<compile_context>
chip_gen: v5e
topology: v5e:2x2
jax: 0.10.0
libtpu: 0.0.40
codegen_flags: <defaults>
</compile_context>

<pallas_src>
import functools

import jax
import jax.numpy as jnp
from jax.experimental import pallas as pl
from jax.experimental.pallas import tpu as pltpu

# --- Config (mirrors the PyTorch Config that matters for Block) ---
N_EMBD = 128
N_HEADS = 4
HEAD_DIM = N_EMBD // N_HEADS          # 32
N_HIDDEN = 4 * N_EMBD                 # 512
LN_EPS = 1e-5
NEG_INF = -1e30                       # finite large-negative: no NaN risk vs -inf


def _layernorm(v, gamma, beta):
    # PyTorch nn.LayerNorm: biased variance, eps inside sqrt.  fp32 math.
    mu = jnp.mean(v, axis=-1, keepdims=True)
    var = jnp.mean((v - mu) ** 2, axis=-1, keepdims=True)
    return (v - mu) * jax.lax.rsqrt(var + LN_EPS) * gamma + beta


def block_kernel(seq_len, x_ref, g1_ref, b1_ref, w_attn_ref, w_aproj_ref,
                 g2_ref, b2_ref, w_fc_ref, w_cproj_ref, o_ref):
    """Fused transformer Block over a tile of rows = batch_per_step * seq_len:
       x = x + WordAttention(ln_1(x)); x = x + MLP(ln_2(x)).
       QKV / MLP matmuls run over the whole (rows, C) tile; attention is
       per-sequence (leading batch dim) so only useful scores are computed."""
    x = x_ref[...]                                     # (R, C) fp32
    rows = x.shape[0]
    n_seq = rows // seq_len                            # folded sequences in this tile

    # ---------------- attention branch ----------------
    h = _layernorm(x, g1_ref[...], b1_ref[...])        # fp32 (R, C)
    qkv = jnp.dot(h.astype(jnp.bfloat16), w_attn_ref[...],
                  preferred_element_type=jnp.float32)  # (R, 3C), f32 accumulate
    qkv = qkv.astype(jnp.bfloat16)

    # Tiny per-sequence causal additive bias, shared by all heads / sequences.
    r = jax.lax.broadcasted_iota(jnp.int32, (seq_len, seq_len), 0)
    c = jax.lax.broadcasted_iota(jnp.int32, (seq_len, seq_len), 1)
    causal_bias = jnp.where(c <= r, 0.0, NEG_INF).astype(jnp.float32)  # (W, W)

    scale = 1.0 / (HEAD_DIM ** 0.5)
    attn = jnp.zeros((rows, N_EMBD), jnp.float32)      # c_proj accumulator (f32)
    for hi in range(N_HEADS):
        q_sl = slice(hi * HEAD_DIM, (hi + 1) * HEAD_DIM)
        k_sl = slice(N_EMBD + hi * HEAD_DIM, N_EMBD + (hi + 1) * HEAD_DIM)
        v_sl = slice(2 * N_EMBD + hi * HEAD_DIM, 2 * N_EMBD + (hi + 1) * HEAD_DIM)
        qh = qkv[:, q_sl].reshape(n_seq, seq_len, HEAD_DIM)   # (BF, W, 32) bf16
        kh = qkv[:, k_sl].reshape(n_seq, seq_len, HEAD_DIM)
        vh = qkv[:, v_sl].reshape(n_seq, seq_len, HEAD_DIM)

        # Per-sequence scores: only the useful (W, W) block per sequence.
        s = jnp.einsum('bqd,bkd->bqk', qh, kh,
                       preferred_element_type=jnp.float32) * scale
        s = s + causal_bias                             # broadcast over sequences
        s = s - jnp.max(s, axis=-1, keepdims=True)
        p = jnp.exp(s)
        p = p * pl.reciprocal(jnp.sum(p, axis=-1, keepdims=True), approx=True)
        pv = jnp.einsum('bqk,bkd->bqd', p.astype(jnp.bfloat16), vh,
                        preferred_element_type=jnp.float32)   # (BF, W, 32) f32

        # Accumulate this head's contribution directly into the c_proj output:
        # sum_h head_out_h @ w_aproj[h*32:(h+1)*32, :]  ==  concat(heads) @ w_aproj.
        attn = attn + jnp.dot(pv.reshape(rows, HEAD_DIM).astype(jnp.bfloat16),
                              w_aproj_ref[q_sl, :],
                              preferred_element_type=jnp.float32)
    # TODO(synk): nn.Dropout is identity in eval mode; not applied here.
    x = x + attn

    # ---------------- MLP branch ----------------
    h2 = _layernorm(x, g2_ref[...], b2_ref[...])       # (R, C) fp32
    fc = jnp.dot(h2.astype(jnp.bfloat16), w_fc_ref[...],
                 preferred_element_type=jnp.float32)   # (R, 4C) fp32
    # Exact GELU (PyTorch nn.GELU default, approximate='none') in fp32.
    gelu = 0.5 * fc * (1.0 + jax.lax.erf(fc * (2.0 ** -0.5)))
    mlp = jnp.dot(gelu.astype(jnp.bfloat16), w_cproj_ref[...],
                  preferred_element_type=jnp.float32)  # (R, C)
    o_ref[...] = x + mlp


def _two_tensorcores():
    """True on chips that shard a 'parallel' grid axis across 2 TensorCores."""
    try:
        kind = jax.devices()[0].device_kind.lower()
    except Exception:
        return False
    return any(t in kind for t in ("v4", "v5p", "v7"))


def _choose_batch_per_step(B, W, two_tc):
    # With per-sequence attention the largest per-step temporaries are the
    # (rows, 4C) fp32 fc/gelu tiles (~2 MiB each at 1024 rows), so a 1024-row
    # cap fits every chip's scoped-VMEM budget with headroom.
    max_rows = 1024
    # Single grid step on 1-TC chips (v5e/v6e): a 2-way grid there is just a
    # serial loop that halves M per matmul.  2 parallel steps only when a
    # second TensorCore exists and B splits evenly.
    target_steps = 2 if (two_tc and B % 2 == 0) else 1
    bps = max(1, B // target_steps)

    def ok(n):
        if n < 1 or B % n:
            return False
        rows = n * W
        aligned = (rows % 8 == 0) or (n == B)   # (8,128) tiling: mult-of-8 rows or full array
        return aligned and rows <= max_rows

    while bps > 1 and not ok(bps):
        bps -= 1
    if not ok(bps):
        bps = B        # full-array block always satisfies the tiling constraint
    return bps


def block_forward(x, params, *, batch_per_step=None):
    B, W, C = x.shape
    assert C == N_EMBD
    g1, b1, w_attn, w_aproj, g2, b2, w_fc, w_cproj = params

    if batch_per_step is None:
        batch_per_step = _choose_batch_per_step(B, W, _two_tensorcores())
    assert B % batch_per_step == 0
    rows = batch_per_step * W
    assert rows % 8 == 0 or batch_per_step == B, "row tile violates (8,128) tiling"
    grid = (B // batch_per_step,)

    x_flat = x.reshape(B * W, C)
    # bf16 weights: native MXU dtype, halves weight DMA bytes.  LN params stay f32.
    w_attn, w_aproj, w_fc, w_cproj = (
        w.astype(jnp.bfloat16) for w in (w_attn, w_aproj, w_fc, w_cproj))

    def full_spec(shape):
        # Entire (small) weight resident in VMEM; same block every grid step.
        return pl.BlockSpec(shape, lambda i: (0,) * len(shape))

    out = pl.pallas_call(
        functools.partial(block_kernel, W),
        out_shape=jax.ShapeDtypeStruct((B * W, C), x.dtype),
        grid_spec=pltpu.PrefetchScalarGridSpec(
            num_scalar_prefetch=0,
            grid=grid,
            in_specs=[
                pl.BlockSpec((rows, C), lambda i: (i, 0)),  # x row tile
                full_spec((1, C)), full_spec((1, C)),       # ln_1 gamma/beta
                full_spec((C, 3 * C)),                      # attn qkv weight
                full_spec((C, C)),                          # attn c_proj weight
                full_spec((1, C)), full_spec((1, C)),       # ln_2 gamma/beta
                full_spec((C, N_HIDDEN)),                   # mlp c_fc weight
                full_spec((N_HIDDEN, C)),                   # mlp c_proj weight
            ],
            out_specs=pl.BlockSpec((rows, C), lambda i: (i, 0)),
        ),
        input_output_aliases={0: 0},   # output overwrites the x buffer (residual form)
        compiler_params=pltpu.CompilerParams(
            dimension_semantics=("parallel",),
            vmem_limit_bytes=32 * 1024 * 1024),
    )(x_flat, g1, b1, w_attn, w_aproj, g2, b2, w_fc, w_cproj)
    return out.reshape(B, W, C)


def init_params(key):
    ks = jax.random.split(key, 4)
    scale = 0.02
    g1 = jnp.ones((1, N_EMBD), jnp.float32)
    b1 = jnp.zeros((1, N_EMBD), jnp.float32)
    g2 = jnp.ones((1, N_EMBD), jnp.float32)
    b2 = jnp.zeros((1, N_EMBD), jnp.float32)
    w_attn = scale * jax.random.normal(ks[0], (N_EMBD, 3 * N_EMBD), jnp.float32)
    w_aproj = scale * jax.random.normal(ks[1], (N_EMBD, N_EMBD), jnp.float32)
    w_fc = scale * jax.random.normal(ks[2], (N_EMBD, N_HIDDEN), jnp.float32)
    w_cproj = scale * jax.random.normal(ks[3], (N_HIDDEN, N_EMBD), jnp.float32)
    return (g1, b1, w_attn, w_aproj, g2, b2, w_fc, w_cproj)


def block_reference(x, params):
    """Pure-JAX fp32 reference of the PyTorch Block forward (dropout = eval/identity)."""
    g1, b1, w_attn, w_aproj, g2, b2, w_fc, w_cproj = params
    B, W, C = x.shape

    def ln(v, g, b):
        mu = jnp.mean(v, axis=-1, keepdims=True)
        var = jnp.mean((v - mu) ** 2, axis=-1, keepdims=True)
        return (v - mu) / jnp.sqrt(var + LN_EPS) * g + b

    h = ln(x, g1, b1)
    qkv = h @ w_attn
    q, k, v = jnp.split(qkv, 3, axis=-1)
    q = q.reshape(B, W, N_HEADS, HEAD_DIM).transpose(0, 2, 1, 3)
    k = k.reshape(B, W, N_HEADS, HEAD_DIM).transpose(0, 2, 1, 3)
    v = v.reshape(B, W, N_HEADS, HEAD_DIM).transpose(0, 2, 1, 3)
    s = jnp.einsum('bhqd,bhkd->bhqk', q, k) / (HEAD_DIM ** 0.5)
    mask = jnp.tril(jnp.ones((W, W), bool))
    s = jnp.where(mask, s, -jnp.inf)
    p = jax.nn.softmax(s, axis=-1)
    o = jnp.einsum('bhqk,bhkd->bhqd', p, v).transpose(0, 2, 1, 3).reshape(B, W, C)
    x = x + o @ w_aproj
    h2 = ln(x, g2, b2)
    fc = h2 @ w_fc
    gelu = 0.5 * fc * (1.0 + jax.lax.erf(fc / jnp.sqrt(2.0)))
    x = x + gelu @ w_cproj
    return x


if __name__ == "__main__":
    key = jax.random.PRNGKey(0)
    k_x, k_p = jax.random.split(key)
    B, W = 8, 16                              # config.batch_size, config.w_block_size
    x = jax.random.normal(k_x, (B, W, N_EMBD), jnp.float32)
    params = init_params(k_p)

    ref = block_reference(x, params)          # compute fp32 reference first

    out = block_forward(x, params)
    out = jax.block_until_ready(out)

    assert out.shape == (B, W, N_EMBD)
    # bf16 MXU operands (fp32 accumulate) => looser tolerance than pure fp32.
    assert jnp.allclose(out, ref, atol=2e-2, rtol=2e-2), "mismatch vs reference"
    print("KERNEL_OK")
</pallas_src>

<mosaic_0001>
module attributes {stable_mosaic.version = 11 : i64} {
  func.func @block_kernel(%arg0: i32, %arg1: memref<128x128xf32, #tpu.memory_space<vmem>>, %arg2: memref<1x128xf32, #tpu.memory_space<vmem>>, %arg3: memref<1x128xf32, #tpu.memory_space<vmem>>, %arg4: memref<128x384xbf16, #tpu.memory_space<vmem>>, %arg5: memref<128x128xbf16, #tpu.memory_space<vmem>>, %arg6: memref<1x128xf32, #tpu.memory_space<vmem>>, %arg7: memref<1x128xf32, #tpu.memory_space<vmem>>, %arg8: memref<128x512xbf16, #tpu.memory_space<vmem>>, %arg9: memref<512x128xbf16, #tpu.memory_space<vmem>>, %arg10: memref<128x128xf32, #tpu.memory_space<vmem>>) attributes {dimension_semantics = [#tpu.dimension_semantics<parallel>], iteration_bounds = array<i64: 1>, scalar_prefetch = 0 : i64, scratch_operands = 0 : i64, tpu.core_type = #tpu.core_type<tc>, window_params = [{transform_indices = @transform_0, window_bounds = array<i64: 128, 128>}, {pipeline_mode = #tpu.pipeline_mode<synchronous>, transform_indices = @transform_1, window_bounds = array<i64: 1, 128>}, {pipeline_mode = #tpu.pipeline_mode<synchronous>, transform_indices = @transform_2, window_bounds = array<i64: 1, 128>}, {pipeline_mode = #tpu.pipeline_mode<synchronous>, transform_indices = @transform_3, window_bounds = array<i64: 128, 384>}, {pipeline_mode = #tpu.pipeline_mode<synchronous>, transform_indices = @transform_4, window_bounds = array<i64: 128, 128>}, {pipeline_mode = #tpu.pipeline_mode<synchronous>, transform_indices = @transform_5, window_bounds = array<i64: 1, 128>}, {pipeline_mode = #tpu.pipeline_mode<synchronous>, transform_indices = @transform_6, window_bounds = array<i64: 1, 128>}, {pipeline_mode = #tpu.pipeline_mode<synchronous>, transform_indices = @transform_7, window_bounds = array<i64: 128, 512>}, {pipeline_mode = #tpu.pipeline_mode<synchronous>, transform_indices = @transform_8, window_bounds = array<i64: 512, 128>}, {transform_indices = @transform_9, window_bounds = array<i64: 128, 128>}]} {
    %c0 = arith.constant 0 : index
    %c0_0 = arith.constant 0 : index
    %0 = vector.load %arg1[%c0, %c0_0] : memref<128x128xf32, #tpu.memory_space<vmem>>, vector<128x128xf32>
    %c0_1 = arith.constant 0 : index
    %c0_2 = arith.constant 0 : index
    %1 = vector.load %arg2[%c0_1, %c0_2] : memref<1x128xf32, #tpu.memory_space<vmem>>, vector<1x128xf32>
    %c0_3 = arith.constant 0 : index
    %c0_4 = arith.constant 0 : index
    %2 = vector.load %arg3[%c0_3, %c0_4] : memref<1x128xf32, #tpu.memory_space<vmem>>, vector<1x128xf32>
    %cst = arith.constant dense<0.000000e+00> : vector<128xf32>
    %3 = vector.multi_reduction <add>, %0, %cst [1] : vector<128x128xf32> to vector<128xf32>
    %4 = vector.shape_cast %3 : vector<128xf32> to vector<128x1xf32>
    %cst_5 = arith.constant 1.280000e+02 : f32
    %5 = vector.broadcast %cst_5 : f32 to vector<128x1xf32>
    %6 = arith.divf %4, %5 : vector<128x1xf32>
    %7 = vector.broadcast %6 : vector<128x1xf32> to vector<128x128xf32>
    %8 = arith.subf %0, %7 : vector<128x128xf32>
    %9 = arith.mulf %8, %8 : vector<128x128xf32>
    %cst_6 = arith.constant dense<0.000000e+00> : vector<128xf32>
    %10 = vector.multi_reduction <add>, %9, %cst_6 [1] : vector<128x128xf32> to vector<128xf32>
    %11 = vector.shape_cast %10 : vector<128xf32> to vector<128x1xf32>
    %cst_7 = arith.constant 1.280000e+02 : f32
    %12 = vector.broadcast %cst_7 : f32 to vector<128x1xf32>
    %13 = arith.divf %11, %12 : vector<128x1xf32>
    %14 = vector.broadcast %6 : vector<128x1xf32> to vector<128x128xf32>
    %15 = arith.subf %0, %14 : vector<128x128xf32>
    %cst_8 = arith.constant 9.99999974E-6 : f32
    %16 = vector.broadcast %cst_8 : f32 to vector<128x1xf32>
    %17 = arith.addf %13, %16 : vector<128x1xf32>
    %18 = math.rsqrt %17 : vector<128x1xf32>
    %19 = vector.broadcast %18 : vector<128x1xf32> to vector<128x128xf32>
    %20 = arith.mulf %15, %19 : vector<128x128xf32>
    %21 = vector.broadcast %1 : vector<1x128xf32> to vector<128x128xf32>
    %22 = arith.mulf %20, %21 : vector<128x128xf32>
    %23 = vector.broadcast %2 : vector<1x128xf32> to vector<128x128xf32>
    %24 = arith.addf %22, %23 : vector<128x128xf32>
    %25 = arith.truncf %24 : vector<128x128xf32> to vector<128x128xbf16>
    %c0_9 = arith.constant 0 : index
    %c0_10 = arith.constant 0 : index
    %26 = vector.load %arg4[%c0_9, %c0_10] : memref<128x384xbf16, #tpu.memory_space<vmem>>, vector<128x384xbf16>
    %cst_11 = arith.constant dense<0.000000e+00> : vector<128x384xf32>
    %27 = tpu.matmul %25, %26, %cst_11 {dimension_numbers = #tpu.dot_dimension_numbers<[1], [0], [0], [1], [0, 0, 1, 1], [], []>} : vector<128x128xbf16>, vector<128x384xbf16>, vector<128x384xf32> -> vector<128x384xf32>
    %28 = arith.truncf %27 : vector<128x384xf32> to vector<128x384xbf16>
    %29 = tpu.iota {dimensions = array<i32: 0>} : vector<16x16xi32>
    %30 = tpu.iota {dimensions = array<i32: 1>} : vector<16x16xi32>
    %31 = arith.cmpi sle, %30, %29 : vector<16x16xi32>
    %cst_12 = arith.constant 0.000000e+00 : f32
    %cst_13 = arith.constant -1.000000e+30 : f32
    %32 = vector.broadcast %cst_12 : f32 to vector<16x16xf32>
    %33 = vector.broadcast %cst_13 : f32 to vector<16x16xf32>
    %34 = arith.select %31, %32, %33 : vector<16x16xi1>, vector<16x16xf32>
    %cst_14 = arith.constant 0.000000e+00 : f32
    %35 = vector.broadcast %cst_14 : f32 to vector<128x128xf32>
    %36 = vector.extract_strided_slice %28 {offsets = [0, 0], sizes = [128, 32], strides = [1, 1]} : vector<128x384xbf16> to vector<128x32xbf16>
    %37 = vector.shape_cast %36 : vector<128x32xbf16> to vector<8x16x32xbf16>
    %38 = vector.extract_strided_slice %28 {offsets = [0, 128], sizes = [128, 32], strides = [1, 1]} : vector<128x384xbf16> to vector<128x32xbf16>
    %39 = vector.shape_cast %38 : vector<128x32xbf16> to vector<8x16x32xbf16>
    %40 = vector.extract_strided_slice %28 {offsets = [0, 256], sizes = [128, 32], strides = [1, 1]} : vector<128x384xbf16> to vector<128x32xbf16>
    %41 = vector.shape_cast %40 : vector<128x32xbf16> to vector<8x16x32xbf16>
    "tpu.trace_start"() <{level = 10 : i32, message = "bqd,bkd->bqk"}> : () -> ()
    %cst_15 = arith.constant dense<0.000000e+00> : vector<8x16x16xf32>
    %42 = tpu.matmul %37, %39, %cst_15 {dimension_numbers = #tpu.dot_dimension_numbers<[2], [2], [1], [1], [0, 0, 0, 1, 1, 1], [0], [0]>} : vector<8x16x32xbf16>, vector<8x16x32xbf16>, vector<8x16x16xf32> -> vector<8x16x16xf32>
    "tpu.trace_stop"() : () -> ()
    %cst_16 = arith.constant 0.176776692 : f32
    %43 = vector.broadcast %cst_16 : f32 to vector<8x16x16xf32>
    %44 = arith.mulf %42, %43 : vector<8x16x16xf32>
    %45 = vector.shape_cast %34 : vector<16x16xf32> to vector<1x16x16xf32>
    %46 = vector.broadcast %45 : vector<1x16x16xf32> to vector<8x16x16xf32>
    %47 = arith.addf %44, %46 : vector<8x16x16xf32>
    %cst_17 = arith.constant dense<0xFF800000> : vector<8x16xf32>
    %48 = vector.multi_reduction <maximumf>, %47, %cst_17 [2] : vector<8x16x16xf32> to vector<8x16xf32>
    %49 = vector.shape_cast %48 : vector<8x16xf32> to vector<8x16x1xf32>
    %50 = vector.broadcast %49 : vector<8x16x1xf32> to vector<8x16x16xf32>
    %51 = arith.subf %47, %50 : vector<8x16x16xf32>
    %52 = math.exp %51 : vector<8x16x16xf32>
    %cst_18 = arith.constant dense<0.000000e+00> : vector<8x16xf32>
    %53 = vector.multi_reduction <add>, %52, %cst_18 [2] : vector<8x16x16xf32> to vector<8x16xf32>
    %54 = vector.shape_cast %53 : vector<8x16xf32> to vector<8x16x1xf32>
    %55 = tpu.reciprocal %54 {approx = true} : vector<8x16x1xf32> -> vector<8x16x1xf32>
    %56 = vector.broadcast %55 : vector<8x16x1xf32> to vector<8x16x16xf32>
    %57 = arith.mulf %52, %56 : vector<8x16x16xf32>
    %58 = arith.truncf %57 : vector<8x16x16xf32> to vector<8x16x16xbf16>
    "tpu.trace_start"() <{level = 10 : i32, message = "bqk,bkd->bqd"}> : () -> ()
    %cst_19 = arith.constant dense<0.000000e+00> : vector<8x16x32xf32>
    %59 = tpu.matmul %58, %41, %cst_19 {dimension_numbers = #tpu.dot_dimension_numbers<[2], [1], [1], [2], [0, 0, 0, 1, 1, 2], [0], [0]>} : vector<8x16x16xbf16>, vector<8x16x32xbf16>, vector<8x16x32xf32> -> vector<8x16x32xf32>
    "tpu.trace_stop"() : () -> ()
    %60 = vector.shape_cast %59 : vector<8x16x32xf32> to vector<128x32xf32>
    %61 = arith.truncf %60 : vector<128x32xf32> to vector<128x32xbf16>
    %c0_20 = arith.constant 0 : index
    %c0_21 = arith.constant 0 : index
    %62 = vector.load %arg5[%c0_20, %c0_21] : memref<128x128xbf16, #tpu.memory_space<vmem>>, vector<32x128xbf16>
    %cst_22 = arith.constant dense<0.000000e+00> : vector<128x128xf32>
    %63 = tpu.matmul %61, %62, %cst_22 {dimension_numbers = #tpu.dot_dimension_numbers<[1], [0], [0], [1], [0, 0, 1, 1], [], []>} : vector<128x32xbf16>, vector<32x128xbf16>, vector<128x128xf32> -> vector<128x128xf32>
    %64 = arith.addf %35, %63 : vector<128x128xf32>
    %65 = vector.extract_strided_slice %28 {offsets = [0, 32], sizes = [128, 32], strides = [1, 1]} : vector<128x384xbf16> to vector<128x32xbf16>
    %66 = vector.shape_cast %65 : vector<128x32xbf16> to vector<8x16x32xbf16>
    %67 = vector.extract_strided_slice %28 {offsets = [0, 160], sizes = [128, 32], strides = [1, 1]} : vector<128x384xbf16> to vector<128x32xbf16>
    %68 = vector.shape_cast %67 : vector<128x32xbf16> to vector<8x16x32xbf16>
    %69 = vector.extract_strided_slice %28 {offsets = [0, 288], sizes = [128, 32], strides = [1, 1]} : vector<128x384xbf16> to vector<128x32xbf16>
    %70 = vector.shape_cast %69 : vector<128x32xbf16> to vector<8x16x32xbf16>
    "tpu.trace_start"() <{level = 10 : i32, message = "bqd,bkd->bqk"}> : () -> ()
    %cst_23 = arith.constant dense<0.000000e+00> : vector<8x16x16xf32>
    %71 = tpu.matmul %66, %68, %cst_23 {dimension_numbers = #tpu.dot_dimension_numbers<[2], [2], [1], [1], [0, 0, 0, 1, 1, 1], [0], [0]>} : vector<8x16x32xbf16>, vector<8x16x32xbf16>, vector<8x16x16xf32> -> vector<8x16x16xf32>
    "tpu.trace_stop"() : () -> ()
    %cst_24 = arith.constant 0.176776692 : f32
    %72 = vector.broadcast %cst_24 : f32 to vector<8x16x16xf32>
    %73 = arith.mulf %71, %72 : vector<8x16x16xf32>
    %74 = vector.shape_cast %34 : vector<16x16xf32> to vector<1x16x16xf32>
    %75 = vector.broadcast %74 : vector<1x16x16xf32> to vector<8x16x16xf32>
    %76 = arith.addf %73, %75 : vector<8x16x16xf32>
    %cst_25 = arith.constant dense<0xFF800000> : vector<8x16xf32>
    %77 = vector.multi_reduction <maximumf>, %76, %cst_25 [2] : vector<8x16x16xf32> to vector<8x16xf32>
    %78 = vector.shape_cast %77 : vector<8x16xf32> to vector<8x16x1xf32>
    %79 = vector.broadcast %78 : vector<8x16x1xf32> to vector<8x16x16xf32>
    %80 = arith.subf %76, %79 : vector<8x16x16xf32>
    %81 = math.exp %80 : vector<8x16x16xf32>
    %cst_26 = arith.constant dense<0.000000e+00> : vector<8x16xf32>
    %82 = vector.multi_reduction <add>, %81, %cst_26 [2] : vector<8x16x16xf32> to vector<8x16xf32>
    %83 = vector.shape_cast %82 : vector<8x16xf32> to vector<8x16x1xf32>
    %84 = tpu.reciprocal %83 {approx = true} : vector<8x16x1xf32> -> vector<8x16x1xf32>
    %85 = vector.broadcast %84 : vector<8x16x1xf32> to vector<8x16x16xf32>
    %86 = arith.mulf %81, %85 : vector<8x16x16xf32>
    %87 = arith.truncf %86 : vector<8x16x16xf32> to vector<8x16x16xbf16>
    "tpu.trace_start"() <{level = 10 : i32, message = "bqk,bkd->bqd"}> : () -> ()
    %cst_27 = arith.constant dense<0.000000e+00> : vector<8x16x32xf32>
    %88 = tpu.matmul %87, %70, %cst_27 {dimension_numbers = #tpu.dot_dimension_numbers<[2], [1], [1], [2], [0, 0, 0, 1, 1, 2], [0], [0]>} : vector<8x16x16xbf16>, vector<8x16x32xbf16>, vector<8x16x32xf32> -> vector<8x16x32xf32>
    "tpu.trace_stop"() : () -> ()
    %89 = vector.shape_cast %88 : vector<8x16x32xf32> to vector<128x32xf32>
    %90 = arith.truncf %89 : vector<128x32xf32> to vector<128x32xbf16>
    %c32 = arith.constant 32 : index
    %c0_28 = arith.constant 0 : index
    %91 = vector.load %arg5[%c32, %c0_28] : memref<128x128xbf16, #tpu.memory_space<vmem>>, vector<32x128xbf16>
    %cst_29 = arith.constant dense<0.000000e+00> : vector<128x128xf32>
    %92 = tpu.matmul %90, %91, %cst_29 {dimension_numbers = #tpu.dot_dimension_numbers<[1], [0], [0], [1], [0, 0, 1, 1], [], []>} : vector<128x32xbf16>, vector<32x128xbf16>, vector<128x128xf32> -> vector<128x128xf32>
    %93 = arith.addf %64, %92 : vector<128x128xf32>
    %94 = vector.extract_strided_slice %28 {offsets = [0, 64], sizes = [128, 32], strides = [1, 1]} : vector<128x384xbf16> to vector<128x32xbf16>
    %95 = vector.shape_cast %94 : vector<128x32xbf16> to vector<8x16x32xbf16>
    %96 = vector.extract_strided_slice %28 {offsets = [0, 192], sizes = [128, 32], strides = [1, 1]} : vector<128x384xbf16> to vector<128x32xbf16>
    %97 = vector.shape_cast %96 : vector<128x32xbf16> to vector<8x16x32xbf16>
    %98 = vector.extract_strided_slice %28 {offsets = [0, 320], sizes = [128, 32], strides = [1, 1]} : vector<128x384xbf16> to vector<128x32xbf16>
    %99 = vector.shape_cast %98 : vector<128x32xbf16> to vector<8x16x32xbf16>
    "tpu.trace_start"() <{level = 10 : i32, message = "bqd,bkd->bqk"}> : () -> ()
    %cst_30 = arith.constant dense<0.000000e+00> : vector<8x16x16xf32>
    %100 = tpu.matmul %95, %97, %cst_30 {dimension_numbers = #tpu.dot_dimension_numbers<[2], [2], [1], [1], [0, 0, 0, 1, 1, 1], [0], [0]>} : vector<8x16x32xbf16>, vector<8x16x32xbf16>, vector<8x16x16xf32> -> vector<8x16x16xf32>
    "tpu.trace_stop"() : () -> ()
    %cst_31 = arith.constant 0.176776692 : f32
    %101 = vector.broadcast %cst_31 : f32 to vector<8x16x16xf32>
    %102 = arith.mulf %100, %101 : vector<8x16x16xf32>
    %103 = vector.shape_cast %34 : vector<16x16xf32> to vector<1x16x16xf32>
    %104 = vector.broadcast %103 : vector<1x16x16xf32> to vector<8x16x16xf32>
    %105 = arith.addf %102, %104 : vector<8x16x16xf32>
    %cst_32 = arith.constant dense<0xFF800000> : vector<8x16xf32>
    %106 = vector.multi_reduction <maximumf>, %105, %cst_32 [2] : vector<8x16x16xf32> to vector<8x16xf32>
    %107 = vector.shape_cast %106 : vector<8x16xf32> to vector<8x16x1xf32>
    %108 = vector.broadcast %107 : vector<8x16x1xf32> to vector<8x16x16xf32>
    %109 = arith.subf %105, %108 : vector<8x16x16xf32>
    %110 = math.exp %109 : vector<8x16x16xf32>
    %cst_33 = arith.constant dense<0.000000e+00> : vector<8x16xf32>
    %111 = vector.multi_reduction <add>, %110, %cst_33 [2] : vector<8x16x16xf32> to vector<8x16xf32>
    %112 = vector.shape_cast %111 : vector<8x16xf32> to vector<8x16x1xf32>
    %113 = tpu.reciprocal %112 {approx = true} : vector<8x16x1xf32> -> vector<8x16x1xf32>
    %114 = vector.broadcast %113 : vector<8x16x1xf32> to vector<8x16x16xf32>
    %115 = arith.mulf %110, %114 : vector<8x16x16xf32>
    %116 = arith.truncf %115 : vector<8x16x16xf32> to vector<8x16x16xbf16>
    "tpu.trace_start"() <{level = 10 : i32, message = "bqk,bkd->bqd"}> : () -> ()
    %cst_34 = arith.constant dense<0.000000e+00> : vector<8x16x32xf32>
    %117 = tpu.matmul %116, %99, %cst_34 {dimension_numbers = #tpu.dot_dimension_numbers<[2], [1], [1], [2], [0, 0, 0, 1, 1, 2], [0], [0]>} : vector<8x16x16xbf16>, vector<8x16x32xbf16>, vector<8x16x32xf32> -> vector<8x16x32xf32>
    "tpu.trace_stop"() : () -> ()
    %118 = vector.shape_cast %117 : vector<8x16x32xf32> to vector<128x32xf32>
    %119 = arith.truncf %118 : vector<128x32xf32> to vector<128x32xbf16>
    %c64 = arith.constant 64 : index
    %c0_35 = arith.constant 0 : index
    %120 = vector.load %arg5[%c64, %c0_35] : memref<128x128xbf16, #tpu.memory_space<vmem>>, vector<32x128xbf16>
    %cst_36 = arith.constant dense<0.000000e+00> : vector<128x128xf32>
    %121 = tpu.matmul %119, %120, %cst_36 {dimension_numbers = #tpu.dot_dimension_numbers<[1], [0], [0], [1], [0, 0, 1, 1], [], []>} : vector<128x32xbf16>, vector<32x128xbf16>, vector<128x128xf32> -> vector<128x128xf32>
    %122 = arith.addf %93, %121 : vector<128x128xf32>
    %123 = vector.extract_strided_slice %28 {offsets = [0, 96], sizes = [128, 32], strides = [1, 1]} : vector<128x384xbf16> to vector<128x32xbf16>
    %124 = vector.shape_cast %123 : vector<128x32xbf16> to vector<8x16x32xbf16>
    %125 = vector.extract_strided_slice %28 {offsets = [0, 224], sizes = [128, 32], strides = [1, 1]} : vector<128x384xbf16> to vector<128x32xbf16>
    %126 = vector.shape_cast %125 : vector<128x32xbf16> to vector<8x16x32xbf16>
    %127 = vector.extract_strided_slice %28 {offsets = [0, 352], sizes = [128, 32], strides = [1, 1]} : vector<128x384xbf16> to vector<128x32xbf16>
    %128 = vector.shape_cast %127 : vector<128x32xbf16> to vector<8x16x32xbf16>
    "tpu.trace_start"() <{level = 10 : i32, message = "bqd,bkd->bqk"}> : () -> ()
    %cst_37 = arith.constant dense<0.000000e+00> : vector<8x16x16xf32>
    %129 = tpu.matmul %124, %126, %cst_37 {dimension_numbers = #tpu.dot_dimension_numbers<[2], [2], [1], [1], [0, 0, 0, 1, 1, 1], [0], [0]>} : vector<8x16x32xbf16>, vector<8x16x32xbf16>, vector<8x16x16xf32> -> vector<8x16x16xf32>
    "tpu.trace_stop"() : () -> ()
    %cst_38 = arith.constant 0.176776692 : f32
    %130 = vector.broadcast %cst_38 : f32 to vector<8x16x16xf32>
    %131 = arith.mulf %129, %130 : vector<8x16x16xf32>
    %132 = vector.shape_cast %34 : vector<16x16xf32> to vector<1x16x16xf32>
    %133 = vector.broadcast %132 : vector<1x16x16xf32> to vector<8x16x16xf32>
    %134 = arith.addf %131, %133 : vector<8x16x16xf32>
    %cst_39 = arith.constant dense<0xFF800000> : vector<8x16xf32>
    %135 = vector.multi_reduction <maximumf>, %134, %cst_39 [2] : vector<8x16x16xf32> to vector<8x16xf32>
    %136 = vector.shape_cast %135 : vector<8x16xf32> to vector<8x16x1xf32>
    %137 = vector.broadcast %136 : vector<8x16x1xf32> to vector<8x16x16xf32>
    %138 = arith.subf %134, %137 : vector<8x16x16xf32>
    %139 = math.exp %138 : vector<8x16x16xf32>
    %cst_40 = arith.constant dense<0.000000e+00> : vector<8x16xf32>
    %140 = vector.multi_reduction <add>, %139, %cst_40 [2] : vector<8x16x16xf32> to vector<8x16xf32>
    %141 = vector.shape_cast %140 : vector<8x16xf32> to vector<8x16x1xf32>
    %142 = tpu.reciprocal %141 {approx = true} : vector<8x16x1xf32> -> vector<8x16x1xf32>
    %143 = vector.broadcast %142 : vector<8x16x1xf32> to vector<8x16x16xf32>
    %144 = arith.mulf %139, %143 : vector<8x16x16xf32>
    %145 = arith.truncf %144 : vector<8x16x16xf32> to vector<8x16x16xbf16>
    "tpu.trace_start"() <{level = 10 : i32, message = "bqk,bkd->bqd"}> : () -> ()
    %cst_41 = arith.constant dense<0.000000e+00> : vector<8x16x32xf32>
    %146 = tpu.matmul %145, %128, %cst_41 {dimension_numbers = #tpu.dot_dimension_numbers<[2], [1], [1], [2], [0, 0, 0, 1, 1, 2], [0], [0]>} : vector<8x16x16xbf16>, vector<8x16x32xbf16>, vector<8x16x32xf32> -> vector<8x16x32xf32>
    "tpu.trace_stop"() : () -> ()
    %147 = vector.shape_cast %146 : vector<8x16x32xf32> to vector<128x32xf32>
    %148 = arith.truncf %147 : vector<128x32xf32> to vector<128x32xbf16>
    %c96 = arith.constant 96 : index
    %c0_42 = arith.constant 0 : index
    %149 = vector.load %arg5[%c96, %c0_42] : memref<128x128xbf16, #tpu.memory_space<vmem>>, vector<32x128xbf16>
    %cst_43 = arith.constant dense<0.000000e+00> : vector<128x128xf32>
    %150 = tpu.matmul %148, %149, %cst_43 {dimension_numbers = #tpu.dot_dimension_numbers<[1], [0], [0], [1], [0, 0, 1, 1], [], []>} : vector<128x32xbf16>, vector<32x128xbf16>, vector<128x128xf32> -> vector<128x128xf32>
    %151 = arith.addf %122, %150 : vector<128x128xf32>
    %152 = arith.addf %0, %151 : vector<128x128xf32>
    %c0_44 = arith.constant 0 : index
    %c0_45 = arith.constant 0 : index
    %153 = vector.load %arg6[%c0_44, %c0_45] : memref<1x128xf32, #tpu.memory_space<vmem>>, vector<1x128xf32>
    %c0_46 = arith.constant 0 : index
    %c0_47 = arith.constant 0 : index
    %154 = vector.load %arg7[%c0_46, %c0_47] : memref<1x128xf32, #tpu.memory_space<vmem>>, vector<1x128xf32>
    %cst_48 = arith.constant dense<0.000000e+00> : vector<128xf32>
    %155 = vector.multi_reduction <add>, %152, %cst_48 [1] : vector<128x128xf32> to vector<128xf32>
    %156 = vector.shape_cast %155 : vector<128xf32> to vector<128x1xf32>
    %cst_49 = arith.constant 1.280000e+02 : f32
    %157 = vector.broadcast %cst_49 : f32 to vector<128x1xf32>
    %158 = arith.divf %156, %157 : vector<128x1xf32>
    %159 = vector.broadcast %158 : vector<128x1xf32> to vector<128x128xf32>
    %160 = arith.subf %152, %159 : vector<128x128xf32>
    %161 = arith.mulf %160, %160 : vector<128x128xf32>
    %cst_50 = arith.constant dense<0.000000e+00> : vector<128xf32>
    %162 = vector.multi_reduction <add>, %161, %cst_50 [1] : vector<128x128xf32> to vector<128xf32>
    %163 = vector.shape_cast %162 : vector<128xf32> to vector<128x1xf32>
    %cst_51 = arith.constant 1.280000e+02 : f32
    %164 = vector.broadcast %cst_51 : f32 to vector<128x1xf32>
    %165 = arith.divf %163, %164 : vector<128x1xf32>
    %166 = vector.broadcast %158 : vector<128x1xf32> to vector<128x128xf32>
    %167 = arith.subf %152, %166 : vector<128x128xf32>
    %cst_52 = arith.constant 9.99999974E-6 : f32
    %168 = vector.broadcast %cst_52 : f32 to vector<128x1xf32>
    %169 = arith.addf %165, %168 : vector<128x1xf32>
    %170 = math.rsqrt %169 : vector<128x1xf32>
    %171 = vector.broadcast %170 : vector<128x1xf32> to vector<128x128xf32>
    %172 = arith.mulf %167, %171 : vector<128x128xf32>
    %173 = vector.broadcast %153 : vector<1x128xf32> to vector<128x128xf32>
    %174 = arith.mulf %172, %173 : vector<128x128xf32>
    %175 = vector.broadcast %154 : vector<1x128xf32> to vector<128x128xf32>
    %176 = arith.addf %174, %175 : vector<128x128xf32>
    %177 = arith.truncf %176 : vector<128x128xf32> to vector<128x128xbf16>
    %c0_53 = arith.constant 0 : index
    %c0_54 = arith.constant 0 : index
    %178 = vector.load %arg8[%c0_53, %c0_54] : memref<128x512xbf16, #tpu.memory_space<vmem>>, vector<128x512xbf16>
    %cst_55 = arith.constant dense<0.000000e+00> : vector<128x512xf32>
    %179 = tpu.matmul %177, %178, %cst_55 {dimension_numbers = #tpu.dot_dimension_numbers<[1], [0], [0], [1], [0, 0, 1, 1], [], []>} : vector<128x128xbf16>, vector<128x512xbf16>, vector<128x512xf32> -> vector<128x512xf32>
    %cst_56 = arith.constant 5.000000e-01 : f32
    %180 = vector.broadcast %cst_56 : f32 to vector<128x512xf32>
    %181 = arith.mulf %180, %179 : vector<128x512xf32>
    %cst_57 = arith.constant 0.707106769 : f32
    %182 = vector.broadcast %cst_57 : f32 to vector<128x512xf32>
    %183 = arith.mulf %179, %182 : vector<128x512xf32>
    %184 = math.erf %183 : vector<128x512xf32>
    %cst_58 = arith.constant 1.000000e+00 : f32
    %185 = vector.broadcast %cst_58 : f32 to vector<128x512xf32>
    %186 = arith.addf %185, %184 : vector<128x512xf32>
    %187 = arith.mulf %181, %186 : vector<128x512xf32>
    %188 = arith.truncf %187 : vector<128x512xf32> to vector<128x512xbf16>
    %c0_59 = arith.constant 0 : index
    %c0_60 = arith.constant 0 : index
    %189 = vector.load %arg9[%c0_59, %c0_60] : memref<512x128xbf16, #tpu.memory_space<vmem>>, vector<512x128xbf16>
    %cst_61 = arith.constant dense<0.000000e+00> : vector<128x128xf32>
    %190 = tpu.matmul %188, %189, %cst_61 {dimension_numbers = #tpu.dot_dimension_numbers<[1], [0], [0], [1], [0, 0, 1, 1], [], []>} : vector<128x512xbf16>, vector<512x128xbf16>, vector<128x128xf32> -> vector<128x128xf32>
    %191 = arith.addf %152, %190 : vector<128x128xf32>
    %c0_62 = arith.constant 0 : index
    %c0_63 = arith.constant 0 : index
    %192 = vector.load %arg10[%c0_62, %c0_63] : memref<128x128xf32, #tpu.memory_space<vmem>>, vector<128x128xf32>
    tpu.vector_store %arg10[%c0_62, %c0_63], %191 {strides = array<i32>} : memref<128x128xf32, #tpu.memory_space<vmem>>, vector<128x128xf32>,
    return
  }
  func.func @transform_0(%arg0: i32) -> (i32, i32) {
    %c0_i32 = arith.constant 0 : i32
    %c0_i32_0 = arith.constant 0 : i32
    return %arg0, %c0_i32 : i32, i32
  }
  func.func @transform_1(%arg0: i32) -> (i32, i32) {
    %c0_i32 = arith.constant 0 : i32
    %c0_i32_0 = arith.constant 0 : i32
    %c0_i32_1 = arith.constant 0 : i32
    return %c0_i32, %c0_i32_0 : i32, i32
  }
  func.func @transform_2(%arg0: i32) -> (i32, i32) {
    %c0_i32 = arith.constant 0 : i32
    %c0_i32_0 = arith.constant 0 : i32
    %c0_i32_1 = arith.constant 0 : i32
    return %c0_i32, %c0_i32_0 : i32, i32
  }
  func.func @transform_3(%arg0: i32) -> (i32, i32) {
    %c0_i32 = arith.constant 0 : i32
    %c0_i32_0 = arith.constant 0 : i32
    %c0_i32_1 = arith.constant 0 : i32
    return %c0_i32, %c0_i32_0 : i32, i32
  }
  func.func @transform_4(%arg0: i32) -> (i32, i32) {
    %c0_i32 = arith.constant 0 : i32
    %c0_i32_0 = arith.constant 0 : i32
    %c0_i32_1 = arith.constant 0 : i32
    return %c0_i32, %c0_i32_0 : i32, i32
  }
  func.func @transform_5(%arg0: i32) -> (i32, i32) {
    %c0_i32 = arith.constant 0 : i32
    %c0_i32_0 = arith.constant 0 : i32
    %c0_i32_1 = arith.constant 0 : i32
    return %c0_i32, %c0_i32_0 : i32, i32
  }
  func.func @transform_6(%arg0: i32) -> (i32, i32) {
    %c0_i32 = arith.constant 0 : i32
    %c0_i32_0 = arith.constant 0 : i32
    %c0_i32_1 = arith.constant 0 : i32
    return %c0_i32, %c0_i32_0 : i32, i32
  }
  func.func @transform_7(%arg0: i32) -> (i32, i32) {
    %c0_i32 = arith.constant 0 : i32
    %c0_i32_0 = arith.constant 0 : i32
    %c0_i32_1 = arith.constant 0 : i32
    return %c0_i32, %c0_i32_0 : i32, i32
  }
  func.func @transform_8(%arg0: i32) -> (i32, i32) {
    %c0_i32 = arith.constant 0 : i32
    %c0_i32_0 = arith.constant 0 : i32
    %c0_i32_1 = arith.constant 0 : i32
    return %c0_i32, %c0_i32_0 : i32, i32
  }
  func.func @transform_9(%arg0: i32) -> (i32, i32) {
    %c0_i32 = arith.constant 0 : i32
    %c0_i32_0 = arith.constant 0 : i32
    return %arg0, %c0_i32 : i32, i32
  }
}

</mosaic_0001>

<bundles_post_ra>
// kernel: tpu_custom_call.1
= control target key start
LH: loop header
LB: loop body
LE: loop exit
PB: predicated region body
PF: predicated region fallthrough
CT: control target
= control target key end

     0   :  { %14 = vsyncpa [#allocation3], 0  ;;  %s15360_s0 = inlined_call_operand.hbm [shape: f32[128,128], index: 0, kind: input, shape index: {}, may-alias: {0,9}]   ;;  %s15361_s1 = inlined_call_operand.vmem [shape: f32[1,128], index: 1, kind: input, shape index: {}]   ;;  %s15362_s2 = inlined_call_operand.vmem [shape: f32[1,128], index: 2, kind: input, shape index: {}]   ;;  %s15363_s3 = inlined_call_operand.hbm [shape: bf16[128,384], index: 3, kind: input, shape index: {}]   ;;  %s15364_s4 = inlined_call_operand.hbm [shape: bf16[128,128], index: 4, kind: input, shape index: {}]   ;;  %s15365_s5 = inlined_call_operand.vmem [shape: f32[1,128], index: 5, kind: input, shape index: {}]   ;;  %s15366_s6 = inlined_call_operand.vmem [shape: f32[1,128], index: 6, kind: input, shape index: {}]   ;;  %s15367_s7 = inlined_call_operand.vmem [shape: bf16[128,512], index: 7, kind: input, shape index: {}]   ;;  %s15368_s8 = inlined_call_operand.hbm [shape: bf16[512,128], index: 8, kind: input, shape index: {}]   ;;  %s15369_s9 = inlined_call_operand.hbm [shape: f32[128,128], index: 9, kind: output, shape index: {}, may-alias: {0,9}]  }
   0x1   :  { %15 = vsyncpa [#allocation6], 0 }
   0x2   :  { %16 = vsyncpa [#allocation9], 0  ;;  %s39_s11 = sshll.u32 %s15363_s3, 4  ;;  %s40_s11 = int_to_ptr.hbm [resolvable:$true] %s39_s11 }
   0x3   :  { %17 = vsyncpa [#allocation4], 0  ;;  %s9360_s12 = smov [#allocation5]   ;;  %s22_s16 = sshll.u32 %s15360_s0, 4  ;;  %s23_s16 = int_to_ptr.hbm [resolvable:$true] %s22_s16 }
   0x4   :  { %s41_s13 = sshll.u32 %s9360_s12, 4  ;;  %s9361_s17 = smov 192   ;;  %s42_s13 = int_to_ptr.vmem [resolvable:$true] %s41_s13 }
   0x5   :  { %s9362_s18 = smov 12   ;;  %s9363_s19 = smov [#allocation2]  }
   0x6   :  { %47 = dma.hbm_to_vmem [thread:$0]  %s40_s11, 3072, %s42_s13, [#allocation6], %s9361_s17, %s9361_s17, %s9362_s18  }
   0x7   :  { %s24_s20 = sshll.u32 %s9363_s19, 4  ;;  %s9364_s21 = smov 128   ;;  %s25_s20 = int_to_ptr.vmem [resolvable:$true] %s24_s20 }
   0x8   :  { %s9365_s22 = smov 8   ;;  %s52_s24 = sshll.u32 %s15364_s4, 4  ;;  %s53_s24 = int_to_ptr.hbm [resolvable:$true] %s52_s24 }
   0x9   :  { %30 = dma.hbm_to_vmem [thread:$0]  %s23_s16, 2048, %s25_s20, [#allocation3], %s9364_s21, %s9364_s21, %s9365_s22  }
   0xa   :  { %s9366_s25 = smov [#allocation7]   ;;  %s71_s28 = sshll.u32 %s15368_s8, 4  ;;  %s72_s28 = int_to_ptr.hbm [resolvable:$true] %s71_s28 }
   0xb   :  { %s54_s0 = sshll.u32 %s9366_s25, 4  ;;  %s9367_s29 = smov 64   ;;  %s55_s0 = int_to_ptr.vmem [resolvable:$true] %s54_s0 }
   0xc   :  { %s9368_s30 = smov 4   ;;  %s9369_s10 = smov [#allocation8]  }
   0xd   :  { %60 = dma.hbm_to_vmem [thread:$0]  %s53_s24, 1024, %s55_s0, [#allocation6], %s9367_s29, %s9367_s29, %s9368_s30  }
   0xe   :  { %s73_s11 = sshll.u32 %s9369_s10, 4  ;;  %s74_s11 = int_to_ptr.vmem [resolvable:$true] %s73_s11 }
   0xf   :  { %79 = dma.hbm_to_vmem [thread:$0]  %s72_s28, 4096, %s74_s11, [#allocation9], %s9367_s29, %s9367_s29, %s9368_s30  }
  0x10   :  { %9352 = dma.done.wait [#allocation3], 2048  }
  0x11   :  { %9353 = vsyncadd [#allocation3], 4294965248 }
  0x12   :  { %9354 = dma.done.wait [#allocation6], 4096  }
  0x13   :  { %9355 = vsyncadd [#allocation6], 4294963200 }
  0x14   :  { %9356 = dma.done.wait [#allocation9], 4096  }
  0x15   :  { %9357 = vsyncadd [#allocation9], 4294963200  ;;  %v107_v0 = vld [vmem:[#allocation2 + $0x50] sm:$0xff]  ;;  %v105_v1 = vld [vmem:[#allocation2 + $0x40] sm:$0xff]  ;;  %v9370_v7 = vmov 128.0   ;;  %s9373_s13 = smov 32  }
  0x16   :  { %135 = vadd.xlane.f32.xlu1 %v107_v0  ;;  %131 = vadd.xlane.f32.xlu0 %v105_v1  ;;  %v109_v2 = vld [vmem:[#allocation2 + $0x60] sm:$0xff]  ;;  %v108_v3 = vld [vmem:[#allocation2 + $0x58] sm:$0xff]  ;;  %v106_v4 = vld [vmem:[#allocation2 + $0x48] sm:$0xff]  ;;  %8762 = vrcp.f32 %v9370_v7  ;;  %s8072_s30 = sshll.u32 %s15369_s9, 4  ;;  %s8073_s30 = int_to_ptr.hbm [resolvable:$true] %s8072_s30 }
  0x17   :  { %139 = vadd.xlane.f32.xlu2 %v109_v2  ;;  %v110_v5 = vld [vmem:[#allocation2 + $0x68] sm:$0xff]  ;;  %v97_v6 = vld [vmem:[#allocation2] sm:$0xff]  ;;  %v9471_v35 = vld [vmem:[#allocation2 + $0x10] sm:$0xff] }
  0x18   :  { %v9457_v26 = vld [vmem:[#allocation2 + $0x8] sm:$0xff]  ;;  %v9483_v42 = vld [vmem:[#allocation2 + $0x18] sm:$0xff]  ;;  %v9493_v46 = vld [vmem:[#allocation2 + $0x20] sm:$0xff] }
  0x19   :  { %v9485_v43 = vld [vmem:[#allocation2 + $0x28] sm:$0xff]  ;;  %v9495_v47 = vld [vmem:[#allocation2 + $0x30] sm:$0xff]  ;;  %v9499_v48 = vld [vmem:[#allocation2 + $0x38] sm:$0xff] }
  0x1a   :  { %v8173_v49 = vld [vmem:[#allocation5 + $0xa8] sm:$0xf]  ;;  %v8653_v50 = vld [vmem:[#allocation5 + $0xb0] sm:$0xf0]  ;;  %v8161_v52 = vld [vmem:[#allocation5 + $0x90] sm:$0xf] }
  0x1b   :  { %v8174_v51 = vor.u32 %v8653_v50, %v8173_v49  ;;  %v8650_v53 = vld [vmem:[#allocation5 + $0x98] sm:$0xf0]  ;;  %v8149_v55 = vld [vmem:[#allocation5 + $0x78] sm:$0xf]  ;;  %v8647_v56 = vld [vmem:[#allocation5 + $0x80] sm:$0xf0] }
  0x1c   :  { %v8763_v8 = vpop.eup %8762  ;;  %v8162_v54 = vor.u32 %v8650_v53, %v8161_v52  ;;  %v8150_v57 = vor.u32 %v8647_v56, %v8149_v55  ;;  %v8137_v58 = vld [vmem:[#allocation5 + $0x60] sm:$0xf]  ;;  %v8644_v59 = vld [vmem:[#allocation5 + $0x68] sm:$0xf0]  ;;  %v8125_v61 = vld [vmem:[#allocation5 + $0x48] sm:$0xf] }
  0x1d   :  { %v148_v9 = vmul.f32 128.0, %v8763_v8  ;;  %vm152_vm0 = vweird.f32 %v8763_v8  ;;  %8727 = vmatpush.bf16.msra.mxu1 %v8174_v51  ;;  %648 = vmatpush.bf16.msra.mxu0 %v8174_v51  ;;  %v8138_v60 = vor.u32 %v8644_v59, %v8137_v58  ;;  %v8641_v62 = vld [vmem:[#allocation5 + $0x50] sm:$0xf0] }
  0x1e   :  { %137 = vadd.xlane.f32.xlu1 %v108_v3  ;;  %133 = vadd.xlane.f32.xlu0 %v106_v4  ;;  %v8126_v63 = vor.u32 %v8641_v62, %v8125_v61  ;;  %v9614_v56 = vld [vmem:[#allocation2 + $0x70] sm:$0xff] }
  0x1f   :  { %141 = vadd.xlane.f32.xlu2 %v110_v5  ;;  %v149_v10 = vsub.f32 1.0, %v148_v9  ;;  %8728 = vmatpush.bf16.msra.mxu3 %v8174_v51  ;;  %v8089_v9 = vld [vmem:[#allocation5] sm:$0xf] }
  0x21   :  { %v150_v11 = vmul.f32 %v8763_v8, %v149_v10  ;;  %8729 = vmatpush.bf16.msra.mxu1 %v8162_v54  ;;  %649 = vmatpush.bf16.msra.mxu0 %v8162_v54  ;;  %v8632_v10 = vld [vmem:[#allocation5 + $0x8] sm:$0xf0] }
  0x23   :  { %v151_v12 = vadd.f32 %v8763_v8, %v150_v11  ;;  %8730 = vmatpush.bf16.msra.mxu3 %v8162_v54  ;;  %v8090_v11 = vor.u32 %v8632_v10, %v8089_v9 }
  0x25   :  { %v9444_v13 = vsel %vm152_vm0, %v8763_v8, %v151_v12  ;;  %8731 = vmatpush.bf16.msra.mxu1 %v8150_v57  ;;  %650 = vmatpush.bf16.msra.mxu0 %v8150_v57 }
  0x26   :  { %15436 = vst [vmem:[#allocation15_spill] sm:$0xff] %v9444_v13 }
  0x27   :  { %115 = vadd.xlane.f32.xlu2 %v97_v6  ;;  %8732 = vmatpush.bf16.msra.mxu3 %v8150_v57 }
  0x29   :  { %8733 = vmatpush.bf16.msra.mxu1 %v8138_v60  ;;  %651 = vmatpush.bf16.msra.mxu0 %v8138_v60 }
  0x2b   :  { %8734 = vmatpush.bf16.msra.mxu3 %v8138_v60 }
  0x2d   :  { %8735 = vmatpush.bf16.msra.mxu1 %v8126_v63  ;;  %652 = vmatpush.bf16.msra.mxu0 %v8126_v63 }
  0x2f   :  { %8736 = vmatpush.bf16.msra.mxu3 %v8126_v63 }
  0x89   :  { %v136_v14 = vpop.xlane.xlu1 %135  ;;  %v132_v15 = vpop.xlane.xlu0 %131 }
  0x8a   :  { %v162_v16 = vmul.f32 %v9444_v13, %v132_v15  ;;  %v140_v18 = vpop.xlane.xlu2 %139  ;;  %v164_v28 = vmul.f32 %v9444_v13, %v136_v14 }
  0x8b   :  { %v166_v27 = vmul.f32 %v9444_v13, %v140_v18 }
  0x8c   :  { %v9447_v17 = vsub.f32 %v105_v1, %v162_v16  ;;  %v9468_v33 = vsub.f32 %v107_v0, %v164_v28  ;;  %v8113_v0 = vld [vmem:[#allocation5 + $0x30] sm:$0xf]  ;;  %v8638_v1 = vld [vmem:[#allocation5 + $0x38] sm:$0xf0] }
  0x8d   :  { %v9466_v32 = vsub.f32 %v109_v2, %v166_v27  ;;  %v8114_v2 = vor.u32 %v8638_v1, %v8113_v0 }
  0x8e   :  { %v194_v19 = vmul.f32 %v9447_v17, %v9447_v17  ;;  %v196_v37 = vmul.f32 %v9468_v33, %v9468_v33 }
  0x8f   :  { %v198_v36 = vmul.f32 %v9466_v32, %v9466_v32  ;;  %8737 = vmatpush.bf16.msra.mxu1 %v8114_v2  ;;  %653 = vmatpush.bf16.msra.mxu0 %v8114_v2 }
  0x90   :  { %218 = vadd.xlane.f32.xlu0 %v194_v19  ;;  %8738 = vmatpush.bf16.msra.mxu3 %v8114_v2 }
  0x91   :  { %v138_v20 = vpop.xlane.xlu1 %137  ;;  %v134_v21 = vpop.xlane.xlu0 %133 }
  0x92   :  { %v165_v22 = vmul.f32 %v9444_v13, %v138_v20  ;;  %v163_v23 = vmul.f32 %v9444_v13, %v134_v21  ;;  %v142_v31 = vpop.xlane.xlu2 %141 }
  0x93   :  { %v167_v34 = vmul.f32 %v9444_v13, %v142_v31 }
  0x94   :  { %v9453_v24 = vsub.f32 %v106_v4, %v163_v23  ;;  %v9455_v25 = vsub.f32 %v108_v3, %v165_v22  ;;  %v8101_v3 = vld [vmem:[#allocation5 + $0x18] sm:$0xf]  ;;  %v8635_v4 = vld [vmem:[#allocation5 + $0x20] sm:$0xf0] }
  0x95   :  { %v9478_v38 = vsub.f32 %v110_v5, %v167_v34 }
  0x96   :  { %v195_v29 = vmul.f32 %v9453_v24, %v9453_v24  ;;  %v197_v30 = vmul.f32 %v9455_v25, %v9455_v25 }
  0x97   :  { %v199_v40 = vmul.f32 %v9478_v38, %v9478_v38 }
  0x98   :  { %220 = vadd.xlane.f32.xlu1 %v195_v29  ;;  %117 = vadd.xlane.f32.xlu0 %v9457_v26 }
  0x99   :  { %224 = vadd.xlane.f32.xlu2 %v197_v30 }
  0x9a   :  { %v116_v39 = vpop.xlane.xlu2 %115 }
  0x9b   :  { %v154_v41 = vmul.f32 %v9444_v13, %v116_v39 }
  0x9d   :  { %v9488_v44 = vsub.f32 %v97_v6, %v154_v41  ;;  %v8102_v6 = vor.u32 %v8635_v4, %v8101_v3 }
  0x9f   :  { %v186_v45 = vmul.f32 %v9488_v44, %v9488_v44  ;;  %8739 = vmatpush.bf16.msra.mxu1 %v8102_v6  ;;  %654 = vmatpush.bf16.msra.mxu0 %v8102_v6 }
  0xa0   :  { %222 = vadd.xlane.f32.xlu1 %v196_v37  ;;  %119 = vadd.xlane.f32.xlu0 %v9471_v35 }
  0xa1   :  { %226 = vadd.xlane.f32.xlu2 %v198_v36  ;;  %8740 = vmatpush.bf16.msra.mxu3 %v8102_v6 }
  0xa3   :  { %8741 = vmatpush.bf16.msra.mxu1 %v8090_v11  ;;  %655 = vmatpush.bf16.msra.mxu0 %v8090_v11 }
  0xa5   :  { %8742 = vmatpush.bf16.msra.mxu3 %v8090_v11 }
  0xa8   :  { %121 = vadd.xlane.f32.xlu1 %v9483_v42  ;;  %228 = vadd.xlane.f32.xlu0 %v199_v40 }
  0xa9   :  { %125 = vadd.xlane.f32.xlu2 %v9485_v43 }
  0xb0   :  { %123 = vadd.xlane.f32.xlu1 %v9493_v46  ;;  %202 = vadd.xlane.f32.xlu0 %v186_v45 }
  0xb1   :  { %127 = vadd.xlane.f32.xlu2 %v9495_v47 }
  0xb8   :  { %129 = vadd.xlane.f32.xlu0 %v9499_v48 }
 0x103   :  { %v219_v5 = vpop.xlane.xlu0 %218 }
 0x104   :  { %v242_v7 = vmul.f32 %v219_v5, %v9444_v13 }
 0x106   :  { %v258_v8 = vadd.f32 1e-05, %v242_v7 }
 0x108   :  { %8764 = vrsqrt.f32 %v258_v8  ;;  %vm352_vm2 = vweird.f32 %v258_v8 }
 0x10b   :  { %v221_v12 = vpop.xlane.xlu1 %220  ;;  %v118_v14 = vpop.xlane.xlu0 %117 }
 0x10c   :  { %v243_v15 = vmul.f32 %v221_v12, %v9444_v13  ;;  %v155_v16 = vmul.f32 %v9444_v13, %v118_v14  ;;  %v225_v18 = vpop.xlane.xlu2 %224 }
 0x10d   :  { %v245_v19 = vmul.f32 %v225_v18, %v9444_v13 }
 0x10e   :  { %v8765_v20 = vpop.eup %8764  ;;  %v259_v21 = vadd.f32 1e-05, %v243_v15  ;;  %v9507_v22 = vsub.f32 %v9457_v26, %v155_v16 }
 0x10f   :  { %v347_v23 = vmul.f32 %v8765_v20, %v258_v8  ;;  %v9509_v27 = vadd.f32 1e-05, %v245_v19  ;;  %vm353_vm1 = vweird.f32 %v8765_v20  ;;  %v9553_v8 = vld [vmem:[%s15361_s1] ss:$0 sm:$0xff] }
 0x110   :  { %8766 = vrsqrt.f32 %v259_v21  ;;  %v187_v28 = vmul.f32 %v9507_v22, %v9507_v22  ;;  %vm9529_vm3 = vmor %vm352_vm2, %vm353_vm1  ;;  %vm362_vm5 = vweird.f32 %v259_v21 }
 0x111   :  { %v348_v29 = vmul.f32 %v8765_v20, %v347_v23  ;;  %8768 = vrsqrt.f32 %v9509_v27  ;;  %vm382_vm10 = vweird.f32 %v9509_v27 }
 0x112   :  { %204 = vadd.xlane.f32.xlu1 %v187_v28 }
 0x113   :  { %v349_v30 = vmul.f32 0.5, %v348_v29  ;;  %v223_v31 = vpop.xlane.xlu1 %222  ;;  %v120_v34 = vpop.xlane.xlu0 %119 }
 0x114   :  { %v244_v36 = vmul.f32 %v223_v31, %v9444_v13  ;;  %v156_v37 = vmul.f32 %v9444_v13, %v120_v34  ;;  %v227_v26 = vpop.xlane.xlu2 %226 }
 0x115   :  { %v350_v39 = vsub.f32 1.5, %v349_v30  ;;  %v246_v40 = vmul.f32 %v227_v26, %v9444_v13 }
 0x116   :  { %v8767_v41 = vpop.eup %8766  ;;  %v9517_v45 = vadd.f32 1e-05, %v244_v36  ;;  %v9520_v49 = vsub.f32 %v9471_v35, %v156_v37 }
 0x117   :  { %v9522_v50 = vpop.eup %8768  ;;  %v351_v51 = vmul.f32 %v8765_v20, %v350_v39  ;;  %v357_v52 = vmul.f32 %v8767_v41, %v259_v21  ;;  %v9527_v55 = vadd.f32 1e-05, %v246_v40  ;;  %vm363_vm4 = vweird.f32 %v8767_v41 }
 0x118   :  { %v377_v53 = vmul.f32 %v9522_v50, %v9509_v27  ;;  %8770 = vrsqrt.f32 %v9517_v45  ;;  %v188_v57 = vmul.f32 %v9520_v49, %v9520_v49  ;;  %vm364_vm6 = vmor %vm362_vm5, %vm363_vm4  ;;  %vm383_vm7 = vweird.f32 %v9522_v50 }
 0x119   :  { %v358_v54 = vmul.f32 %v8767_v41, %v357_v52  ;;  %v355_v58 = vsel %vm9529_vm3, %v8765_v20, %v351_v51  ;;  %8772 = vrsqrt.f32 %v9527_v55  ;;  %vm372_vm8 = vweird.f32 %v9517_v45  ;;  %vm9605_vm12 = vmor %vm382_vm10, %vm383_vm7  ;;  %v8648_v52 = vld [vmem:[#allocation5 + $0x88] sm:$0xf0] }
 0x11a   :  { %v378_v35 = vmul.f32 %v9522_v50, %v377_v53  ;;  %206 = vadd.xlane.f32.xlu1 %v188_v57  ;;  %v434_v7 = vmul.f32 %v355_v58, %v9447_v17  ;;  %v8652_v57 = vld [vmem:[#allocation5 + $0xac] sm:$0xf]  ;;  %v8175_v58 = vld [vmem:[#allocation5 + $0xb4] sm:$0xf0]  ;;  %vm392_vm1 = vweird.f32 %v9527_v55 }
 0x11b   :  { %v359_v59 = vmul.f32 0.5, %v358_v54  ;;  %v122_v60 = vpop.xlane.xlu1 %121  ;;  %v229_v61 = vpop.xlane.xlu0 %228 }
 0x11c   :  { %v157_v62 = vmul.f32 %v9444_v13, %v122_v60  ;;  %v247_v63 = vmul.f32 %v229_v61, %v9444_v13  ;;  %v126_v0 = vpop.xlane.xlu2 %125  ;;  %v379_v4 = vmul.f32 0.5, %v378_v35  ;;  %v453_v18 = vmul.f32 %v9553_v8, %v434_v7 }
 0x11d   :  { %v360_v1 = vsub.f32 1.5, %v359_v59  ;;  %v159_v2 = vmul.f32 %v9444_v13, %v126_v0  ;;  %v8181_v59 = vld [vmem:[#allocation5 + $0xb0] sm:$0xf]  ;;  %v8654_v0 = vld [vmem:[#allocation5 + $0xb8] sm:$0xf0] }
 0x11e   :  { %v9542_v3 = vpop.eup %8770  ;;  %v9544_v5 = vadd.f32 1e-05, %v247_v63  ;;  %v9547_v6 = vsub.f32 %v9483_v42, %v157_v62  ;;  %v380_v14 = vsub.f32 1.5, %v379_v4  ;;  %v8178_v63 = vor.u32 %v8652_v57, %v8175_v58  ;;  %v8645_v58 = vld [vmem:[#allocation5 + $0x70] sm:$0xf0] }
 0x11f   :  { %v361_v9 = vmul.f32 %v8767_v41, %v360_v1  ;;  %v367_v10 = vmul.f32 %v9542_v3, %v9517_v45  ;;  %v9558_v11 = vsub.f32 %v9485_v43, %v159_v2  ;;  %v9571_v43 = vld [vmem:[%s15362_s2] ss:$0 sm:$0xff]  ;;  %v9573_v19 = vpop.eup %8772  ;;  %vm373_vm9 = vweird.f32 %v9542_v3  ;;  %s9371_s2 = smov 96  }
 0x120   :  { %8774 = vrsqrt.f32 %v9544_v5  ;;  %v189_v17 = vmul.f32 %v9547_v6, %v9547_v6  ;;  %v381_v36 = vmul.f32 %v9522_v50, %v380_v14  ;;  %v472_v37 = vadd.f32 %v9571_v43, %v453_v18  ;;  %vm9597_vm11 = vmor %vm372_vm8, %vm373_vm9  ;;  %697 = vmatpush.bf16.msrb.mxu1 %v8178_v63  ;;  %v8133_v63 = vld [vmem:[#allocation5 + $0x50] sm:$0xf] }
 0x121   :  { %v365_v42 = vsel %vm364_vm6, %v8767_v41, %v361_v9  ;;  %v368_v12 = vmul.f32 %v9542_v3, %v367_v10  ;;  %v191_v15 = vmul.f32 %v9558_v11, %v9558_v11  ;;  %v387_v41 = vmul.f32 %v9573_v19, %v9527_v55  ;;  %v8649_v55 = vld [vmem:[#allocation5 + $0x94] sm:$0xf] }
 0x122   :  { %v435_v16 = vmul.f32 %v365_v42, %v9453_v24  ;;  %208 = vadd.xlane.f32.xlu2 %v189_v17  ;;  %v385_v60 = vsel %vm9605_vm12, %v9522_v50, %v381_v36  ;;  %v9632_v42 = vld [vmem:[#allocation2 + $0x78] sm:$0xff]  ;;  %vm402_vm13 = vweird.f32 %v9544_v5  ;;  %vm393_vm0 = vweird.f32 %v9573_v19 }
 0x123   :  { %v369_v20 = vmul.f32 0.5, %v368_v12  ;;  %v124_v21 = vpop.xlane.xlu1 %123  ;;  %v9575_v23 = vpop.xlane.xlu0 %202  ;;  %212 = vadd.xlane.f32.xlu1 %v191_v15  ;;  %v388_v61 = vmul.f32 %v9573_v19, %v387_v41  ;;  %v437_v50 = vmul.f32 %v385_v60, %v9455_v25  ;;  %vm394_vm2 = vmor %vm392_vm1, %vm393_vm0  ;;  %v8157_v41 = vld [vmem:[#allocation5 + $0x80] sm:$0xf] }
 0x124   :  { %v158_v28 = vmul.f32 %v9444_v13, %v124_v21  ;;  %v128_v24 = vpop.xlane.xlu2 %127  ;;  %v454_v29 = vmul.f32 %v9553_v8, %v435_v16 }
 0x125   :  { %v370_v30 = vsub.f32 1.5, %v369_v20  ;;  %v160_v31 = vmul.f32 %v9444_v13, %v128_v24  ;;  %v389_v9 = vmul.f32 0.5, %v388_v61  ;;  %v8640_v61 = vld [vmem:[#allocation5 + $0x4c] sm:$0xf] }
 0x126   :  { %v8775_v34 = vpop.eup %8774  ;;  %v473_v26 = vadd.f32 %v9571_v43, %v454_v29  ;;  %v9587_v39 = vsub.f32 %v9493_v46, %v158_v28  ;;  %v234_v46 = vmul.f32 %v9575_v23, %v9444_v13  ;;  %v8637_v23 = vld [vmem:[#allocation5 + $0x34] sm:$0xf] }
 0x127   :  { %v371_v40 = vmul.f32 %v9542_v3, %v370_v30  ;;  %v397_v45 = vmul.f32 %v8775_v34, %v9544_v5  ;;  %v9594_v51 = vsub.f32 %v9495_v47, %v160_v31  ;;  %v390_v14 = vsub.f32 1.5, %v389_v9  ;;  %v8639_v9 = vld [vmem:[#allocation5 + $0x40] sm:$0xf0] }
 0x128   :  { %v9601_v53 = vpack.c.bf16 %v473_v26, %v472_v37  ;;  %v190_v27 = vmul.f32 %v9587_v39, %v9587_v39  ;;  %vm403_vm14 = vweird.f32 %v8775_v34  ;;  %v8169_v37 = vld [vmem:[#allocation5 + $0x98] sm:$0xf]  ;;  %v8651_v26 = vld [vmem:[#allocation5 + $0xa0] sm:$0xf0] }
 0x129   :  { %v375_v54 = vsel %vm9597_vm11, %v9542_v3, %v371_v40  ;;  %v398_v47 = vmul.f32 %v8775_v34, %v397_v45  ;;  %v192_v35 = vmul.f32 %v9594_v51, %v9594_v51  ;;  %v8182_v3 = vor.u32 %v8654_v0, %v8181_v59  ;;  %vm404_vm15 = vmor %vm402_vm13, %vm403_vm14  ;;  %v8151_v40 = vld [vmem:[#allocation5 + $0x84] sm:$0xf0] }
 0x12a   :  { %676 = vmatmul.bf16.vlgmr.msra.gmra.mxu1 %v9601_v53  ;;  %210 = vadd.xlane.f32.xlu0 %v190_v27  ;;  %v436_v2 = vmul.f32 %v375_v54, %v9468_v33  ;;  %v456_v33 = vmul.f32 %v9553_v8, %v437_v50  ;;  %v391_v16 = vmul.f32 %v9573_v19, %v390_v14  ;;  %v8139_v27 = vld [vmem:[#allocation5 + $0x6c] sm:$0xf0]  ;;  %v250_v59 = vadd.f32 1e-05, %v234_v46  ;;  %v8109_v14 = vld [vmem:[#allocation5 + $0x20] sm:$0xf] }
 0x12b   :  { %214 = vadd.xlane.f32.xlu2 %v192_v35  ;;  %v130_v62 = vpop.xlane.xlu0 %129  ;;  %143 = vadd.xlane.f32.xlu1 %v9614_v56  ;;  %v399_v4 = vmul.f32 0.5, %v398_v47  ;;  %v8158_v54 = vor.u32 %v8648_v52, %v8157_v41  ;;  %v8643_v47 = vld [vmem:[#allocation5 + $0x64] sm:$0xf]  ;;  %v8145_v35 = vld [vmem:[#allocation5 + $0x68] sm:$0xf] }
 0x12c   :  { %v161_v1 = vmul.f32 %v9444_v13, %v130_v62  ;;  %746 = vmatpush.bf16.msra.mxu2 %v8182_v3  ;;  %v455_v12 = vmul.f32 %v9553_v8, %v436_v2  ;;  %v475_v15 = vadd.f32 %v9571_v43, %v456_v33  ;;  %v395_v5 = vsel %vm394_vm2, %v9573_v19, %v391_v16  ;;  %v8127_v62 = vld [vmem:[#allocation5 + $0x54] sm:$0xf0]  ;;  %v8115_v3 = vld [vmem:[#allocation5 + $0x3c] sm:$0xf0]  ;;  %v8103_v33 = vld [vmem:[#allocation5 + $0x24] sm:$0xf0] }
 0x12d   :  { %v400_v17 = vsub.f32 1.5, %v399_v4  ;;  %v438_v28 = vmul.f32 %v395_v5, %v9466_v32  ;;  %v8646_v32 = vld [vmem:[#allocation5 + $0x7c] sm:$0xf]  ;;  %v8142_v57 = vor.u32 %v8643_v47, %v8139_v27  ;;  %v8146_v60 = vor.u32 %v8645_v58, %v8145_v35  ;;  %v8121_v4 = vld [vmem:[#allocation5 + $0x38] sm:$0xf] }
 0x12e   :  { %v9627_v7 = vsub.f32 %v9499_v48, %v161_v1  ;;  %v474_v25 = vadd.f32 %v9571_v43, %v455_v12  ;;  %v8154_v45 = vor.u32 %v8646_v32, %v8151_v40  ;;  %v8130_v0 = vor.u32 %v8640_v61, %v8127_v62  ;;  %v8642_v1 = vld [vmem:[#allocation5 + $0x58] sm:$0xf0]  ;;  %v8091_v5 = vld [vmem:[#allocation5 + $0xc] sm:$0xf0] }
 0x12f   :  { %v401_v48 = vmul.f32 %v8775_v34, %v400_v17  ;;  %v457_v29 = vmul.f32 %v9553_v8, %v438_v28  ;;  %8776 = vrsqrt.f32 %v250_v59  ;;  %v8134_v2 = vor.u32 %v8642_v1, %v8133_v63  ;;  %v8634_v17 = vld [vmem:[#allocation5 + $0x1c] sm:$0xf] }
 0x130   :  { %v193_v10 = vmul.f32 %v9627_v7, %v9627_v7  ;;  %v9642_v18 = vpack.c.bf16 %v475_v15, %v474_v25  ;;  %v8118_v50 = vor.u32 %v8637_v23, %v8115_v3  ;;  %v8106_v25 = vor.u32 %v8634_v17, %v8103_v33 }
 0x131   :  { %v405_v20 = vsel %vm404_vm15, %v8775_v34, %v401_v48  ;;  %v476_v31 = vadd.f32 %v9571_v43, %v457_v29  ;;  %v8163_v34 = vld [vmem:[#allocation5 + $0x9c] sm:$0xf0]  ;;  %v8636_v48 = vld [vmem:[#allocation5 + $0x28] sm:$0xf0]  ;;  %vm272_vm3 = vweird.f32 %v250_v59 }
 0x132   :  { %216 = vadd.xlane.f32.xlu0 %v193_v10  ;;  %v439_v21 = vmul.f32 %v405_v20, %v9478_v38  ;;  %v8166_v19 = vor.u32 %v8649_v55, %v8163_v34  ;;  %v8170_v38 = vor.u32 %v8651_v26, %v8169_v37  ;;  %v8122_v10 = vor.u32 %v8639_v9, %v8121_v4  ;;  %v8631_v20 = vld [vmem:[#allocation5 + $0x4] sm:$0xf] }
 0x133   :  { %145 = vadd.xlane.f32.xlu2 %v9632_v42  ;;  %v8110_v15 = vor.u32 %v8636_v48, %v8109_v14  ;;  %v8094_v28 = vor.u32 %v8631_v20, %v8091_v5 }
 0x134   :  { %v458_v24 = vmul.f32 %v9553_v8, %v439_v21  ;;  %698 = vmatpush.bf16.msrb.mxu1 %v8166_v19  ;;  %747 = vmatpush.bf16.msra.mxu2 %v8170_v38  ;;  %v8097_v21 = vld [vmem:[#allocation5 + $0x8] sm:$0xf] }
 0x135   :  { %v8777_v12 = vpop.eup %8776 }
 0x136   :  { %v477_v30 = vadd.f32 %v9571_v43, %v458_v24  ;;  %v267_v16 = vmul.f32 %v8777_v12, %v250_v59  ;;  %v8633_v24 = vld [vmem:[#allocation5 + $0x10] sm:$0xf0]  ;;  %vm273_vm4 = vweird.f32 %v8777_v12 }
 0x137   :  { %v8098_v29 = vor.u32 %v8633_v24, %v8097_v21  ;;  %vm274_vm5 = vmor %vm272_vm3, %vm273_vm4 }
 0x138   :  { %v9653_v36 = vpack.c.bf16 %v477_v30, %v476_v31  ;;  %699 = vmatpush.bf16.msrb.mxu1 %v8154_v45  ;;  %748 = vmatpush.bf16.msra.mxu2 %v8158_v54  ;;  %v268_v30 = vmul.f32 %v8777_v12, %v267_v16 }
 0x13a   :  { %681 = vmatmul.bf16.gmra.mxu1 %v9642_v18  ;;  %v269_v37 = vmul.f32 0.5, %v268_v30 }
 0x13c   :  { %700 = vmatpush.bf16.msrb.mxu1 %v8142_v57  ;;  %749 = vmatpush.bf16.msra.mxu2 %v8146_v60  ;;  %v270_v19 = vsub.f32 1.5, %v269_v37 }
 0x13e   :  { %v271_v40 = vmul.f32 %v8777_v12, %v270_v19 }
 0x140   :  { %701 = vmatpush.bf16.msrb.mxu1 %v8130_v0  ;;  %750 = vmatpush.bf16.msra.mxu2 %v8134_v2  ;;  %v275_v46 = vsel %vm274_vm5, %v8777_v12, %v271_v40 }
 0x141   :  { %v426_v59 = vmul.f32 %v275_v46, %v9488_v44 }
 0x143   :  { %v445_v23 = vmul.f32 %v9553_v8, %v426_v59 }
 0x144   :  { %702 = vmatpush.bf16.msrb.mxu1 %v8118_v50  ;;  %751 = vmatpush.bf16.msra.mxu2 %v8122_v10 }
 0x145   :  { %v464_v33 = vadd.f32 %v9571_v43, %v445_v23 }
 0x148   :  { %703 = vmatpush.bf16.msrb.mxu1 %v8106_v25  ;;  %752 = vmatpush.bf16.msra.mxu2 %v8110_v15 }
 0x14a   :  { %686 = vmatmul.bf16.gmra.mxu1 %v9653_v36 }
 0x14c   :  { %704 = vmatpush.bf16.msrb.mxu1 %v8094_v28  ;;  %753 = vmatpush.bf16.msra.mxu2 %v8098_v29 }
 0x185   :  { %v205_v31 = vpop.xlane.xlu1 %204 }
 0x186   :  { %v235_v55 = vmul.f32 %v205_v31, %v9444_v13 }
 0x188   :  { %v251_v34 = vadd.f32 1e-05, %v235_v55 }
 0x18a   :  { %8778 = vrsqrt.f32 %v251_v34  ;;  %vm282_vm6 = vweird.f32 %v251_v34 }
 0x18d   :  { %v207_v26 = vpop.xlane.xlu1 %206 }
 0x18e   :  { %v236_v32 = vmul.f32 %v207_v26, %v9444_v13 }
 0x190   :  { %v8779_v38 = vpop.eup %8778  ;;  %v252_v45 = vadd.f32 1e-05, %v236_v32 }
 0x191   :  { %v277_v41 = vmul.f32 %v8779_v38, %v251_v34  ;;  %vm283_vm7 = vweird.f32 %v8779_v38 }
 0x192   :  { %8780 = vrsqrt.f32 %v252_v45  ;;  %vm284_vm8 = vmor %vm282_vm6, %vm283_vm7  ;;  %vm292_vm9 = vweird.f32 %v252_v45 }
 0x193   :  { %v278_v52 = vmul.f32 %v8779_v38, %v277_v41 }
 0x195   :  { %v279_v54 = vmul.f32 0.5, %v278_v52  ;;  %v209_v47 = vpop.xlane.xlu2 %208 }
 0x196   :  { %v213_v35 = vpop.xlane.xlu1 %212  ;;  %v237_v57 = vmul.f32 %v209_v47, %v9444_v13 }
 0x197   :  { %v280_v27 = vsub.f32 1.5, %v279_v54  ;;  %v239_v58 = vmul.f32 %v213_v35, %v9444_v13 }
 0x198   :  { %v253_v61 = vadd.f32 1e-05, %v237_v57  ;;  %v8781_v62 = vpop.eup %8780 }
 0x199   :  { %v281_v60 = vmul.f32 %v8779_v38, %v280_v27  ;;  %v9663_v63 = vadd.f32 1e-05, %v239_v58  ;;  %v287_v1 = vmul.f32 %v8781_v62, %v252_v45  ;;  %vm293_vm10 = vweird.f32 %v8781_v62 }
 0x19a   :  { %8782 = vrsqrt.f32 %v253_v61  ;;  %vm9681_vm11 = vmor %vm292_vm9, %vm293_vm10  ;;  %vm302_vm13 = vweird.f32 %v253_v61 }
 0x19b   :  { %v285_v0 = vsel %vm284_vm8, %v8779_v38, %v281_v60  ;;  %8784 = vrsqrt.f32 %v9663_v63  ;;  %v288_v3 = vmul.f32 %v8781_v62, %v287_v1  ;;  %vm322_vm3 = vweird.f32 %v9663_v63 }
 0x19c   :  { %v427_v2 = vmul.f32 %v285_v0, %v9507_v22 }
 0x19d   :  { %v211_v4 = vpop.xlane.xlu0 %210  ;;  %v289_v9 = vmul.f32 0.5, %v288_v3 }
 0x19e   :  { %v215_v50 = vpop.xlane.xlu2 %214  ;;  %v446_v44 = vmul.f32 %v9553_v8, %v427_v2  ;;  %v238_v10 = vmul.f32 %v211_v4, %v9444_v13  ;;  %v144_v12 = vpop.xlane.xlu1 %143 }
 0x19f   :  { %v168_v17 = vmul.f32 %v9444_v13, %v144_v12  ;;  %v290_v48 = vsub.f32 1.5, %v289_v9  ;;  %v240_v15 = vmul.f32 %v215_v50, %v9444_v13 }
 0x1a0   :  { %v465_v14 = vadd.f32 %v9571_v43, %v446_v44  ;;  %v8783_v25 = vpop.eup %8782  ;;  %v254_v22 = vadd.f32 1e-05, %v238_v10 }
 0x1a1   :  { %v9674_v16 = vpop.eup %8784  ;;  %v297_v20 = vmul.f32 %v8783_v25, %v253_v61  ;;  %v9677_v21 = vsub.f32 %v9614_v56, %v168_v17  ;;  %v291_v28 = vmul.f32 %v8781_v62, %v290_v48  ;;  %v9685_v31 = vadd.f32 1e-05, %v240_v15 }
 0x1a2   :  { %v480_v5 = vpack.c.bf16 %v465_v14, %v464_v33  ;;  %v317_v24 = vmul.f32 %v9674_v16, %v9663_v63  ;;  %8786 = vrsqrt.f32 %v254_v22  ;;  %vm303_vm12 = vweird.f32 %v8783_v25 }
 0x1a3   :  { %v298_v29 = vmul.f32 %v8783_v25, %v297_v20  ;;  %v200_v55 = vmul.f32 %v9677_v21, %v9677_v21  ;;  %v295_v56 = vsel %vm9681_vm11, %v8781_v62, %v291_v28  ;;  %8788 = vrsqrt.f32 %v9685_v31  ;;  %vm304_vm14 = vmor %vm302_vm13, %vm303_vm12 }
 0x1a4   :  { %656 = vmatmul.bf16.vlgmr.msra.gmra.mxu0 %v480_v5  ;;  %705 = vmatmul.bf16.vlgmr.msrb.gmra.mxu1 %v480_v5  ;;  %v318_v34 = vmul.f32 %v9674_v16, %v317_v24  ;;  %v428_v46 = vmul.f32 %v295_v56, %v9520_v49  ;;  %vm312_vm15 = vweird.f32 %v254_v22  ;;  %vm323_vm1 = vweird.f32 %v9674_v16 }
 0x1a5   :  { %754 = vmatmul.bf16.vlgmr.msra.gmra.mxu2 %v480_v5  ;;  %v299_v37 = vmul.f32 0.5, %v298_v29  ;;  %v217_v19 = vpop.xlane.xlu0 %216  ;;  %230 = vadd.xlane.f32.xlu0 %v200_v55  ;;  %vm324_vm4 = vmor %vm322_vm3, %vm323_vm1  ;;  %vm332_vm9 = vweird.f32 %v9685_v31  ;;  %vm1109_vm3 = vcmask 130048  }
 0x1a6   :  { %v146_v26 = vpop.xlane.xlu2 %145  ;;  %v241_v38 = vmul.f32 %v217_v19, %v9444_v13  ;;  %v319_v54 = vmul.f32 0.5, %v318_v34  ;;  %v447_v60 = vmul.f32 %v9553_v8, %v428_v46 }
 0x1a7   :  { %v169_v32 = vmul.f32 %v9444_v13, %v146_v26  ;;  %v300_v40 = vsub.f32 1.5, %v299_v37 }
 0x1a8   :  { %v8787_v41 = vpop.eup %8786  ;;  %v257_v45 = vadd.f32 1e-05, %v241_v38  ;;  %v320_v62 = vsub.f32 1.5, %v319_v54 }
 0x1a9   :  { %v9696_v52 = vsub.f32 %v9632_v42, %v169_v32  ;;  %v301_v47 = vmul.f32 %v8783_v25, %v300_v40  ;;  %v307_v27 = vmul.f32 %v8787_v41, %v254_v22  ;;  %vm313_vm0 = vweird.f32 %v8787_v41  ;;  %v8789_v49 = vpop.eup %8788 }
 0x1aa   :  { %8790 = vrsqrt.f32 %v257_v45  ;;  %vm9705_vm2 = vmor %vm312_vm15, %vm313_vm0  ;;  %v321_v3 = vmul.f32 %v9674_v16, %v320_v62  ;;  %v327_v50 = vmul.f32 %v8789_v49, %v9685_v31  ;;  %vm342_vm5 = vweird.f32 %v257_v45  ;;  %v9732_v31 = vpop.f32.mrf.mxu1 }
 0x1ab   :  { %v305_v35 = vsel %vm304_vm14, %v8783_v25, %v301_v47  ;;  %v308_v57 = vmul.f32 %v8787_v41, %v307_v27  ;;  %v201_v58 = vmul.f32 %v9696_v52, %v9696_v52  ;;  %vm333_vm8 = vweird.f32 %v8789_v49 }
 0x1ac   :  { %v429_v59 = vmul.f32 %v305_v35, %v9547_v6  ;;  %v466_v6 = vadd.f32 %v9571_v43, %v447_v60  ;;  %v325_v17 = vsel %vm324_vm4, %v9674_v16, %v321_v3  ;;  %v328_v33 = vmul.f32 %v8789_v49, %v327_v50  ;;  %vm334_vm10 = vmor %vm332_vm9, %vm333_vm8 }
 0x1ad   :  { %v309_v42 = vmul.f32 0.5, %v308_v57  ;;  %232 = vadd.xlane.f32.xlu1 %v201_v58  ;;  %v431_v48 = vmul.f32 %v325_v17, %v9558_v11  ;;  %vm874_vm14 = vcmask 261120  }
 0x1ae   :  { %v448_v61 = vmul.f32 %v9553_v8, %v429_v59  ;;  %v329_v22 = vmul.f32 0.5, %v328_v33 }
 0x1af   :  { %v310_v0 = vsub.f32 1.5, %v309_v42  ;;  %v450_v20 = vmul.f32 %v9553_v8, %v431_v48 }
 0x1b0   :  { %v8791_v1 = vpop.eup %8790  ;;  %v467_v23 = vadd.f32 %v9571_v43, %v448_v61  ;;  %v330_v5 = vsub.f32 1.5, %v329_v22 }
 0x1b1   :  { %v311_v4 = vmul.f32 %v8787_v41, %v310_v0  ;;  %v337_v44 = vmul.f32 %v8791_v1, %v257_v45  ;;  %vm343_vm6 = vweird.f32 %v8791_v1  ;;  %v469_v16 = vadd.f32 %v9571_v43, %v450_v20 }
 0x1b2   :  { %v481_v9 = vpack.c.bf16 %v467_v23, %v466_v6  ;;  %vm344_vm7 = vmor %vm342_vm5, %vm343_vm6  ;;  %v331_v29 = vmul.f32 %v8789_v49, %v330_v5 }
 0x1b3   :  { %v315_v10 = vsel %vm9705_vm2, %v8787_v41, %v311_v4  ;;  %v338_v12 = vmul.f32 %v8791_v1, %v337_v44 }
 0x1b4   :  { %661 = vmatmul.bf16.gmra.mxu0 %v481_v9  ;;  %710 = vmatmul.bf16.gmra.mxu1 %v481_v9  ;;  %v430_v14 = vmul.f32 %v315_v10, %v9587_v39  ;;  %v335_v30 = vsel %vm334_vm10, %v8789_v49, %v331_v29 }
 0x1b5   :  { %759 = vmatmul.bf16.gmra.mxu2 %v481_v9  ;;  %v339_v25 = vmul.f32 0.5, %v338_v12  ;;  %v432_v56 = vmul.f32 %v335_v30, %v9594_v51 }
 0x1b6   :  { %v449_v15 = vmul.f32 %v9553_v8, %v430_v14 }
 0x1b7   :  { %v340_v63 = vsub.f32 1.5, %v339_v25  ;;  %v451_v37 = vmul.f32 %v9553_v8, %v432_v56 }
 0x1b8   :  { %v468_v28 = vadd.f32 %v9571_v43, %v449_v15 }
 0x1b9   :  { %v341_v24 = vmul.f32 %v8791_v1, %v340_v63  ;;  %v470_v26 = vadd.f32 %v9571_v43, %v451_v37 }
 0x1ba   :  { %v482_v39 = vpack.c.bf16 %v469_v16, %v468_v28 }
 0x1bb   :  { %v345_v11 = vsel %vm344_vm7, %v8791_v1, %v341_v24 }
 0x1bc   :  { %v433_v55 = vmul.f32 %v345_v11, %v9627_v7  ;;  %v9734_v7 = vpop.f32.mrf.mxu1 }
 0x1be   :  { %v452_v34 = vmul.f32 %v9553_v8, %v433_v55 }
 0x1c0   :  { %v471_v19 = vadd.f32 %v9571_v43, %v452_v34 }
 0x1c2   :  { %v483_v38 = vpack.c.bf16 %v471_v19, %v470_v26 }
 0x1c4   :  { %666 = vmatmul.bf16.gmra.mxu0 %v482_v39  ;;  %715 = vmatmul.bf16.gmra.mxu1 %v482_v39  ;;  %v9738_v51 = vpop.f32.mrf.mxu1 }
 0x1c5   :  { %764 = vmatmul.bf16.gmra.mxu2 %v482_v39 }
 0x1cc   :  { %v9741_v32 = vpop.f32.mrf.mxu1 }
 0x1d4   :  { %671 = vmatmul.bf16.gmra.mxu0 %v483_v38  ;;  %720 = vmatmul.bf16.gmra.mxu1 %v483_v38  ;;  %v9744_v40 = vpop.f32.mrf.mxu1 }
 0x1d5   :  { %769 = vmatmul.bf16.gmra.mxu2 %v483_v38 }
 0x1dc   :  { %v9746_v41 = vpop.f32.mrf.mxu1 }
 0x1e4   :  { %725 = vmatmul.bf16.gmra.mxu1 %v9601_v53 }
 0x1e5   :  { %774 = vmatmul.bf16.gmra.mxu2 %v9601_v53 }
 0x1f4   :  { %730 = vmatmul.bf16.gmra.mxu1 %v9642_v18 }
 0x1f5   :  { %779 = vmatmul.bf16.gmra.mxu2 %v9642_v18 }
 0x204   :  { %735 = vmatmul.bf16.gmra.mxu1 %v9653_v36 }
 0x205   :  { %784 = vmatmul.bf16.gmra.mxu2 %v9653_v36 }
 0x218   :  { %v231_v53 = vpop.xlane.xlu0 %230 }
 0x219   :  { %v248_v45 = vmul.f32 %v231_v53, %v9444_v13 }
 0x21b   :  { %v264_v46 = vadd.f32 1e-05, %v248_v45 }
 0x21d   :  { %8792 = vrsqrt.f32 %v264_v46  ;;  %vm412_vm11 = vweird.f32 %v264_v46 }
 0x220   :  { %v233_v54 = vpop.xlane.xlu1 %232 }
 0x221   :  { %v657_v47 = vpop.f32.mrf.mxu0  ;;  %v249_v18 = vmul.f32 %v233_v54, %v9444_v13  ;;  %v706_v27 = vpop.f32.mrf.mxu1 }
 0x222   :  { %v9750_v59 = vpack.c.bf16 %v706_v27, %v657_v47 }
 0x223   :  { %v265_v35 = vadd.f32 1e-05, %v249_v18  ;;  %v8793_v57 = vpop.eup %8792 }
 0x224   :  { %v407_v58 = vmul.f32 %v8793_v57, %v264_v46  ;;  %v852_v0 = vrot.slane %v9750_v59, 4  ;;  %vm413_vm12 = vweird.f32 %v8793_v57 }
 0x225   :  { %8794 = vrsqrt.f32 %v265_v35  ;;  %vm414_vm13 = vmor %vm412_vm11, %vm413_vm12  ;;  %vm422_vm0 = vweird.f32 %v265_v35 }
 0x226   :  { %v408_v36 = vmul.f32 %v8793_v57, %v407_v58  ;;  %v871_v50 = vunpack.c.l.b16 %v852_v0 }
 0x228   :  { %v9752_v60 = vpop.f32.mrf.mxu2  ;;  %v409_v42 = vmul.f32 0.5, %v408_v36 }
 0x229   :  { %v659_v62 = vpop.f32.mrf.mxu0  ;;  %v708_v49 = vpop.f32.mrf.mxu1 }
 0x22a   :  { %v9754_v61 = vpack.c.bf16 %v708_v49, %v659_v62  ;;  %v410_v2 = vsub.f32 1.5, %v409_v42 }
 0x22b   :  { %v8795_v1 = vpop.eup %8794 }
 0x22c   :  { %15447 = vst [vmem:[#allocation16_spill] sm:$0xff] %v9754_v61  ;;  %v417_v6 = vmul.f32 %v8795_v1, %v265_v35  ;;  %v853_v23 = vrot.slane %v9754_v61, 4  ;;  %v411_v3 = vmul.f32 %v8793_v57, %v410_v2  ;;  %vm423_vm15 = vweird.f32 %v8795_v1 }
 0x22d   :  { %vm424_vm1 = vmor %vm422_vm0, %vm423_vm15  ;;  %v869_v47 = vunpack.c.l.b16 %v9754_v61  ;;  %v868_v35 = vunpack.c.l.b16 %v9750_v59 }
 0x22e   :  { %v418_v4 = vmul.f32 %v8795_v1, %v417_v6  ;;  %v872_v44 = vunpack.c.l.b16 %v853_v23  ;;  %v415_v10 = vsel %vm414_vm13, %v8793_v57, %v411_v3 }
 0x22f   :  { %v440_v15 = vmul.f32 %v415_v10, %v9677_v21  ;;  %v9796_v62 = vpack.c.b16 %v869_v47, %v868_v35 }
 0x230   :  { %v9758_v9 = vpop.f32.mrf.mxu2  ;;  %v419_v12 = vmul.f32 0.5, %v418_v4  ;;  %v873_v17 = vpack.c.b16 %v872_v44, %v871_v50 }
 0x231   :  { %v662_v33 = vpop.f32.mrf.mxu0  ;;  %v711_v14 = vpop.f32.mrf.mxu1  ;;  %v459_v28 = vmul.f32 %v9553_v8, %v440_v15 }
 0x232   :  { %v420_v25 = vsub.f32 1.5, %v419_v12  ;;  %v9760_v48 = vpack.c.bf16 %v711_v14, %v662_v33  ;;  %v879_v22 = vsel %vm874_vm14, %v873_v17, 0 }
 0x233   :  { %888 = vmatpush.bf16.xpose.msrb.mxu3 %v879_v22  ;;  %v478_v30 = vadd.f32 %v9571_v43, %v459_v28 }
 0x234   :  { %v421_v63 = vmul.f32 %v8795_v1, %v420_v25  ;;  %1542 = vrot.lane.b32.xlu1 %v9760_v48, %s9371_s2  ;;  %v854_v21 = vrot.slane %v9760_v48, 4 }
 0x236   :  { %v425_v20 = vsel %vm424_vm1, %v8795_v1, %v421_v63  ;;  %v898_v34 = vunpack.c.l.b16 %v854_v21 }
 0x237   :  { %v441_v5 = vmul.f32 %v425_v20, %v9696_v52  ;;  %v895_v20 = vunpack.c.l.b16 %v9760_v48 }
 0x238   :  { %v9768_v24 = vpop.f32.mrf.mxu2 }
 0x239   :  { %v664_v16 = vpop.f32.mrf.mxu0  ;;  %v713_v29 = vpop.f32.mrf.mxu1  ;;  %v460_v39 = vmul.f32 %v9553_v8, %v441_v5 }
 0x23a   :  { %v9771_v11 = vpack.c.bf16 %v713_v29, %v664_v16 }
 0x23b   :  { %v479_v55 = vadd.f32 %v9571_v43, %v460_v39 }
 0x23c   :  { %1544 = vrot.lane.b32.xlu0 %v9771_v11, %s9371_s2  ;;  %v855_v52 = vrot.slane %v9771_v11, 4  ;;  %v896_v22 = vunpack.c.l.b16 %v9771_v11 }
 0x23d   :  { %v487_v56 = vpack.c.bf16 %v479_v55, %v478_v30 }
 0x23e   :  { %v899_v37 = vunpack.c.l.b16 %v855_v52  ;;  %v9822_v29 = vpack.c.b16 %v896_v22, %v895_v20 }
 0x23f   :  { %691 = vmatmul.bf16.vlgmr.msra.gmra.mxu3 %v487_v56  ;;  %740 = vmatmul.bf16.gmra.mxu1 %v487_v56 }
 0x240   :  { %789 = vmatmul.bf16.gmra.mxu2 %v487_v56  ;;  %v9779_v8 = vpop.f32.mrf.mxu2  ;;  %v900_v19 = vpack.c.b16 %v899_v37, %v898_v34 }
 0x241   :  { %v667_v26 = vpop.f32.mrf.mxu0  ;;  %v716_v38 = vpop.f32.mrf.mxu1 }
 0x242   :  { %v9781_v53 = vpack.c.bf16 %v716_v38, %v667_v26  ;;  %v905_v43 = vsel %vm874_vm14, %v900_v19, 0 }
 0x243   :  { %914 = vmatpush.bf16.xpose.msra.mxu3 %v905_v43 }
 0x244   :  { %15448 = vst [vmem:[#allocation17_spill] sm:$0xff] %v9781_v53  ;;  %1546 = vrot.lane.b32.xlu0 %v9781_v53, %s9371_s2  ;;  %v856_v27 = vrot.slane %v9781_v53, 4  ;;  %v921_v57 = vunpack.c.l.b16 %v9781_v53 }
 0x246   :  { %v924_v49 = vunpack.c.l.b16 %v856_v27 }
 0x248   :  { %v765_v45 = vpop.f32.mrf.mxu2 }
 0x249   :  { %v669_v46 = vpop.f32.mrf.mxu0  ;;  %v718_v54 = vpop.f32.mrf.mxu1  ;;  %v804_v1 = vpack.c.bf16 %v765_v45, %v765_v45 }
 0x24a   :  { %v9787_v18 = vpack.c.bf16 %v718_v54, %v669_v46 }
 0x24b   :  { %v1365_v10 = vunpack.c.l.b16 %v804_v1 }
 0x24c   :  { %15449 = vst [vmem:[#allocation18_spill] sm:$0xff] %v9787_v18  ;;  %1548 = vrot.lane.b32.xlu1 %v9787_v18, %s9371_s2  ;;  %v922_v58 = vunpack.c.l.b16 %v9787_v18  ;;  %v857_v36 = vrot.slane %v9787_v18, 4 }
 0x24e   :  { %v9798_v42 = vpack.c.b16 %v922_v58, %v921_v57  ;;  %v925_v0 = vunpack.c.l.b16 %v857_v36 }
 0x24f   :  { %8183 = vmatmul.msk.bf16.vlgmr.msrb.gmra.mxu3 %vm874_vm14, %v9796_v62 }
 0x250   :  { %15450 = vst [vmem:[#allocation19_spill] sm:$0xff] %v9798_v42  ;;  %v767_v2 = vpop.f32.mrf.mxu2  ;;  %1636 = vrot.lane.b32.xlu2 %v9798_v42, %s9371_s2  ;;  %v926_v6 = vpack.c.b16 %v925_v0, %v924_v49 }
 0x251   :  { %v806_v23 = vpack.c.bf16 %v767_v2, %v767_v2  ;;  %v672_v3 = vpop.f32.mrf.mxu0  ;;  %v721_v4 = vpop.f32.mrf.mxu1 }
 0x252   :  { %v9804_v50 = vpack.c.bf16 %v721_v4, %v672_v3  ;;  %v931_v44 = vsel %vm874_vm14, %v926_v6, 0 }
 0x253   :  { %v1366_v12 = vunpack.c.l.b16 %v806_v23  ;;  %940 = vmatpush.bf16.xpose.msrb.mxu3 %v931_v44 }
 0x254   :  { %15451 = vst [vmem:[#allocation20_spill] sm:$0xff] %v9804_v50  ;;  %1550 = vrot.lane.b32.xlu0 %v9804_v50, %s9371_s2  ;;  %v858_v63 = vrot.slane %v9804_v50, 4  ;;  %v947_v5 = vunpack.c.l.b16 %v9804_v50 }
 0x255   :  { %v9809_v17 = vpack.c.b16 %v1366_v12, %v1365_v10 }
 0x256   :  { %v950_v21 = vunpack.c.l.b16 %v858_v63 }
 0x257   :  { %15452 = vst [vmem:[#allocation21_spill] sm:$0xff] %v9809_v17  ;;  %1379 = vmatpush.bf16.msrb.mxu2 %v9809_v17 }
 0x258   :  { %v770_v33 = vpop.f32.mrf.mxu2 }
 0x259   :  { %v674_v14 = vpop.f32.mrf.mxu0  ;;  %v723_v25 = vpop.f32.mrf.mxu1  ;;  %v808_v55 = vpack.c.bf16 %v770_v33, %v770_v33 }
 0x25a   :  { %v9813_v15 = vpack.c.bf16 %v723_v25, %v674_v14 }
 0x25b   :  { %v1393_v26 = vunpack.c.l.b16 %v808_v55 }
 0x25c   :  { %15453 = vst [vmem:[#allocation22_spill] sm:$0xff] %v9813_v15  ;;  %1552 = vrot.lane.b32.xlu1 %v9813_v15, %s9371_s2  ;;  %v948_v28 = vunpack.c.l.b16 %v9813_v15  ;;  %v859_v16 = vrot.slane %v9813_v15, 4 }
 0x25e   :  { %v9824_v39 = vpack.c.b16 %v948_v28, %v947_v5  ;;  %v951_v30 = vunpack.c.l.b16 %v859_v16 }
 0x25f   :  { %8184 = vmatmul.msk.bf16.vlgmr.msra.gmra.mxu3 %vm874_vm14, %v9822_v29 }
 0x260   :  { %15454 = vst [vmem:[#allocation23_spill] sm:$0xff] %v9824_v39  ;;  %v772_v52 = vpop.f32.mrf.mxu2  ;;  %1661 = vrot.lane.b32.xlu2 %v9824_v39, %s9371_s2  ;;  %v952_v56 = vpack.c.b16 %v951_v30, %v950_v21 }
 0x261   :  { %v810_v34 = vpack.c.bf16 %v772_v52, %v772_v52  ;;  %v726_v37 = vpop.f32.mrf.mxu1 }
 0x262   :  { %v957_v19 = vsel %vm874_vm14, %v952_v56, 0  ;;  %v9834_v45 = vpack.c.bf16 %v726_v37, %v9732_v31 }
 0x263   :  { %v1394_v38 = vunpack.c.l.b16 %v810_v34  ;;  %966 = vmatpush.bf16.xpose.msra.mxu3 %v957_v19 }
 0x264   :  { %v860_v27 = vrot.slane %v9834_v45, 4  ;;  %v973_v55 = vunpack.c.l.b16 %v9834_v45 }
 0x265   :  { %v9831_v43 = vpack.c.b16 %v1394_v38, %v1393_v26 }
 0x266   :  { %v976_v57 = vunpack.c.l.b16 %v860_v27 }
 0x267   :  { %15455 = vst [vmem:[#allocation24_spill] sm:$0xff] %v9831_v43  ;;  %1407 = vmatpush.bf16.msra.mxu1 %v9831_v43 }
 0x268   :  { %v775_v46 = vpop.f32.mrf.mxu2 }
 0x269   :  { %v728_v54 = vpop.f32.mrf.mxu1  ;;  %v812_v36 = vpack.c.bf16 %v775_v46, %v775_v46 }
 0x26a   :  { %v9838_v47 = vpack.c.bf16 %v728_v54, %v9734_v7 }
 0x26b   :  { %v1421_v6 = vunpack.c.l.b16 %v812_v36 }
 0x26c   :  { %v861_v35 = vrot.slane %v9838_v47, 4  ;;  %v974_v16 = vunpack.c.l.b16 %v9838_v47 }
 0x26e   :  { %v977_v58 = vunpack.c.l.b16 %v861_v35  ;;  %v9879_v34 = vpack.c.b16 %v974_v16, %v973_v55  ;;  %v798_v55 = vpack.c.bf16 %v9758_v9, %v9758_v9 }
 0x26f   :  { %8185 = vmatmul.msk.bf16.vlgmr.msrb.gmra.mxu3 %vm874_vm14, %v9798_v42 }
 0x270   :  { %v777_v49 = vpop.f32.mrf.mxu2  ;;  %v978_v31 = vpack.c.b16 %v977_v58, %v976_v57 }
 0x271   :  { %v814_v0 = vpack.c.bf16 %v777_v49, %v777_v49  ;;  %v731_v1 = vpop.f32.mrf.mxu1 }
 0x272   :  { %v983_v2 = vsel %vm874_vm14, %v978_v31, 0  ;;  %v9848_v3 = vpack.c.bf16 %v731_v1, %v9738_v51 }
 0x273   :  { %v1422_v23 = vunpack.c.l.b16 %v814_v0  ;;  %992 = vmatpush.bf16.xpose.msrb.mxu3 %v983_v2 }
 0x274   :  { %15457 = vst [vmem:[#allocation26_spill] sm:$0xff] %v9848_v3  ;;  %v862_v12 = vrot.slane %v9848_v3, 4  ;;  %v999_v49 = vunpack.c.l.b16 %v9848_v3 }
 0x275   :  { %v9845_v7 = vpack.c.b16 %v1422_v23, %v1421_v6 }
 0x276   :  { %v1002_v14 = vunpack.c.l.b16 %v862_v12 }
 0x277   :  { %15456 = vst [vmem:[#allocation25_spill] sm:$0xff] %v9845_v7  ;;  %1435 = vmatpush.bf16.msra.mxu2 %v9845_v7 }
 0x278   :  { %v9851_v4 = vpop.f32.mrf.mxu2 }
 0x279   :  { %v733_v44 = vpop.f32.mrf.mxu1 }
 0x27a   :  { %v9854_v10 = vpack.c.bf16 %v733_v44, %v9741_v32 }
 0x27c   :  { %15458 = vst [vmem:[#allocation27_spill] sm:$0xff] %v9854_v10  ;;  %v863_v33 = vrot.slane %v9854_v10, 4  ;;  %v1000_v36 = vunpack.c.l.b16 %v9854_v10 }
 0x27e   :  { %v1003_v25 = vunpack.c.l.b16 %v863_v33  ;;  %v9893_v31 = vpack.c.b16 %v1000_v36, %v999_v49 }
 0x27f   :  { %8186 = vmatmul.msk.bf16.vlgmr.msra.gmra.mxu3 %vm874_vm14, %v9824_v39 }
 0x280   :  { %v9860_v22 = vpop.f32.mrf.mxu2  ;;  %v1004_v51 = vpack.c.b16 %v1003_v25, %v1002_v14  ;;  %15463 = vst [vmem:[#allocation32_spill] sm:$0xff] %v9893_v31 }
 0x281   :  { %v736_v63 = vpop.f32.mrf.mxu1 }
 0x282   :  { %v9863_v20 = vpack.c.bf16 %v736_v63, %v9744_v40  ;;  %v1009_v5 = vsel %vm874_vm14, %v1004_v51, 0 }
 0x283   :  { %1018 = vmatpush.bf16.xpose.msra.mxu3 %v1009_v5 }
 0x284   :  { %15459 = vst [vmem:[#allocation28_spill] sm:$0xff] %v9863_v20  ;;  %1562 = vrot.lane.b32.xlu0 %v9863_v20, %s9371_s2  ;;  %v864_v30 = vrot.slane %v9863_v20, 4  ;;  %v1025_v40 = vunpack.c.l.b16 %v9863_v20 }
 0x286   :  { %v1028_v19 = vunpack.c.l.b16 %v864_v30 }
 0x288   :  { %v785_v32 = vpop.f32.mrf.mxu2 }
 0x289   :  { %v738_v28 = vpop.f32.mrf.mxu1  ;;  %v820_v26 = vpack.c.bf16 %v785_v32, %v785_v32 }
 0x28a   :  { %v9870_v21 = vpack.c.bf16 %v738_v28, %v9746_v41 }
 0x28b   :  { %v1477_v35 = vunpack.c.l.b16 %v820_v26 }
 0x28c   :  { %15460 = vst [vmem:[#allocation29_spill] sm:$0xff] %v9870_v21  ;;  %1564 = vrot.lane.b32.xlu1 %v9870_v21, %s9371_s2  ;;  %v1026_v52 = vunpack.c.l.b16 %v9870_v21  ;;  %v865_v56 = vrot.slane %v9870_v21, 4 }
 0x28e   :  { %v9881_v37 = vpack.c.b16 %v1026_v52, %v1025_v40  ;;  %v1029_v41 = vunpack.c.l.b16 %v865_v56 }
 0x28f   :  { %8187 = vmatmul.msk.bf16.vlgmr.msrb.gmra.mxu3 %vm874_vm14, %v9879_v34 }
 0x290   :  { %15461 = vst [vmem:[#allocation30_spill] sm:$0xff] %v9881_v37  ;;  %v787_v38 = vpop.f32.mrf.mxu2  ;;  %1736 = vrot.lane.b32.xlu0 %v9881_v37, %s9371_s2  ;;  %v1030_v46 = vpack.c.b16 %v1029_v41, %v1028_v19  ;;  %v796_v41 = vpack.c.bf16 %v9752_v60, %v9752_v60 }
 0x291   :  { %v822_v54 = vpack.c.bf16 %v787_v38, %v787_v38 }
 0x292   :  { %v1035_v27 = vsel %vm874_vm14, %v1030_v46, 0 }
 0x293   :  { %v1478_v57 = vunpack.c.l.b16 %v822_v54  ;;  %1044 = vmatpush.bf16.xpose.msrb.mxu3 %v1035_v27  ;;  %v1310_v27 = vunpack.c.l.b16 %v798_v55 }
 0x295   :  { %v9888_v58 = vpack.c.b16 %v1478_v57, %v1477_v35 }
 0x297   :  { %15462 = vst [vmem:[#allocation31_spill] sm:$0xff] %v9888_v58  ;;  %1491 = vmatpush.bf16.msrb.mxu0 %v9888_v58 }
 0x29f   :  { %8188 = vmatmul.msk.bf16.vlgmr.msra.gmra.mxu3 %vm874_vm14, %v9893_v31 }
 0x2a6   :  { %v9901_v1 = vpop.permute.xlu1 %1542 }
 0x2ae   :  { %v9899_v0 = vpop.permute.xlu0 %1544 }
 0x2af   :  { %8189 = vmatmul.msk.bf16.vlgmr.msrb.gmra.mxu3 %vm874_vm14, %v9881_v37 }
 0x2b6   :  { %v1547_v2 = vpop.permute.xlu0 %1546 }
 0x2b7   :  { %v1574_v6 = vrot.slane %v1547_v2, 4  ;;  %v1309_v2 = vunpack.c.l.b16 %v796_v41 }
 0x2b9   :  { %v1638_v33 = vunpack.c.l.b16 %v1574_v6  ;;  %v802_v6 = vpack.c.bf16 %v9779_v8, %v9779_v8  ;;  %v827_v8 = vlaneseq }
 0x2bc   :  { %v741_v12 = vpop.f32.mrf.mxu1 }
 0x2be   :  { %v1549_v23 = vpop.permute.xlu1 %1548 }
 0x2bf   :  { %v1575_v44 = vrot.slane %v1549_v23, 4 }
 0x2c1   :  { %v1639_v14 = vunpack.c.l.b16 %v1575_v44  ;;  %v9929_v44 = vpack.c.b16 %v1310_v27, %v1309_v2 }
 0x2c2   :  { %v692_v25 = vpop.f32.mrf.mxu3 }
 0x2c3   :  { %v1640_v51 = vpack.c.b16 %v1639_v14, %v1638_v33  ;;  %v9903_v63 = vpack.c.bf16 %v741_v12, %v692_v25  ;;  %v790_v5 = vpop.f32.mrf.mxu2  ;;  %15467 = vst [vmem:[#allocation36_spill] sm:$0xff] %v9929_v44  ;;  %v800_v33 = vpack.c.bf16 %v9768_v24, %v9768_v24  ;;  %v1338_v14 = vunpack.c.l.b16 %v802_v6 }
 0x2c4   :  { %v824_v28 = vpack.c.bf16 %v790_v5, %v790_v5  ;;  %v743_v16 = vpop.f32.mrf.mxu1  ;;  %v9372_v24 = vmov -1e+30  }
 0x2c5   :  { %15464 = vst [vmem:[#allocation33_spill] sm:$0xff] %v9903_v63  ;;  %1566 = vrot.lane.b32.xlu1 %v9903_v63, %s9371_s2  ;;  %v1645_v32 = vsel %vm874_vm14, %v1640_v51, 0  ;;  %v866_v56 = vrot.slane %v9903_v63, 4  ;;  %v1051_v26 = vunpack.c.l.b16 %v9903_v63  ;;  %v1337_v25 = vunpack.c.l.b16 %v800_v33 }
 0x2c6   :  { %1654 = vmatpush.bf16.xpose.msra.mxu0 %v1645_v32  ;;  %v1505_v54 = vunpack.c.l.b16 %v824_v28  ;;  %v828_v32 = vshrl.u32 %v827_v8, 7  ;;  %v831_v28 = vand.u32 127, %v827_v8 }
 0x2c7   :  { %v1054_v57 = vunpack.c.l.b16 %v866_v56  ;;  %v9935_v51 = vpack.c.b16 %v1338_v14, %v1337_v25 }
 0x2c8   :  { %vm832_vm2 = vcmp.le.s32.totalorder %v831_v28, %v828_v32 }
 0x2c9   :  { %15468 = vst [vmem:[#allocation37_spill] sm:$0xff] %v9935_v51  ;;  %v9940_v55 = vsel %vm832_vm2, 0.0, %v9372_v24 }
 0x2ca   :  { %v694_v30 = vpop.f32.mrf.mxu3  ;;  %15469 = vst [vmem:[#allocation38_spill] sm:$0xff] %v9940_v55 }
 0x2cb   :  { %v9910_v40 = vpack.c.bf16 %v743_v16, %v694_v30  ;;  %v792_v52 = vpop.f32.mrf.mxu2 }
 0x2cc   :  { %v826_v19 = vpack.c.bf16 %v792_v52, %v792_v52  ;;  %v829_v52 = vadd.s32 8, %v828_v32 }
 0x2cd   :  { %15465 = vst [vmem:[#allocation34_spill] sm:$0xff] %v9910_v40  ;;  %1568 = vrot.lane.b32.xlu0 %v9910_v40, %s9371_s2  ;;  %v1052_v38 = vunpack.c.l.b16 %v9910_v40  ;;  %v867_v46 = vrot.slane %v9910_v40, 4 }
 0x2ce   :  { %v1506_v9 = vunpack.c.l.b16 %v826_v19  ;;  %vm833_vm4 = vcmp.le.s32.totalorder %v831_v28, %v829_v52 }
 0x2cf   :  { %v9920_v35 = vpack.c.b16 %v1052_v38, %v1051_v26  ;;  %v1055_v36 = vunpack.c.l.b16 %v867_v46  ;;  %v9947_v46 = vsel %vm833_vm4, 0.0, %v9372_v24 }
 0x2d0   :  { %v9922_v49 = vpack.c.b16 %v1506_v9, %v1505_v54  ;;  %15470 = vst [vmem:[#allocation39_spill] sm:$0xff] %v9947_v46 }
 0x2d1   :  { %15466 = vst [vmem:[#allocation35_spill] sm:$0xff] %v9920_v35  ;;  %1761 = vrot.lane.b32.xlu2 %v9920_v35, %s9371_s2  ;;  %v1056_v60 = vpack.c.b16 %v1055_v36, %v1054_v57 }
 0x2d2   :  { %1519 = vmatpush.bf16.msrb.mxu1 %v9922_v49  ;;  %v890_v23 = vpop.f32.mrf.mxu3 }
 0x2d3   :  { %v1061_v12 = vsel %vm874_vm14, %v1056_v60, 0  ;;  %v1077_v30 = vmul.f32 0.17677669, %v890_v23 }
 0x2d4   :  { %1070 = vmatpush.bf16.xpose.msra.mxu3 %v1061_v12 }
 0x2d5   :  { %v9943_v19 = vadd.f32 %v1077_v30, %v9940_v55 }
 0x2d7   :  { %v1110_v38 = vsel %vm1109_vm3, %v9943_v19, -inf }
 0x2da   :  { %v892_v5 = vpop.f32.mrf.mxu3 }
 0x2db   :  { %8190 = vmatmul.msk.bf16.vlgmr.msra.gmra.mxu3 %vm874_vm14, %v9920_v35  ;;  %v1078_v41 = vmul.f32 0.17677669, %v892_v5 }
 0x2dc   :  { %1323 = vmatpush.bf16.msrb.mxu3 %v9929_v44 }
 0x2dd   :  { %v9955_v57 = vadd.f32 %v1078_v41, %v9947_v46 }
 0x2df   :  { %v1113_v60 = vsel %vm1109_vm3, %v9955_v57, -inf }
 0x2e0   :  { %1351 = vmatpush.bf16.msra.mxu3 %v9935_v51 }
 0x2e2   :  { %v916_v16 = vpop.f32.mrf.mxu3 }
 0x2e3   :  { %v1079_v54 = vmul.f32 0.17677669, %v916_v16 }
 0x2e5   :  { %v9958_v36 = vadd.f32 %v1079_v54, %v9940_v55 }
 0x2e7   :  { %v1116_v6 = vsel %vm1109_vm3, %v9958_v36, -inf }
 0x2ea   :  { %v918_v56 = vpop.f32.mrf.mxu3 }
 0x2eb   :  { %v1080_v26 = vmul.f32 0.17677669, %v918_v56 }
 0x2ed   :  { %v9952_v27 = vadd.f32 %v1080_v26, %v9947_v46 }
 0x2ef   :  { %1111 = vmax.xlane.f32.xlu1 %v1110_v38  ;;  %v1119_v2 = vsel %vm1109_vm3, %v9952_v27, -inf }
 0x2f2   :  { %v9949_v9 = vpop.f32.mrf.mxu3 }
 0x2f7   :  { %1120 = vmax.xlane.f32.xlu1 %v1119_v2  ;;  %1114 = vmax.xlane.f32.xlu0 %v1113_v60 }
 0x2fa   :  { %v9966_v23 = vpop.f32.mrf.mxu3  ;;  %1117 = vmax.xlane.f32.xlu2 %v1116_v6 }
 0x302   :  { %v968_v12 = vpop.f32.mrf.mxu3 }
 0x303   :  { %v1083_v33 = vmul.f32 0.17677669, %v968_v12 }
 0x305   :  { %v9969_v14 = vadd.f32 %v1083_v33, %v9940_v55 }
 0x307   :  { %v1128_v25 = vsel %vm1109_vm3, %v9969_v14, -inf }
 0x308   :  { %1129 = vmax.xlane.f32.xlu1 %v1128_v25 }
 0x30a   :  { %v970_v5 = vpop.f32.mrf.mxu3 }
 0x30b   :  { %v1084_v8 = vmul.f32 0.17677669, %v970_v5 }
 0x30d   :  { %v9974_v32 = vadd.f32 %v1084_v8, %v9947_v46 }
 0x30f   :  { %v1131_v28 = vsel %vm1109_vm3, %v9974_v32, -inf }
 0x310   :  { %1132 = vmax.xlane.f32.xlu2 %v1131_v28 }
 0x312   :  { %v9978_v16 = vpop.f32.mrf.mxu3 }
 0x31a   :  { %v9980_v30 = vpop.f32.mrf.mxu3 }
 0x322   :  { %v1020_v24 = vpop.f32.mrf.mxu3 }
 0x323   :  { %v1087_v52 = vmul.f32 0.17677669, %v1020_v24  ;;  %v10002_v24 = vpop.permute.xlu0 %1550 }
 0x325   :  { %v9983_v56 = vadd.f32 %v1087_v52, %v9940_v55  ;;  %v10004_v52 = vpop.permute.xlu1 %1552 }
 0x327   :  { %v1140_v41 = vsel %vm1109_vm3, %v9983_v56, -inf }
 0x328   :  { %1141 = vmax.xlane.f32.xlu0 %v1140_v41 }
 0x32a   :  { %v1022_v26 = vpop.f32.mrf.mxu3 }
 0x32b   :  { %v1088_v38 = vmul.f32 0.17677669, %v1022_v26  ;;  %v10006_v41 = vpop.permute.xlu0 %1562 }
 0x32d   :  { %v9988_v54 = vadd.f32 %v1088_v38, %v9947_v46  ;;  %v10008_v26 = vpop.permute.xlu1 %1564  ;;  %v10010_v38 = vpop.permute.xlu2 %1636 }
 0x32e   :  { %15471 = vst [vmem:[#allocation40_spill] sm:$0xff] %v10010_v38 }
 0x32f   :  { %v1143_v2 = vsel %vm1109_vm3, %v9988_v54, -inf }
 0x330   :  { %1144 = vmax.xlane.f32.xlu2 %v1143_v2 }
 0x332   :  { %v1046_v60 = vpop.f32.mrf.mxu3 }
 0x333   :  { %v1089_v6 = vmul.f32 0.17677669, %v1046_v60  ;;  %v10012_v2 = vpop.permute.xlu0 %1736 }
 0x334   :  { %15472 = vst [vmem:[#allocation41_spill] sm:$0xff] %v10012_v2 }
 0x335   :  { %v9993_v12 = vadd.f32 %v1089_v6, %v9940_v55  ;;  %v10016_v6 = vpop.permute.xlu2 %1661 }
 0x336   :  { %15474 = vst [vmem:[#allocation43_spill] sm:$0xff] %v10016_v6 }
 0x337   :  { %v1146_v33 = vsel %vm1109_vm3, %v9993_v12, -inf  ;;  %v10014_v60 = vpop.permute.xlu1 %1566 }
 0x338   :  { %1147 = vmax.xlane.f32.xlu2 %v1146_v33  ;;  %15473 = vst [vmem:[#allocation42_spill] sm:$0xff] %v10014_v60 }
 0x33a   :  { %v1048_v25 = vpop.f32.mrf.mxu3 }
 0x33b   :  { %v1090_v5 = vmul.f32 0.17677669, %v1048_v25 }
 0x33d   :  { %v9998_v8 = vadd.f32 %v1090_v5, %v9947_v46  ;;  %v10026_v35 = vpop.permute.xlu2 %1761 }
 0x33e   :  { %15475 = vst [vmem:[#allocation44_spill] sm:$0xff] %v10026_v35 }
 0x33f   :  { %v1149_v28 = vsel %vm1109_vm3, %v9998_v8, -inf }
 0x340   :  { %1150 = vmax.xlane.f32.xlu0 %v1149_v28  ;;  %v10021_v28 = vpop.permute.xlu0 %1568 }
 0x35e   :  { %v1072_v33 = vpop.f32.mrf.mxu3 }
 0x35f   :  { %v1091_v25 = vmul.f32 0.17677669, %v1072_v33 }
 0x361   :  { %v10019_v5 = vadd.f32 %v1091_v25, %v9940_v55 }
 0x362   :  { %v1112_v13 = vpop.xlane.xlu1 %1111 }
 0x363   :  { %v1158_v7 = vsub.f32 %v9943_v19, %v1112_v13  ;;  %v1152_v44 = vsel %vm1109_vm3, %v10019_v5, -inf }
 0x364   :  { %1153 = vmax.xlane.f32.xlu0 %v1152_v44 }
 0x365   :  { %v1174_v51 = vmul.f32 1.442695, %v1158_v7 }
 0x366   :  { %v1074_v2 = vpop.f32.mrf.mxu3 }
 0x367   :  { %v1092_v39 = vmul.f32 0.17677669, %v1074_v2  ;;  %8796 = vpow2.f32 %v1174_v51 }
 0x369   :  { %v10029_v6 = vadd.f32 %v1092_v39, %v9947_v46 }
 0x36a   :  { %v1115_v33 = vpop.xlane.xlu0 %1114  ;;  %v1121_v25 = vpop.xlane.xlu1 %1120 }
 0x36b   :  { %v1159_v60 = vsub.f32 %v9955_v57, %v1115_v33  ;;  %v1161_v38 = vsub.f32 %v9952_v27, %v1121_v25  ;;  %v1155_v13 = vsel %vm1109_vm3, %v10029_v6, -inf }
 0x36c   :  { %1156 = vmax.xlane.f32.xlu1 %v1155_v13 }
 0x36d   :  { %v1176_v44 = vmul.f32 1.442695, %v1159_v60  ;;  %v1180_v19 = vmul.f32 1.442695, %v1161_v38  ;;  %v1118_v35 = vpop.xlane.xlu2 %1117  ;;  %v10036_v2 = vpop.eup %8796 }
 0x36e   :  { %v1160_v7 = vsub.f32 %v9958_v36, %v1118_v35  ;;  %v1206_v51 = vsel %vm1109_vm3, %v10036_v2, 0.0 }
 0x36f   :  { %8798 = vpow2.f32 %v1176_v44 }
 0x370   :  { %v1178_v39 = vmul.f32 1.442695, %v1160_v7  ;;  %8800 = vpow2.f32 %v1180_v19 }
 0x372   :  { %8802 = vpow2.f32 %v1178_v39 }
 0x374   :  { %1207 = vadd.xlane.f32.xlu1 %v1206_v51 }
 0x375   :  { %v10040_v27 = vpop.eup %8798 }
 0x376   :  { %v1209_v57 = vsel %vm1109_vm3, %v10040_v27, 0.0  ;;  %v10044_v60 = vpop.eup %8800 }
 0x377   :  { %1210 = vadd.xlane.f32.xlu0 %v1209_v57  ;;  %v1215_v33 = vsel %vm1109_vm3, %v10044_v60, 0.0 }
 0x378   :  { %v10046_v38 = vpop.eup %8802 }
 0x379   :  { %v1212_v35 = vsel %vm1109_vm3, %v10046_v38, 0.0 }
 0x37a   :  { %1213 = vadd.xlane.f32.xlu2 %v1212_v35 }
 0x37b   :  { %v1130_v36 = vpop.xlane.xlu1 %1129 }
 0x37c   :  { %v1164_v25 = vsub.f32 %v9969_v14, %v1130_v36  ;;  %1216 = vadd.xlane.f32.xlu1 %v1215_v33 }
 0x37e   :  { %v1186_v13 = vmul.f32 1.442695, %v1164_v25 }
 0x380   :  { %8804 = vpow2.f32 %v1186_v13 }
 0x383   :  { %v1133_v44 = vpop.xlane.xlu2 %1132 }
 0x384   :  { %v1165_v19 = vsub.f32 %v9974_v32, %v1133_v44 }
 0x386   :  { %v10054_v7 = vpop.eup %8804  ;;  %v1188_v39 = vmul.f32 1.442695, %v1165_v19 }
 0x387   :  { %v1224_v51 = vsel %vm1109_vm3, %v10054_v7, 0.0 }
 0x388   :  { %8806 = vpow2.f32 %v1188_v39  ;;  %1225 = vadd.xlane.f32.xlu1 %v1224_v51 }
 0x38e   :  { %v10058_v57 = vpop.eup %8806 }
 0x38f   :  { %v1227_v35 = vsel %vm1109_vm3, %v10058_v57, 0.0 }
 0x390   :  { %1228 = vadd.xlane.f32.xlu2 %v1227_v35 }
 0x39b   :  { %v1142_v14 = vpop.xlane.xlu0 %1141 }
 0x39c   :  { %v1168_v36 = vsub.f32 %v9983_v56, %v1142_v14 }
 0x39e   :  { %v1194_v33 = vmul.f32 1.442695, %v1168_v36 }
 0x3a0   :  { %8808 = vpow2.f32 %v1194_v33 }
 0x3a1   :  { %1560 = vrot.lane.b32.xlu1 %v9854_v10, %s9371_s2 }
 0x3a3   :  { %v1145_v32 = vpop.xlane.xlu2 %1144 }
 0x3a4   :  { %v1169_v25 = vsub.f32 %v9988_v54, %v1145_v32 }
 0x3a6   :  { %v10066_v13 = vpop.eup %8808  ;;  %v1196_v44 = vmul.f32 1.442695, %v1169_v25  ;;  %v1081_v25 = vmul.f32 0.17677669, %v9949_v9 }
 0x3a7   :  { %v1236_v19 = vsel %vm1109_vm3, %v10066_v13, 0.0 }
 0x3a8   :  { %8810 = vpow2.f32 %v1196_v44  ;;  %1237 = vadd.xlane.f32.xlu0 %v1236_v19  ;;  %v10092_v44 = vadd.f32 %v1081_v25, %v9940_v55 }
 0x3a9   :  { %2065 = vrot.lane.b32.xlu1 %v9809_v17, %s9371_s2 }
 0x3ab   :  { %v1148_v56 = vpop.xlane.xlu2 %1147 }
 0x3ac   :  { %v1170_v39 = vsub.f32 %v9993_v12, %v1148_v56 }
 0x3ae   :  { %v10073_v51 = vpop.eup %8810  ;;  %v1198_v35 = vmul.f32 1.442695, %v1170_v39 }
 0x3af   :  { %v1239_v54 = vsel %vm1109_vm3, %v10073_v51, 0.0 }
 0x3b0   :  { %8812 = vpow2.f32 %v1198_v35  ;;  %1240 = vadd.xlane.f32.xlu2 %v1239_v54  ;;  %v1122_v35 = vsel %vm1109_vm3, %v10092_v44, -inf }
 0x3b1   :  { %2394 = vrot.lane.b32.xlu1 %v9754_v61, %s9367_s29 }
 0x3b3   :  { %v1151_v12 = vpop.xlane.xlu0 %1150 }
 0x3b4   :  { %v1171_v33 = vsub.f32 %v9998_v8, %v1151_v12 }
 0x3b6   :  { %v10079_v14 = vpop.eup %8812  ;;  %v1200_v32 = vmul.f32 1.442695, %v1171_v33 }
 0x3b7   :  { %v1242_v36 = vsel %vm1109_vm3, %v10079_v14, 0.0 }
 0x3b8   :  { %1243 = vadd.xlane.f32.xlu2 %v1242_v36  ;;  %8814 = vpow2.f32 %v1200_v32 }
 0x3b9   :  { %2090 = vrot.lane.b32.xlu1 %v9831_v43, %s9371_s2 }
 0x3bc   :  { %1558 = vrot.lane.b32.xlu0 %v9848_v3, %s9371_s2 }
 0x3be   :  { %v10094_v56 = vpop.eup %8814 }
 0x3bf   :  { %v1245_v54 = vsel %vm1109_vm3, %v10094_v56, 0.0 }
 0x3d0   :  { %1611 = vrot.lane.b32.xlu2 %v9822_v29, %s9371_s2 }
 0x3d7   :  { %v1154_v39 = vpop.xlane.xlu0 %1153 }
 0x3d8   :  { %v1172_v8 = vsub.f32 %v10019_v5, %v1154_v39  ;;  %v816_v39 = vpack.c.bf16 %v9851_v4, %v9851_v4 }
 0x3da   :  { %v1202_v12 = vmul.f32 1.442695, %v1172_v8 }
 0x3df   :  { %v1157_v19 = vpop.xlane.xlu1 %1156 }
 0x3e0   :  { %v1173_v32 = vsub.f32 %v10029_v6, %v1157_v19 }
 0x3e2   :  { %v1204_v8 = vmul.f32 1.442695, %v1173_v32 }
 0x3e3   :  { %1123 = vmax.xlane.f32.xlu1 %v1122_v35  ;;  %v818_v35 = vpack.c.bf16 %v9860_v22, %v9860_v22 }
 0x3e5   :  { %v1450_v6 = vunpack.c.l.b16 %v818_v35 }
 0x3e6   :  { %1246 = vadd.xlane.f32.xlu0 %v1245_v54 }
 0x3e7   :  { %v1208_v36 = vpop.xlane.xlu1 %1207 }
 0x3e8   :  { %8816 = vrcp.f32 %v1208_v36 }
 0x3ea   :  { %v1211_v9 = vpop.xlane.xlu0 %1210 }
 0x3eb   :  { %8818 = vrcp.f32 %v1211_v9 }
 0x3ec   :  { %8820 = vpow2.f32 %v1202_v12  ;;  %v1449_v12 = vunpack.c.l.b16 %v816_v39 }
 0x3ed   :  { %v1214_v5 = vpop.xlane.xlu2 %1213 }
 0x3ee   :  { %v8817_v33 = vpop.eup %8816 }
 0x3ef   :  { %v1270_v25 = vmul.f32 %v8817_v33, %v10036_v2  ;;  %v1217_v17 = vpop.xlane.xlu1 %1216 }
 0x3f0   :  { %8822 = vrcp.f32 %v1217_v17 }
 0x3f1   :  { %v8819_v61 = vpop.eup %8818  ;;  %v1286_v43 = vpack.c.bf16 %v1270_v25, %v1270_v25  ;;  %8824 = vrcp.f32 %v1214_v5  ;;  %v1573_v25 = vrot.slane %v9899_v0, 4 }
 0x3f2   :  { %v1271_v54 = vmul.f32 %v8819_v61, %v10040_v27  ;;  %v10108_v9 = vpop.eup %8820  ;;  %8826 = vpow2.f32 %v1204_v8  ;;  %v10112_v27 = vpack.c.b16 %v1450_v6, %v1449_v12  ;;  %v1577_v12 = vrot.slane %v10004_v52, 4 }
 0x3f3   :  { %v1304_v2 = vunpack.c.l.b16 %v1286_v43  ;;  %v1248_v22 = vsel %vm1109_vm3, %v10108_v9, 0.0  ;;  %v1614_v8 = vunpack.c.l.b16 %v1573_v25 }
 0x3f4   :  { %v1287_v36 = vpack.c.bf16 %v1271_v54, %v1271_v54  ;;  %v1572_v54 = vrot.slane %v9901_v1, 4 }
 0x3f6   :  { %v1305_v19 = vunpack.c.l.b16 %v1287_v36  ;;  %v8823_v61 = vpop.eup %8822 }
 0x3f7   :  { %v8825_v17 = vpop.eup %8824  ;;  %v1273_v4 = vmul.f32 %v8823_v61, %v10044_v60 }
 0x3f8   :  { %v1306_v33 = vpack.c.b16 %v1305_v19, %v1304_v2  ;;  %v10121_v32 = vpop.eup %8826  ;;  %v1272_v35 = vmul.f32 %v8825_v17, %v10046_v38  ;;  %v1613_v2 = vunpack.c.l.b16 %v1572_v54 }
 0x3f9   :  { %1249 = vadd.xlane.f32.xlu2 %v1248_v22  ;;  %v1289_v5 = vpack.c.bf16 %v1273_v4, %v1273_v4  ;;  %v1251_v39 = vsel %vm1109_vm3, %v10121_v32, 0.0  ;;  %v1576_v22 = vrot.slane %v10002_v24, 4 }
 0x3fa   :  { %2392 = vrot.lane.b32.xlu0 %v9750_v59, %s9367_s29  ;;  %8191 = vmatmul.msk.bf16.vlgmr.msrb.gmra.mxu3 %vm1109_vm3, %v1306_v33  ;;  %v1288_v36 = vpack.c.bf16 %v1272_v35, %v1272_v35  ;;  %v1615_v0 = vpack.c.b16 %v1614_v8, %v1613_v2 }
 0x3fb   :  { %1463 = vmatpush.bf16.msrb.mxu3 %v10112_v27  ;;  %v1226_v43 = vpop.xlane.xlu1 %1225  ;;  %v1333_v19 = vunpack.c.l.b16 %v1289_v5  ;;  %v1663_v35 = vunpack.c.l.b16 %v1576_v22 }
 0x3fc   :  { %2402 = vrot.lane.b32.xlu1 %v9787_v18, %s9367_s29  ;;  %8828 = vrcp.f32 %v1226_v43  ;;  %v1332_v38 = vunpack.c.l.b16 %v1288_v36  ;;  %v1620_v17 = vsel %vm874_vm14, %v1615_v0, 0  ;;  %v1664_v43 = vunpack.c.l.b16 %v1577_v12 }
 0x3fe   :  { %v1334_v33 = vpack.c.b16 %v1333_v19, %v1332_v38  ;;  %v1665_v5 = vpack.c.b16 %v1664_v43, %v1663_v35  ;;  %v1085_v19 = vmul.f32 0.17677669, %v9978_v16 }
 0x400   :  { %v1670_v24 = vsel %vm874_vm14, %v1665_v5, 0 }
 0x401   :  { %1252 = vadd.xlane.f32.xlu2 %v1251_v39 }
 0x402   :  { %v8829_v6 = vpop.eup %8828 }
 0x403   :  { %v1229_v60 = vpop.xlane.xlu2 %1228  ;;  %v1276_v1 = vmul.f32 %v8829_v6, %v10054_v7  ;;  %v1082_v7 = vmul.f32 0.17677669, %v9966_v23  ;;  %v10153_v23 = vadd.f32 %v1085_v19, %v9940_v55 }
 0x404   :  { %8830 = vrcp.f32 %v1229_v60  ;;  %2490 = vrot.lane.b32.xlu1 %v9798_v42, %s9367_s29 }
 0x405   :  { %v1292_v4 = vpack.c.bf16 %v1276_v1, %v1276_v1 }
 0x407   :  { %v1388_v39 = vunpack.c.l.b16 %v1292_v4 }
 0x40a   :  { %v8831_v61 = vpop.eup %8830  ;;  %8192 = vmatmul.msk.bf16.vlgmr.msra.gmra.mxu3 %vm1109_vm3, %v1334_v33 }
 0x40b   :  { %v1277_v25 = vmul.f32 %v8831_v61, %v10058_v57  ;;  %1629 = vmatpush.bf16.xpose.msra.mxu3 %v1620_v17  ;;  %v10142_v57 = vadd.f32 %v1082_v7, %v9947_v46  ;;  %v1134_v17 = vsel %vm1109_vm3, %v10153_v23, -inf }
 0x40d   :  { %v1293_v54 = vpack.c.bf16 %v1277_v25, %v1277_v25  ;;  %v1125_v6 = vsel %vm1109_vm3, %v10142_v57, -inf }
 0x40f   :  { %v1389_v52 = vunpack.c.l.b16 %v1293_v54 }
 0x411   :  { %v1390_v8 = vpack.c.b16 %v1389_v52, %v1388_v39 }
 0x413   :  { %8194 = vmatmul.msk.bf16.vlgmr.msra.gmra.mxu1 %vm1109_vm3, %v1390_v8  ;;  %v1561_v12 = vpop.permute.xlu1 %1560  ;;  %v1086_v8 = vmul.f32 0.17677669, %v9980_v30 }
 0x414   :  { %1679 = vmatpush.bf16.xpose.msra.mxu1 %v1670_v24  ;;  %v1581_v22 = vrot.slane %v1561_v12, 4 }
 0x416   :  { %v1714_v25 = vunpack.c.l.b16 %v1581_v22 }
 0x419   :  { %1711 = vrot.lane.b32.xlu2 %v9893_v31, %s9371_s2 }
 0x41b   :  { %v1238_v36 = vpop.xlane.xlu0 %1237 }
 0x41c   :  { %8832 = vrcp.f32 %v1238_v36  ;;  %v1583_v36 = vrot.slane %v10008_v26, 4 }
 0x41e   :  { %v1739_v30 = vunpack.c.l.b16 %v1583_v36 }
 0x421   :  { %2165 = vrot.lane.b32.xlu2 %v9888_v58, %s9371_s2 }
 0x422   :  { %v8833_v2 = vpop.eup %8832 }
 0x423   :  { %v1241_v60 = vpop.xlane.xlu2 %1240  ;;  %v1280_v0 = vmul.f32 %v8833_v2, %v10066_v13  ;;  %v1582_v2 = vrot.slane %v10006_v41, 4 }
 0x424   :  { %8834 = vrcp.f32 %v1241_v60  ;;  %1126 = vmax.xlane.f32.xlu0 %v1125_v6  ;;  %v10185_v6 = vadd.f32 %v1086_v8, %v9947_v46 }
 0x425   :  { %v1296_v1 = vpack.c.bf16 %v1280_v0, %v1280_v0 }
 0x426   :  { %v1137_v26 = vsel %vm1109_vm3, %v10185_v6, -inf }
 0x427   :  { %v1444_v16 = vunpack.c.l.b16 %v1296_v1 }
 0x429   :  { %2400 = vrot.lane.b32.xlu2 %v9781_v53, %s9367_s29 }
 0x42a   :  { %v8835_v38 = vpop.eup %8834 }
 0x42b   :  { %v1281_v33 = vmul.f32 %v8835_v38, %v10073_v51  ;;  %v1244_v39 = vpop.xlane.xlu2 %1243 }
 0x42c   :  { %8836 = vrcp.f32 %v1244_v39 }
 0x42d   :  { %v1297_v61 = vpack.c.bf16 %v1281_v33, %v1281_v33 }
 0x42e   :  { %v1559_v43 = vpop.permute.xlu0 %1558  ;;  %1135 = vmax.xlane.f32.xlu1 %v1134_v17  ;;  %v2066_v17 = vpop.permute.xlu1 %2065 }
 0x42f   :  { %v1445_v13 = vunpack.c.l.b16 %v1297_v61  ;;  %v1580_v4 = vrot.slane %v1559_v43, 4 }
 0x431   :  { %v1446_v35 = vpack.c.b16 %v1445_v13, %v1444_v16  ;;  %v1713_v54 = vunpack.c.l.b16 %v1580_v4  ;;  %2396 = vrot.lane.b32.xlu2 %v9760_v48, %s9367_s29  ;;  %v1585_v13 = vrot.slane %v10021_v28, 4 }
 0x432   :  { %v8837_v7 = vpop.eup %8836 }
 0x433   :  { %v1715_v5 = vpack.c.b16 %v1714_v25, %v1713_v54  ;;  %8196 = vmatmul.msk.bf16.vlgmr.msrb.gmra.mxu3 %vm1109_vm3, %v1446_v35  ;;  %v1612_v52 = vpop.permute.xlu2 %1611  ;;  %v1282_v60 = vmul.f32 %v8837_v7, %v10079_v14  ;;  %v1738_v14 = vunpack.c.l.b16 %v1582_v2  ;;  %v15476_v25 = vld [vmem:[#allocation40_spill] sm:$0xff]  ;;  %v15477_v35 = vld [vmem:[#allocation42_spill] sm:$0xff] }
 0x434   :  { %v1584_v54 = vrot.slane %v15477_v35, 4 }
 0x435   :  { %v1720_v51 = vsel %vm874_vm14, %v1715_v5, 0  ;;  %v1298_v0 = vpack.c.bf16 %v1282_v60, %v1282_v60  ;;  %v1740_v1 = vpack.c.b16 %v1739_v30, %v1738_v14  ;;  %v15478_v5 = vld [vmem:[#allocation23_spill] sm:$0xff] }
 0x436   :  { %1729 = vmatpush.bf16.xpose.msrb.mxu3 %v1720_v51  ;;  %v10214_v39 = vpop.permute.xlu1 %2394 }
 0x437   :  { %v1472_v33 = vunpack.c.l.b16 %v1298_v0 }
 0x438   :  { %2440 = vrot.lane.b32.xlu0 %v9796_v62, %s9367_s29 }
 0x439   :  { %2408 = vrot.lane.b32.xlu2 %v9834_v45, %s9367_s29 }
 0x43e   :  { %v2091_v0 = vpop.permute.xlu1 %2090 }
 0x440   :  { %2190 = vrot.lane.b32.xlu0 %v9922_v49, %s9371_s2 }
 0x443   :  { %8200 = vmatmul.msk.bf16.vlgmr.msra.gmra.mxu3 %vm874_vm14, %v1612_v52  ;;  %v1764_v52 = vunpack.c.l.b16 %v1585_v13 }
 0x447   :  { %2418 = vrot.lane.b32.xlu1 %v9870_v21, %s9367_s29 }
 0x448   :  { %2398 = vrot.lane.b32.xlu0 %v9771_v11, %s9367_s29 }
 0x44f   :  { %2412 = vrot.lane.b32.xlu1 %v9848_v3, %s9367_s29 }
 0x450   :  { %2410 = vrot.lane.b32.xlu0 %v9838_v47, %s9367_s29 }
 0x457   :  { %2414 = vrot.lane.b32.xlu1 %v9854_v10, %s9367_s29 }
 0x458   :  { %2465 = vrot.lane.b32.xlu0 %v9822_v29, %s9367_s29 }
 0x459   :  { %v1247_v24 = vpop.xlane.xlu0 %1246 }
 0x45a   :  { %8838 = vrcp.f32 %v1247_v24  ;;  %v1763_v24 = vunpack.c.l.b16 %v1584_v54 }
 0x45c   :  { %v1765_v36 = vpack.c.b16 %v1764_v52, %v1763_v24 }
 0x45e   :  { %v1770_v30 = vsel %vm874_vm14, %v1765_v36, 0 }
 0x45f   :  { %2590 = vrot.lane.b32.xlu1 %v9881_v37, %s9367_s29 }
 0x460   :  { %v8839_v19 = vpop.eup %8838  ;;  %2404 = vrot.lane.b32.xlu0 %v9804_v50, %s9367_s29 }
 0x461   :  { %v1283_v38 = vmul.f32 %v8839_v19, %v10094_v56  ;;  %v1745_v56 = vsel %vm874_vm14, %v1740_v1, 0 }
 0x462   :  { %1138 = vmax.xlane.f32.xlu2 %v1137_v26  ;;  %v15479_v26 = vld [vmem:[#allocation41_spill] sm:$0xff] }
 0x463   :  { %v1299_v12 = vpack.c.bf16 %v1283_v38, %v1283_v38 }
 0x465   :  { %v1473_v41 = vunpack.c.l.b16 %v1299_v12 }
 0x467   :  { %2420 = vrot.lane.b32.xlu1 %v9903_v63, %s9367_s29  ;;  %v1474_v22 = vpack.c.b16 %v1473_v41, %v1472_v33  ;;  %v15480_v41 = vld [vmem:[#allocation43_spill] sm:$0xff] }
 0x468   :  { %2406 = vrot.lane.b32.xlu0 %v9813_v15, %s9367_s29 }
 0x469   :  { %8197 = vmatmul.msk.bf16.vlgmr.msrb.gmra.mxu0 %vm1109_vm3, %v1474_v22 }
 0x46a   :  { %1754 = vmatpush.bf16.xpose.msrb.mxu0 %v1745_v56 }
 0x46c   :  { %v1250_v61 = vpop.xlane.xlu2 %1249  ;;  %v10222_v14 = vpop.permute.xlu0 %2392 }
 0x46d   :  { %8840 = vrcp.f32 %v1250_v61 }
 0x46f   :  { %2422 = vrot.lane.b32.xlu1 %v9910_v40, %s9367_s29 }
 0x470   :  { %2540 = vrot.lane.b32.xlu0 %v9879_v34, %s9367_s29 }
 0x473   :  { %v8841_v16 = vpop.eup %8840 }
 0x474   :  { %v1253_v43 = vpop.xlane.xlu2 %1252  ;;  %v1284_v4 = vmul.f32 %v8841_v16, %v10108_v9 }
 0x475   :  { %8842 = vrcp.f32 %v1253_v43 }
 0x476   :  { %v1300_v8 = vpack.c.bf16 %v1284_v4, %v1284_v4 }
 0x478   :  { %2416 = vrot.lane.b32.xlu0 %v9863_v20, %s9367_s29  ;;  %v1500_v60 = vunpack.c.l.b16 %v1300_v8 }
 0x479   :  { %8201 = vmatmul.msk.bf16.vlgmr.msra.gmra.mxu0 %vm874_vm14, %v15476_v25  ;;  %v15483_v25 = vld [vmem:[#allocation44_spill] sm:$0xff] }
 0x47a   :  { %2078 = vmatpush.bf16.msra.mxu0 %v2066_v17  ;;  %2515 = vrot.lane.b32.xlu2 %v15478_v5, %s9367_s29 }
 0x47b   :  { %v8843_v51 = vpop.eup %8842 }
 0x47c   :  { %v1285_v28 = vmul.f32 %v8843_v51, %v10121_v32  ;;  %v1712_v9 = vpop.permute.xlu2 %1711  ;;  %v1124_v32 = vpop.xlane.xlu1 %1123 }
 0x47d   :  { %8204 = vmatmul.msk.bf16.vlgmr.msrb.gmra.mxu3 %vm874_vm14, %v1712_v9  ;;  %v1162_v12 = vsub.f32 %v10092_v44, %v1124_v32  ;;  %v10225_v1 = vpop.f32.mrf.mxu3 }
 0x47e   :  { %v1301_v7 = vpack.c.bf16 %v1285_v28, %v1285_v28 }
 0x47f   :  { %v1182_v33 = vmul.f32 1.442695, %v1162_v12 }
 0x480   :  { %v1501_v2 = vunpack.c.l.b16 %v1301_v7 }
 0x481   :  { %8844 = vpow2.f32 %v1182_v33 }
 0x482   :  { %v1502_v19 = vpack.c.b16 %v1501_v2, %v1500_v60 }
 0x484   :  { %8198 = vmatmul.msk.bf16.vlgmr.msrb.gmra.mxu1 %vm1109_vm3, %v1502_v19  ;;  %v2166_v38 = vpop.permute.xlu2 %2165 }
 0x485   :  { %1779 = vmatpush.bf16.xpose.msrb.mxu1 %v1770_v30  ;;  %v10230_v61 = vpop.f32.mrf.mxu3 }
 0x486   :  { %15481 = vst [vmem:[#allocation40_spill] sm:$0xff] %v10230_v61 }
 0x487   :  { %v10232_v43 = vpop.eup %8844 }
 0x488   :  { %v1218_v44 = vsel %vm1109_vm3, %v10232_v43, 0.0 }
 0x489   :  { %8205 = vmatmul.msk.bf16.vlgmr.msrb.gmra.mxu0 %vm874_vm14, %v15479_v26 }
 0x48a   :  { %2178 = vmatpush.bf16.msrb.mxu0 %v2166_v38 }
 0x48c   :  { %v10272_v26 = vpop.permute.xlu2 %2400 }
 0x48d   :  { %v10240_v4 = vpop.f32.mrf.mxu3 }
 0x48e   :  { %15482 = vst [vmem:[#allocation42_spill] sm:$0xff] %v10240_v4 }
 0x490   :  { %v10276_v12 = vpop.f32.mrf.mxu1 }
 0x491   :  { %15489 = vst [vmem:[#allocation47_spill] sm:$0xff] %v10276_v12 }
 0x494   :  { %8202 = vmatmul.msk.bf16.vlgmr.msra.gmra.mxu1 %vm874_vm14, %v15480_v41  ;;  %v10280_v41 = vpop.permute.xlu2 %2396 }
 0x495   :  { %2103 = vmatpush.bf16.msra.mxu1 %v2091_v0  ;;  %v10246_v35 = vpop.f32.mrf.mxu3 }
 0x496   :  { %15484 = vst [vmem:[#allocation41_spill] sm:$0xff] %v10246_v35 }
 0x497   :  { %v1127_v22 = vpop.xlane.xlu0 %1126 }
 0x498   :  { %v1163_v56 = vsub.f32 %v10142_v57, %v1127_v22 }
 0x49a   :  { %v1184_v17 = vmul.f32 1.442695, %v1163_v56 }
 0x49c   :  { %8846 = vpow2.f32 %v1184_v17  ;;  %v10282_v17 = vpop.f32.mrf.mxu1 }
 0x49d   :  { %15490 = vst [vmem:[#allocation48_spill] sm:$0xff] %v10282_v17 }
 0x4a2   :  { %v10236_v16 = vpop.eup %8846  ;;  %1219 = vadd.xlane.f32.xlu0 %v1218_v44 }
 0x4a3   :  { %v1221_v13 = vsel %vm1109_vm3, %v10236_v16, 0.0 }
 0x4a4   :  { %1222 = vadd.xlane.f32.xlu2 %v1221_v13  ;;  %8206 = vmatmul.msk.bf16.vlgmr.msrb.gmra.mxu1 %vm874_vm14, %v15483_v25 }
 0x4aa   :  { %v10244_v57 = vpop.permute.xlu0 %2440 }
 0x4b2   :  { %v2191_v54 = vpop.permute.xlu0 %2190 }
 0x4b3   :  { %2203 = vmatpush.bf16.msrb.mxu1 %v2191_v54  ;;  %v10291_v54 = vpop.permute.xlu2 %2408 }
 0x4b6   :  { %2565 = vrot.lane.b32.xlu0 %v9893_v31, %s9367_s29  ;;  %v10250_v51 = vpop.f32.mrf.mxu3 }
 0x4b7   :  { %15485 = vst [vmem:[#allocation43_spill] sm:$0xff] %v10250_v51 }
 0x4ba   :  { %v10254_v24 = vpop.permute.xlu0 %2398 }
 0x4be   :  { %v10252_v52 = vpop.f32.mrf.mxu3 }
 0x4bf   :  { %15486 = vst [vmem:[#allocation44_spill] sm:$0xff] %v10252_v52 }
 0x4c2   :  { %v10261_v2 = vpop.permute.xlu0 %2410 }
 0x4c6   :  { %v1631_v8 = vpop.f32.mrf.mxu3 }
 0x4c7   :  { %v1788_v60 = vmul.f32 0.17677669, %v1631_v8 }
 0x4c9   :  { %v10264_v19 = vadd.f32 %v1788_v60, %v9940_v55 }
 0x4ca   :  { %v10268_v0 = vpop.permute.xlu0 %2465 }
 0x4cb   :  { %v1824_v30 = vsel %vm1109_vm3, %v10264_v19, -inf }
 0x4ce   :  { %v1633_v28 = vpop.f32.mrf.mxu3 }
 0x4cf   :  { %v1789_v9 = vmul.f32 0.17677669, %v1633_v28 }
 0x4d1   :  { %v10257_v7 = vadd.f32 %v1789_v9, %v9947_v46 }
 0x4d2   :  { %v10278_v33 = vpop.permute.xlu0 %2404 }
 0x4d3   :  { %v1827_v36 = vsel %vm1109_vm3, %v10257_v7, -inf }
 0x4d4   :  { %1828 = vmax.xlane.f32.xlu1 %v1827_v36 }
 0x4da   :  { %v10284_v44 = vpop.permute.xlu0 %2406 }
 0x4e0   :  { %1825 = vmax.xlane.f32.xlu0 %v1824_v30 }
 0x4e2   :  { %v10298_v60 = vpop.permute.xlu0 %2540 }
 0x4e6   :  { %v10270_v38 = vpop.f32.mrf.mxu0 }
 0x4e7   :  { %15487 = vst [vmem:[#allocation45_spill] sm:$0xff] %v10270_v38 }
 0x4ee   :  { %v10274_v32 = vpop.f32.mrf.mxu0 }
 0x4ef   :  { %15488 = vst [vmem:[#allocation46_spill] sm:$0xff] %v10274_v32 }
 0x4f6   :  { %v1656_v22 = vpop.f32.mrf.mxu0 }
 0x4f7   :  { %v1790_v56 = vmul.f32 0.17677669, %v1656_v22  ;;  %v10302_v22 = vpop.xlane.xlu2 %1138 }
 0x4f9   :  { %v10287_v13 = vadd.f32 %v1790_v56, %v9940_v55 }
 0x4fb   :  { %v1830_v25 = vsel %vm1109_vm3, %v10287_v13, -inf }
 0x4fc   :  { %1831 = vmax.xlane.f32.xlu0 %v1830_v25 }
 0x4fe   :  { %v1658_v8 = vpop.f32.mrf.mxu0 }
 0x4ff   :  { %v1791_v28 = vmul.f32 0.17677669, %v1658_v8  ;;  %v10313_v63 = vpop.permute.xlu2 %2515 }
 0x501   :  { %v10293_v9 = vpop.f32.mrf.mxu1  ;;  %v10296_v36 = vadd.f32 %v1791_v28, %v9947_v46  ;;  %v10311_v28 = vpop.permute.xlu0 %2416 }
 0x502   :  { %15491 = vst [vmem:[#allocation49_spill] sm:$0xff] %v10293_v9 }
 0x503   :  { %v1833_v30 = vsel %vm1109_vm3, %v10296_v36, -inf }
 0x504   :  { %1834 = vmax.xlane.f32.xlu1 %v1833_v30 }
 0x506   :  { %v1756_v56 = vpop.f32.mrf.mxu0 }
 0x507   :  { %v1798_v20 = vmul.f32 0.17677669, %v1756_v56 }
 0x509   :  { %v10304_v25 = vpop.f32.mrf.mxu1  ;;  %v10307_v21 = vadd.f32 %v1798_v20, %v9940_v55 }
 0x50a   :  { %15492 = vst [vmem:[#allocation50_spill] sm:$0xff] %v10304_v25 }
 0x50b   :  { %v1854_v8 = vsel %vm1109_vm3, %v10307_v21, -inf }
 0x50c   :  { %1855 = vmax.xlane.f32.xlu2 %v1854_v8 }
 0x50e   :  { %v1758_v40 = vpop.f32.mrf.mxu0 }
 0x50f   :  { %v1799_v37 = vmul.f32 0.17677669, %v1758_v40 }
 0x511   :  { %v1681_v30 = vpop.f32.mrf.mxu1  ;;  %v10316_v31 = vadd.f32 %v1799_v37, %v9947_v46  ;;  %v10325_v37 = vpop.permute.xlu1 %2402 }
 0x512   :  { %v1792_v56 = vmul.f32 0.17677669, %v1681_v30 }
 0x513   :  { %v1857_v3 = vsel %vm1109_vm3, %v10316_v31, -inf }
 0x514   :  { %1858 = vmax.xlane.f32.xlu0 %v1857_v3  ;;  %v10321_v20 = vadd.f32 %v1792_v56, %v9940_v55 }
 0x515   :  { %v1220_v5 = vpop.xlane.xlu0 %1219 }
 0x516   :  { %8848 = vrcp.f32 %v1220_v5  ;;  %v1836_v8 = vsel %vm1109_vm3, %v10321_v20, -inf }
 0x517   :  { %1837 = vmax.xlane.f32.xlu1 %v1836_v8  ;;  %v1223_v10 = vpop.xlane.xlu2 %1222 }
 0x518   :  { %8850 = vrcp.f32 %v1223_v10 }
 0x519   :  { %v1683_v40 = vpop.f32.mrf.mxu1 }
 0x51a   :  { %v1793_v42 = vmul.f32 0.17677669, %v1683_v40 }
 0x51c   :  { %v8849_v30 = vpop.eup %8848  ;;  %v10328_v15 = vadd.f32 %v1793_v42, %v9947_v46  ;;  %v10337_v42 = vpop.permute.xlu1 %2490 }
 0x51d   :  { %v1274_v3 = vmul.f32 %v8849_v30, %v10232_v43 }
 0x51e   :  { %v8851_v56 = vpop.eup %8850  ;;  %v1839_v5 = vsel %vm1109_vm3, %v10328_v15, -inf }
 0x51f   :  { %v1290_v18 = vpack.c.bf16 %v1274_v3, %v1274_v3  ;;  %v1275_v25 = vmul.f32 %v8851_v56, %v10236_v16  ;;  %1840 = vmax.xlane.f32.xlu2 %v1839_v5  ;;  %v1731_v3 = vpop.f32.mrf.mxu3 }
 0x520   :  { %v1796_v56 = vmul.f32 0.17677669, %v1731_v3 }
 0x521   :  { %v1291_v8 = vpack.c.bf16 %v1275_v25, %v1275_v25  ;;  %v1781_v10 = vpop.f32.mrf.mxu1  ;;  %v1360_v40 = vunpack.c.l.b16 %v1290_v18 }
 0x522   :  { %v1800_v9 = vmul.f32 0.17677669, %v1781_v10 }
 0x523   :  { %v1361_v32 = vunpack.c.l.b16 %v1291_v8 }
 0x524   :  { %v10335_v38 = vadd.f32 %v1800_v9, %v9940_v55  ;;  %v10345_v18 = vpop.xlane.xlu1 %1135 }
 0x525   :  { %v1362_v50 = vpack.c.b16 %v1361_v32, %v1360_v40  ;;  %v10350_v32 = vadd.f32 %v1796_v56, %v9940_v55 }
 0x526   :  { %v1860_v43 = vsel %vm1109_vm3, %v10335_v38, -inf }
 0x527   :  { %1861 = vmax.xlane.f32.xlu0 %v1860_v43  ;;  %8193 = vmatmul.msk.bf16.vlgmr.msrb.gmra.mxu2 %vm1109_vm3, %v1362_v50  ;;  %v1848_v50 = vsel %vm1109_vm3, %v10350_v32, -inf }
 0x528   :  { %v10360_v40 = vpop.permute.xlu0 %2565 }
 0x529   :  { %v1783_v30 = vpop.f32.mrf.mxu1 }
 0x52a   :  { %v1801_v16 = vmul.f32 0.17677669, %v1783_v30 }
 0x52c   :  { %v10343_v25 = vadd.f32 %v1801_v16, %v9947_v46  ;;  %v10352_v5 = vpop.permute.xlu1 %2418 }
 0x52e   :  { %v1863_v9 = vsel %vm1109_vm3, %v10343_v25, -inf }
 0x52f   :  { %1864 = vmax.xlane.f32.xlu1 %v1863_v9 }
 0x534   :  { %v10356_v8 = vpop.permute.xlu1 %2412 }
 0x537   :  { %1849 = vmax.xlane.f32.xlu1 %v1848_v50 }
 0x53c   :  { %v10358_v10 = vpop.permute.xlu1 %2414 }
 0x544   :  { %v10362_v43 = vpop.permute.xlu1 %2590 }
 0x54c   :  { %v10365_v56 = vpop.permute.xlu1 %2420 }
 0x553   :  { %v1826_v30 = vpop.xlane.xlu0 %1825 }
 0x554   :  { %v1868_v16 = vsub.f32 %v10264_v19, %v1826_v30  ;;  %v10371_v53 = vpop.permute.xlu1 %2422  ;;  %v15493_v30 = vld [vmem:[#allocation37_spill] sm:$0xff] }
 0x556   :  { %v1886_v3 = vmul.f32 1.442695, %v1868_v16 }
 0x558   :  { %8852 = vpow2.f32 %v1886_v3  ;;  %v1167_v3 = vsub.f32 %v10185_v6, %v10302_v22  ;;  %v1733_v6 = vpop.f32.mrf.mxu3 }
 0x55c   :  { %v1829_v52 = vpop.xlane.xlu1 %1828 }
 0x55e   :  { %v10367_v9 = vpop.eup %8852 }
 0x55f   :  { %v1920_v50 = vsel %vm1109_vm3, %v10367_v9, 0.0 }
 0x560   :  { %1921 = vadd.xlane.f32.xlu1 %v1920_v50 }
 0x56f   :  { %v1832_v51 = vpop.xlane.xlu0 %1831 }
 0x570   :  { %v1870_v17 = vsub.f32 %v10287_v13, %v1832_v51  ;;  %v1192_v51 = vmul.f32 1.442695, %v1167_v3  ;;  %v1869_v13 = vsub.f32 %v10257_v7, %v1829_v52  ;;  %v15494_v3 = vld [vmem:[#allocation24_spill] sm:$0xff] }
 0x572   :  { %v1890_v12 = vmul.f32 1.442695, %v1870_v17  ;;  %v1888_v22 = vmul.f32 1.442695, %v1869_v13 }
 0x574   :  { %8854 = vpow2.f32 %v1890_v12 }
 0x577   :  { %v1835_v55 = vpop.xlane.xlu1 %1834 }
 0x578   :  { %v1871_v19 = vsub.f32 %v10296_v36, %v1835_v55 }
 0x579   :  { %2040 = vrot.lane.b32.xlu1 %v15493_v30, %s9371_s2 }
 0x57a   :  { %v10377_v16 = vpop.eup %8854  ;;  %v1892_v50 = vmul.f32 1.442695, %v1871_v19 }
 0x57b   :  { %v1926_v35 = vsel %vm1109_vm3, %v10377_v16, 0.0 }
 0x57c   :  { %8856 = vpow2.f32 %v1892_v50  ;;  %1927 = vadd.xlane.f32.xlu2 %v1926_v35  ;;  %v1797_v35 = vmul.f32 0.17677669, %v1733_v6 }
 0x57d   :  { %8858 = vpow2.f32 %v1192_v51  ;;  %v15495_v51 = vld [vmem:[#allocation35_spill] sm:$0xff] }
 0x57e   :  { %v10397_v19 = vadd.f32 %v1797_v35, %v9947_v46  ;;  %8860 = vpow2.f32 %v1888_v22 }
 0x57f   :  { %v1856_v13 = vpop.xlane.xlu2 %1855 }
 0x580   :  { %v1851_v50 = vsel %vm1109_vm3, %v10397_v19, -inf  ;;  %v1878_v22 = vsub.f32 %v10307_v21, %v1856_v13 }
 0x581   :  { %2140 = vrot.lane.b32.xlu1 %v10112_v27, %s9371_s2 }
 0x582   :  { %v10385_v12 = vpop.eup %8856 }
 0x583   :  { %v1929_v55 = vsel %vm1109_vm3, %v10385_v12, 0.0  ;;  %v10389_v17 = vpop.eup %8858 }
 0x584   :  { %1930 = vadd.xlane.f32.xlu0 %v1929_v55  ;;  %v1233_v36 = vsel %vm1109_vm3, %v10389_v17, 0.0  ;;  %v10405_v52 = vpop.eup %8860 }
 0x585   :  { %v1923_v55 = vsel %vm1109_vm3, %v10405_v52, 0.0 }
 0x587   :  { %v1859_v35 = vpop.xlane.xlu0 %1858 }
 0x589   :  { %1586 = vrot.lane.b32.xlu1 %v9796_v62, %s9371_s2 }
 0x58a   :  { %v1838_v7 = vpop.xlane.xlu1 %1837 }
 0x58c   :  { %1234 = vadd.xlane.f32.xlu0 %v1233_v36 }
 0x591   :  { %2944 = vrot.lane.b32.xlu1 %v15494_v3, %s9367_s29  ;;  %v1879_v3 = vsub.f32 %v10316_v31, %v1859_v35 }
 0x592   :  { %v1841_v4 = vpop.xlane.xlu2 %1840 }
 0x593   :  { %v1908_v46 = vmul.f32 1.442695, %v1879_v3 }
 0x594   :  { %2615 = vrot.lane.b32.xlu2 %v15495_v51, %s9367_s29  ;;  %1852 = vmax.xlane.f32.xlu0 %v1851_v50  ;;  %v1906_v51 = vmul.f32 1.442695, %v1878_v22 }
 0x599   :  { %3019 = vrot.lane.b32.xlu1 %v9888_v58, %s9367_s29 }
 0x59c   :  { %1924 = vadd.xlane.f32.xlu0 %v1923_v55  ;;  %v1872_v55 = vsub.f32 %v10321_v20, %v1838_v7  ;;  %v1166_v20 = vsub.f32 %v10153_v23, %v10345_v18  ;;  %v1862_v7 = vpop.xlane.xlu0 %1861 }
 0x59d   :  { %v1880_v23 = vsub.f32 %v10335_v38, %v1862_v7  ;;  %v2425_v7 = vrot.slane %v10214_v39, 4 }
 0x59e   :  { %v1894_v13 = vmul.f32 1.442695, %v1872_v55 }
 0x59f   :  { %v1910_v22 = vmul.f32 1.442695, %v1880_v23 }
 0x5a1   :  { %3225 = vrot.lane.b32.xlu1 %v9796_v62, %s9373_s13  ;;  %v1873_v62 = vsub.f32 %v10328_v15, %v1841_v4 }
 0x5a2   :  { %v1865_v6 = vpop.xlane.xlu1 %1864 }
 0x5a3   :  { %v1896_v31 = vmul.f32 1.442695, %v1873_v62 }
 0x5aa   :  { %v1850_v36 = vpop.xlane.xlu1 %1849 }
 0x5ab   :  { %v1876_v50 = vsub.f32 %v10350_v32, %v1850_v36 }
 0x5ad   :  { %v1902_v58 = vmul.f32 1.442695, %v1876_v50 }
 0x5af   :  { %8862 = vpow2.f32 %v1902_v58  ;;  %v1881_v58 = vsub.f32 %v10343_v25, %v1865_v6 }
 0x5b0   :  { %8864 = vpow2.f32 %v1906_v51  ;;  %v1190_v51 = vmul.f32 1.442695, %v1166_v20 }
 0x5b1   :  { %8866 = vpow2.f32 %v1908_v46  ;;  %v1912_v15 = vmul.f32 1.442695, %v1881_v58 }
 0x5b2   :  { %8868 = vpow2.f32 %v1894_v13 }
 0x5b3   :  { %8870 = vpow2.f32 %v1896_v31 }
 0x5b4   :  { %8872 = vpow2.f32 %v1912_v15 }
 0x5b5   :  { %v10417_v61 = vpop.eup %8862  ;;  %8874 = vpow2.f32 %v1190_v51 }
 0x5b6   :  { %v1944_v21 = vsel %vm1109_vm3, %v10417_v61, 0.0  ;;  %v10422_v32 = vpop.eup %8864  ;;  %8876 = vpow2.f32 %v1910_v22 }
 0x5b7   :  { %1945 = vadd.xlane.f32.xlu0 %v1944_v21  ;;  %v10425_v3 = vpop.eup %8866  ;;  %v1950_v46 = vsel %vm1109_vm3, %v10422_v32, 0.0 }
 0x5b8   :  { %v1953_v4 = vsel %vm1109_vm3, %v10425_v3, 0.0  ;;  %v10433_v35 = vpop.eup %8868 }
 0x5b9   :  { %v10435_v25 = vpop.eup %8870  ;;  %v1932_v18 = vsel %vm1109_vm3, %v10433_v35, 0.0 }
 0x5ba   :  { %v1935_v6 = vsel %vm1109_vm3, %v10435_v25, 0.0  ;;  %v10442_v36 = vpop.eup %8872 }
 0x5bb   :  { %v10444_v50 = vpop.eup %8874  ;;  %v1959_v55 = vsel %vm1109_vm3, %v10442_v36, 0.0 }
 0x5bc   :  { %v1230_v38 = vsel %vm1109_vm3, %v10444_v50, 0.0  ;;  %v10450_v62 = vpop.eup %8876 }
 0x5bd   :  { %1951 = vadd.xlane.f32.xlu2 %v1950_v46  ;;  %v1956_v21 = vsel %vm1109_vm3, %v10450_v62, 0.0  ;;  %v15496_v46 = vld [vmem:[#allocation16_spill] sm:$0xff] }
 0x5bf   :  { %1954 = vadd.xlane.f32.xlu0 %v1953_v4 }
 0x5c5   :  { %1933 = vadd.xlane.f32.xlu2 %v1932_v18 }
 0x5c7   :  { %1936 = vadd.xlane.f32.xlu0 %v1935_v6 }
 0x5cb   :  { %1960 = vadd.xlane.f32.xlu1 %v1959_v55 }
 0x5cd   :  { %1231 = vadd.xlane.f32.xlu2 %v1230_v38  ;;  %v2443_v38 = vunpack.c.l.b16 %v2425_v7 }
 0x5d3   :  { %v1922_v13 = vpop.xlane.xlu1 %1921 }
 0x5d5   :  { %1957 = vadd.xlane.f32.xlu2 %v1956_v21 }
 0x5db   :  { %1538 = vrot.lane.b32.xlu0 %v9750_v59, %s9371_s2 }
 0x5e3   :  { %1554 = vrot.lane.b32.xlu0 %v9834_v45, %s9371_s2 }
 0x5e4   :  { %3181 = vrot.lane.b32.xlu1 %v9760_v48, %s9373_s13  ;;  %v2424_v48 = vrot.slane %v10222_v14, 4 }
 0x5e6   :  { %v2442_v18 = vunpack.c.l.b16 %v2424_v48 }
 0x5eb   :  { %v2041_v31 = vpop.permute.xlu1 %2040  ;;  %1686 = vrot.lane.b32.xlu0 %v9879_v34, %s9371_s2 }
 0x5ec   :  { %2994 = vrot.lane.b32.xlu1 %v10112_v27, %s9367_s29  ;;  %2053 = vmatpush.bf16.msra.mxu3 %v2041_v31  ;;  %v2444_v31 = vpack.c.b16 %v2443_v38, %v2442_v18 }
 0x5ef   :  { %v1928_v58 = vpop.xlane.xlu2 %1927 }
 0x5f0   :  { %8878 = vrcp.f32 %v1928_v58 }
 0x5f3   :  { %v2141_v20 = vpop.permute.xlu1 %2140  ;;  %3179 = vrot.lane.b32.xlu0 %v15496_v46, %s9373_s13 }
 0x5f4   :  { %2153 = vmatpush.bf16.msrb.mxu3 %v2141_v20 }
 0x5f6   :  { %v8879_v4 = vpop.eup %8878 }
 0x5f7   :  { %v1931_v15 = vpop.xlane.xlu0 %1930  ;;  %v1982_v51 = vmul.f32 %v8879_v4, %v10377_v16  ;;  %v2449_v16 = vsel %vm874_vm14, %v2444_v31, 0 }
 0x5f8   :  { %8880 = vrcp.f32 %v1931_v15 }
 0x5f9   :  { %v1998_v6 = vpack.c.bf16 %v1982_v51, %v1982_v51  ;;  %8882 = vrcp.f32 %v1922_v13 }
 0x5fb   :  { %3250 = vrot.lane.b32.xlu0 %v9822_v29, %s9373_s13  ;;  %v2062_v58 = vunpack.c.l.b16 %v1998_v6  ;;  %v10481_v38 = vpop.permute.xlu1 %1586 }
 0x5fe   :  { %v8881_v23 = vpop.eup %8880 }
 0x5ff   :  { %v1983_v22 = vmul.f32 %v8881_v23, %v10385_v12  ;;  %v1235_v55 = vpop.xlane.xlu0 %1234  ;;  %v8883_v12 = vpop.eup %8882 }
 0x600   :  { %v1980_v51 = vmul.f32 %v8883_v12, %v10367_v9 }
 0x601   :  { %v1999_v21 = vpack.c.bf16 %v1983_v22, %v1983_v22 }
 0x602   :  { %v1996_v18 = vpack.c.bf16 %v1980_v51, %v1980_v51 }
 0x603   :  { %v2063_v20 = vunpack.c.l.b16 %v1999_v21  ;;  %v10484_v31 = vpop.permute.xlu1 %2944 }
 0x604   :  { %v2037_v22 = vunpack.c.l.b16 %v1996_v18 }
 0x605   :  { %v2064_v15 = vpack.c.b16 %v2063_v20, %v2062_v58  ;;  %v10486_v58 = vpop.permute.xlu2 %2615 }
 0x607   :  { %v1853_v14 = vpop.xlane.xlu0 %1852  ;;  %8209 = vmatmul.msk.bf16.vlgmr.msra.gmra.mxu0 %vm1109_vm3, %v2064_v15 }
 0x608   :  { %v1877_v29 = vsub.f32 %v10397_v19, %v1853_v14  ;;  %2458 = vmatpush.bf16.xpose.msra.mxu0 %v2449_v16  ;;  %v2428_v14 = vrot.slane %v10272_v26, 4  ;;  %v15497_v26 = vld [vmem:[#allocation36_spill] sm:$0xff] }
 0x60a   :  { %v1904_v39 = vmul.f32 1.442695, %v1877_v29  ;;  %v2429_v29 = vrot.slane %v10325_v37, 4 }
 0x60b   :  { %v10492_v20 = vpop.permute.xlu1 %3019 }
 0x60c   :  { %8884 = vpow2.f32 %v1904_v39 }
 0x60f   :  { %v1925_v4 = vpop.xlane.xlu0 %1924 }
 0x610   :  { %8886 = vrcp.f32 %v1925_v4 }
 0x612   :  { %v10475_v48 = vpop.eup %8884 }
 0x613   :  { %v1947_v7 = vsel %vm1109_vm3, %v10475_v48, 0.0  ;;  %v10499_v51 = vpop.permute.xlu1 %3225 }
 0x614   :  { %1948 = vadd.xlane.f32.xlu2 %v1947_v7 }
 0x616   :  { %v8887_v23 = vpop.eup %8886 }
 0x617   :  { %v1981_v6 = vmul.f32 %v8887_v23, %v10405_v52 }
 0x619   :  { %v1997_v19 = vpack.c.bf16 %v1981_v6, %v1981_v6  ;;  %v2493_v6 = vunpack.c.l.b16 %v2429_v29 }
 0x61b   :  { %v2038_v13 = vunpack.c.l.b16 %v1997_v19 }
 0x61d   :  { %v2039_v21 = vpack.c.b16 %v2038_v13, %v2037_v22 }
 0x61f   :  { %8208 = vmatmul.msk.bf16.vlgmr.msra.gmra.mxu3 %vm1109_vm3, %v2039_v21 }
 0x62a   :  { %v10488_v9 = vpop.xlane.xlu0 %1945 }
 0x62c   :  { %1540 = vrot.lane.b32.xlu2 %v15496_v46, %s9371_s2  ;;  %v2492_v46 = vunpack.c.l.b16 %v2428_v14 }
 0x62e   :  { %v2494_v37 = vpack.c.b16 %v2493_v6, %v2492_v46 }
 0x630   :  { %v1952_v52 = vpop.xlane.xlu2 %1951 }
 0x631   :  { %8888 = vrcp.f32 %v1952_v52 }
 0x632   :  { %v1955_v15 = vpop.xlane.xlu0 %1954 }
 0x633   :  { %8890 = vrcp.f32 %v1955_v15 }
 0x634   :  { %1556 = vrot.lane.b32.xlu2 %v9838_v47, %s9371_s2 }
 0x637   :  { %v8889_v16 = vpop.eup %8888 }
 0x638   :  { %v1990_v39 = vmul.f32 %v8889_v16, %v10422_v32  ;;  %v1934_v4 = vpop.xlane.xlu2 %1933  ;;  %v2427_v32 = vrot.slane %v10254_v24, 4  ;;  %v2499_v24 = vsel %vm874_vm14, %v2494_v37, 0 }
 0x639   :  { %v8891_v12 = vpop.eup %8890  ;;  %8892 = vrcp.f32 %v1934_v4 }
 0x63a   :  { %8894 = vrcp.f32 %v1235_v55  ;;  %v2006_v7 = vpack.c.bf16 %v1990_v39, %v1990_v39  ;;  %v1991_v23 = vmul.f32 %v8891_v12, %v10425_v3  ;;  %v1937_v18 = vpop.xlane.xlu0 %1936  ;;  %v2426_v55 = vrot.slane %v10280_v41, 4 }
 0x63b   :  { %8896 = vrcp.f32 %v1937_v18  ;;  %v2468_v29 = vunpack.c.l.b16 %v2427_v32  ;;  %v2433_v18 = vrot.slane %v10261_v2, 4  ;;  %v2432_v32 = vrot.slane %v10291_v54, 4 }
 0x63c   :  { %v2007_v19 = vpack.c.bf16 %v1991_v23, %v1991_v23  ;;  %2869 = vrot.lane.b32.xlu2 %v15497_v26, %s9367_s29  ;;  %v2162_v22 = vunpack.c.l.b16 %v2006_v7  ;;  %v2467_v46 = vunpack.c.l.b16 %v2426_v55  ;;  %v15498_v23 = vld [vmem:[#allocation21_spill] sm:$0xff] }
 0x63d   :  { %v2542_v2 = vunpack.c.l.b16 %v2432_v32 }
 0x63e   :  { %v2163_v13 = vunpack.c.l.b16 %v2007_v19  ;;  %v1961_v12 = vpop.xlane.xlu1 %1960 }
 0x63f   :  { %v8893_v21 = vpop.eup %8892 }
 0x640   :  { %v8895_v52 = vpop.eup %8894  ;;  %v2164_v15 = vpack.c.b16 %v2163_v13, %v2162_v22  ;;  %v1984_v14 = vmul.f32 %v8893_v21, %v10433_v35  ;;  %v1232_v3 = vpop.xlane.xlu2 %1231  ;;  %v2469_v35 = vpack.c.b16 %v2468_v29, %v2467_v46 }
 0x641   :  { %v8897_v16 = vpop.eup %8896  ;;  %8898 = vrcp.f32 %v1232_v3  ;;  %v1279_v7 = vmul.f32 %v8895_v52, %v10389_v17  ;;  %v2543_v17 = vunpack.c.l.b16 %v2433_v18 }
 0x642   :  { %v2000_v39 = vpack.c.bf16 %v1984_v14, %v1984_v14  ;;  %v1985_v4 = vmul.f32 %v8897_v16, %v10435_v25  ;;  %8213 = vmatmul.msk.bf16.vlgmr.msrb.gmra.mxu0 %vm1109_vm3, %v2164_v15  ;;  %8900 = vrcp.f32 %v1961_v12  ;;  %v2474_v55 = vsel %vm874_vm14, %v2469_v35, 0 }
 0x643   :  { %2508 = vmatpush.bf16.xpose.msrb.mxu0 %v2499_v24  ;;  %v1295_v22 = vpack.c.bf16 %v1279_v7, %v1279_v7  ;;  %v2544_v54 = vpack.c.b16 %v2543_v17, %v2542_v2  ;;  %v2431_v16 = vrot.slane %v10284_v44, 4 }
 0x644   :  { %v2001_v41 = vpack.c.bf16 %v1985_v4, %v1985_v4  ;;  %2919 = vrot.lane.b32.xlu2 %v15498_v23, %s9367_s29  ;;  %v2087_v6 = vunpack.c.l.b16 %v2000_v39  ;;  %v2430_v4 = vrot.slane %v10278_v33, 4  ;;  %v2436_v33 = vrot.slane %v10311_v28, 4 }
 0x645   :  { %v1417_v14 = vunpack.c.l.b16 %v1295_v22  ;;  %v2518_v24 = vunpack.c.l.b16 %v2431_v16  ;;  %v2435_v22 = vrot.slane %v10358_v10, 4 }
 0x646   :  { %v2088_v19 = vunpack.c.l.b16 %v2001_v41  ;;  %v2549_v41 = vsel %vm874_vm14, %v2544_v54, 0  ;;  %v2517_v44 = vunpack.c.l.b16 %v2430_v4 }
 0x647   :  { %v8899_v25 = vpop.eup %8898  ;;  %v2568_v28 = vunpack.c.l.b16 %v2435_v22 }
 0x648   :  { %v2089_v13 = vpack.c.b16 %v2088_v19, %v2087_v6  ;;  %v1278_v37 = vmul.f32 %v8899_v25, %v10444_v50  ;;  %v1958_v21 = vpop.xlane.xlu2 %1957  ;;  %v8901_v15 = vpop.eup %8900  ;;  %v2519_v18 = vpack.c.b16 %v2518_v24, %v2517_v44  ;;  %v2437_v6 = vrot.slane %v10352_v5, 4 }
 0x649   :  { %8902 = vrcp.f32 %v1958_v21  ;;  %v1993_v50 = vmul.f32 %v8901_v15, %v10442_v36  ;;  %v15499_v36 = vld [vmem:[#allocation25_spill] sm:$0xff]  ;;  %v2592_v25 = vunpack.c.l.b16 %v2436_v33 }
 0x64a   :  { %v1294_v52 = vpack.c.bf16 %v1278_v37, %v1278_v37  ;;  %8210 = vmatmul.msk.bf16.vlgmr.msra.gmra.mxu1 %vm1109_vm3, %v2089_v13  ;;  %v2593_v32 = vunpack.c.l.b16 %v2437_v6  ;;  %v2434_v37 = vrot.slane %v10356_v8, 4  ;;  %v2439_v8 = vrot.slane %v10371_v53, 4  ;;  %v8655_v53 = vld [vmem:[#allocation7] sm:$0xff] }
 0x64b   :  { %2483 = vmatpush.bf16.xpose.msra.mxu1 %v2474_v55  ;;  %v2009_v46 = vpack.c.bf16 %v1993_v50, %v1993_v50  ;;  %v8656_v55 = vld [vmem:[#allocation7 + $0x8] sm:$0xff]  ;;  %8904 = vrcp.f32 %v10488_v9 }
 0x64c   :  { %v1416_v3 = vunpack.c.l.b16 %v1294_v52  ;;  %2894 = vrot.lane.b32.xlu2 %v15493_v30, %s9367_s29  ;;  %v2594_v13 = vpack.c.b16 %v2593_v32, %v2592_v25  ;;  %v2567_v21 = vunpack.c.l.b16 %v2434_v37  ;;  %v2618_v10 = vunpack.c.l.b16 %v2439_v8  ;;  %2349 = vmatpush.bf16.msra.mxu3 %v8656_v55  ;;  %v15502_v32 = vld [vmem:[#allocation41_spill] sm:$0xff]  ;;  %v1381_v37 = vpop.f32.mrf.mxu2 }
 0x64e   :  { %v1418_v29 = vpack.c.b16 %v1417_v14, %v1416_v3  ;;  %v2599_v5 = vsel %vm874_vm14, %v2594_v13, 0  ;;  %v2569_v17 = vpack.c.b16 %v2568_v28, %v2567_v21 }
 0x64f   :  { %v8903_v39 = vpop.eup %8902 }
 0x650   :  { %v1992_v12 = vmul.f32 %v8903_v39, %v10450_v62  ;;  %8195 = vmatmul.msk.bf16.vlgmr.msra.gmra.mxu2 %vm1109_vm3, %v1418_v29  ;;  %v2188_v62 = vunpack.c.l.b16 %v2009_v46  ;;  %2350 = vmatpush.bf16.msra.mxu3 %v8655_v53 }
 0x651   :  { %v8905_v15 = vpop.eup %8904 }
 0x652   :  { %v2008_v7 = vpack.c.bf16 %v1992_v12, %v1992_v12  ;;  %8247 = vmatmul.msk.bf16.vlgmr.msra.gmra.mxu0 %vm874_vm14, %v10244_v57  ;;  %v2524_v57 = vsel %vm874_vm14, %v2519_v18, 0 }
 0x653   :  { %2558 = vmatpush.bf16.xpose.msra.mxu0 %v2549_v41 }
 0x654   :  { %v2187_v35 = vunpack.c.l.b16 %v2008_v7  ;;  %2969 = vrot.lane.b32.xlu2 %v15499_v36, %s9367_s29  ;;  %v1383_v8 = vpop.f32.mrf.mxu2 }
 0x656   :  { %v2189_v19 = vpack.c.b16 %v2188_v62, %v2187_v35  ;;  %v15500_v62 = vld [vmem:[#allocation40_spill] sm:$0xff] }
 0x657   :  { %v1526_v6 = vpack.c.bf16 %v15500_v62, %v10225_v1 }
 0x65a   :  { %8214 = vmatmul.msk.bf16.vlgmr.msrb.gmra.mxu1 %vm1109_vm3, %v2189_v19 }
 0x65b   :  { %2533 = vmatpush.bf16.xpose.msrb.mxu1 %v2524_v57 }
 0x65c   :  { %3177 = vrot.lane.b32.xlu2 %v9750_v59, %s9373_s13  ;;  %v2574_v59 = vsel %vm874_vm14, %v2569_v17, 0 }
 0x662   :  { %8249 = vmatmul.msk.bf16.vlgmr.msrb.gmra.mxu0 %vm874_vm14, %v10337_v42  ;;  %v2438_v42 = vrot.slane %v10365_v56, 4 }
 0x663   :  { %2608 = vmatpush.bf16.xpose.msrb.mxu0 %v2599_v5 }
 0x664   :  { %3183 = vrot.lane.b32.xlu2 %v9771_v11, %s9373_s13  ;;  %v2617_v52 = vunpack.c.l.b16 %v2438_v42 }
 0x666   :  { %v2619_v11 = vpack.c.b16 %v2618_v10, %v2617_v52 }
 0x66a   :  { %8248 = vmatmul.msk.bf16.vlgmr.msra.gmra.mxu1 %vm874_vm14, %v10268_v0  ;;  %v2624_v0 = vsel %vm874_vm14, %v2619_v11, 0  ;;  %v1528_v11 = vpack.c.bf16 %v1383_v8, %v1381_v37  ;;  %v15507_v8 = vld [vmem:[#allocation43_spill] sm:$0xff] }
 0x66b   :  { %2583 = vmatpush.bf16.xpose.msra.mxu1 %v2574_v59 }
 0x66c   :  { %3044 = vrot.lane.b32.xlu2 %v9922_v49, %s9367_s29 }
 0x672   :  { %8251 = vmatmul.msk.bf16.vlgmr.msra.gmra.mxu0 %vm874_vm14, %v10298_v60  ;;  %v1539_v60 = vpop.permute.xlu0 %1538 }
 0x673   :  { %v1570_v14 = vrot.slane %v1539_v60, 4 }
 0x67a   :  { %8250 = vmatmul.msk.bf16.vlgmr.msrb.gmra.mxu1 %vm874_vm14, %v10313_v63  ;;  %v1988_v63 = vmul.f32 %v8905_v15, %v10417_v61  ;;  %v1555_v4 = vpop.permute.xlu0 %1554 }
 0x67b   :  { %2633 = vmatpush.bf16.xpose.msrb.mxu1 %v2624_v0  ;;  %v1578_v7 = vrot.slane %v1555_v4, 4 }
 0x67c   :  { %v2004_v3 = vpack.c.bf16 %v1988_v63, %v1988_v63 }
 0x67d   :  { %v1688_v44 = vunpack.c.l.b16 %v1578_v7 }
 0x67e   :  { %v2137_v39 = vunpack.c.l.b16 %v2004_v3 }
 0x682   :  { %8253 = vmatmul.msk.bf16.vlgmr.msrb.gmra.mxu0 %vm874_vm14, %v10362_v43  ;;  %v1588_v43 = vunpack.c.l.b16 %v1570_v14  ;;  %v1687_v25 = vpop.permute.xlu0 %1686 }
 0x684   :  { %v10572_v57 = vpop.f32.mrf.mxu0 }
 0x687   :  { %v1949_v56 = vpop.xlane.xlu2 %1948 }
 0x688   :  { %8906 = vrcp.f32 %v1949_v56 }
 0x68a   :  { %8252 = vmatmul.msk.bf16.vlgmr.msra.gmra.mxu1 %vm874_vm14, %v10360_v40  ;;  %v3180_v28 = vpop.permute.xlu0 %3179 }
 0x68b   :  { %v3210_v5 = vrot.slane %v3180_v28, 4 }
 0x68c   :  { %v10578_v13 = vpop.f32.mrf.mxu0 }
 0x68d   :  { %v3228_v42 = vunpack.c.l.b16 %v3210_v5 }
 0x68e   :  { %v8907_v2 = vpop.eup %8906 }
 0x68f   :  { %v1989_v54 = vmul.f32 %v8907_v2, %v10475_v48  ;;  %v1541_v9 = vpop.permute.xlu2 %1540 }
 0x690   :  { %v1571_v16 = vrot.slane %v1541_v9, 4 }
 0x691   :  { %v2005_v50 = vpack.c.bf16 %v1989_v54, %v1989_v54 }
 0x692   :  { %v1589_v29 = vunpack.c.l.b16 %v1571_v16  ;;  %v15503_v16 = vld [vmem:[#allocation38_spill] sm:$0xff] }
 0x693   :  { %v2138_v12 = vunpack.c.l.b16 %v2005_v50 }
 0x694   :  { %v1590_v24 = vpack.c.b16 %v1589_v29, %v1588_v43  ;;  %v15504_v29 = vld [vmem:[#allocation47_spill] sm:$0xff] }
 0x695   :  { %v2139_v46 = vpack.c.b16 %v2138_v12, %v2137_v39  ;;  %v15505_v39 = vld [vmem:[#allocation48_spill] sm:$0xff] }
 0x696   :  { %v1595_v40 = vsel %vm874_vm14, %v1590_v24, 0  ;;  %v1529_v4 = vpack.c.bf16 %v15505_v39, %v15504_v29  ;;  %v15511_v39 = vld [vmem:[#allocation45_spill] sm:$0xff] }
 0x697   :  { %1604 = vmatpush.bf16.xpose.msrb.mxu2 %v1595_v40  ;;  %8212 = vmatmul.msk.bf16.vlgmr.msrb.gmra.mxu3 %vm1109_vm3, %v2139_v46  ;;  %v1557_v61 = vpop.permute.xlu2 %1556  ;;  %v15506_v40 = vld [vmem:[#allocation39_spill] sm:$0xff] }
 0x698   :  { %v1579_v41 = vrot.slane %v1557_v61, 4 }
 0x69a   :  { %v1689_v48 = vunpack.c.l.b16 %v1579_v41  ;;  %8254 = vmatmul.msk.bf16.vlgmr.msrb.gmra.mxu1 %vm874_vm14, %v10486_v58 }
 0x69c   :  { %v1690_v35 = vpack.c.b16 %v1689_v48, %v1688_v44 }
 0x69e   :  { %8199 = vmatmul.msk.bf16.vlgmr.msrb.gmra.mxu2 %vm874_vm14, %v10481_v38  ;;  %v1695_v18 = vsel %vm874_vm14, %v1690_v35, 0  ;;  %v15501_v38 = vld [vmem:[#allocation42_spill] sm:$0xff] }
 0x69f   :  { %1704 = vmatpush.bf16.xpose.msra.mxu2 %v1695_v18  ;;  %v2870_v33 = vpop.permute.xlu2 %2869  ;;  %v1527_v22 = vpack.c.bf16 %v15502_v32, %v15501_v38 }
 0x6a0   :  { %2882 = vmatpush.bf16.msra.mxu0 %v2870_v33 }
 0x6a7   :  { %8239 = vmatmul.msk.bf16.vlgmr.msra.gmra.mxu3 %vm874_vm14, %v1526_v6  ;;  %v2920_v19 = vpop.permute.xlu2 %2919 }
 0x6a8   :  { %2932 = vmatpush.bf16.msrb.mxu0 %v2920_v19 }
 0x6ae   :  { %8203 = vmatmul.msk.bf16.vlgmr.msra.gmra.mxu2 %vm874_vm14, %v1687_v25 }
 0x6af   :  { %v2895_v58 = vpop.permute.xlu2 %2894 }
 0x6b0   :  { %2907 = vmatpush.bf16.msra.mxu1 %v2895_v58 }
 0x6b4   :  { %2957 = vmatpush.bf16.msrb.mxu1 %v10484_v31  ;;  %v3182_v31 = vpop.permute.xlu1 %3181 }
 0x6b5   :  { %v3211_v55 = vrot.slane %v3182_v31, 4  ;;  %v15509_v31 = vld [vmem:[#allocation17_spill] sm:$0xff] }
 0x6b7   :  { %8240 = vmatmul.msk.bf16.gmra.mxu3 %vm874_vm14, %v1527_v22  ;;  %v10581_v1 = vpop.permute.xlu2 %2969  ;;  %v10591_v63 = vunpack.c.l.b16 %v3211_v55 }
 0x6bf   :  { %v10583_v21 = vpop.f32.mrf.mxu0  ;;  %v3178_v17 = vpop.permute.xlu2 %3177 }
 0x6c0   :  { %v3209_v59 = vrot.slane %v3178_v17, 4 }
 0x6c2   :  { %v3227_v10 = vunpack.c.l.b16 %v3209_v59 }
 0x6c4   :  { %v3229_v52 = vpack.c.b16 %v3228_v42, %v3227_v10  ;;  %v15508_v42 = vld [vmem:[#allocation44_spill] sm:$0xff] }
 0x6c5   :  { %v1531_v10 = vpack.c.bf16 %v15508_v42, %v15507_v8 }
 0x6c6   :  { %v3234_v0 = vsel %vm874_vm14, %v3229_v52, 0 }
 0x6c7   :  { %v10586_v53 = vpop.f32.mrf.mxu1  ;;  %v10588_v56 = vpop.f32.mrf.mxu0  ;;  %8241 = vmatmul.msk.bf16.gmra.mxu3 %vm874_vm14, %v1528_v11 }
 0x6c8   :  { %3243 = vmatpush.bf16.xpose.msrb.mxu3 %v3234_v0  ;;  %v3184_v15 = vpop.permute.xlu2 %3183 }
 0x6c9   :  { %v3212_v60 = vrot.slane %v3184_v15, 4 }
 0x6cb   :  { %v10593_v2 = vunpack.c.l.b16 %v3212_v60 }
 0x6cd   :  { %v3254_v14 = vpack.c.b16 %v10593_v2, %v10591_v63 }
 0x6cf   :  { %v10597_v3 = vpop.f32.mrf.mxu1  ;;  %v2460_v54 = vpop.f32.mrf.mxu0 }
 0x6d0   :  { %v2640_v9 = vmul.f32 0.17677669, %v2460_v54 }
 0x6d2   :  { %v10600_v50 = vadd.f32 %v2640_v9, %v15503_v16  ;;  %v15510_v9 = vld [vmem:[#allocation20_spill] sm:$0xff] }
 0x6d3   :  { %v1437_v46 = vpop.f32.mrf.mxu2 }
 0x6d4   :  { %v2672_v43 = vsel %vm1109_vm3, %v10600_v50, -inf }
 0x6d5   :  { %2673 = vmax.xlane.f32.xlu0 %v2672_v43 }
 0x6d7   :  { %v10606_v12 = vpop.f32.mrf.mxu1  ;;  %8242 = vmatmul.msk.bf16.gmra.mxu3 %vm874_vm14, %v1529_v4  ;;  %v2462_v24 = vpop.f32.mrf.mxu0  ;;  %v15512_v4 = vld [vmem:[#allocation46_spill] sm:$0xff] }
 0x6d8   :  { %v2641_v7 = vmul.f32 0.17677669, %v2462_v24  ;;  %v1532_v24 = vpack.c.bf16 %v15512_v4, %v15511_v39 }
 0x6da   :  { %v10610_v61 = vadd.f32 %v2641_v7, %v15506_v40 }
 0x6db   :  { %v1439_v18 = vpop.f32.mrf.mxu2 }
 0x6dc   :  { %v2675_v41 = vsel %vm1109_vm3, %v10610_v61, -inf  ;;  %v1530_v6 = vpack.c.bf16 %v1439_v18, %v1437_v46 }
 0x6dd   :  { %2676 = vmax.xlane.f32.xlu2 %v2675_v41 }
 0x6df   :  { %v10614_v44 = vpop.f32.mrf.mxu1  ;;  %v2510_v48 = vpop.f32.mrf.mxu0 }
 0x6e0   :  { %v2644_v35 = vmul.f32 0.17677669, %v2510_v48 }
 0x6e2   :  { %v10617_v33 = vadd.f32 %v2644_v35, %v15503_v16 }
 0x6e4   :  { %v2684_v62 = vsel %vm1109_vm3, %v10617_v33, -inf }
 0x6e5   :  { %2685 = vmax.xlane.f32.xlu1 %v2684_v62 }
 0x6e7   :  { %8243 = vmatmul.msk.bf16.gmra.mxu3 %vm874_vm14, %v1530_v6  ;;  %v2485_v19 = vpop.f32.mrf.mxu1  ;;  %v2512_v25 = vpop.f32.mrf.mxu0 }
 0x6e8   :  { %v2645_v58 = vmul.f32 0.17677669, %v2512_v25 }
 0x6ea   :  { %v10623_v38 = vadd.f32 %v2645_v58, %v15506_v40 }
 0x6ec   :  { %v2687_v32 = vsel %vm1109_vm3, %v10623_v38, -inf }
 0x6ed   :  { %2688 = vmax.xlane.f32.xlu0 %v2687_v32  ;;  %v15513_v32 = vld [vmem:[#allocation49_spill] sm:$0xff] }
 0x6ef   :  { %v2487_v22 = vpop.f32.mrf.mxu1  ;;  %v2560_v28 = vpop.f32.mrf.mxu0 }
 0x6f0   :  { %v2643_v37 = vmul.f32 0.17677669, %v2487_v22  ;;  %v2648_v17 = vmul.f32 0.17677669, %v2560_v28  ;;  %v15514_v22 = vld [vmem:[#allocation50_spill] sm:$0xff] }
 0x6f1   :  { %v2642_v28 = vmul.f32 0.17677669, %v2485_v19 }
 0x6f2   :  { %v10628_v5 = vadd.f32 %v2643_v37, %v15506_v40  ;;  %v10638_v11 = vadd.f32 %v2648_v17, %v15503_v16  ;;  %v1533_v37 = vpack.c.bf16 %v15514_v22, %v15513_v32  ;;  %v10709_v32 = vpop.permute.xlu1 %2994 }
 0x6f3   :  { %v10669_v8 = vadd.f32 %v2642_v28, %v15503_v16 }
 0x6f4   :  { %v2681_v59 = vsel %vm1109_vm3, %v10628_v5, -inf  ;;  %v2696_v55 = vsel %vm1109_vm3, %v10638_v11, -inf }
 0x6f5   :  { %3185 = vrot.lane.b32.xlu2 %v15509_v31, %s9373_s13  ;;  %2682 = vmax.xlane.f32.xlu1 %v2681_v59 }
 0x6f7   :  { %8244 = vmatmul.msk.bf16.gmra.mxu3 %vm874_vm14, %v1531_v10  ;;  %v2535_v52 = vpop.f32.mrf.mxu1  ;;  %v2562_v15 = vpop.f32.mrf.mxu0 }
 0x6f8   :  { %v2646_v0 = vmul.f32 0.17677669, %v2535_v52  ;;  %v2649_v43 = vmul.f32 0.17677669, %v2562_v15  ;;  %v2678_v52 = vsel %vm1109_vm3, %v10669_v8, -inf }
 0x6fa   :  { %v10643_v54 = vadd.f32 %v2646_v0, %v15503_v16  ;;  %v10653_v41 = vadd.f32 %v2649_v43, %v15506_v40 }
 0x6fc   :  { %v2690_v29 = vsel %vm1109_vm3, %v10643_v54, -inf  ;;  %v2699_v35 = vsel %vm1109_vm3, %v10653_v41, -inf }
 0x6fd   :  { %2697 = vmax.xlane.f32.xlu1 %v2696_v55 }
 0x6ff   :  { %v2537_v60 = vpop.f32.mrf.mxu1  ;;  %v2610_v46 = vpop.f32.mrf.mxu0 }
 0x700   :  { %v2647_v31 = vmul.f32 0.17677669, %v2537_v60  ;;  %v2652_v15 = vmul.f32 0.17677669, %v2610_v46 }
 0x701   :  { %3189 = vrot.lane.b32.xlu0 %v15510_v9, %s9373_s13 }
 0x702   :  { %v10679_v55 = vadd.f32 %v2647_v31, %v15506_v40 }
 0x704   :  { %v2693_v60 = vsel %vm1109_vm3, %v10679_v55, -inf }
 0x705   :  { %2691 = vmax.xlane.f32.xlu1 %v2690_v29  ;;  %v10686_v29 = vadd.f32 %v2652_v15, %v15503_v16 }
 0x707   :  { %8245 = vmatmul.msk.bf16.gmra.mxu3 %vm874_vm14, %v1532_v24  ;;  %v2585_v7 = vpop.f32.mrf.mxu1  ;;  %v2612_v6 = vpop.f32.mrf.mxu0  ;;  %v2708_v24 = vsel %vm1109_vm3, %v10686_v29, -inf }
 0x708   :  { %v2650_v48 = vmul.f32 0.17677669, %v2585_v7  ;;  %v2653_v25 = vmul.f32 0.17677669, %v2612_v6 }
 0x70a   :  { %v10658_v62 = vadd.f32 %v2650_v48, %v15503_v16  ;;  %v10666_v59 = vadd.f32 %v2653_v25, %v15506_v40 }
 0x70c   :  { %v2702_v58 = vsel %vm1109_vm3, %v10658_v62, -inf  ;;  %v2711_v10 = vsel %vm1109_vm3, %v10666_v59, -inf }
 0x70d   :  { %2700 = vmax.xlane.f32.xlu1 %v2699_v35  ;;  %v10704_v35 = vpop.permute.xlu0 %3250 }
 0x70f   :  { %v2587_v18 = vpop.f32.mrf.mxu1 }
 0x710   :  { %v2651_v42 = vmul.f32 0.17677669, %v2587_v18  ;;  %v10706_v18 = vpop.permute.xlu2 %3044 }
 0x712   :  { %v10676_v19 = vadd.f32 %v2651_v42, %v15506_v40 }
 0x714   :  { %v2705_v43 = vsel %vm1109_vm3, %v10676_v19, -inf }
 0x715   :  { %2703 = vmax.xlane.f32.xlu1 %v2702_v58 }
 0x717   :  { %8246 = vmatmul.msk.bf16.gmra.mxu3 %vm874_vm14, %v1533_v37  ;;  %v2635_v17 = vpop.f32.mrf.mxu1 }
 0x718   :  { %v2654_v4 = vmul.f32 0.17677669, %v2635_v17 }
 0x71a   :  { %v10698_v7 = vadd.f32 %v2654_v4, %v15503_v16 }
 0x71c   :  { %v2714_v48 = vsel %vm1109_vm3, %v10698_v7, -inf }
 0x71d   :  { %2712 = vmax.xlane.f32.xlu1 %v2711_v10 }
 0x71e   :  { %2679 = vmax.xlane.f32.xlu2 %v2678_v52 }
 0x71f   :  { %v2637_v0 = vpop.f32.mrf.mxu1 }
 0x720   :  { %v2655_v9 = vmul.f32 0.17677669, %v2637_v0 }
 0x722   :  { %v10691_v39 = vadd.f32 %v2655_v9, %v15506_v40 }
 0x724   :  { %v2717_v46 = vsel %vm1109_vm3, %v10691_v39, -inf }
 0x725   :  { %2706 = vmax.xlane.f32.xlu1 %v2705_v43 }
 0x726   :  { %2694 = vmax.xlane.f32.xlu2 %v2693_v60 }
 0x727   :  { %8279 = vmatmul.msk.bf16.vlgmr.msrb.gmra.mxu3 %vm874_vm14, %v10499_v51  ;;  %v15515_v51 = vld [vmem:[#allocation18_spill] sm:$0xff] }
 0x72b   :  { %2709 = vmax.xlane.f32.xlu0 %v2708_v24 }
 0x72d   :  { %2718 = vmax.xlane.f32.xlu1 %v2717_v46 }
 0x733   :  { %2715 = vmax.xlane.f32.xlu0 %v2714_v48 }
 0x73e   :  { %3187 = vrot.lane.b32.xlu2 %v15515_v51, %s9373_s13 }
 0x748   :  { %v2674_v6 = vpop.xlane.xlu0 %2673 }
 0x749   :  { %v2720_v25 = vsub.f32 %v10600_v50, %v2674_v6 }
 0x74b   :  { %v2736_v58 = vmul.f32 1.442695, %v2720_v25 }
 0x74d   :  { %8908 = vpow2.f32 %v2736_v58 }
 0x750   :  { %v2677_v22 = vpop.xlane.xlu2 %2676 }
 0x751   :  { %v2721_v37 = vsub.f32 %v10610_v61, %v2677_v22 }
 0x753   :  { %v10712_v28 = vpop.eup %8908  ;;  %v2738_v17 = vmul.f32 1.442695, %v2721_v37 }
 0x754   :  { %v2768_v42 = vsel %vm1109_vm3, %v10712_v28, 0.0 }
 0x755   :  { %8910 = vpow2.f32 %v2738_v17  ;;  %2769 = vadd.xlane.f32.xlu1 %v2768_v42 }
 0x758   :  { %v2686_v10 = vpop.xlane.xlu1 %2685  ;;  %v10736_v17 = vpop.permute.xlu2 %3185 }
 0x759   :  { %v2724_v31 = vsub.f32 %v10617_v33, %v2686_v10 }
 0x75b   :  { %v10717_v52 = vpop.eup %8910  ;;  %v2744_v50 = vmul.f32 1.442695, %v2724_v31 }
 0x75c   :  { %v2771_v0 = vsel %vm1109_vm3, %v10717_v52, 0.0 }
 0x75d   :  { %8912 = vpow2.f32 %v2744_v50  ;;  %2772 = vadd.xlane.f32.xlu1 %v2771_v0 }
 0x760   :  { %v2689_v61 = vpop.xlane.xlu0 %2688 }
 0x761   :  { %v2725_v15 = vsub.f32 %v10623_v38, %v2689_v61 }
 0x763   :  { %v10722_v9 = vpop.eup %8912  ;;  %v2746_v43 = vmul.f32 1.442695, %v2725_v15 }
 0x764   :  { %v2780_v60 = vsel %vm1109_vm3, %v10722_v9, 0.0 }
 0x765   :  { %8914 = vpow2.f32 %v2746_v43  ;;  %2781 = vadd.xlane.f32.xlu0 %v2780_v60 }
 0x768   :  { %v2683_v33 = vpop.xlane.xlu1 %2682 }
 0x769   :  { %v2723_v4 = vsub.f32 %v10628_v5, %v2683_v33 }
 0x76b   :  { %v10727_v24 = vpop.eup %8914  ;;  %v2742_v46 = vmul.f32 1.442695, %v2723_v4 }
 0x76c   :  { %v2783_v48 = vsel %vm1109_vm3, %v10727_v24, 0.0 }
 0x76d   :  { %8916 = vpow2.f32 %v2742_v46  ;;  %2784 = vadd.xlane.f32.xlu1 %v2783_v48 }
 0x770   :  { %v2698_v38 = vpop.xlane.xlu1 %2697 }
 0x773   :  { %v10731_v51 = vpop.eup %8916  ;;  %v10749_v33 = vpop.permute.xlu0 %3189 }
 0x774   :  { %v2777_v6 = vsel %vm1109_vm3, %v10731_v51, 0.0 }
 0x775   :  { %2778 = vadd.xlane.f32.xlu1 %v2777_v6 }
 0x778   :  { %v2692_v25 = vpop.xlane.xlu1 %2691 }
 0x780   :  { %v2701_v58 = vpop.xlane.xlu1 %2700 }
 0x781   :  { %v2729_v22 = vsub.f32 %v10653_v41, %v2701_v58  ;;  %v2728_v41 = vsub.f32 %v10638_v11, %v2698_v38 }
 0x783   :  { %v2754_v5 = vmul.f32 1.442695, %v2729_v22 }
 0x785   :  { %8918 = vpow2.f32 %v2754_v5  ;;  %v1606_v5 = vpop.f32.mrf.mxu2 }
 0x788   :  { %v2704_v37 = vpop.xlane.xlu1 %2703 }
 0x789   :  { %v2730_v42 = vsub.f32 %v10658_v62, %v2704_v37  ;;  %v2752_v62 = vmul.f32 1.442695, %v2728_v41  ;;  %v15516_v41 = vld [vmem:[#allocation22_spill] sm:$0xff] }
 0x78b   :  { %v10739_v10 = vpop.eup %8918  ;;  %v2756_v31 = vmul.f32 1.442695, %v2730_v42  ;;  %v1786_v42 = vmul.f32 0.17677669, %v1606_v5  ;;  %v15518_v5 = vld [vmem:[#allocation27_spill] sm:$0xff] }
 0x78c   :  { %v2795_v50 = vsel %vm1109_vm3, %v10739_v10, 0.0 }
 0x78d   :  { %8920 = vpow2.f32 %v2756_v31  ;;  %2796 = vadd.xlane.f32.xlu1 %v2795_v50  ;;  %v10767_v50 = vadd.f32 %v1786_v42, %v15503_v16 }
 0x791   :  { %v2680_v0 = vpop.xlane.xlu2 %2679 }
 0x792   :  { %v2722_v61 = vsub.f32 %v10669_v8, %v2680_v0  ;;  %v2726_v8 = vsub.f32 %v10643_v54, %v2692_v25 }
 0x793   :  { %v10744_v15 = vpop.eup %8920 }
 0x794   :  { %v2740_v43 = vmul.f32 1.442695, %v2722_v61  ;;  %v2798_v60 = vsel %vm1109_vm3, %v10744_v15, 0.0  ;;  %v2748_v38 = vmul.f32 1.442695, %v2726_v8  ;;  %v2713_v61 = vpop.xlane.xlu1 %2712 }
 0x795   :  { %2799 = vadd.xlane.f32.xlu2 %v2798_v60 }
 0x796   :  { %8922 = vpow2.f32 %v2740_v43  ;;  %v1818_v43 = vsel %vm1109_vm3, %v10767_v50, -inf }
 0x797   :  { %8924 = vpow2.f32 %v2752_v62 }
 0x799   :  { %v2695_v4 = vpop.xlane.xlu2 %2694 }
 0x79a   :  { %v2727_v46 = vsub.f32 %v10679_v55, %v2695_v4 }
 0x79c   :  { %v10752_v48 = vpop.eup %8922  ;;  %v2750_v6 = vmul.f32 1.442695, %v2727_v46  ;;  %v10781_v4 = vpop.xlane.xlu1 %2706 }
 0x79d   :  { %v2774_v11 = vsel %vm1109_vm3, %v10752_v48, 0.0  ;;  %v10757_v22 = vpop.eup %8924 }
 0x79e   :  { %8926 = vpow2.f32 %v2750_v6  ;;  %2775 = vadd.xlane.f32.xlu0 %v2774_v11  ;;  %v2710_v58 = vpop.xlane.xlu0 %2709  ;;  %v2792_v54 = vsel %vm1109_vm3, %v10757_v22, 0.0  ;;  %v1608_v6 = vpop.f32.mrf.mxu2  ;;  %v15517_v11 = vld [vmem:[#allocation19_spill] sm:$0xff] }
 0x79f   :  { %8928 = vpow2.f32 %v2748_v38  ;;  %v2732_v55 = vsub.f32 %v10686_v29, %v2710_v58  ;;  %v1787_v38 = vmul.f32 0.17677669, %v1608_v6  ;;  %v10789_v58 = vpop.f32.mrf.mxu3 }
 0x7a1   :  { %v2760_v31 = vmul.f32 1.442695, %v2732_v55 }
 0x7a3   :  { %8930 = vpow2.f32 %v2760_v31 }
 0x7a4   :  { %v10759_v37 = vpop.eup %8926  ;;  %v10783_v46 = vpop.xlane.xlu1 %2718 }
 0x7a5   :  { %v2789_v25 = vsel %vm1109_vm3, %v10759_v37, 0.0  ;;  %v10769_v0 = vpop.eup %8928 }
 0x7a6   :  { %2793 = vadd.xlane.f32.xlu0 %v2792_v54  ;;  %2790 = vadd.xlane.f32.xlu1 %v2789_v25  ;;  %v2786_v29 = vsel %vm1109_vm3, %v10769_v0, 0.0  ;;  %v2716_v55 = vpop.xlane.xlu0 %2715  ;;  %v10794_v25 = vadd.f32 %v1787_v38, %v15506_v40 }
 0x7a9   :  { %v10777_v60 = vpop.eup %8930 }
 0x7aa   :  { %v2804_v62 = vsel %vm1109_vm3, %v10777_v60, 0.0 }
 0x7ad   :  { %3191 = vrot.lane.b32.xlu2 %v15516_v41, %s9373_s13  ;;  %v1821_v41 = vsel %vm1109_vm3, %v10794_v25, -inf }
 0x7ae   :  { %2787 = vadd.xlane.f32.xlu0 %v2786_v29  ;;  %1819 = vmax.xlane.f32.xlu1 %v1818_v43  ;;  %v10801_v43 = vpop.f32.mrf.mxu3 }
 0x7b6   :  { %2805 = vadd.xlane.f32.xlu0 %v2804_v62 }
 0x7c7   :  { %3193 = vrot.lane.b32.xlu1 %v9834_v45, %s9373_s13  ;;  %v15519_v45 = vld [vmem:[#allocation23_spill] sm:$0xff] }
 0x7c8   :  { %v2770_v8 = vpop.xlane.xlu1 %2769 }
 0x7c9   :  { %8932 = vrcp.f32 %v2770_v8 }
 0x7ca   :  { %3275 = vrot.lane.b32.xlu0 %v15517_v11, %s9373_s13 }
 0x7cf   :  { %3199 = vrot.lane.b32.xlu1 %v15518_v5, %s9373_s13  ;;  %v8933_v54 = vpop.eup %8932 }
 0x7d0   :  { %v2773_v42 = vpop.xlane.xlu1 %2772  ;;  %v2832_v31 = vmul.f32 %v8933_v54, %v10712_v28  ;;  %v10806_v28 = vpop.f32.mrf.mxu3 }
 0x7d1   :  { %8934 = vrcp.f32 %v2773_v42 }
 0x7d2   :  { %3300 = vrot.lane.b32.xlu0 %v15519_v45, %s9373_s13  ;;  %v2848_v62 = vpack.c.bf16 %v2832_v31, %v2832_v31 }
 0x7d4   :  { %v2866_v38 = vunpack.c.l.b16 %v2848_v62 }
 0x7d6   :  { %1822 = vmax.xlane.f32.xlu2 %v1821_v41 }
 0x7d7   :  { %v8935_v29 = vpop.eup %8934 }
 0x7d8   :  { %v2833_v8 = vmul.f32 %v8935_v29, %v10717_v52  ;;  %v2782_v6 = vpop.xlane.xlu0 %2781  ;;  %v10815_v62 = vpop.f32.mrf.mxu3 }
 0x7d9   :  { %8936 = vrcp.f32 %v2782_v6  ;;  %v15520_v6 = vld [vmem:[#allocation26_spill] sm:$0xff] }
 0x7da   :  { %v2849_v11 = vpack.c.bf16 %v2833_v8, %v2833_v8  ;;  %3195 = vrot.lane.b32.xlu0 %v9838_v47, %s9373_s13  ;;  %v2733_v47 = vsub.f32 %v10666_v59, %v2713_v61 }
 0x7dc   :  { %v2867_v5 = vunpack.c.l.b16 %v2849_v11  ;;  %v2762_v11 = vmul.f32 1.442695, %v2733_v47 }
 0x7de   :  { %v2868_v42 = vpack.c.b16 %v2867_v5, %v2866_v38 }
 0x7df   :  { %v8937_v45 = vpop.eup %8936 }
 0x7e0   :  { %8255 = vmatmul.msk.bf16.vlgmr.msra.gmra.mxu0 %vm1109_vm3, %v2868_v42  ;;  %v2785_v54 = vpop.xlane.xlu1 %2784  ;;  %v2836_v52 = vmul.f32 %v8937_v45, %v10722_v9  ;;  %v2734_v9 = vsub.f32 %v10698_v7, %v2716_v55  ;;  %v15522_v42 = vld [vmem:[#allocation30_spill] sm:$0xff]  ;;  %v15523_v55 = vld [vmem:[#allocation33_spill] sm:$0xff] }
 0x7e1   :  { %2982 = vmatpush.bf16.msra.mxu0 %v10581_v1  ;;  %8938 = vrcp.f32 %v2785_v54 }
 0x7e2   :  { %3325 = vrot.lane.b32.xlu0 %v9879_v34, %s9373_s13  ;;  %v2852_v41 = vpack.c.bf16 %v2836_v52, %v2836_v52  ;;  %v15521_v34 = vld [vmem:[#allocation32_spill] sm:$0xff]  ;;  %8940 = vpow2.f32 %v2762_v11  ;;  %v2764_v59 = vmul.f32 1.442695, %v2734_v9 }
 0x7e4   :  { %v2916_v1 = vunpack.c.l.b16 %v2852_v41  ;;  %8942 = vpow2.f32 %v2764_v59  ;;  %v15524_v41 = vld [vmem:[#allocation34_spill] sm:$0xff] }
 0x7e7   :  { %v8939_v31 = vpop.eup %8938 }
 0x7e8   :  { %v2837_v29 = vmul.f32 %v8939_v31, %v10727_v24  ;;  %v10824_v24 = vpop.f32.mrf.mxu3  ;;  %v10826_v61 = vpop.eup %8940  ;;  %v2731_v31 = vsub.f32 %v10676_v19, %v10781_v4  ;;  %v3215_v19 = vrot.slane %v10749_v33, 4 }
 0x7e9   :  { %v2807_v54 = vsel %vm1109_vm3, %v10826_v61, 0.0  ;;  %v2779_v11 = vpop.xlane.xlu1 %2778 }
 0x7ea   :  { %v2853_v8 = vpack.c.bf16 %v2837_v29, %v2837_v29  ;;  %3197 = vrot.lane.b32.xlu0 %v15520_v6, %s9373_s13  ;;  %v10832_v45 = vpop.eup %8942  ;;  %v2758_v47 = vmul.f32 1.442695, %v2731_v31  ;;  %v2735_v6 = vsub.f32 %v10691_v39, %v10783_v46  ;;  %v3302_v39 = vunpack.c.l.b16 %v3215_v19 }
 0x7eb   :  { %v2810_v52 = vsel %vm1109_vm3, %v10832_v45, 0.0 }
 0x7ec   :  { %v2917_v38 = vunpack.c.l.b16 %v2853_v8  ;;  %8944 = vpow2.f32 %v2758_v47 }
 0x7ed   :  { %8946 = vrcp.f32 %v2779_v11 }
 0x7ee   :  { %v2918_v5 = vpack.c.b16 %v2917_v38, %v2916_v1  ;;  %3350 = vrot.lane.b32.xlu2 %v15521_v34, %s9373_s13  ;;  %v2766_v1 = vmul.f32 1.442695, %v2735_v6 }
 0x7f0   :  { %8257 = vmatmul.msk.bf16.vlgmr.msrb.gmra.mxu0 %vm1109_vm3, %v2918_v5  ;;  %v10834_v7 = vpop.f32.mrf.mxu3  ;;  %8948 = vpow2.f32 %v2766_v1 }
 0x7f1   :  { %3032 = vmatpush.bf16.msrb.mxu0 %v10492_v20  ;;  %v10838_v20 = vpop.permute.xlu2 %3187 }
 0x7f2   :  { %v10855_v4 = vpop.eup %8944 }
 0x7f3   :  { %v8947_v59 = vpop.eup %8946 }
 0x7f4   :  { %v2835_v33 = vmul.f32 %v8947_v59, %v10731_v51 }
 0x7f6   :  { %3375 = vrot.lane.b32.xlu2 %v15522_v42, %s9373_s13 }
 0x7f8   :  { %v10846_v29 = vpop.f32.mrf.mxu3 }
 0x7f9   :  { %2808 = vadd.xlane.f32.xlu1 %v2807_v54  ;;  %v2801_v54 = vsel %vm1109_vm3, %v10855_v4, 0.0 }
 0x7fe   :  { %3205 = vrot.lane.b32.xlu2 %v15523_v55, %s9373_s13 }
 0x800   :  { %v2797_v5 = vpop.xlane.xlu1 %2796  ;;  %v10857_v42 = vpop.f32.mrf.mxu3 }
 0x801   :  { %2811 = vadd.xlane.f32.xlu1 %v2810_v52  ;;  %15525 = vst [vmem:[#allocation37_spill] sm:$0xff] %v10857_v42  ;;  %v10862_v52 = vpop.eup %8948 }
 0x802   :  { %v2813_v51 = vsel %vm1109_vm3, %v10862_v52, 0.0 }
 0x806   :  { %3207 = vrot.lane.b32.xlu2 %v15524_v41, %s9373_s13  ;;  %v2851_v41 = vpack.c.bf16 %v2835_v33, %v2835_v33 }
 0x808   :  { %v10848_v8 = vpop.xlane.xlu2 %2799 }
 0x80e   :  { %2015 = vrot.lane.b32.xlu2 %v15497_v26, %s9371_s2 }
 0x810   :  { %v3192_v38 = vpop.permute.xlu2 %3191 }
 0x811   :  { %v3216_v34 = vrot.slane %v3192_v38, 4  ;;  %v2776_v9 = vpop.xlane.xlu0 %2775  ;;  %v15526_v38 = vld [vmem:[#allocation29_spill] sm:$0xff] }
 0x812   :  { %8950 = vrcp.f32 %v2776_v9  ;;  %v2892_v9 = vunpack.c.l.b16 %v2851_v41 }
 0x813   :  { %v3303_v46 = vunpack.c.l.b16 %v3216_v34  ;;  %8952 = vrcp.f32 %v2797_v5  ;;  %v10870_v34 = vpop.f32.mrf.mxu3 }
 0x814   :  { %2802 = vadd.xlane.f32.xlu0 %v2801_v54  ;;  %15527 = vst [vmem:[#allocation16_spill] sm:$0xff] %v10870_v34 }
 0x815   :  { %v3304_v55 = vpack.c.b16 %v3303_v46, %v3302_v39 }
 0x817   :  { %v3309_v31 = vsel %vm874_vm14, %v3304_v55, 0 }
 0x818   :  { %v8951_v47 = vpop.eup %8950  ;;  %3318 = vmatpush.bf16.xpose.msra.mxu3 %v3309_v31 }
 0x819   :  { %v2834_v6 = vmul.f32 %v8951_v47, %v10752_v48  ;;  %v2794_v11 = vpop.xlane.xlu0 %2793  ;;  %v2791_v1 = vpop.xlane.xlu1 %2790 }
 0x81a   :  { %v8953_v19 = vpop.eup %8952  ;;  %8954 = vrcp.f32 %v2794_v11  ;;  %3203 = vrot.lane.b32.xlu1 %v15526_v38, %s9373_s13 }
 0x81b   :  { %v2850_v5 = vpack.c.bf16 %v2834_v6, %v2834_v6  ;;  %8956 = vrcp.f32 %v2791_v1  ;;  %v2841_v59 = vmul.f32 %v8953_v19, %v10739_v10  ;;  %v10877_v1 = vpop.f32.mrf.mxu3 }
 0x81c   :  { %2814 = vadd.xlane.f32.xlu0 %v2813_v51  ;;  %15528 = vst [vmem:[#allocation36_spill] sm:$0xff] %v10877_v1 }
 0x81d   :  { %v2891_v39 = vunpack.c.l.b16 %v2850_v5  ;;  %v2857_v54 = vpack.c.bf16 %v2841_v59, %v2841_v59 }
 0x81f   :  { %v2893_v48 = vpack.c.b16 %v2892_v9, %v2891_v39  ;;  %v2967_v6 = vunpack.c.l.b16 %v2857_v54  ;;  %v15530_v39 = vld [vmem:[#allocation28_spill] sm:$0xff]  ;;  %v1706_v54 = vpop.f32.mrf.mxu2 }
 0x820   :  { %v8955_v46 = vpop.eup %8954 }
 0x821   :  { %v2840_v33 = vmul.f32 %v8955_v46, %v10757_v22  ;;  %8256 = vmatmul.msk.bf16.vlgmr.msra.gmra.mxu1 %vm1109_vm3, %v2893_v48  ;;  %v2788_v55 = vpop.xlane.xlu0 %2787  ;;  %v8957_v31 = vpop.eup %8956 }
 0x822   :  { %3007 = vmatpush.bf16.msra.mxu1 %v10709_v32  ;;  %8958 = vrcp.f32 %v2788_v55  ;;  %v2839_v41 = vmul.f32 %v8957_v31, %v10759_v37  ;;  %v3259_v32 = vsel %vm874_vm14, %v3254_v14, 0  ;;  %v1820_v46 = vpop.xlane.xlu1 %1819 }
 0x823   :  { %v2856_v47 = vpack.c.bf16 %v2840_v33, %v2840_v33  ;;  %v10885_v37 = vpop.f32.mrf.mxu3  ;;  %v1866_v33 = vsub.f32 %v10767_v50, %v1820_v46 }
 0x824   :  { %v2855_v38 = vpack.c.bf16 %v2839_v41, %v2839_v41  ;;  %15529 = vst [vmem:[#allocation21_spill] sm:$0xff] %v10885_v37 }
 0x825   :  { %v2966_v11 = vunpack.c.l.b16 %v2856_v47  ;;  %v1882_v47 = vmul.f32 1.442695, %v1866_v33 }
 0x826   :  { %v2942_v51 = vunpack.c.l.b16 %v2855_v38 }
 0x827   :  { %v2968_v10 = vpack.c.b16 %v2967_v6, %v2966_v11  ;;  %v1708_v41 = vpop.f32.mrf.mxu2 }
 0x828   :  { %v8959_v19 = vpop.eup %8958 }
 0x829   :  { %v2838_v5 = vmul.f32 %v8959_v19, %v10769_v0  ;;  %8259 = vmatmul.msk.bf16.vlgmr.msra.gmra.mxu0 %vm1109_vm3, %v2968_v10  ;;  %v2806_v0 = vpop.xlane.xlu0 %2805  ;;  %v1795_v19 = vmul.f32 0.17677669, %v1708_v41 }
 0x82a   :  { %3268 = vmatpush.bf16.xpose.msra.mxu0 %v3259_v32 }
 0x82b   :  { %v2854_v22 = vpack.c.bf16 %v2838_v5, %v2838_v5  ;;  %v10891_v48 = vpop.f32.mrf.mxu3 }
 0x82c   :  { %15531 = vst [vmem:[#allocation25_spill] sm:$0xff] %v10891_v48 }
 0x82d   :  { %v2941_v9 = vunpack.c.l.b16 %v2854_v22 }
 0x82f   :  { %v2943_v59 = vpack.c.b16 %v2942_v51, %v2941_v9  ;;  %v10917_v51 = vadd.f32 %v1795_v19, %v15506_v40 }
 0x830   :  { %3201 = vrot.lane.b32.xlu0 %v15530_v39, %s9373_s13 }
 0x831   :  { %8258 = vmatmul.msk.bf16.vlgmr.msrb.gmra.mxu1 %vm1109_vm3, %v2943_v59  ;;  %v1845_v39 = vsel %vm1109_vm3, %v10917_v51, -inf }
 0x832   :  { %3057 = vmatpush.bf16.msrb.mxu1 %v10706_v18 }
 0x833   :  { %v10895_v2 = vpop.f32.mrf.mxu3 }
 0x834   :  { %15532 = vst [vmem:[#allocation40_spill] sm:$0xff] %v10895_v2 }
 0x839   :  { %v3194_v9 = vpop.permute.xlu1 %3193 }
 0x83b   :  { %v10900_v18 = vpop.f32.mrf.mxu3 }
 0x83c   :  { %v10893_v63 = vpop.permute.xlu0 %3275  ;;  %15533 = vst [vmem:[#allocation42_spill] sm:$0xff] %v10900_v18 }
 0x841   :  { %v10928_v33 = vpop.permute.xlu1 %3199 }
 0x843   :  { %v10910_v50 = vpop.f32.mrf.mxu3 }
 0x844   :  { %v3301_v14 = vpop.permute.xlu0 %3300  ;;  %15534 = vst [vmem:[#allocation41_spill] sm:$0xff] %v10910_v50 }
 0x845   :  { %8282 = vmatmul.msk.bf16.vlgmr.msra.gmra.mxu3 %vm874_vm14, %v3301_v14 }
 0x849   :  { %v1823_v55 = vpop.xlane.xlu2 %1822 }
 0x84a   :  { %v1867_v31 = vsub.f32 %v10794_v25, %v1823_v55  ;;  %v1794_v25 = vmul.f32 0.17677669, %v1706_v54 }
 0x84b   :  { %v10926_v54 = vpop.f32.mrf.mxu3 }
 0x84c   :  { %v1884_v6 = vmul.f32 1.442695, %v1867_v31  ;;  %v10920_v59 = vadd.f32 %v1794_v25, %v15503_v16  ;;  %15535 = vst [vmem:[#allocation38_spill] sm:$0xff] %v10926_v54  ;;  %v3196_v31 = vpop.permute.xlu0 %3195 }
 0x84e   :  { %8960 = vpow2.f32 %v1884_v6  ;;  %v1842_v46 = vsel %vm1109_vm3, %v10920_v59, -inf }
 0x84f   :  { %8962 = vpow2.f32 %v1882_v47 }
 0x850   :  { %8964 = vrcp.f32 %v2806_v0 }
 0x851   :  { %v10902_v11 = vpop.permute.xlu2 %3350 }
 0x853   :  { %v10930_v47 = vpop.f32.mrf.mxu3 }
 0x854   :  { %v10904_v10 = vpop.eup %8960  ;;  %15536 = vst [vmem:[#allocation47_spill] sm:$0xff] %v10930_v47  ;;  %v3326_v18 = vpop.permute.xlu0 %3325  ;;  %v15538_v47 = vld [vmem:[#allocation35_spill] sm:$0xff] }
 0x855   :  { %v1917_v38 = vsel %vm1109_vm3, %v10904_v10, 0.0  ;;  %v10908_v5 = vpop.eup %8962 }
 0x856   :  { %1918 = vadd.xlane.f32.xlu1 %v1917_v38  ;;  %v1914_v22 = vsel %vm1109_vm3, %v10908_v5, 0.0  ;;  %v8965_v41 = vpop.eup %8964  ;;  %v3218_v38 = vrot.slane %v3196_v31, 4 }
 0x857   :  { %v2844_v19 = vmul.f32 %v8965_v41, %v10777_v60 }
 0x858   :  { %v3328_v54 = vunpack.c.l.b16 %v3218_v38 }
 0x859   :  { %v10912_v32 = vpop.permute.xlu2 %3375  ;;  %v2860_v50 = vpack.c.bf16 %v2844_v19, %v2844_v19 }
 0x85a   :  { %1915 = vadd.xlane.f32.xlu0 %v1914_v22  ;;  %v3217_v22 = vrot.slane %v3194_v9, 4 }
 0x85b   :  { %v10934_v0 = vpop.f32.mrf.mxu3 }
 0x85c   :  { %15537 = vst [vmem:[#allocation48_spill] sm:$0xff] %v10934_v0  ;;  %v3327_v48 = vunpack.c.l.b16 %v3217_v22  ;;  %v3198_v41 = vpop.permute.xlu0 %3197 }
 0x85e   :  { %1846 = vmax.xlane.f32.xlu1 %v1845_v39  ;;  %v3329_v2 = vpack.c.b16 %v3328_v54, %v3327_v48  ;;  %v3214_v48 = vrot.slane %v10838_v20, 4 }
 0x860   :  { %v3334_v9 = vsel %vm874_vm14, %v3329_v2, 0 }
 0x861   :  { %v3206_v14 = vpop.permute.xlu2 %3205 }
 0x862   :  { %1843 = vmax.xlane.f32.xlu0 %v1842_v46  ;;  %v3223_v38 = vrot.slane %v3206_v14, 4 }
 0x863   :  { %v10940_v19 = vpop.f32.mrf.mxu3 }
 0x864   :  { %15539 = vst [vmem:[#allocation39_spill] sm:$0xff] %v10940_v19  ;;  %v3402_v22 = vunpack.c.l.b16 %v3223_v38 }
 0x869   :  { %v3208_v55 = vpop.permute.xlu2 %3207 }
 0x86c   :  { %v2809_v6 = vpop.xlane.xlu1 %2808 }
 0x86d   :  { %8966 = vrcp.f32 %v2809_v6  ;;  %v3016_v6 = vunpack.c.l.b16 %v2860_v50 }
 0x86e   :  { %8968 = vrcp.f32 %v10848_v8  ;;  %v3213_v8 = vrot.slane %v10736_v17, 4 }
 0x871   :  { %v2016_v25 = vpop.permute.xlu2 %2015 }
 0x872   :  { %2028 = vmatpush.bf16.msrb.mxu2 %v2016_v25 }
 0x873   :  { %v8967_v39 = vpop.eup %8966 }
 0x874   :  { %v2845_v46 = vmul.f32 %v8967_v39, %v10826_v61  ;;  %v3224_v61 = vrot.slane %v3208_v55, 4  ;;  %v3278_v55 = vunpack.c.l.b16 %v3214_v48  ;;  %v3219_v48 = vrot.slane %v3198_v41, 4 }
 0x876   :  { %v2861_v37 = vpack.c.bf16 %v2845_v46, %v2845_v46  ;;  %3400 = vrot.lane.b32.xlu0 %v15538_v47, %s9373_s13  ;;  %v3403_v25 = vunpack.c.l.b16 %v3224_v61  ;;  %v8969_v47 = vpop.eup %8968 }
 0x877   :  { %v2842_v2 = vmul.f32 %v8969_v47, %v10744_v15 }
 0x878   :  { %v3017_v60 = vunpack.c.l.b16 %v2861_v37  ;;  %v3404_v50 = vpack.c.b16 %v3403_v25, %v3402_v22  ;;  %v10943_v37 = vpop.f32.mrf.mxu3 }
 0x879   :  { %15540 = vst [vmem:[#allocation43_spill] sm:$0xff] %v10943_v37  ;;  %v2858_v46 = vpack.c.bf16 %v2842_v2, %v2842_v2 }
 0x87a   :  { %v3018_v31 = vpack.c.b16 %v3017_v60, %v3016_v6  ;;  %v3409_v54 = vsel %vm874_vm14, %v3404_v50, 0  ;;  %v2812_v6 = vpop.xlane.xlu1 %2811 }
 0x87b   :  { %v2991_v61 = vunpack.c.l.b16 %v2858_v46 }
 0x87c   :  { %8261 = vmatmul.msk.bf16.vlgmr.msrb.gmra.mxu0 %vm1109_vm3, %v3018_v31 }
 0x87d   :  { %3343 = vmatpush.bf16.xpose.msrb.mxu0 %v3334_v9  ;;  %v3277_v9 = vunpack.c.l.b16 %v3213_v8 }
 0x87f   :  { %v3279_v15 = vpack.c.b16 %v3278_v55, %v3277_v9  ;;  %v3352_v55 = vunpack.c.l.b16 %v3219_v48 }
 0x881   :  { %v3284_v17 = vsel %vm874_vm14, %v3279_v15, 0 }
 0x887   :  { %v2803_v39 = vpop.xlane.xlu0 %2802 }
 0x888   :  { %8970 = vrcp.f32 %v2803_v39 }
 0x88c   :  { %8280 = vmatmul.msk.bf16.vlgmr.msra.gmra.mxu0 %vm874_vm14, %v10704_v35  ;;  %v3245_v35 = vpop.f32.mrf.mxu3 }
 0x88d   :  { %3418 = vmatpush.bf16.xpose.msra.mxu0 %v3409_v54  ;;  %v3425_v39 = vmul.f32 0.17677669, %v3245_v35  ;;  %v3220_v54 = vrot.slane %v10928_v33, 4 }
 0x88e   :  { %v8971_v14 = vpop.eup %8970 }
 0x88f   :  { %v2843_v60 = vmul.f32 %v8971_v14, %v10855_v4  ;;  %v2815_v31 = vpop.xlane.xlu0 %2814  ;;  %v10956_v50 = vadd.f32 %v3425_v39, %v15503_v16  ;;  %v3204_v14 = vpop.permute.xlu1 %3203 }
 0x890   :  { %8972 = vrcp.f32 %v2815_v31 }
 0x891   :  { %v2859_v20 = vpack.c.bf16 %v2843_v60, %v2843_v60  ;;  %8974 = vrcp.f32 %v2812_v6  ;;  %v3457_v6 = vsel %vm1109_vm3, %v10956_v50, -inf  ;;  %v3353_v60 = vunpack.c.l.b16 %v3220_v54 }
 0x893   :  { %v2992_v38 = vunpack.c.l.b16 %v2859_v20  ;;  %v3354_v20 = vpack.c.b16 %v3353_v60, %v3352_v55 }
 0x895   :  { %v2993_v25 = vpack.c.b16 %v2992_v38, %v2991_v61  ;;  %v3359_v33 = vsel %vm874_vm14, %v3354_v20, 0 }
 0x896   :  { %v8973_v22 = vpop.eup %8972 }
 0x897   :  { %8260 = vmatmul.msk.bf16.vlgmr.msra.gmra.mxu1 %vm1109_vm3, %v2993_v25  ;;  %v8975_v47 = vpop.eup %8974  ;;  %v2847_v4 = vmul.f32 %v8973_v22, %v10862_v52  ;;  %v3222_v52 = vrot.slane %v3204_v14, 4  ;;  %v3247_v25 = vpop.f32.mrf.mxu3 }
 0x898   :  { %3293 = vmatpush.bf16.xpose.msra.mxu1 %v3284_v17  ;;  %v2846_v2 = vmul.f32 %v8975_v47, %v10832_v45 }
 0x899   :  { %v2863_v8 = vpack.c.bf16 %v2847_v4, %v2847_v4  ;;  %v3378_v45 = vunpack.c.l.b16 %v3222_v52 }
 0x89a   :  { %v2862_v46 = vpack.c.bf16 %v2846_v2, %v2846_v2 }
 0x89b   :  { %v3042_v31 = vunpack.c.l.b16 %v2863_v8 }
 0x89c   :  { %8283 = vmatmul.msk.bf16.vlgmr.msrb.gmra.mxu0 %vm874_vm14, %v3326_v18  ;;  %v3041_v41 = vunpack.c.l.b16 %v2862_v46 }
 0x89e   :  { %v3043_v61 = vpack.c.b16 %v3042_v31, %v3041_v41 }
 0x8a0   :  { %3458 = vmax.xlane.f32.xlu0 %v3457_v6 }
 0x8a2   :  { %v3202_v9 = vpop.permute.xlu0 %3201 }
 0x8a3   :  { %v3221_v15 = vrot.slane %v3202_v9, 4 }
 0x8a5   :  { %v3377_v18 = vunpack.c.l.b16 %v3221_v15 }
 0x8a7   :  { %v3379_v38 = vpack.c.b16 %v3378_v45, %v3377_v18  ;;  %8262 = vmatmul.msk.bf16.vlgmr.msrb.gmra.mxu1 %vm1109_vm3, %v3043_v61 }
 0x8a8   :  { %3368 = vmatpush.bf16.xpose.msrb.mxu1 %v3359_v33 }
 0x8a9   :  { %v3384_v35 = vsel %vm874_vm14, %v3379_v38, 0  ;;  %v10989_v38 = vpop.f32.mrf.mxu0 }
 0x8aa   :  { %3393 = vmatpush.bf16.xpose.msrb.mxu3 %v3384_v35 }
 0x8b1   :  { %8285 = vmatmul.msk.bf16.vlgmr.msrb.gmra.mxu3 %vm874_vm14, %v10912_v32  ;;  %v10991_v33 = vpop.f32.mrf.mxu0 }
 0x8b7   :  { %8281 = vmatmul.msk.bf16.vlgmr.msra.gmra.mxu1 %vm874_vm14, %v10893_v63 }
 0x8b9   :  { %v10993_v35 = vpop.f32.mrf.mxu0 }
 0x8c7   :  { %8284 = vmatmul.msk.bf16.vlgmr.msrb.gmra.mxu1 %vm874_vm14, %v10902_v11 }
 0x8c8   :  { %v3320_v22 = vpop.f32.mrf.mxu3 }
 0x8c9   :  { %v1919_v39 = vpop.xlane.xlu1 %1918  ;;  %v3431_v41 = vmul.f32 0.17677669, %v3320_v22  ;;  %v3426_v22 = vmul.f32 0.17677669, %v3247_v25 }
 0x8ca   :  { %8976 = vrcp.f32 %v1919_v39  ;;  %v10995_v39 = vpop.f32.mrf.mxu0 }
 0x8cb   :  { %v3447_v45 = vadd.f32 %v3431_v41, %v15503_v16 }
 0x8cd   :  { %v1916_v17 = vpop.xlane.xlu0 %1915 }
 0x8ce   :  { %8978 = vrcp.f32 %v1916_v17  ;;  %v10997_v17 = vpop.f32.mrf.mxu1 }
 0x8d0   :  { %v8977_v47 = vpop.eup %8976  ;;  %v3322_v4 = vpop.f32.mrf.mxu3 }
 0x8d1   :  { %v1979_v48 = vmul.f32 %v8977_v47, %v10904_v10  ;;  %v3432_v2 = vmul.f32 0.17677669, %v3322_v4  ;;  %v1847_v54 = vpop.xlane.xlu1 %1846  ;;  %v11000_v47 = vadd.f32 %v3426_v22, %v15506_v40 }
 0x8d2   :  { %v1875_v32 = vsub.f32 %v10917_v51, %v1847_v54 }
 0x8d3   :  { %v10975_v8 = vadd.f32 %v3432_v2, %v15506_v40  ;;  %v1995_v55 = vpack.c.bf16 %v1979_v48, %v1979_v48  ;;  %v3460_v4 = vsel %vm1109_vm3, %v11000_v47, -inf  ;;  %v11004_v48 = vpop.f32.mrf.mxu0 }
 0x8d4   :  { %v8979_v63 = vpop.eup %8978  ;;  %v1900_v14 = vmul.f32 1.442695, %v1875_v32 }
 0x8d5   :  { %v1978_v11 = vmul.f32 %v8979_v63, %v10908_v5  ;;  %v1844_v46 = vpop.xlane.xlu0 %1843  ;;  %v3478_v6 = vsel %vm1109_vm3, %v10975_v8, -inf  ;;  %v2013_v31 = vunpack.c.l.b16 %v1995_v55 }
 0x8d6   :  { %8980 = vpow2.f32 %v1900_v14  ;;  %v1874_v60 = vsub.f32 %v10920_v59, %v1844_v46  ;;  %3479 = vmax.xlane.f32.xlu0 %v3478_v6  ;;  %v3475_v59 = vsel %vm1109_vm3, %v3447_v45, -inf  ;;  %v11006_v2 = vpop.f32.mrf.mxu1 }
 0x8d7   :  { %v1994_v10 = vpack.c.bf16 %v1978_v11, %v1978_v11 }
 0x8d8   :  { %v1898_v52 = vmul.f32 1.442695, %v1874_v60 }
 0x8d9   :  { %v2012_v51 = vunpack.c.l.b16 %v1994_v10 }
 0x8da   :  { %8982 = vpow2.f32 %v1898_v52 }
 0x8db   :  { %v2014_v9 = vpack.c.b16 %v2013_v31, %v2012_v51  ;;  %v11008_v54 = vpop.f32.mrf.mxu0 }
 0x8dc   :  { %v8981_v20 = vpop.eup %8980 }
 0x8dd   :  { %8207 = vmatmul.msk.bf16.vlgmr.msrb.gmra.mxu2 %vm1109_vm3, %v2014_v9  ;;  %v1941_v5 = vsel %vm1109_vm3, %v8981_v20, 0.0 }
 0x8de   :  { %1942 = vadd.xlane.f32.xlu2 %v1941_v5  ;;  %v11010_v32 = vpop.f32.mrf.mxu1 }
 0x8e0   :  { %v8983_v15 = vpop.eup %8982 }
 0x8e1   :  { %v1938_v61 = vsel %vm1109_vm3, %v8983_v15, 0.0 }
 0x8e2   :  { %1939 = vadd.xlane.f32.xlu1 %v1938_v61 }
 0x8e6   :  { %3476 = vmax.xlane.f32.xlu2 %v3475_v59  ;;  %v11019_v46 = vpop.f32.mrf.mxu1 }
 0x8e8   :  { %v3401_v18 = vpop.permute.xlu0 %3400 }
 0x8e9   :  { %8286 = vmatmul.msk.bf16.vlgmr.msra.gmra.mxu0 %vm874_vm14, %v3401_v18 }
 0x8f9   :  { %v11017_v11 = vpop.f32.mrf.mxu0 }
 0x8fb   :  { %2115 = vrot.lane.b32.xlu1 %v15499_v36, %s9371_s2 }
 0x901   :  { %v11023_v6 = vpop.f32.mrf.mxu0 }
 0x909   :  { %v11027_v10 = vpop.f32.mrf.mxu0 }
 0x911   :  { %v11034_v41 = vpop.f32.mrf.mxu0 }
 0x913   :  { %v3459_v31 = vpop.xlane.xlu0 %3458 }
 0x914   :  { %v11025_v60 = vpop.f32.mrf.mxu1  ;;  %v3505_v51 = vsub.f32 %v10956_v50, %v3459_v31 }
 0x916   :  { %v3521_v61 = vmul.f32 1.442695, %v3505_v51 }
 0x919   :  { %v3345_v22 = vpop.f32.mrf.mxu0 }
 0x91c   :  { %v11031_v52 = vpop.f32.mrf.mxu1 }
 0x925   :  { %3461 = vmax.xlane.f32.xlu1 %v3460_v4 }
 0x934   :  { %v3395_v25 = vpop.f32.mrf.mxu3 }
 0x935   :  { %v3437_v63 = vmul.f32 0.17677669, %v3395_v25 }
 0x937   :  { %v11013_v14 = vadd.f32 %v3437_v63, %v15503_v16 }
 0x939   :  { %v3493_v55 = vsel %vm1109_vm3, %v11013_v14, -inf }
 0x93a   :  { %3494 = vmax.xlane.f32.xlu0 %v3493_v55 }
 0x93c   :  { %v3397_v50 = vpop.f32.mrf.mxu3 }
 0x93d   :  { %v3438_v37 = vmul.f32 0.17677669, %v3397_v50 }
 0x93e   :  { %3654 = vrot.lane.b32.xlu1 %v15497_v26, %s9373_s13  ;;  %v11036_v26 = vpop.f32.mrf.mxu1 }
 0x93f   :  { %v11045_v0 = vadd.f32 %v3438_v37, %v15506_v40 }
 0x946   :  { %v11040_v63 = vpop.f32.mrf.mxu1 }
 0x94e   :  { %3704 = vrot.lane.b32.xlu0 %v15498_v23, %s9373_s13  ;;  %v11047_v42 = vpop.f32.mrf.mxu1 }
 0x951   :  { %v1943_v5 = vpop.xlane.xlu2 %1942 }
 0x955   :  { %v1940_v9 = vpop.xlane.xlu1 %1939 }
 0x956   :  { %8984 = vrcp.f32 %v1940_v9 }
 0x957   :  { %8986 = vrcp.f32 %v1943_v5 }
 0x958   :  { %8988 = vpow2.f32 %v3521_v61 }
 0x959   :  { %v3477_v23 = vpop.xlane.xlu2 %3476 }
 0x95a   :  { %v3511_v31 = vsub.f32 %v3447_v45, %v3477_v23 }
 0x95c   :  { %v8985_v59 = vpop.eup %8984  ;;  %v3533_v5 = vmul.f32 1.442695, %v3511_v31 }
 0x95d   :  { %v8987_v18 = vpop.eup %8986  ;;  %v1986_v4 = vmul.f32 %v8985_v59, %v8983_v15  ;;  %v8658_v15 = vld [vmem:[#allocation7 + $0x18] sm:$0xff]  ;;  %v3347_v59 = vpop.f32.mrf.mxu0 }
 0x95e   :  { %v11038_v25 = vpop.eup %8988  ;;  %v1987_v55 = vmul.f32 %v8987_v18, %v8981_v20  ;;  %8990 = vpow2.f32 %v3533_v5  ;;  %v3434_v20 = vmul.f32 0.17677669, %v3347_v59  ;;  %v3496_v18 = vsel %vm1109_vm3, %v11045_v0, -inf }
 0x95f   :  { %v2002_v19 = vpack.c.bf16 %v1986_v4, %v1986_v4  ;;  %v3553_v51 = vsel %vm1109_vm3, %v11038_v25, 0.0  ;;  %v8657_v4 = vld [vmem:[#allocation7 + $0x10] sm:$0xff] }
 0x960   :  { %v2003_v9 = vpack.c.bf16 %v1987_v55, %v1987_v55  ;;  %v11053_v37 = vadd.f32 %v3434_v20, %v15506_v40  ;;  %v3433_v55 = vmul.f32 0.17677669, %v3345_v22 }
 0x961   :  { %v2112_v61 = vunpack.c.l.b16 %v2002_v19  ;;  %v2030_v19 = vpop.f32.mrf.mxu2 }
 0x962   :  { %v2113_v1 = vunpack.c.l.b16 %v2003_v9  ;;  %v11062_v9 = vadd.f32 %v3433_v55, %v15503_v16 }
 0x964   :  { %v2114_v45 = vpack.c.b16 %v2113_v1, %v2112_v61  ;;  %v11055_v23 = vpop.eup %8990  ;;  %v3484_v1 = vsel %vm1109_vm3, %v11053_v37, -inf  ;;  %v3481_v20 = vsel %vm1109_vm3, %v11062_v9, -inf }
 0x965   :  { %v3571_v31 = vsel %vm1109_vm3, %v11055_v23, 0.0 }
 0x966   :  { %v3420_v50 = vpop.f32.mrf.mxu0 }
 0x968   :  { %3554 = vadd.xlane.f32.xlu1 %v3553_v51  ;;  %v3297_v51 = vpop.f32.mrf.mxu1 }
 0x969   :  { %v2032_v61 = vpop.f32.mrf.mxu2 }
 0x96a   :  { %v2210_v59 = vpack.c.bf16 %v2032_v61, %v2030_v19 }
 0x96d   :  { %v2116_v34 = vpop.permute.xlu1 %2115 }
 0x96e   :  { %2128 = vmatpush.bf16.msra.mxu2 %v2116_v34  ;;  %v3439_v34 = vmul.f32 0.17677669, %v3420_v50 }
 0x970   :  { %3497 = vmax.xlane.f32.xlu1 %v3496_v18  ;;  %v11065_v5 = vadd.f32 %v3439_v34, %v15503_v16  ;;  %v2211_v34 = vpack.c.bf16 %v10801_v43, %v10789_v58  ;;  %v2212_v43 = vpack.c.bf16 %v10578_v13, %v10572_v57  ;;  %v2213_v57 = vpack.c.bf16 %v10597_v3, %v10586_v53  ;;  %v3480_v13 = vpop.xlane.xlu0 %3479 }
 0x971   :  { %8211 = vmatmul.msk.bf16.vlgmr.msra.gmra.mxu2 %vm1109_vm3, %v2114_v45  ;;  %v3370_v45 = vpop.f32.mrf.mxu1 }
 0x972   :  { %2264 = vmatpush.bf16.msrb.mxu2 %v8658_v15  ;;  %v3430_v15 = vmul.f32 0.17677669, %v3297_v51  ;;  %v3499_v22 = vsel %vm1109_vm3, %v11065_v5, -inf }
 0x974   :  { %v11073_v18 = vadd.f32 %v3430_v15, %v15506_v40 }
 0x976   :  { %2265 = vmatpush.bf16.msrb.mxu2 %v8657_v4  ;;  %v3435_v4 = vmul.f32 0.17677669, %v3370_v45  ;;  %v3472_v50 = vsel %vm1109_vm3, %v11073_v18, -inf  ;;  %v3427_v45 = vmul.f32 0.17677669, %v11027_v10 }
 0x978   :  { %3485 = vmax.xlane.f32.xlu1 %v3484_v1  ;;  %3572 = vadd.xlane.f32.xlu0 %v3571_v31  ;;  %v11078_v19 = vadd.f32 %v3435_v4, %v15503_v16 }
 0x979   :  { %v3372_v55 = vpop.f32.mrf.mxu1 }
 0x97a   :  { %v3436_v1 = vmul.f32 0.17677669, %v3372_v55  ;;  %v3487_v31 = vsel %vm1109_vm3, %v11078_v19, -inf }
 0x97c   :  { %v11086_v51 = vadd.f32 %v3436_v1, %v15506_v40  ;;  %v3429_v1 = vmul.f32 0.17677669, %v11047_v42 }
 0x97e   :  { %v3490_v61 = vsel %vm1109_vm3, %v11086_v51, -inf }
 0x980   :  { %3500 = vmax.xlane.f32.xlu1 %v3499_v22  ;;  %3482 = vmax.xlane.f32.xlu0 %v3481_v20  ;;  %v15541_v22 = vld [vmem:[#allocation24_spill] sm:$0xff] }
 0x981   :  { %8223 = vmatmul.msk.bf16.vlgmr.msrb.gmra.mxu2 %vm874_vm14, %v2210_v59 }
 0x988   :  { %3473 = vmax.xlane.f32.xlu0 %v3472_v50  ;;  %v3428_v50 = vmul.f32 0.17677669, %v11034_v41 }
 0x98a   :  { %v11110_v10 = vadd.f32 %v3428_v50, %v15506_v40 }
 0x98c   :  { %v3466_v41 = vsel %vm1109_vm3, %v11110_v10, -inf }
 0x990   :  { %3488 = vmax.xlane.f32.xlu0 %v3487_v31  ;;  %v11117_v31 = vadd.f32 %v3429_v1, %v15503_v16 }
 0x991   :  { %8224 = vmatmul.msk.bf16.gmra.mxu2 %vm874_vm14, %v2211_v34 }
 0x992   :  { %v3469_v53 = vsel %vm1109_vm3, %v11117_v31, -inf }
 0x998   :  { %v3462_v15 = vpop.xlane.xlu1 %3461  ;;  %3491 = vmax.xlane.f32.xlu0 %v3490_v61 }
 0x999   :  { %v3506_v59 = vsub.f32 %v11000_v47, %v3462_v15  ;;  %3729 = vrot.lane.b32.xlu1 %v15541_v22, %s9373_s13  ;;  %v11102_v47 = vadd.f32 %v3427_v45, %v15503_v16 }
 0x99b   :  { %v3523_v58 = vmul.f32 1.442695, %v3506_v59  ;;  %v3463_v55 = vsel %vm1109_vm3, %v11102_v47, -inf  ;;  %v3512_v59 = vsub.f32 %v10975_v8, %v3480_v13 }
 0x99d   :  { %8992 = vpow2.f32 %v3523_v58  ;;  %v3535_v16 = vmul.f32 1.442695, %v3512_v59 }
 0x99f   :  { %8994 = vpow2.f32 %v3535_v16 }
 0x9a1   :  { %8225 = vmatmul.msk.bf16.gmra.mxu2 %vm874_vm14, %v2212_v43 }
 0x9a3   :  { %v11096_v20 = vpop.eup %8992 }
 0x9a4   :  { %v3556_v4 = vsel %vm1109_vm3, %v11096_v20, 0.0 }
 0x9a5   :  { %3557 = vadd.xlane.f32.xlu2 %v3556_v4 }
 0x9ad   :  { %3464 = vmax.xlane.f32.xlu2 %v3463_v55  ;;  %v11119_v61 = vpop.xlane.xlu0 %3494  ;;  %v11133_v55 = vpop.eup %8994 }
 0x9b0   :  { %v3655_v34 = vpop.permute.xlu1 %3654 }
 0x9b1   :  { %8226 = vmatmul.msk.bf16.gmra.mxu2 %vm874_vm14, %v2213_v57  ;;  %3667 = vmatpush.bf16.msra.mxu1 %v3655_v34  ;;  %v3574_v34 = vsel %vm1109_vm3, %v11133_v55, 0.0 }
 0x9b5   :  { %3467 = vmax.xlane.f32.xlu2 %v3466_v41  ;;  %v2215_v41 = vpack.c.bf16 %v10815_v62, %v10806_v28 }
 0x9bd   :  { %3470 = vmax.xlane.f32.xlu2 %v3469_v53  ;;  %v8660_v53 = vld [vmem:[#allocation7 + $0x28] sm:$0xff] }
 0x9be   :  { %3118 = vmatpush.bf16.msra.mxu2 %v8660_v53 }
 0x9c0   :  { %v3705_v3 = vpop.permute.xlu0 %3704 }
 0x9c1   :  { %3717 = vmatpush.bf16.msrb.mxu0 %v3705_v3 }
 0x9d5   :  { %3679 = vrot.lane.b32.xlu2 %v15493_v30, %s9373_s13 }
 0x9db   :  { %v3555_v15 = vpop.xlane.xlu1 %3554 }
 0x9e3   :  { %v11128_v22 = vpop.xlane.xlu1 %3497 }
 0x9eb   :  { %v11125_v42 = vpop.xlane.xlu0 %3572  ;;  %v11131_v50 = vpop.xlane.xlu1 %3485 }
 0x9f3   :  { %v3483_v58 = vpop.xlane.xlu0 %3482  ;;  %v3501_v13 = vpop.xlane.xlu1 %3500 }
 0x9f4   :  { %v3513_v43 = vsub.f32 %v11062_v9, %v3483_v58  ;;  %v2130_v45 = vpop.f32.mrf.mxu2  ;;  %v8659_v58 = vld [vmem:[#allocation7 + $0x20] sm:$0xff] }
 0x9f5   :  { %3119 = vmatpush.bf16.msra.mxu2 %v8659_v58 }
 0x9f6   :  { %v3537_v4 = vmul.f32 1.442695, %v3513_v43  ;;  %v2216_v43 = vpack.c.bf16 %v10588_v56, %v10583_v21  ;;  %v3422_v56 = vpop.f32.mrf.mxu0 }
 0x9f8   :  { %8996 = vpow2.f32 %v3537_v4 }
 0x9f9   :  { %8998 = vrcp.f32 %v3555_v15 }
 0x9fc   :  { %v2132_v30 = vpop.f32.mrf.mxu2 }
 0x9fd   :  { %v2214_v57 = vpack.c.bf16 %v2132_v30, %v2130_v45 }
 0x9fe   :  { %3575 = vadd.xlane.f32.xlu2 %v3574_v34  ;;  %v11137_v8 = vpop.eup %8996 }
 0x9ff   :  { %8227 = vmatmul.msk.bf16.gmra.mxu2 %vm874_vm14, %v2214_v57  ;;  %v3577_v9 = vsel %vm1109_vm3, %v11137_v8, 0.0  ;;  %v8999_v59 = vpop.eup %8998 }
 0xa00   :  { %3578 = vadd.xlane.f32.xlu1 %v3577_v9  ;;  %v3617_v16 = vmul.f32 %v8999_v59, %v11038_v25  ;;  %v3474_v9 = vpop.xlane.xlu0 %3473  ;;  %v2217_v59 = vpack.c.bf16 %v10614_v44, %v10606_v12  ;;  %v3514_v12 = vsub.f32 %v11053_v37, %v11131_v50 }
 0xa02   :  { %v3633_v28 = vpack.c.bf16 %v3617_v16, %v3617_v16 }
 0xa04   :  { %v3651_v34 = vunpack.c.l.b16 %v3633_v28 }
 0xa0b   :  { %v3730_v1 = vpop.permute.xlu1 %3729 }
 0xa0c   :  { %3742 = vmatpush.bf16.msrb.mxu1 %v3730_v1 }
 0xa0f   :  { %8228 = vmatmul.msk.bf16.gmra.mxu2 %vm874_vm14, %v2215_v41 }
 0xa18   :  { %v3558_v3 = vpop.xlane.xlu2 %3557 }
 0xa19   :  { %9000 = vrcp.f32 %v3558_v3  ;;  %3779 = vrot.lane.b32.xlu1 %v10112_v27, %s9373_s13  ;;  %v3440_v3 = vmul.f32 0.17677669, %v3422_v56 }
 0xa1f   :  { %v9001_v45 = vpop.eup %9000  ;;  %8229 = vmatmul.msk.bf16.gmra.mxu2 %vm874_vm14, %v2216_v43 }
 0xa20   :  { %v3618_v62 = vmul.f32 %v9001_v45, %v11096_v20  ;;  %v3465_v15 = vpop.xlane.xlu2 %3464  ;;  %v3510_v20 = vsub.f32 %v11073_v18, %v3474_v9  ;;  %v3517_v18 = vsub.f32 %v11013_v14, %v11119_v61  ;;  %v3519_v45 = vsub.f32 %v11065_v5, %v3501_v13  ;;  %v3489_v5 = vpop.xlane.xlu0 %3488 }
 0xa21   :  { %v3507_v4 = vsub.f32 %v11102_v47, %v3465_v15  ;;  %v3515_v50 = vsub.f32 %v11078_v19, %v3489_v5  ;;  %v3070_v5 = vpack.c.bf16 %v11023_v6, %v11017_v11 }
 0xa22   :  { %v3634_v30 = vpack.c.bf16 %v3618_v62, %v3618_v62  ;;  %v3531_v16 = vmul.f32 1.442695, %v3510_v20  ;;  %v3545_v15 = vmul.f32 1.442695, %v3517_v18  ;;  %v3549_v14 = vmul.f32 1.442695, %v3519_v45 }
 0xa23   :  { %v3525_v57 = vmul.f32 1.442695, %v3507_v4  ;;  %v3066_v20 = vpack.c.bf16 %v10995_v39, %v10993_v35 }
 0xa24   :  { %v3652_v27 = vunpack.c.l.b16 %v3634_v30 }
 0xa25   :  { %9002 = vpow2.f32 %v3525_v57  ;;  %v3064_v57 = vpack.c.bf16 %v10991_v33, %v10989_v38 }
 0xa26   :  { %v3653_v25 = vpack.c.b16 %v3652_v27, %v3651_v34  ;;  %v3541_v27 = vmul.f32 1.442695, %v3515_v50 }
 0xa28   :  { %8287 = vmatmul.msk.bf16.vlgmr.msra.gmra.mxu1 %vm1109_vm3, %v3653_v25  ;;  %v3468_v21 = vpop.xlane.xlu2 %3467 }
 0xa29   :  { %v3508_v1 = vsub.f32 %v11110_v10, %v3468_v21  ;;  %v11164_v10 = vadd.f32 %v3440_v3, %v15506_v40  ;;  %v11216_v3 = vpop.f32.mrf.mxu2 }
 0xa2b   :  { %v11155_v41 = vpop.eup %9002  ;;  %v3527_v53 = vmul.f32 1.442695, %v3508_v1  ;;  %v3502_v62 = vsel %vm1109_vm3, %v11164_v10, -inf  ;;  %v3065_v1 = vpack.c.bf16 %v11006_v2, %v10997_v17  ;;  %v3067_v17 = vpack.c.bf16 %v11019_v46, %v11010_v32 }
 0xa2c   :  { %v3559_v47 = vsel %vm1109_vm3, %v11155_v41, 0.0 }
 0xa2d   :  { %9004 = vpow2.f32 %v3527_v53  ;;  %3560 = vadd.xlane.f32.xlu2 %v3559_v47  ;;  %v15542_v53 = vld [vmem:[#allocation31_spill] sm:$0xff] }
 0xa2e   :  { %9006 = vpow2.f32 %v3531_v16 }
 0xa2f   :  { %8230 = vmatmul.msk.bf16.gmra.mxu2 %vm874_vm14, %v2217_v59  ;;  %v3492_v59 = vpop.xlane.xlu0 %3491 }
 0xa30   :  { %v3471_v58 = vpop.xlane.xlu2 %3470 }
 0xa31   :  { %v3509_v43 = vsub.f32 %v11117_v31, %v3471_v58  ;;  %v3539_v31 = vmul.f32 1.442695, %v3514_v12  ;;  %v11222_v35 = vpop.f32.mrf.mxu2 }
 0xa33   :  { %v11170_v28 = vpop.eup %9004  ;;  %v3529_v44 = vmul.f32 1.442695, %v3509_v43  ;;  %v3068_v43 = vpack.c.bf16 %v11008_v54, %v11004_v48 }
 0xa34   :  { %v3562_v40 = vsel %vm1109_vm3, %v11170_v28, 0.0  ;;  %v11178_v13 = vpop.eup %9006 }
 0xa35   :  { %9008 = vpow2.f32 %v3529_v44  ;;  %3503 = vmax.xlane.f32.xlu2 %v3502_v62  ;;  %3563 = vadd.xlane.f32.xlu0 %v3562_v40  ;;  %v3568_v4 = vsel %vm1109_vm3, %v11178_v13, 0.0 }
 0xa36   :  { %9010 = vpow2.f32 %v3545_v15  ;;  %v3069_v15 = vpack.c.bf16 %v11031_v52, %v11025_v60 }
 0xa37   :  { %9012 = vpow2.f32 %v3549_v14 }
 0xa38   :  { %v3680_v61 = vpop.permute.xlu2 %3679  ;;  %9014 = vpow2.f32 %v3539_v31 }
 0xa39   :  { %3692 = vmatpush.bf16.msra.mxu3 %v3680_v61  ;;  %9016 = vpow2.f32 %v3541_v27  ;;  %v11231_v44 = vpop.f32.mrf.mxu2 }
 0xa3a   :  { %9018 = vrcp.f32 %v11125_v42  ;;  %v3516_v42 = vsub.f32 %v11086_v51, %v3492_v59 }
 0xa3b   :  { %v11180_v37 = vpop.eup %9008 }
 0xa3c   :  { %v3565_v30 = vsel %vm1109_vm3, %v11180_v37, 0.0  ;;  %v11189_v34 = vpop.eup %9010  ;;  %v3543_v12 = vmul.f32 1.442695, %v3516_v42 }
 0xa3d   :  { %3569 = vadd.xlane.f32.xlu2 %v3568_v4  ;;  %3566 = vadd.xlane.f32.xlu0 %v3565_v30  ;;  %v11192_v25 = vpop.eup %9012  ;;  %v3589_v38 = vsel %vm1109_vm3, %v11189_v34, 0.0 }
 0xa3e   :  { %v11194_v9 = vpop.eup %9014  ;;  %v3595_v19 = vsel %vm1109_vm3, %v11192_v25, 0.0 }
 0xa3f   :  { %8271 = vmatmul.msk.bf16.vlgmr.msra.gmra.mxu2 %vm874_vm14, %v3064_v57  ;;  %v3580_v21 = vsel %vm1109_vm3, %v11194_v9, 0.0  ;;  %v11202_v33 = vpop.eup %9016 }
 0xa40   :  { %v3583_v56 = vsel %vm1109_vm3, %v11202_v33, 0.0  ;;  %v9019_v47 = vpop.eup %9018 }
 0xa41   :  { %v3623_v39 = vmul.f32 %v9019_v47, %v11055_v23  ;;  %v11241_v48 = vpop.f32.mrf.mxu2 }
 0xa43   :  { %3596 = vadd.xlane.f32.xlu1 %v3595_v19  ;;  %v3639_v18 = vpack.c.bf16 %v3623_v39, %v3623_v39  ;;  %v3071_v19 = vpack.c.bf16 %v11040_v63, %v11036_v26 }
 0xa45   :  { %3581 = vadd.xlane.f32.xlu2 %v3580_v21  ;;  %3590 = vadd.xlane.f32.xlu0 %v3589_v38  ;;  %v3726_v45 = vunpack.c.l.b16 %v3639_v18 }
 0xa49   :  { %v11248_v14 = vpop.f32.mrf.mxu2 }
 0xa4d   :  { %3584 = vadd.xlane.f32.xlu0 %v3583_v56 }
 0xa4f   :  { %8272 = vmatmul.msk.bf16.gmra.mxu2 %vm874_vm14, %v3065_v1 }
 0xa51   :  { %v11250_v31 = vpop.f32.mrf.mxu2 }
 0xa59   :  { %v11255_v50 = vpop.f32.mrf.mxu2 }
 0xa5d   :  { %3754 = vrot.lane.b32.xlu2 %v15499_v36, %s9373_s13  ;;  %v3518_v36 = vsub.f32 %v11045_v0, %v11128_v22 }
 0xa5f   :  { %8273 = vmatmul.msk.bf16.gmra.mxu2 %vm874_vm14, %v3066_v20  ;;  %v3547_v58 = vmul.f32 1.442695, %v3518_v36 }
 0xa61   :  { %3804 = vrot.lane.b32.xlu0 %v15542_v53, %s9373_s13  ;;  %v11261_v6 = vpop.f32.mrf.mxu2 }
 0xa6f   :  { %8274 = vmatmul.msk.bf16.gmra.mxu2 %vm874_vm14, %v3067_v17 }
 0xa71   :  { %v3576_v2 = vpop.xlane.xlu2 %3575 }
 0xa72   :  { %9020 = vrcp.f32 %v3576_v2 }
 0xa73   :  { %9022 = vpow2.f32 %v3547_v58  ;;  %v3579_v51 = vpop.xlane.xlu1 %3578 }
 0xa74   :  { %9024 = vpow2.f32 %v3543_v12 }
 0xa78   :  { %v9021_v16 = vpop.eup %9020 }
 0xa79   :  { %v3624_v32 = vmul.f32 %v9021_v16, %v11133_v55  ;;  %v11235_v23 = vpop.eup %9022 }
 0xa7a   :  { %v3592_v55 = vsel %vm1109_vm3, %v11235_v23, 0.0  ;;  %v11239_v62 = vpop.eup %9024 }
 0xa7b   :  { %v3640_v46 = vpack.c.bf16 %v3624_v32, %v3624_v32  ;;  %v3586_v54 = vsel %vm1109_vm3, %v11239_v62, 0.0 }
 0xa7d   :  { %v3727_v0 = vunpack.c.l.b16 %v3640_v46 }
 0xa7f   :  { %v3728_v22 = vpack.c.b16 %v3727_v0, %v3726_v45  ;;  %8275 = vmatmul.msk.bf16.gmra.mxu2 %vm874_vm14, %v3068_v43 }
 0xa81   :  { %8290 = vmatmul.msk.bf16.vlgmr.msrb.gmra.mxu1 %vm1109_vm3, %v3728_v22 }
 0xa86   :  { %3593 = vadd.xlane.f32.xlu2 %v3592_v55 }
 0xa8b   :  { %3587 = vadd.xlane.f32.xlu0 %v3586_v54  ;;  %v3780_v40 = vpop.permute.xlu1 %3779  ;;  %v8662_v54 = vld [vmem:[#allocation7 + $0x38] sm:$0xff] }
 0xa8c   :  { %3792 = vmatpush.bf16.msra.mxu0 %v3780_v40  ;;  %v8661_v40 = vld [vmem:[#allocation7 + $0x30] sm:$0xff] }
 0xa8f   :  { %8276 = vmatmul.msk.bf16.gmra.mxu2 %vm874_vm14, %v3069_v15 }
 0xa9f   :  { %8277 = vmatmul.msk.bf16.gmra.mxu2 %vm874_vm14, %v3070_v5 }
 0xaa0   :  { %v3561_v61 = vpop.xlane.xlu2 %3560 }
 0xaa1   :  { %9026 = vrcp.f32 %v3561_v61 }
 0xaa7   :  { %v9027_v57 = vpop.eup %9026 }
 0xaa8   :  { %v3564_v4 = vpop.xlane.xlu0 %3563  ;;  %v3504_v30 = vpop.xlane.xlu2 %3503  ;;  %v3619_v27 = vmul.f32 %v9027_v57, %v11155_v41 }
 0xaa9   :  { %9028 = vrcp.f32 %v3564_v4  ;;  %v3520_v60 = vsub.f32 %v11164_v10, %v3504_v30 }
 0xaaa   :  { %v3635_v21 = vpack.c.bf16 %v3619_v27, %v3619_v27 }
 0xaab   :  { %v3551_v52 = vmul.f32 1.442695, %v3520_v60 }
 0xaac   :  { %v3676_v41 = vunpack.c.l.b16 %v3635_v21 }
 0xaad   :  { %9030 = vpow2.f32 %v3551_v52 }
 0xaaf   :  { %v9029_v11 = vpop.eup %9028  ;;  %8278 = vmatmul.msk.bf16.gmra.mxu2 %vm874_vm14, %v3071_v19 }
 0xab0   :  { %v3620_v38 = vmul.f32 %v9029_v11, %v11170_v28  ;;  %v3567_v56 = vpop.xlane.xlu0 %3566  ;;  %v3570_v1 = vpop.xlane.xlu2 %3569 }
 0xab1   :  { %9032 = vrcp.f32 %v3567_v56 }
 0xab2   :  { %v3636_v20 = vpack.c.bf16 %v3620_v38, %v3620_v38  ;;  %9034 = vrcp.f32 %v3570_v1 }
 0xab3   :  { %v11265_v10 = vpop.eup %9030  ;;  %9036 = vrcp.f32 %v3579_v51 }
 0xab4   :  { %v3677_v53 = vunpack.c.l.b16 %v3636_v20  ;;  %v3598_v26 = vsel %vm1109_vm3, %v11265_v10, 0.0 }
 0xab5   :  { %3599 = vadd.xlane.f32.xlu0 %v3598_v26 }
 0xab6   :  { %v3678_v63 = vpack.c.b16 %v3677_v53, %v3676_v41  ;;  %v3669_v53 = vpop.f32.mrf.mxu1 }
 0xab7   :  { %v9033_v17 = vpop.eup %9032 }
 0xab8   :  { %v9035_v2 = vpop.eup %9034  ;;  %v3621_v47 = vmul.f32 %v9033_v17, %v11180_v37  ;;  %8288 = vmatmul.msk.bf16.vlgmr.msra.gmra.mxu3 %vm1109_vm3, %v3678_v63  ;;  %v3582_v28 = vpop.xlane.xlu2 %3581 }
 0xab9   :  { %v3622_v36 = vmul.f32 %v9035_v2, %v11178_v13  ;;  %v9037_v39 = vpop.eup %9036  ;;  %9038 = vrcp.f32 %v3582_v28  ;;  %v3591_v12 = vpop.xlane.xlu0 %3590 }
 0xaba   :  { %v3637_v59 = vpack.c.bf16 %v3621_v47, %v3621_v47  ;;  %v3625_v18 = vmul.f32 %v9037_v39, %v11137_v8  ;;  %9040 = vrcp.f32 %v3591_v12 }
 0xabb   :  { %v3638_v16 = vpack.c.bf16 %v3622_v36, %v3622_v36 }
 0xabc   :  { %v3701_v58 = vunpack.c.l.b16 %v3637_v59  ;;  %v3641_v45 = vpack.c.bf16 %v3625_v18, %v3625_v18 }
 0xabd   :  { %v3702_v42 = vunpack.c.l.b16 %v3638_v16 }
 0xabe   :  { %v3751_v13 = vunpack.c.l.b16 %v3641_v45 }
 0xabf   :  { %v3703_v32 = vpack.c.b16 %v3702_v42, %v3701_v58  ;;  %v9039_v46 = vpop.eup %9038 }
 0xac0   :  { %v3755_v43 = vpop.permute.xlu2 %3754  ;;  %v3626_v37 = vmul.f32 %v9039_v46, %v11194_v9  ;;  %v9041_v15 = vpop.eup %9040 }
 0xac1   :  { %8289 = vmatmul.msk.bf16.vlgmr.msrb.gmra.mxu0 %vm1109_vm3, %v3703_v32  ;;  %3767 = vmatpush.bf16.msrb.mxu3 %v3755_v43  ;;  %v3585_v8 = vpop.xlane.xlu0 %3584  ;;  %v3629_v5 = vmul.f32 %v9041_v15, %v11189_v34  ;;  %v11288_v46 = vpop.f32.mrf.mxu2 }
 0xac2   :  { %v3642_v0 = vpack.c.bf16 %v3626_v37, %v3626_v37  ;;  %3903 = vmatpush.bf16.msrb.mxu0 %v8662_v54  ;;  %9042 = vrcp.f32 %v3585_v8 }
 0xac3   :  { %v3645_v57 = vpack.c.bf16 %v3629_v5, %v3629_v5 }
 0xac4   :  { %v3752_v22 = vunpack.c.l.b16 %v3642_v0 }
 0xac5   :  { %v3801_v19 = vunpack.c.l.b16 %v3645_v57 }
 0xac6   :  { %v3753_v51 = vpack.c.b16 %v3752_v22, %v3751_v13  ;;  %3904 = vmatpush.bf16.msrb.mxu0 %v8661_v40 }
 0xac8   :  { %8291 = vmatmul.msk.bf16.vlgmr.msrb.gmra.mxu3 %vm1109_vm3, %v3753_v51  ;;  %v9043_v4 = vpop.eup %9042 }
 0xac9   :  { %3829 = vrot.lane.b32.xlu0 %v9922_v49, %s9373_s13  ;;  %v3627_v60 = vmul.f32 %v9043_v4, %v11202_v33  ;;  %v3597_v33 = vpop.xlane.xlu1 %3596 }
 0xacb   :  { %v3643_v21 = vpack.c.bf16 %v3627_v60, %v3627_v60 }
 0xacd   :  { %v3776_v34 = vunpack.c.l.b16 %v3643_v21 }
 0xad3   :  { %v3805_v55 = vpop.permute.xlu0 %3804 }
 0xad4   :  { %3817 = vmatpush.bf16.msra.mxu1 %v3805_v55 }
 0xaf9   :  { %v3594_v9 = vpop.xlane.xlu2 %3593 }
 0xafa   :  { %9044 = vrcp.f32 %v3594_v9 }
 0xafe   :  { %v3588_v61 = vpop.xlane.xlu0 %3587 }
 0xaff   :  { %9046 = vrcp.f32 %v3588_v61 }
 0xb00   :  { %v9045_v30 = vpop.eup %9044 }
 0xb01   :  { %v3630_v49 = vmul.f32 %v9045_v30, %v11235_v23  ;;  %v3671_v23 = vpop.f32.mrf.mxu1 }
 0xb02   :  { %v3849_v26 = vpack.c.bf16 %v3671_v23, %v3669_v53  ;;  %v9213_v53 = vld [vmem:[#allocation2 + $0x8] sm:$0xff] }
 0xb03   :  { %v3646_v52 = vpack.c.bf16 %v3630_v49, %v3630_v49  ;;  %v2353_v49 = vadd.f32 %v10824_v24, %v11216_v3 }
 0xb05   :  { %v9047_v27 = vpop.eup %9046  ;;  %v3802_v11 = vunpack.c.l.b16 %v3646_v52 }
 0xb06   :  { %v3628_v38 = vmul.f32 %v9047_v27, %v11239_v62 }
 0xb07   :  { %v3803_v56 = vpack.c.b16 %v3802_v11, %v3801_v19  ;;  %v9212_v19 = vld [vmem:[#allocation2] sm:$0xff] }
 0xb08   :  { %v3644_v1 = vpack.c.bf16 %v3628_v38, %v3628_v38  ;;  %v2355_v38 = vadd.f32 %v10834_v7, %v11222_v35 }
 0xb09   :  { %8293 = vmatmul.msk.bf16.vlgmr.msra.gmra.mxu1 %vm1109_vm3, %v3803_v56  ;;  %v3744_v12 = vpop.f32.mrf.mxu1 }
 0xb0a   :  { %v3777_v20 = vunpack.c.l.b16 %v3644_v1 }
 0xb0c   :  { %v3778_v41 = vpack.c.b16 %v3777_v20, %v3776_v34 }
 0xb0e   :  { %8292 = vmatmul.msk.bf16.vlgmr.msra.gmra.mxu0 %vm1109_vm3, %v3778_v41 }
 0xb11   :  { %v3746_v0 = vpop.f32.mrf.mxu1 }
 0xb12   :  { %v3852_v22 = vpack.c.bf16 %v3746_v0, %v3744_v12  ;;  %v15550_v0 = vld [vmem:[#allocation36_spill] sm:$0xff] }
 0xb1e   :  { %8303 = vmatmul.msk.bf16.vlgmr.msrb.gmra.mxu0 %vm874_vm14, %v3849_v26  ;;  %v2358_v26 = vadd.f32 %v10846_v29, %v11231_v44  ;;  %v9215_v29 = vld [vmem:[#allocation2 + $0x18] sm:$0xff] }
 0xb28   :  { %v3600_v63 = vpop.xlane.xlu0 %3599 }
 0xb29   :  { %9048 = vrcp.f32 %v3600_v63 }
 0xb2a   :  { %9050 = vrcp.f32 %v3597_v33 }
 0xb2f   :  { %v9049_v17 = vpop.eup %9048 }
 0xb30   :  { %v9051_v62 = vpop.eup %9050  ;;  %v3632_v2 = vmul.f32 %v9049_v17, %v11265_v10  ;;  %v11291_v10 = vpop.f32.mrf.mxu2  ;;  %v9214_v17 = vld [vmem:[#allocation2 + $0x10] sm:$0xff] }
 0xb31   :  { %v3631_v47 = vmul.f32 %v9051_v62, %v11192_v25 }
 0xb32   :  { %v3648_v28 = vpack.c.bf16 %v3632_v2, %v3632_v2 }
 0xb33   :  { %v3647_v36 = vpack.c.bf16 %v3631_v47, %v3631_v47  ;;  %v15546_v47 = vld [vmem:[#allocation37_spill] sm:$0xff] }
 0xb34   :  { %v3827_v39 = vunpack.c.l.b16 %v3648_v28  ;;  %v2360_v28 = vadd.f32 %v15546_v47, %v11241_v48 }
 0xb35   :  { %v3826_v59 = vunpack.c.l.b16 %v3647_v36 }
 0xb37   :  { %v3828_v18 = vpack.c.b16 %v3827_v39, %v3826_v59 }
 0xb38   :  { %v11294_v37 = vpop.f32.mrf.mxu2 }
 0xb3b   :  { %v3694_v16 = vpop.f32.mrf.mxu3  ;;  %v3830_v58 = vpop.permute.xlu0 %3829 }
 0xb3c   :  { %3842 = vmatpush.bf16.msra.mxu3 %v3830_v58 }
 0xb3e   :  { %v3719_v43 = vpop.f32.mrf.mxu0 }
 0xb3f   :  { %8294 = vmatmul.msk.bf16.vlgmr.msra.gmra.mxu3 %vm1109_vm3, %v3828_v18  ;;  %v15548_v18 = vld [vmem:[#allocation16_spill] sm:$0xff] }
 0xb40   :  { %v11296_v13 = vpop.f32.mrf.mxu2 }
 0xb43   :  { %v3696_v42 = vpop.f32.mrf.mxu3 }
 0xb44   :  { %v3850_v32 = vpack.c.bf16 %v3696_v42, %v3694_v16  ;;  %v2363_v42 = vadd.f32 %v15548_v18, %v11248_v14  ;;  %v15559_v18 = vld [vmem:[#allocation42_spill] sm:$0xff] }
 0xb46   :  { %8304 = vmatmul.msk.bf16.gmra.mxu0 %vm874_vm14, %v3850_v32  ;;  %v3721_v25 = vpop.f32.mrf.mxu0 }
 0xb47   :  { %v3851_v45 = vpack.c.bf16 %v3721_v25, %v3719_v43 }
 0xb48   :  { %v11299_v8 = vpop.f32.mrf.mxu2 }
 0xb4b   :  { %v3769_v51 = vpop.f32.mrf.mxu3 }
 0xb50   :  { %v11302_v40 = vpop.f32.mrf.mxu2 }
 0xb53   :  { %v3771_v55 = vpop.f32.mrf.mxu3 }
 0xb54   :  { %v3853_v54 = vpack.c.bf16 %v3771_v55, %v3769_v51 }
 0xb56   :  { %8305 = vmatmul.msk.bf16.gmra.mxu0 %vm874_vm14, %v3851_v45  ;;  %v9216_v45 = vld [vmem:[#allocation2 + $0x20] sm:$0xff] }
 0xb58   :  { %v11304_v9 = vpop.f32.mrf.mxu2 }
 0xb60   :  { %v11306_v15 = vpop.f32.mrf.mxu2 }
 0xb66   :  { %8306 = vmatmul.msk.bf16.gmra.mxu0 %vm874_vm14, %v3852_v22  ;;  %v2365_v22 = vadd.f32 %v15550_v0, %v11250_v31 }
 0xb68   :  { %v3121_v30 = vpop.f32.mrf.mxu2 }
 0xb69   :  { %v3161_v60 = vadd.f32 %v3121_v30, %v2353_v49 }
 0xb70   :  { %v3123_v21 = vpop.f32.mrf.mxu2 }
 0xb71   :  { %v3162_v1 = vadd.f32 %v3123_v21, %v2355_v38  ;;  %v9218_v21 = vld [vmem:[#allocation2 + $0x40] sm:$0xff] }
 0xb76   :  { %8307 = vmatmul.msk.bf16.gmra.mxu0 %vm874_vm14, %v3853_v54 }
 0xb78   :  { %v3126_v24 = vpop.f32.mrf.mxu2 }
 0xb79   :  { %v3163_v7 = vadd.f32 %v3126_v24, %v2358_v26 }
 0xb80   :  { %v3128_v3 = vpop.f32.mrf.mxu2 }
 0xb81   :  { %v3164_v36 = vadd.f32 %v3128_v3, %v2360_v28 }
 0xb86   :  { %v3819_v57 = vpop.f32.mrf.mxu1 }
 0xb88   :  { %v3131_v2 = vpop.f32.mrf.mxu2 }
 0xb89   :  { %v3165_v43 = vadd.f32 %v3131_v2, %v2363_v42  ;;  %v2375_v42 = vadd.f32 %v15559_v18, %v11291_v10  ;;  %v8433_v18 = vld [vmem:[%s15367_s7 + $0xe8] sm:$0xf] }
 0xb8b   :  { %v3794_v5 = vpop.f32.mrf.mxu0 }
 0xb8e   :  { %v3821_v56 = vpop.f32.mrf.mxu1 }
 0xb8f   :  { %v3855_v20 = vpack.c.bf16 %v3821_v56, %v3819_v57 }
 0xb90   :  { %v3133_v32 = vpop.f32.mrf.mxu2 }
 0xb91   :  { %v3166_v51 = vadd.f32 %v3133_v32, %v2365_v22 }
 0xb93   :  { %v3796_v61 = vpop.f32.mrf.mxu0 }
 0xb94   :  { %v3854_v4 = vpack.c.bf16 %v3796_v61, %v3794_v5  ;;  %v9217_v61 = vld [vmem:[#allocation2 + $0x28] sm:$0xff] }
 0xb96   :  { %8308 = vmatmul.msk.bf16.gmra.mxu0 %vm874_vm14, %v3854_v4 }
 0xb98   :  { %v3136_v55 = vpop.f32.mrf.mxu2 }
 0xb9b   :  { %v3906_v52 = vpop.f32.mrf.mxu0 }
 0xb9c   :  { %v3946_v27 = vadd.f32 %v3906_v52, %v3161_v60  ;;  %v15552_v60 = vld [vmem:[#allocation40_spill] sm:$0xff] }
 0xb9d   :  { %v2373_v52 = vadd.f32 %v15552_v60, %v11288_v46 }
 0xb9e   :  { %v11311_v11 = vadd.f32 %v9212_v19, %v3946_v27 }
 0xba0   :  { %15543 = vst [vmem:[#allocation44_spill] sm:$0xff] %v11311_v11  ;;  %3980 = vadd.xlane.f32.xlu2 %v11311_v11  ;;  %v3138_v30 = vpop.f32.mrf.mxu2 }
 0xba3   :  { %v3908_v34 = vpop.f32.mrf.mxu0 }
 0xba4   :  { %v3947_v41 = vadd.f32 %v3908_v34, %v3162_v1  ;;  %v15554_v1 = vld [vmem:[#allocation15_spill] sm:$0xff] }
 0xba6   :  { %v11316_v23 = vadd.f32 %v9213_v53, %v3947_v41  ;;  %8309 = vmatmul.msk.bf16.gmra.mxu0 %vm874_vm14, %v3855_v20  ;;  %v15555_v41 = vld [vmem:[#allocation21_spill] sm:$0xff] }
 0xba7   :  { %v2368_v53 = vadd.f32 %v15555_v41, %v11255_v50 }
 0xba8   :  { %15544 = vst [vmem:[#allocation17_spill] sm:$0xff] %v11316_v23  ;;  %3982 = vadd.xlane.f32.xlu0 %v11316_v23  ;;  %v3141_v49 = vpop.f32.mrf.mxu2 }
 0xba9   :  { %v3169_v27 = vadd.f32 %v3141_v49, %v2373_v52  ;;  %v3167_v24 = vadd.f32 %v3136_v55, %v2368_v53  ;;  %v15560_v55 = vld [vmem:[#allocation41_spill] sm:$0xff] }
 0xbc2   :  { %v3844_v35 = vpop.f32.mrf.mxu3 }
 0xbc3   :  { %v3911_v33 = vpop.f32.mrf.mxu0 }
 0xbc4   :  { %v3948_v63 = vadd.f32 %v3911_v33, %v3163_v7  ;;  %v15556_v33 = vld [vmem:[#allocation25_spill] sm:$0xff] }
 0xbc6   :  { %v11322_v62 = vadd.f32 %v9214_v17, %v3948_v63  ;;  %v2370_v63 = vadd.f32 %v15556_v33, %v11261_v6  ;;  %v9219_v17 = vld [vmem:[#allocation2 + $0x30] sm:$0xff] }
 0xbc8   :  { %15545 = vst [vmem:[#allocation20_spill] sm:$0xff] %v11322_v62  ;;  %3984 = vadd.xlane.f32.xlu1 %v11322_v62  ;;  %v3168_v47 = vadd.f32 %v3138_v30, %v2370_v63 }
 0xbca   :  { %v3846_v39 = vpop.f32.mrf.mxu3 }
 0xbcb   :  { %v3856_v59 = vpack.c.bf16 %v3846_v39, %v3844_v35  ;;  %v3913_v16 = vpop.f32.mrf.mxu0 }
 0xbcc   :  { %v3949_v58 = vadd.f32 %v3913_v16, %v3164_v36  ;;  %v9220_v36 = vld [vmem:[#allocation2 + $0x38] sm:$0xff] }
 0xbcd   :  { %8310 = vmatmul.msk.bf16.gmra.mxu0 %vm874_vm14, %v3856_v59  ;;  %v3143_v59 = vpop.f32.mrf.mxu2 }
 0xbce   :  { %v11328_v44 = vadd.f32 %v9215_v29, %v3949_v58 }
 0xbd0   :  { %15547 = vst [vmem:[#allocation45_spill] sm:$0xff] %v11328_v44  ;;  %3986 = vadd.xlane.f32.xlu2 %v11328_v44 }
 0xbd3   :  { %v3916_v48 = vpop.f32.mrf.mxu0 }
 0xbd4   :  { %v3950_v25 = vadd.f32 %v3916_v48, %v3165_v43  ;;  %v3170_v43 = vadd.f32 %v3143_v59, %v2375_v42  ;;  %v8693_v59 = vld [vmem:[%s15367_s7 + $0xec] sm:$0xf0]  ;;  %v8694_v42 = vld [vmem:[%s15367_s7 + $0xf4] sm:$0xf0] }
 0xbd5   :  { %v3146_v48 = vpop.f32.mrf.mxu2 }
 0xbd6   :  { %v11333_v12 = vadd.f32 %v9216_v45, %v3950_v25 }
 0xbd8   :  { %15549 = vst [vmem:[#allocation46_spill] sm:$0xff] %v11333_v12  ;;  %3988 = vadd.xlane.f32.xlu1 %v11333_v12 }
 0xbdb   :  { %v3918_v54 = vpop.f32.mrf.mxu0 }
 0xbdc   :  { %v3951_v5 = vadd.f32 %v3918_v54, %v3166_v51  ;;  %v2378_v54 = vadd.f32 %v15560_v55, %v11294_v37  ;;  %v15562_v37 = vld [vmem:[#allocation38_spill] sm:$0xff]  ;;  %v8687_v55 = vld [vmem:[%s15367_s7 + $0xc4] sm:$0xf] }
 0xbdd   :  { %v3148_v60 = vpop.f32.mrf.mxu2 }
 0xbde   :  { %v11338_v14 = vadd.f32 %v9217_v61, %v3951_v5  ;;  %v9221_v5 = vld [vmem:[#allocation2 + $0x48] sm:$0xff] }
 0xbe0   :  { %15551 = vst [vmem:[#allocation49_spill] sm:$0xff] %v11338_v14  ;;  %3990 = vadd.xlane.f32.xlu2 %v11338_v14 }
 0xbe3   :  { %v3921_v4 = vpop.f32.mrf.mxu0 }
 0xbe4   :  { %v3952_v26 = vadd.f32 %v3921_v4, %v3167_v24  ;;  %v3171_v4 = vadd.f32 %v3146_v48, %v2378_v54  ;;  %v8692_v48 = vld [vmem:[%s15367_s7 + $0xec] sm:$0xf] }
 0xbe6   :  { %v11360_v2 = vadd.f32 %v9219_v17, %v3952_v26 }
 0xbe8   :  { %15557 = vst [vmem:[#allocation18_spill] sm:$0xff] %v11360_v2 }
 0xbeb   :  { %v3923_v57 = vpop.f32.mrf.mxu0 }
 0xbec   :  { %v3953_v28 = vadd.f32 %v3923_v57, %v3168_v47 }
 0xbee   :  { %v11365_v39 = vadd.f32 %v9220_v36, %v3953_v28  ;;  %v9224_v28 = vld [vmem:[#allocation2 + $0x60] sm:$0xff] }
 0xbf0   :  { %15558 = vst [vmem:[#allocation22_spill] sm:$0xff] %v11365_v39 }
 0xbf3   :  { %v3926_v31 = vpop.f32.mrf.mxu0 }
 0xbf4   :  { %v3954_v19 = vadd.f32 %v3926_v31, %v3169_v27  ;;  %v2380_v31 = vadd.f32 %v15562_v37, %v11296_v13  ;;  %v15564_v13 = vld [vmem:[#allocation47_spill] sm:$0xff] }
 0xbf5   :  { %v2383_v26 = vadd.f32 %v15564_v13, %v11299_v8  ;;  %v8425_v8 = vld [vmem:[%s15367_s7 + $0xe0] sm:$0xf]  ;;  %v8684_v13 = vld [vmem:[%s15367_s7 + $0xac] sm:$0xf] }
 0xbf6   :  { %v11343_v38 = vadd.f32 %v9218_v21, %v3954_v19  ;;  %v9222_v19 = vld [vmem:[#allocation2 + $0x50] sm:$0xff]  ;;  %v8393_v37 = vld [vmem:[%s15367_s7 + $0xa0] sm:$0xf] }
 0xbf8   :  { %15553 = vst [vmem:[#allocation50_spill] sm:$0xff] %v11343_v38  ;;  %3996 = vadd.xlane.f32.xlu0 %v11343_v38 }
 0xbfb   :  { %v3928_v58 = vpop.f32.mrf.mxu0 }
 0xbfc   :  { %v3955_v45 = vadd.f32 %v3928_v58, %v3170_v43  ;;  %v8427_v58 = vld [vmem:[%s15367_s7 + $0xf0] sm:$0xf0]  ;;  %v8434_v43 = vor.u32 %v8694_v42, %v8433_v18  ;;  %v8387_v18 = vld [vmem:[%s15367_s7 + $0x98] sm:$0xf0] }
 0xbfe   :  { %v11382_v61 = vadd.f32 %v9221_v5, %v3955_v45  ;;  %4636 = vmatpush.bf16.msrb.mxu2 %v8434_v43  ;;  %v8411_v5 = vld [vmem:[%s15367_s7 + $0xd0] sm:$0xf0]  ;;  %v8677_v43 = vld [vmem:[%s15367_s7 + $0x6c] sm:$0xf0] }
 0xc00   :  { %15561 = vst [vmem:[#allocation19_spill] sm:$0xff] %v11382_v61 }
 0xc13   :  { %v3981_v56 = vpop.xlane.xlu2 %3980  ;;  %v3931_v22 = vpop.f32.mrf.mxu0 }
 0xc14   :  { %v4012_v34 = vmul.f32 %v3981_v56, %v15554_v1  ;;  %v3956_v57 = vadd.f32 %v3931_v22, %v3171_v4  ;;  %v8689_v22 = vld [vmem:[%s15367_s7 + $0xcc] sm:$0xf0]  ;;  %v8690_v4 = vld [vmem:[%s15367_s7 + $0xd4] sm:$0xf0] }
 0xc16   :  { %v11348_v20 = vsub.f32 %v11311_v11, %v4012_v34  ;;  %v11393_v21 = vadd.f32 %v9222_v19, %v3956_v57  ;;  %v3172_v34 = vadd.f32 %v3148_v60, %v2380_v31  ;;  %v8419_v60 = vld [vmem:[%s15367_s7 + $0xd8] sm:$0xf0]  ;;  %v8685_v31 = vld [vmem:[%s15367_s7 + $0xac] sm:$0xf0]  ;;  %v8683_v19 = vld [vmem:[%s15367_s7 + $0xa4] sm:$0xf] }
 0xc18   :  { %v4044_v46 = vmul.f32 %v11348_v20, %v11348_v20  ;;  %15563 = vst [vmem:[#allocation27_spill] sm:$0xff] %v11393_v21 }
 0xc1a   :  { %4060 = vadd.xlane.f32.xlu1 %v4044_v46 }
 0xc1b   :  { %v3983_v3 = vpop.xlane.xlu0 %3982  ;;  %v3933_v27 = vpop.f32.mrf.mxu0 }
 0xc1c   :  { %v4013_v7 = vmul.f32 %v3983_v3, %v15554_v1  ;;  %v3957_v53 = vadd.f32 %v3933_v27, %v3172_v34  ;;  %v3151_v3 = vpop.f32.mrf.mxu2  ;;  %v8395_v34 = vld [vmem:[%s15367_s7 + $0xb0] sm:$0xf0] }
 0xc1e   :  { %v11356_v35 = vsub.f32 %v11316_v23, %v4013_v7  ;;  %v9223_v7 = vld [vmem:[#allocation2 + $0x58] sm:$0xff] }
 0xc1f   :  { %v11404_v33 = vadd.f32 %v9223_v7, %v3957_v53  ;;  %v8686_v53 = vld [vmem:[%s15367_s7 + $0xb4] sm:$0xf0] }
 0xc20   :  { %v4045_v50 = vmul.f32 %v11356_v35, %v11356_v35 }
 0xc21   :  { %15565 = vst [vmem:[#allocation23_spill] sm:$0xff] %v11404_v33 }
 0xc22   :  { %4062 = vadd.xlane.f32.xlu2 %v4045_v50  ;;  %3992 = vadd.xlane.f32.xlu1 %v11360_v2  ;;  %v3173_v50 = vadd.f32 %v3151_v3, %v2383_v26  ;;  %v8403_v26 = vld [vmem:[%s15367_s7 + $0xb8] sm:$0xf0] }
 0xc23   :  { %v3936_v17 = vpop.f32.mrf.mxu0  ;;  %v8406_v7 = vor.u32 %v8684_v13, %v8403_v26  ;;  %v8667_v13 = vld [vmem:[%s15367_s7 + $0x24] sm:$0xf] }
 0xc24   :  { %v3958_v47 = vadd.f32 %v3936_v17, %v3173_v50  ;;  %v8681_v17 = vld [vmem:[%s15367_s7 + $0x8c] sm:$0xf0]  ;;  %v8679_v50 = vld [vmem:[%s15367_s7 + $0x84] sm:$0xf] }
 0xc26   :  { %v11409_v36 = vadd.f32 %v9224_v28, %v3958_v47  ;;  %v8379_v28 = vld [vmem:[%s15367_s7 + $0x90] sm:$0xf0] }
 0xc28   :  { %15566 = vst [vmem:[#allocation26_spill] sm:$0xff] %v11409_v36 }
 0xc2a   :  { %3994 = vadd.xlane.f32.xlu2 %v11365_v39 }
 0xc3b   :  { %v3985_v16 = vpop.xlane.xlu1 %3984 }
 0xc3c   :  { %v4014_v6 = vmul.f32 %v3985_v16, %v15554_v1  ;;  %v8691_v16 = vld [vmem:[%s15367_s7 + $0xe4] sm:$0xf] }
 0xc3e   :  { %v11370_v29 = vsub.f32 %v11322_v62, %v4014_v6  ;;  %v8426_v6 = vor.u32 %v8693_v59, %v8425_v8  ;;  %v8385_v8 = vld [vmem:[%s15367_s7 + $0x88] sm:$0xf]  ;;  %v8682_v59 = vld [vmem:[%s15367_s7 + $0x94] sm:$0xf0] }
 0xc40   :  { %v4046_v32 = vmul.f32 %v11370_v29, %v11370_v29  ;;  %4538 = vmatpush.bf16.msrb.mxu1 %v8426_v6  ;;  %v8386_v6 = vor.u32 %v8682_v59, %v8385_v8  ;;  %v8668_v59 = vld [vmem:[%s15367_s7 + $0x2c] sm:$0xf] }
 0xc42   :  { %4064 = vadd.xlane.f32.xlu1 %v4046_v32  ;;  %v8430_v32 = vor.u32 %v8691_v16, %v8427_v58  ;;  %v8382_v16 = vor.u32 %v8679_v50, %v8379_v28  ;;  %v8680_v58 = vld [vmem:[%s15367_s7 + $0x8c] sm:$0xf]  ;;  %v8670_v50 = vld [vmem:[%s15367_s7 + $0x34] sm:$0xf0] }
 0xc43   :  { %v3987_v25 = vpop.xlane.xlu2 %3986  ;;  %v8390_v42 = vor.u32 %v8680_v58, %v8387_v18  ;;  %v8313_v18 = vld [vmem:[%s15367_s7] sm:$0xf] }
 0xc44   :  { %v4015_v0 = vmul.f32 %v3987_v25, %v15554_v1  ;;  %v8435_v25 = vld [vmem:[%s15367_s7 + $0xf8] sm:$0xf0]  ;;  %4587 = vmatpush.bf16.msrb.mxu3 %v8430_v32  ;;  %v8361_v32 = vld [vmem:[%s15367_s7 + $0x60] sm:$0xf] }
 0xc45   :  { %v8438_v45 = vor.u32 %v8692_v48, %v8435_v25  ;;  %v8675_v48 = vld [vmem:[%s15367_s7 + $0x64] sm:$0xf]  ;;  %v8362_v25 = vor.u32 %v8677_v43, %v8361_v32 }
 0xc46   :  { %v11378_v51 = vsub.f32 %v11328_v44, %v4015_v0  ;;  %v8409_v0 = vld [vmem:[%s15367_s7 + $0xc0] sm:$0xf]  ;;  %v8663_v43 = vld [vmem:[%s15367_s7 + $0x4] sm:$0xf] }
 0xc47   :  { %4685 = vmatpush.bf16.msra.mxu0 %v8438_v45  ;;  %v8410_v54 = vor.u32 %v8689_v22, %v8409_v0  ;;  %v8363_v45 = vld [vmem:[%s15367_s7 + $0x70] sm:$0xf0]  ;;  %v8369_v0 = vld [vmem:[%s15367_s7 + $0x68] sm:$0xf]  ;;  %v8678_v22 = vld [vmem:[%s15367_s7 + $0x74] sm:$0xf0] }
 0xc48   :  { %v4047_v10 = vmul.f32 %v11378_v51, %v11378_v51 }
 0xc49   :  { %4539 = vmatpush.bf16.msrb.mxu1 %v8410_v54  ;;  %v8370_v54 = vor.u32 %v8678_v22, %v8369_v0  ;;  %v8666_v0 = vld [vmem:[%s15367_s7 + $0x14] sm:$0xf0]  ;;  %v8664_v22 = vld [vmem:[%s15367_s7 + $0xc] sm:$0xf] }
 0xc4a   :  { %3998 = vadd.xlane.f32.xlu1 %v11382_v61  ;;  %4066 = vadd.xlane.f32.xlu2 %v4047_v10  ;;  %v8417_v10 = vld [vmem:[%s15367_s7 + $0xc8] sm:$0xf] }
 0xc4b   :  { %v3989_v30 = vpop.xlane.xlu1 %3988  ;;  %v8418_v57 = vor.u32 %v8690_v4, %v8417_v10  ;;  %v8371_v10 = vld [vmem:[%s15367_s7 + $0x78] sm:$0xf0] }
 0xc4c   :  { %v4016_v49 = vmul.f32 %v3989_v30, %v15554_v1  ;;  %v8414_v30 = vor.u32 %v8687_v55, %v8411_v5  ;;  %v8366_v55 = vor.u32 %v8675_v48, %v8363_v45  ;;  %v8676_v5 = vld [vmem:[%s15367_s7 + $0x6c] sm:$0xf]  ;;  %v8315_v48 = vld [vmem:[%s15367_s7 + $0x10] sm:$0xf0] }
 0xc4d   :  { %4637 = vmatpush.bf16.msrb.mxu2 %v8418_v57  ;;  %v8374_v4 = vor.u32 %v8676_v5, %v8371_v10  ;;  %v8673_v57 = vld [vmem:[%s15367_s7 + $0x4c] sm:$0xf0]  ;;  %v8318_v45 = vor.u32 %v8663_v43, %v8315_v48 }
 0xc4e   :  { %v11389_v52 = vsub.f32 %v11333_v12, %v4016_v49  ;;  %v8688_v49 = vld [vmem:[%s15367_s7 + $0xcc] sm:$0xf]  ;;  %4588 = vmatpush.bf16.msrb.mxu3 %v8414_v30  ;;  %v8345_v30 = vld [vmem:[%s15367_s7 + $0x40] sm:$0xf] }
 0xc4f   :  { %v8422_v27 = vor.u32 %v8688_v49, %v8419_v60  ;;  %v8671_v49 = vld [vmem:[%s15367_s7 + $0x44] sm:$0xf]  ;;  %v8346_v60 = vor.u32 %v8673_v57, %v8345_v30 }
 0xc50   :  { %v4048_v56 = vmul.f32 %v11389_v52, %v11389_v52 }
 0xc51   :  { %4686 = vmatpush.bf16.msra.mxu0 %v8422_v27  ;;  %v8347_v27 = vld [vmem:[%s15367_s7 + $0x50] sm:$0xf0] }
 0xc52   :  { %4000 = vadd.xlane.f32.xlu1 %v11393_v21  ;;  %4068 = vadd.xlane.f32.xlu2 %v4048_v56  ;;  %v8394_v56 = vor.u32 %v8685_v31, %v8393_v37  ;;  %v8353_v37 = vld [vmem:[%s15367_s7 + $0x48] sm:$0xf]  ;;  %v8674_v31 = vld [vmem:[%s15367_s7 + $0x54] sm:$0xf0] }
 0xc53   :  { %v3991_v41 = vpop.xlane.xlu2 %3990 }
 0xc54   :  { %v4017_v46 = vmul.f32 %v3991_v41, %v15554_v1  ;;  %v8401_v41 = vld [vmem:[%s15367_s7 + $0xa8] sm:$0xf]  ;;  %4540 = vmatpush.bf16.msrb.mxu1 %v8394_v56  ;;  %v8354_v56 = vor.u32 %v8674_v31, %v8353_v37 }
 0xc55   :  { %v8402_v3 = vor.u32 %v8686_v53, %v8401_v41  ;;  %4687 = vmatpush.bf16.msra.mxu0 %v8406_v7  ;;  %v8355_v41 = vld [vmem:[%s15367_s7 + $0x58] sm:$0xf0] }
 0xc56   :  { %v11400_v24 = vsub.f32 %v11338_v14, %v4017_v46  ;;  %v8398_v46 = vor.u32 %v8683_v19, %v8395_v34  ;;  %v8350_v19 = vor.u32 %v8671_v49, %v8347_v27  ;;  %v8672_v34 = vld [vmem:[%s15367_s7 + $0x4c] sm:$0xf]  ;;  %v3153_v49 = vpop.f32.mrf.mxu2 }
 0xc57   :  { %4638 = vmatpush.bf16.msrb.mxu2 %v8402_v3  ;;  %v8358_v53 = vor.u32 %v8672_v34, %v8355_v41  ;;  %v8669_v3 = vld [vmem:[%s15367_s7 + $0x2c] sm:$0xf0]  ;;  %v3938_v41 = vpop.f32.mrf.mxu0 }
 0xc58   :  { %v4049_v63 = vmul.f32 %v11400_v24, %v11400_v24  ;;  %4589 = vmatpush.bf16.msrb.mxu3 %v8398_v46  ;;  %v8329_v46 = vld [vmem:[%s15367_s7 + $0x20] sm:$0xf] }
 0xc59   :  { %4688 = vmatpush.bf16.msra.mxu0 %v8390_v42  ;;  %v8330_v7 = vor.u32 %v8669_v3, %v8329_v46  ;;  %v8665_v42 = vld [vmem:[%s15367_s7 + $0xc] sm:$0xf0] }
 0xc5a   :  { %4002 = vadd.xlane.f32.xlu2 %v11404_v33  ;;  %4070 = vadd.xlane.f32.xlu0 %v4049_v63  ;;  %v8377_v63 = vld [vmem:[%s15367_s7 + $0x80] sm:$0xf]  ;;  %v8314_v32 = vor.u32 %v8665_v42, %v8313_v18 }
 0xc5b   :  { %v8378_v47 = vor.u32 %v8681_v17, %v8377_v63  ;;  %4639 = vmatpush.bf16.msrb.mxu2 %v8386_v6  ;;  %v8331_v63 = vld [vmem:[%s15367_s7 + $0x30] sm:$0xf0]  ;;  %v8337_v17 = vld [vmem:[%s15367_s7 + $0x28] sm:$0xf] }
 0xc5c   :  { %4590 = vmatpush.bf16.msrb.mxu3 %v8382_v16  ;;  %v8334_v28 = vor.u32 %v8667_v13, %v8331_v63  ;;  %v8338_v8 = vor.u32 %v8670_v50, %v8337_v17  ;;  %v8339_v16 = vld [vmem:[%s15367_s7 + $0x38] sm:$0xf0] }
 0xc5d   :  { %4541 = vmatpush.bf16.msrb.mxu1 %v8378_v47  ;;  %4689 = vmatpush.bf16.msra.mxu0 %v8374_v4  ;;  %v8342_v6 = vor.u32 %v8668_v59, %v8339_v16  ;;  %v15568_v59 = vld [vmem:[#allocation39_spill] sm:$0xff] }
 0xc5e   :  { %v2388_v16 = vadd.f32 %v15568_v59, %v11304_v9 }
 0xc5f   :  { %4640 = vmatpush.bf16.msrb.mxu2 %v8370_v54  ;;  %v3941_v43 = vpop.f32.mrf.mxu0 }
 0xc60   :  { %4591 = vmatpush.bf16.msrb.mxu3 %v8366_v55  ;;  %v8323_v55 = vld [vmem:[%s15367_s7 + $0x18] sm:$0xf0] }
 0xc61   :  { %4542 = vmatpush.bf16.msrb.mxu1 %v8362_v25  ;;  %4690 = vmatpush.bf16.msra.mxu0 %v8358_v53  ;;  %v8321_v25 = vld [vmem:[%s15367_s7 + $0x8] sm:$0xf]  ;;  %v8326_v5 = vor.u32 %v8664_v22, %v8323_v55 }
 0xc62   :  { %4004 = vadd.xlane.f32.xlu2 %v11409_v36  ;;  %v8322_v54 = vor.u32 %v8666_v0, %v8321_v25 }
 0xc63   :  { %4641 = vmatpush.bf16.msrb.mxu2 %v8354_v56 }
 0xc64   :  { %4592 = vmatpush.bf16.msrb.mxu3 %v8350_v19  ;;  %v15567_v19 = vld [vmem:[#allocation48_spill] sm:$0xff] }
 0xc65   :  { %4543 = vmatpush.bf16.msrb.mxu1 %v8346_v60  ;;  %4691 = vmatpush.bf16.msra.mxu0 %v8342_v6  ;;  %v2385_v56 = vadd.f32 %v15567_v19, %v11302_v40  ;;  %v3156_v40 = vpop.f32.mrf.mxu2  ;;  %v9225_v6 = vld [vmem:[#allocation2 + $0x68] sm:$0xff]  ;;  %v11644_v19 = vld [vmem:[%s15366_s6] ss:$0 sm:$0xff] }
 0xc66   :  { %v3175_v25 = vadd.f32 %v3156_v40, %v2388_v16 }
 0xc67   :  { %4642 = vmatpush.bf16.msrb.mxu2 %v8338_v8  ;;  %v3174_v46 = vadd.f32 %v3153_v49, %v2385_v56  ;;  %v3943_v56 = vpop.f32.mrf.mxu0 }
 0xc68   :  { %4593 = vmatpush.bf16.msrb.mxu3 %v8334_v28  ;;  %v3960_v22 = vadd.f32 %v3941_v43, %v3175_v25 }
 0xc69   :  { %4544 = vmatpush.bf16.msrb.mxu1 %v8330_v7  ;;  %4692 = vmatpush.bf16.msra.mxu0 %v8326_v5 }
 0xc6b   :  { %4643 = vmatpush.bf16.msrb.mxu2 %v8322_v54  ;;  %v3997_v63 = vpop.xlane.xlu0 %3996  ;;  %v11632_v54 = vld [vmem:[%s15365_s5] ss:$0 sm:$0xff] }
 0xc6c   :  { %4594 = vmatpush.bf16.msrb.mxu3 %v8318_v45  ;;  %v4020_v42 = vmul.f32 %v3997_v63, %v15554_v1 }
 0xc6d   :  { %4545 = vmatpush.bf16.msrb.mxu1 %v8314_v32 }
 0xc6e   :  { %v11627_v9 = vsub.f32 %v11343_v38, %v4020_v42 }
 0xc8d   :  { %v4061_v26 = vpop.xlane.xlu1 %4060 }
 0xc8e   :  { %v4092_v47 = vmul.f32 %v4061_v26, %v15554_v1  ;;  %v3959_v26 = vadd.f32 %v3938_v41, %v3174_v46 }
 0xc90   :  { %v4108_v58 = vadd.f32 1e-05, %v4092_v47  ;;  %v11620_v18 = vadd.f32 %v9225_v6, %v3959_v26 }
 0xc92   :  { %9052 = vrsqrt.f32 %v4108_v58  ;;  %15569 = vst [vmem:[#allocation32_spill] sm:$0xff] %v11620_v18  ;;  %vm4130_vm6 = vweird.f32 %v4108_v58 }
 0xc95   :  { %v3993_v10 = vpop.xlane.xlu1 %3992  ;;  %v4063_v4 = vpop.xlane.xlu2 %4062 }
 0xc96   :  { %v4018_v30 = vmul.f32 %v3993_v10, %v15554_v1  ;;  %v4093_v57 = vmul.f32 %v4063_v4, %v15554_v1  ;;  %v9226_v10 = vld [vmem:[#allocation2 + $0x70] sm:$0xff] }
 0xc97   :  { %v11635_v4 = vadd.f32 %v9226_v10, %v3960_v22 }
 0xc98   :  { %v9053_v60 = vpop.eup %9052  ;;  %v11608_v27 = vsub.f32 %v11360_v2, %v4018_v30  ;;  %v4109_v37 = vadd.f32 1e-05, %v4093_v57  ;;  %v4052_v30 = vmul.f32 %v11627_v9, %v11627_v9  ;;  %v3158_v57 = vpop.f32.mrf.mxu2 }
 0xc99   :  { %v4125_v31 = vmul.f32 %v9053_v60, %v4108_v58  ;;  %vm4131_vm5 = vweird.f32 %v9053_v60  ;;  %15570 = vst [vmem:[#allocation30_spill] sm:$0xff] %v11635_v4 }
 0xc9a   :  { %9054 = vrsqrt.f32 %v4109_v37  ;;  %v4050_v34 = vmul.f32 %v11608_v27, %v11608_v27  ;;  %vm4132_vm7 = vmor %vm4130_vm6, %vm4131_vm5  ;;  %vm4140_vm9 = vweird.f32 %v4109_v37 }
 0xc9b   :  { %v4126_v53 = vmul.f32 %v9053_v60, %v4125_v31 }
 0xc9c   :  { %4072 = vadd.xlane.f32.xlu0 %v4050_v34 }
 0xc9d   :  { %v4127_v3 = vmul.f32 0.5, %v4126_v53  ;;  %v3995_v13 = vpop.xlane.xlu2 %3994 }
 0xc9e   :  { %v4019_v7 = vmul.f32 %v3995_v13, %v15554_v1  ;;  %v9227_v13 = vld [vmem:[#allocation2 + $0x78] sm:$0xff] }
 0xc9f   :  { %v4128_v17 = vsub.f32 1.5, %v4127_v3 }
 0xca0   :  { %v9055_v50 = vpop.eup %9054  ;;  %v11616_v47 = vsub.f32 %v11365_v39, %v4019_v7 }
 0xca1   :  { %v4129_v28 = vmul.f32 %v9053_v60, %v4128_v17  ;;  %v4135_v8 = vmul.f32 %v9055_v50, %v4109_v37  ;;  %vm4141_vm8 = vweird.f32 %v9055_v50 }
 0xca2   :  { %v4051_v32 = vmul.f32 %v11616_v47, %v11616_v47  ;;  %vm4142_vm10 = vmor %vm4140_vm9, %vm4141_vm8 }
 0xca3   :  { %v4136_v48 = vmul.f32 %v9055_v50, %v4135_v8  ;;  %v4133_v45 = vsel %vm4132_vm7, %v9053_v60, %v4129_v28  ;;  %v15571_v60 = vld [vmem:[#allocation43_spill] sm:$0xff] }
 0xca4   :  { %4006 = vadd.xlane.f32.xlu0 %v11620_v18  ;;  %4074 = vadd.xlane.f32.xlu1 %v4051_v32  ;;  %v4284_v58 = vmul.f32 %v4133_v45, %v11348_v20  ;;  %v2390_v31 = vadd.f32 %v15571_v60, %v11306_v15 }
 0xca5   :  { %v4137_v0 = vmul.f32 0.5, %v4136_v48 }
 0xca6   :  { %v4303_v20 = vmul.f32 %v11632_v54, %v4284_v58  ;;  %v3176_v34 = vadd.f32 %v3158_v57, %v2390_v31 }
 0xca7   :  { %v4138_v55 = vsub.f32 1.5, %v4137_v0 }
 0xca8   :  { %v3961_v53 = vadd.f32 %v3943_v56, %v3176_v34  ;;  %v4322_v46 = vadd.f32 %v11644_v19, %v4303_v20 }
 0xca9   :  { %v4139_v5 = vmul.f32 %v9055_v50, %v4138_v55 }
 0xcaa   :  { %v11652_v26 = vadd.f32 %v9227_v13, %v3961_v53 }
 0xcab   :  { %v4143_v49 = vsel %vm4142_vm10, %v9055_v50, %v4139_v5 }
 0xcac   :  { %v4285_v37 = vmul.f32 %v4143_v49, %v11356_v35  ;;  %4008 = vadd.xlane.f32.xlu0 %v11635_v4  ;;  %4076 = vadd.xlane.f32.xlu1 %v4052_v30  ;;  %15572 = vst [vmem:[#allocation33_spill] sm:$0xff] %v11652_v26 }
 0xcae   :  { %v4304_v41 = vmul.f32 %v11632_v54, %v4285_v37 }
 0xcb0   :  { %v4323_v15 = vadd.f32 %v11644_v19, %v4304_v41 }
 0xcb2   :  { %v4338_v3 = vpack.c.bf16 %v4323_v15, %v4322_v46 }
 0xcb4   :  { %4546 = vmatmul.bf16.vlgmr.msrb.gmra.mxu1 %v4338_v3  ;;  %4595 = vmatmul.bf16.vlgmr.msrb.gmra.mxu3 %v4338_v3 }
 0xcb5   :  { %4644 = vmatmul.bf16.vlgmr.msrb.gmra.mxu2 %v4338_v3  ;;  %4693 = vmatmul.bf16.vlgmr.msra.gmra.mxu0 %v4338_v3  ;;  %v4065_v35 = vpop.xlane.xlu1 %4064 }
 0xcb6   :  { %4010 = vadd.xlane.f32.xlu1 %v11652_v26  ;;  %v4094_v7 = vmul.f32 %v4065_v35, %v15554_v1 }
 0xcb8   :  { %v4110_v63 = vadd.f32 1e-05, %v4094_v7 }
 0xcba   :  { %9056 = vrsqrt.f32 %v4110_v63  ;;  %vm4150_vm12 = vweird.f32 %v4110_v63 }
 0xcbd   :  { %v3999_v17 = vpop.xlane.xlu1 %3998  ;;  %v4067_v50 = vpop.xlane.xlu2 %4066 }
 0xcbe   :  { %v4021_v40 = vmul.f32 %v3999_v17, %v15554_v1  ;;  %v4095_v28 = vmul.f32 %v4067_v50, %v15554_v1 }
 0xcc0   :  { %v9057_v8 = vpop.eup %9056  ;;  %v11659_v59 = vsub.f32 %v11382_v61, %v4021_v40  ;;  %v4111_v16 = vadd.f32 1e-05, %v4095_v28 }
 0xcc1   :  { %v4145_v6 = vmul.f32 %v9057_v8, %v4110_v63  ;;  %vm4151_vm11 = vweird.f32 %v9057_v8 }
 0xcc2   :  { %9058 = vrsqrt.f32 %v4111_v16  ;;  %v4053_v42 = vmul.f32 %v11659_v59, %v11659_v59  ;;  %vm4152_vm13 = vmor %vm4150_vm12, %vm4151_vm11  ;;  %vm4160_vm15 = vweird.f32 %v4111_v16 }
 0xcc3   :  { %v4146_v32 = vmul.f32 %v9057_v8, %v4145_v6 }
 0xcc4   :  { %4078 = vadd.xlane.f32.xlu2 %v4053_v42 }
 0xcc5   :  { %v4147_v43 = vmul.f32 0.5, %v4146_v32  ;;  %v4001_v48 = vpop.xlane.xlu1 %4000  ;;  %v4069_v25 = vpop.xlane.xlu2 %4068 }
 0xcc6   :  { %v4022_v45 = vmul.f32 %v4001_v48, %v15554_v1  ;;  %v4096_v0 = vmul.f32 %v4069_v25, %v15554_v1 }
 0xcc7   :  { %v4148_v22 = vsub.f32 1.5, %v4147_v43 }
 0xcc8   :  { %v9059_v55 = vpop.eup %9058  ;;  %v11666_v58 = vsub.f32 %v11393_v21, %v4022_v45  ;;  %v4112_v5 = vadd.f32 1e-05, %v4096_v0 }
 0xcc9   :  { %v4149_v10 = vmul.f32 %v9057_v8, %v4148_v22  ;;  %v4155_v30 = vmul.f32 %v9059_v55, %v4111_v16  ;;  %vm4161_vm14 = vweird.f32 %v9059_v55 }
 0xcca   :  { %9060 = vrsqrt.f32 %v4112_v5  ;;  %v4054_v57 = vmul.f32 %v11666_v58, %v11666_v58  ;;  %vm4162_vm0 = vmor %vm4160_vm15, %vm4161_vm14  ;;  %vm4170_vm2 = vweird.f32 %v4112_v5 }
 0xccb   :  { %v4156_v49 = vmul.f32 %v9059_v55, %v4155_v30  ;;  %v4153_v60 = vsel %vm4152_vm13, %v9057_v8, %v4149_v10 }
 0xccc   :  { %4080 = vadd.xlane.f32.xlu2 %v4054_v57  ;;  %v4286_v46 = vmul.f32 %v4153_v60, %v11370_v29 }
 0xccd   :  { %v4157_v31 = vmul.f32 0.5, %v4156_v49  ;;  %v4071_v20 = vpop.xlane.xlu0 %4070  ;;  %v4003_v37 = vpop.xlane.xlu2 %4002 }
 0xcce   :  { %v4097_v56 = vmul.f32 %v4071_v20, %v15554_v1  ;;  %v4023_v34 = vmul.f32 %v4003_v37, %v15554_v1  ;;  %v4305_v40 = vmul.f32 %v11632_v54, %v4286_v46 }
 0xccf   :  { %v4158_v41 = vsub.f32 1.5, %v4157_v31 }
 0xcd0   :  { %v9061_v53 = vpop.eup %9060  ;;  %v4113_v15 = vadd.f32 1e-05, %v4097_v56  ;;  %v11674_v3 = vsub.f32 %v11404_v33, %v4023_v34  ;;  %v4324_v43 = vadd.f32 %v11644_v19, %v4305_v40 }
 0xcd1   :  { %v4159_v13 = vmul.f32 %v9059_v55, %v4158_v41  ;;  %v4165_v35 = vmul.f32 %v9061_v53, %v4112_v5  ;;  %vm4171_vm1 = vweird.f32 %v9061_v53 }
 0xcd2   :  { %9062 = vrsqrt.f32 %v4113_v15  ;;  %v4055_v7 = vmul.f32 %v11674_v3, %v11674_v3  ;;  %vm4172_vm3 = vmor %vm4170_vm2, %vm4171_vm1  ;;  %vm4180_vm5 = vweird.f32 %v4113_v15 }
 0xcd3   :  { %v4163_v63 = vsel %vm4162_vm0, %v9059_v55, %v4159_v13  ;;  %v4166_v17 = vmul.f32 %v9061_v53, %v4165_v35 }
 0xcd4   :  { %v4287_v50 = vmul.f32 %v4163_v63, %v11378_v51  ;;  %4082 = vadd.xlane.f32.xlu0 %v4055_v7 }
 0xcd5   :  { %v4167_v29 = vmul.f32 0.5, %v4166_v17  ;;  %v4005_v28 = vpop.xlane.xlu2 %4004 }
 0xcd6   :  { %v4024_v8 = vmul.f32 %v4005_v28, %v15554_v1  ;;  %v4306_v6 = vmul.f32 %v11632_v54, %v4287_v50 }
 0xcd7   :  { %v4168_v16 = vsub.f32 1.5, %v4167_v29 }
 0xcd8   :  { %v9063_v42 = vpop.eup %9062  ;;  %v11683_v32 = vsub.f32 %v11409_v36, %v4024_v8  ;;  %v4325_v48 = vadd.f32 %v11644_v19, %v4306_v6 }
 0xcd9   :  { %v4169_v25 = vmul.f32 %v9061_v53, %v4168_v16  ;;  %v4175_v51 = vmul.f32 %v9063_v42, %v4113_v15  ;;  %vm4181_vm4 = vweird.f32 %v9063_v42 }
 0xcda   :  { %v4339_v45 = vpack.c.bf16 %v4325_v48, %v4324_v43  ;;  %v4056_v0 = vmul.f32 %v11683_v32, %v11683_v32  ;;  %vm4182_vm6 = vmor %vm4180_vm5, %vm4181_vm4 }
 0xcdb   :  { %v4176_v22 = vmul.f32 %v9063_v42, %v4175_v51  ;;  %v4173_v55 = vsel %vm4172_vm3, %v9061_v53, %v4169_v25 }
 0xcdc   :  { %4551 = vmatmul.bf16.gmra.mxu1 %v4339_v45  ;;  %4600 = vmatmul.bf16.gmra.mxu3 %v4339_v45  ;;  %v4288_v57 = vmul.f32 %v4173_v55, %v11389_v52 }
 0xcdd   :  { %v4177_v10 = vmul.f32 0.5, %v4176_v22  ;;  %4649 = vmatmul.bf16.gmra.mxu2 %v4339_v45  ;;  %4698 = vmatmul.bf16.gmra.mxu0 %v4339_v45 }
 0xcde   :  { %4084 = vadd.xlane.f32.xlu1 %v4056_v0  ;;  %v4307_v5 = vmul.f32 %v11632_v54, %v4288_v57 }
 0xcdf   :  { %v4178_v30 = vsub.f32 1.5, %v4177_v10 }
 0xce0   :  { %v4326_v37 = vadd.f32 %v11644_v19, %v4307_v5 }
 0xce1   :  { %v4179_v49 = vmul.f32 %v9063_v42, %v4178_v30 }
 0xce3   :  { %v4183_v60 = vsel %vm4182_vm6, %v9063_v42, %v4179_v49 }
 0xce4   :  { %v4289_v31 = vmul.f32 %v4183_v60, %v11400_v24 }
 0xce6   :  { %v4308_v20 = vmul.f32 %v11632_v54, %v4289_v31 }
 0xce8   :  { %v4327_v56 = vadd.f32 %v11644_v19, %v4308_v20 }
 0xcea   :  { %v4340_v34 = vpack.c.bf16 %v4327_v56, %v4326_v37 }
 0xcec   :  { %4556 = vmatmul.bf16.gmra.mxu1 %v4340_v34  ;;  %4605 = vmatmul.bf16.gmra.mxu3 %v4340_v34 }
 0xced   :  { %4654 = vmatmul.bf16.gmra.mxu2 %v4340_v34  ;;  %4703 = vmatmul.bf16.gmra.mxu0 %v4340_v34 }
 0xd0f   :  { %v4073_v52 = vpop.xlane.xlu0 %4072 }
 0xd10   :  { %v4098_v41 = vmul.f32 %v4073_v52, %v15554_v1 }
 0xd12   :  { %v4114_v53 = vadd.f32 1e-05, %v4098_v41 }
 0xd14   :  { %9064 = vrsqrt.f32 %v4114_v53  ;;  %vm4190_vm8 = vweird.f32 %v4114_v53 }
 0xd17   :  { %v4007_v46 = vpop.xlane.xlu0 %4006  ;;  %v4075_v24 = vpop.xlane.xlu1 %4074 }
 0xd18   :  { %v4025_v15 = vmul.f32 %v4007_v46, %v15554_v1  ;;  %v4099_v13 = vmul.f32 %v4075_v24, %v15554_v1 }
 0xd1a   :  { %v9065_v35 = vpop.eup %9064  ;;  %v11699_v7 = vsub.f32 %v11620_v18, %v4025_v15  ;;  %v4115_v63 = vadd.f32 1e-05, %v4099_v13 }
 0xd1b   :  { %v4185_v17 = vmul.f32 %v9065_v35, %v4114_v53  ;;  %vm4191_vm7 = vweird.f32 %v9065_v35 }
 0xd1c   :  { %15573 = vst [vmem:[#allocation34_spill] sm:$0xff] %v11699_v7  ;;  %9066 = vrsqrt.f32 %v4115_v63  ;;  %v4057_v50 = vmul.f32 %v11699_v7, %v11699_v7  ;;  %vm4192_vm9 = vmor %vm4190_vm8, %vm4191_vm7  ;;  %vm4200_vm11 = vweird.f32 %v4115_v63 }
 0xd1d   :  { %v4186_v40 = vmul.f32 %v9065_v35, %v4185_v17 }
 0xd1e   :  { %4086 = vadd.xlane.f32.xlu2 %v4057_v50 }
 0xd1f   :  { %v4187_v29 = vmul.f32 0.5, %v4186_v40  ;;  %v4009_v28 = vpop.xlane.xlu0 %4008  ;;  %v4077_v8 = vpop.xlane.xlu1 %4076 }
 0xd20   :  { %v4026_v6 = vmul.f32 %v4009_v28, %v15554_v1 }
 0xd21   :  { %v4188_v16 = vsub.f32 1.5, %v4187_v29 }
 0xd22   :  { %v9067_v42 = vpop.eup %9066  ;;  %v11705_v43 = vsub.f32 %v11635_v4, %v4026_v6 }
 0xd23   :  { %v4189_v48 = vmul.f32 %v9065_v35, %v4188_v16  ;;  %v4195_v25 = vmul.f32 %v9067_v42, %v4115_v63  ;;  %vm4201_vm10 = vweird.f32 %v9067_v42 }
 0xd24   :  { %15574 = vst [vmem:[#allocation29_spill] sm:$0xff] %v11705_v43  ;;  %v4058_v51 = vmul.f32 %v11705_v43, %v11705_v43  ;;  %vm4202_vm12 = vmor %vm4200_vm11, %vm4201_vm10 }
 0xd25   :  { %v4196_v45 = vmul.f32 %v9067_v42, %v4195_v25  ;;  %v4193_v0 = vsel %vm4192_vm9, %v9065_v35, %v4189_v48  ;;  %v4100_v48 = vmul.f32 %v4077_v8, %v15554_v1 }
 0xd26   :  { %4088 = vadd.xlane.f32.xlu0 %v4058_v51  ;;  %v4290_v30 = vmul.f32 %v4193_v0, %v11608_v27 }
 0xd27   :  { %v4197_v22 = vmul.f32 0.5, %v4196_v45 }
 0xd28   :  { %v4309_v37 = vmul.f32 %v11632_v54, %v4290_v30 }
 0xd29   :  { %v4198_v55 = vsub.f32 1.5, %v4197_v22  ;;  %v4011_v10 = vpop.xlane.xlu1 %4010  ;;  %v11758_v22 = vadd.f32 1e-05, %v4100_v48 }
 0xd2a   :  { %v4027_v57 = vmul.f32 %v4011_v10, %v15554_v1  ;;  %v4328_v41 = vadd.f32 %v11644_v19, %v4309_v37 }
 0xd2b   :  { %v4199_v49 = vmul.f32 %v9067_v42, %v4198_v55  ;;  %9068 = vrsqrt.f32 %v11758_v22  ;;  %vm4210_vm14 = vweird.f32 %v11758_v22 }
 0xd2c   :  { %v11712_v60 = vsub.f32 %v11652_v26, %v4027_v57 }
 0xd2d   :  { %v4203_v31 = vsel %vm4202_vm12, %v9067_v42, %v4199_v49 }
 0xd2e   :  { %15575 = vst [vmem:[#allocation28_spill] sm:$0xff] %v11712_v60  ;;  %v4291_v5 = vmul.f32 %v4203_v31, %v11616_v47  ;;  %v4059_v20 = vmul.f32 %v11712_v60, %v11712_v60 }
 0xd30   :  { %4090 = vadd.xlane.f32.xlu1 %v4059_v20  ;;  %v4310_v56 = vmul.f32 %v11632_v54, %v4291_v5 }
 0xd31   :  { %v11719_v27 = vpop.f32.mrf.mxu1 }
 0xd32   :  { %v11722_v34 = vmul.f32 0.70710677, %v11719_v27  ;;  %v11724_v52 = vpop.f32.mrf.mxu0  ;;  %v4329_v53 = vadd.f32 %v11644_v19, %v4310_v56 }
 0xd33   :  { %v11729_v47 = vmul.f32 0.70710677, %v11724_v52  ;;  %v11854_v21 = vmul.f32 0.5, %v11724_v52 }
 0xd34   :  { %v4862_v46 = vmul.f32 %v11722_v34, %v11722_v34  ;;  %v4341_v24 = vpack.c.bf16 %v4329_v53, %v4328_v41 }
 0xd35   :  { %v4982_v13 = vmul.f32 %v11729_v47, %v11729_v47 }
 0xd36   :  { %v11733_v15 = vmin.f32 %v4862_v46, 16.0  ;;  %4561 = vmatmul.bf16.gmra.mxu1 %v4341_v24  ;;  %4610 = vmatmul.bf16.gmra.mxu3 %v4341_v24 }
 0xd37   :  { %4659 = vmatmul.bf16.gmra.mxu2 %v4341_v24  ;;  %4708 = vmatmul.bf16.gmra.mxu0 %v4341_v24  ;;  %v11738_v63 = vmin.f32 %v4982_v13, 16.0  ;;  %v11740_v17 = vpop.f32.mrf.mxu3  ;;  %v11778_v13 = vpop.eup %9068 }
 0xd38   :  { %v4875_v35 = vmul.f32 3.8918573e-05, %v11733_v15  ;;  %v11744_v29 = vmul.f32 0.70710677, %v11740_v17  ;;  %v11746_v28 = vpop.f32.mrf.mxu2  ;;  %v4864_v49 = vmul.f32 2.1237322e-06, %v11733_v15  ;;  %vm4211_vm13 = vweird.f32 %v11778_v13 }
 0xd39   :  { %v4995_v40 = vmul.f32 3.8918573e-05, %v11738_v63  ;;  %v11753_v25 = vmul.f32 0.70710677, %v11746_v28  ;;  %v11762_v10 = vpop.f32.mrf.mxu1  ;;  %v4984_v20 = vmul.f32 2.1237322e-06, %v11738_v63  ;;  %vm11837_vm15 = vmor %vm4210_vm14, %vm4211_vm13 }
 0xd3a   :  { %v4876_v50 = vadd.f32 0.001143296, %v4875_v35  ;;  %v4902_v42 = vmul.f32 %v11744_v29, %v11744_v29  ;;  %v11771_v5 = vmul.f32 0.70710677, %v11762_v10  ;;  %v4865_v53 = vadd.f32 0.00028619796, %v4864_v49 }
 0xd3b   :  { %v4996_v16 = vadd.f32 0.001143296, %v4995_v40  ;;  %v4942_v55 = vmul.f32 %v11753_v25, %v11753_v25  ;;  %v4985_v35 = vadd.f32 0.00028619796, %v4984_v20  ;;  %v11870_v52 = vmul.f32 0.5, %v11740_v17 }
 0xd3c   :  { %v4877_v6 = vmul.f32 %v4876_v50, %v11733_v15  ;;  %v11756_v0 = vmin.f32 %v4902_v42, 16.0  ;;  %v5022_v24 = vmul.f32 %v11771_v5, %v11771_v5  ;;  %v4866_v42 = vmul.f32 %v4865_v53, %v11733_v15 }
 0xd3d   :  { %v4997_v45 = vmul.f32 %v4996_v16, %v11738_v63  ;;  %v11768_v31 = vmin.f32 %v4942_v55, 16.0  ;;  %v4205_v16 = vmul.f32 %v11778_v13, %v11758_v22 }
 0xd3e   :  { %v4878_v51 = vadd.f32 0.014752088, %v4877_v6  ;;  %v4915_v8 = vmul.f32 3.8918573e-05, %v11756_v0  ;;  %v4867_v49 = vadd.f32 0.0036580483, %v4866_v42 }
 0xd3f   :  { %v4998_v57 = vadd.f32 0.014752088, %v4997_v45  ;;  %v4955_v46 = vmul.f32 3.8918573e-05, %v11768_v31  ;;  %v4986_v45 = vmul.f32 %v4985_v35, %v11738_v63  ;;  %v4079_v35 = vpop.xlane.xlu2 %4078  ;;  %v4944_v42 = vmul.f32 2.1237322e-06, %v11768_v31 }
 0xd40   :  { %v4879_v30 = vmul.f32 %v4878_v51, %v11733_v15  ;;  %v4916_v41 = vadd.f32 0.001143296, %v4915_v8  ;;  %v11785_v51 = vmin.f32 %v5022_v24, 16.0  ;;  %v4206_v8 = vmul.f32 %v11778_v13, %v4205_v16 }
 0xd41   :  { %v4999_v56 = vmul.f32 %v4998_v57, %v11738_v63  ;;  %v4956_v48 = vadd.f32 0.001143296, %v4955_v46  ;;  %v4904_v46 = vmul.f32 2.1237322e-06, %v11756_v0 }
 0xd42   :  { %v4880_v37 = vadd.f32 0.112945676, %v4879_v30  ;;  %v4917_v6 = vmul.f32 %v4916_v41, %v11756_v0 }
 0xd43   :  { %v5000_v40 = vadd.f32 0.112945676, %v4999_v56  ;;  %v4957_v20 = vmul.f32 %v4956_v48, %v11768_v31  ;;  %v4987_v56 = vadd.f32 0.0036580483, %v4986_v45  ;;  %v4101_v48 = vmul.f32 %v4079_v35, %v15554_v1 }
 0xd44   :  { %v4881_v50 = vmul.f32 %v4880_v37, %v11733_v15  ;;  %v4918_v57 = vadd.f32 0.014752088, %v4917_v6  ;;  %v5035_v37 = vmul.f32 3.8918573e-05, %v11785_v51 }
 0xd45   :  { %v5001_v30 = vmul.f32 %v5000_v40, %v11738_v63  ;;  %v4868_v40 = vmul.f32 %v4867_v49, %v11733_v15  ;;  %v4958_v6 = vadd.f32 0.014752088, %v4957_v20  ;;  %v4988_v16 = vmul.f32 %v4987_v56, %v11738_v63  ;;  %v11806_v56 = vpop.f32.mrf.mxu0 }
 0xd46   :  { %v4882_v55 = vadd.f32 0.4994258, %v4881_v50  ;;  %v4919_v24 = vmul.f32 %v4918_v57, %v11756_v0  ;;  %v4207_v50 = vmul.f32 0.5, %v4206_v8  ;;  %v5036_v26 = vadd.f32 0.001143296, %v5035_v37 }
 0xd47   :  { %v5002_v53 = vadd.f32 0.4994258, %v5001_v30  ;;  %v4905_v30 = vadd.f32 0.00028619796, %v4904_v46  ;;  %v4869_v57 = vadd.f32 0.05243302, %v4868_v40  ;;  %v4959_v8 = vmul.f32 %v4958_v6, %v11768_v31  ;;  %v11817_v40 = vpop.f32.mrf.mxu3 }
 0xd48   :  { %v4883_v41 = vmul.f32 %v4882_v55, %v11733_v15  ;;  %v4920_v4 = vadd.f32 0.112945676, %v4919_v24  ;;  %v4208_v18 = vsub.f32 1.5, %v4207_v50  ;;  %v5037_v49 = vmul.f32 %v5036_v26, %v11785_v51 }
 0xd49   :  { %v5003_v55 = vmul.f32 %v5002_v53, %v11738_v63  ;;  %v4989_v20 = vadd.f32 0.05243302, %v4988_v16  ;;  %v4945_v37 = vadd.f32 0.00028619796, %v4944_v42  ;;  %v11804_v36 = vadd.f32 1e-05, %v4101_v48 }
 0xd4a   :  { %v11799_v45 = vadd.f32 1.0, %v4883_v41  ;;  %v4906_v53 = vmul.f32 %v4905_v30, %v11756_v0  ;;  %v4921_v46 = vmul.f32 %v4920_v4, %v11756_v0  ;;  %v4870_v24 = vmul.f32 %v4869_v57, %v11733_v15 }
 0xd4b   :  { %v11809_v41 = vadd.f32 1.0, %v5003_v55  ;;  %v4960_v35 = vadd.f32 0.112945676, %v4959_v8  ;;  %v5038_v50 = vadd.f32 0.014752088, %v5037_v49  ;;  %v4990_v6 = vmul.f32 %v4989_v20, %v11738_v63 }
 0xd4c   :  { %9070 = vrcp.f32 %v11799_v45  ;;  %v11815_v26 = vmul.f32 0.70710677, %v11806_v56  ;;  %v4946_v16 = vmul.f32 %v4945_v37, %v11768_v31  ;;  %v4209_v42 = vmul.f32 %v11778_v13, %v4208_v18 }
 0xd4d   :  { %9072 = vrsqrt.f32 %v11804_v36  ;;  %v4907_v4 = vadd.f32 0.0036580483, %v4906_v53  ;;  %v4922_v48 = vadd.f32 0.4994258, %v4921_v46  ;;  %v11827_v55 = vmul.f32 0.70710677, %v11817_v40 }
 0xd4e   :  { %9074 = vrcp.f32 %v11809_v41  ;;  %v4871_v57 = vadd.f32 0.18741608, %v4870_v24  ;;  %v4961_v8 = vmul.f32 %v4960_v35, %v11768_v31  ;;  %v5039_v49 = vmul.f32 %v5038_v50, %v11785_v51 }
 0xd4f   :  { %v5142_v20 = vmul.f32 %v11815_v26, %v11815_v26  ;;  %v4991_v22 = vadd.f32 0.18741608, %v4990_v6  ;;  %v4947_v37 = vadd.f32 0.0036580483, %v4946_v16  ;;  %v4213_v53 = vsel %vm11837_vm15, %v11778_v13, %v4209_v42  ;;  %v11858_v16 = vpop.f32.mrf.mxu2 }
 0xd50   :  { %v4908_v46 = vmul.f32 %v4907_v4, %v11756_v0  ;;  %v4923_v24 = vmul.f32 %v4922_v48, %v11756_v0  ;;  %v11849_v50 = vmul.f32 0.5, %v11719_v27  ;;  %v5062_v6 = vmul.f32 %v11827_v55, %v11827_v55 }
 0xd51   :  { %v4872_v42 = vmul.f32 %v4871_v57, %v11733_v15  ;;  %v4962_v4 = vadd.f32 0.4994258, %v4961_v8  ;;  %v5040_v48 = vadd.f32 0.112945676, %v5039_v49  ;;  %v11863_v18 = vmin.f32 %v5142_v20, 16.0 }
 0xd52   :  { %v11829_v30 = vpop.eup %9070  ;;  %v11866_v27 = vmul.f32 %v4213_v53, %v11627_v9  ;;  %v4992_v61 = vmul.f32 %v4991_v22, %v11738_v63  ;;  %v4948_v38 = vmul.f32 %v4947_v37, %v11768_v31  ;;  %v4909_v39 = vadd.f32 0.05243302, %v4908_v46 }
 0xd53   :  { %v11846_v35 = vpop.eup %9072  ;;  %v4886_v33 = vmul.f32 %v11829_v30, %v11799_v45  ;;  %v11873_v2 = vadd.f32 1.0, %v4923_v24  ;;  %v11878_v57 = vmul.f32 0.70710677, %v11858_v16  ;;  %v5024_v63 = vmul.f32 2.1237322e-06, %v11785_v51 }
 0xd54   :  { %v11860_v13 = vpop.eup %9074  ;;  %v4215_v15 = vmul.f32 %v11846_v35, %v11804_v36  ;;  %v11883_v49 = vmin.f32 %v5062_v6, 16.0  ;;  %v4873_v17 = vadd.f32 1.1283791, %v4872_v42  ;;  %v4963_v20 = vmul.f32 %v4962_v4, %v11768_v31 }
 0xd55   :  { %v4887_v8 = vsub.f32 1.0, %v4886_v33  ;;  %v5006_v9 = vmul.f32 %v11860_v13, %v11809_v41  ;;  %v5041_v22 = vmul.f32 %v5040_v48, %v11785_v51  ;;  %v5155_v37 = vmul.f32 3.8918573e-05, %v11863_v18 }
 0xd56   :  { %v4993_v53 = vadd.f32 1.1283791, %v4992_v61  ;;  %v11889_v46 = vmul.f32 0.5, %v11746_v28  ;;  %v4949_v24 = vadd.f32 0.05243302, %v4948_v38  ;;  %v11892_v33 = vmul.f32 0.5, %v11762_v10 }
 0xd57   :  { %v4910_v14 = vmul.f32 %v4909_v39, %v11756_v0  ;;  %9076 = vrcp.f32 %v11873_v2  ;;  %v4216_v6 = vmul.f32 %v11846_v35, %v4215_v15  ;;  %v5102_v42 = vmul.f32 %v11878_v57, %v11878_v57 }
 0xd58   :  { %v4888_v4 = vmul.f32 %v11829_v30, %v4887_v8  ;;  %v5007_v48 = vsub.f32 1.0, %v5006_v9  ;;  %v5025_v61 = vadd.f32 0.00028619796, %v5024_v63  ;;  %v5075_v28 = vmul.f32 3.8918573e-05, %v11883_v49 }
 0xd59   :  { %v4874_v38 = vmul.f32 %v4873_v17, %v11722_v34  ;;  %v11902_v12 = vadd.f32 1.0, %v4963_v20  ;;  %v5042_v10 = vadd.f32 0.4994258, %v5041_v22  ;;  %v5156_v44 = vadd.f32 0.001143296, %v5155_v37 }
 0xd5a   :  { %vm4890_vm0 = vweird.f32 %v11799_v45  ;;  %v4894_v39 = vand.u32 2147483647, %v11799_v45  ;;  %v4896_v15 = vand.u32 2147483648, %v11799_v45  ;;  %v4950_v62 = vmul.f32 %v4949_v24, %v11768_v31 }
 0xd5b   :  { %v11909_v8 = vmul.f32 %v4993_v53, %v11729_v47  ;;  %v4911_v9 = vadd.f32 0.18741608, %v4910_v14  ;;  %v4217_v63 = vmul.f32 0.5, %v4216_v6  ;;  %v11911_v23 = vmin.f32 %v5102_v42, 16.0 }
 0xd5c   :  { %v4889_v34 = vadd.f32 %v11829_v30, %v4888_v4  ;;  %vm4891_vm1 = vweird.f32 %v11829_v30  ;;  %v5008_v17 = vmul.f32 %v11860_v13, %v5007_v48  ;;  %v5076_v20 = vadd.f32 0.001143296, %v5075_v28 }
 0xd5d   :  { %v11916_v22 = vpop.eup %9076  ;;  %9078 = vrcp.f32 %v11902_v12  ;;  %vm4220_vm2 = vweird.f32 %v11804_v36  ;;  %v5026_v47 = vmul.f32 %v5025_v61, %v11785_v51  ;;  %v5043_v14 = vmul.f32 %v5042_v10, %v11785_v51  ;;  %vm11936_vm5 = vmor %vm4890_vm0, %vm4891_vm1 }
 0xd5e   :  { %v5157_v37 = vmul.f32 %v5156_v44, %v11863_v18  ;;  %vm5010_vm3 = vweird.f32 %v11809_v41  ;;  %v5014_v53 = vand.u32 2147483647, %v11809_v41  ;;  %v5016_v24 = vand.u32 2147483648, %v11809_v41 }
 0xd5f   :  { %v4951_v6 = vadd.f32 0.18741608, %v4950_v62  ;;  %vm11926_vm4 = vcmp.eq.f32.partialorder %v4894_v39, 8.507059e+37  ;;  %v4912_v4 = vmul.f32 %v4911_v9, %v11756_v0  ;;  %v4218_v48 = vsub.f32 1.5, %v4217_v63 }
 0xd60   :  { %v5115_v61 = vmul.f32 3.8918573e-05, %v11911_v23  ;;  %v5009_v28 = vadd.f32 %v11860_v13, %v5008_v17  ;;  %vm5011_vm6 = vweird.f32 %v11860_v13  ;;  %v4926_v62 = vmul.f32 %v11916_v22, %v11873_v2 }
 0xd61   :  { %v5077_v0 = vmul.f32 %v5076_v20, %v11883_v49  ;;  %v4893_v10 = vsel %vm11936_vm5, %v11829_v30, %v4889_v34  ;;  %v5027_v39 = vadd.f32 0.0036580483, %v5026_v47  ;;  %v11948_v9 = vadd.f32 1.0, %v5043_v14  ;;  %vm11966_vm9 = vmor %vm5010_vm3, %vm5011_vm6 }
 0xd62   :  { %v5158_v45 = vadd.f32 0.014752088, %v5157_v37  ;;  %v4897_v63 = vor.u32 1.1754944e-38, %v4896_v15  ;;  %vm11950_vm7 = vcmp.eq.f32.partialorder %v5014_v53, 8.507059e+37  ;;  %v5017_v17 = vor.u32 1.1754944e-38, %v5016_v24 }
 0xd63   :  { %v4952_v43 = vmul.f32 %v4951_v6, %v11768_v31  ;;  %v11955_v60 = vpop.eup %9078  ;;  %v4219_v20 = vmul.f32 %v11846_v35, %v4218_v48  ;;  %vm4221_vm8 = vweird.f32 %v11846_v35  ;;  %v5144_v30 = vmul.f32 2.1237322e-06, %v11863_v18 }
 0xd64   :  { %v5116_v34 = vadd.f32 0.001143296, %v5115_v61  ;;  %v4898_v47 = vsel %vm11926_vm4, %v4897_v63, %v4893_v10  ;;  %v4913_v31 = vadd.f32 1.1283791, %v4912_v4  ;;  %v4927_v14 = vsub.f32 1.0, %v4926_v62  ;;  %vm11984_vm10 = vmor %vm4220_vm2, %vm4221_vm8 }
 0xd65   :  { %v5078_v37 = vadd.f32 0.014752088, %v5077_v0  ;;  %v5013_v53 = vsel %vm11966_vm9, %v11860_v13, %v5009_v28  ;;  %v5028_v24 = vmul.f32 %v5027_v39, %v11785_v51  ;;  %9080 = vrcp.f32 %v11948_v9 }
 0xd66   :  { %v5159_v6 = vmul.f32 %v5158_v45, %v11863_v18  ;;  %v4934_v42 = vand.u32 2147483647, %v11873_v2  ;;  %v4936_v41 = vand.u32 2147483648, %v11873_v2  ;;  %v4953_v48 = vadd.f32 1.1283791, %v4952_v43 }
 0xd67   :  { %v4966_v4 = vmul.f32 %v11955_v60, %v11902_v12  ;;  %v4899_v61 = vmul.f32 %v4898_v47, %v4874_v38  ;;  %v4223_v44 = vsel %vm11984_vm10, %v11846_v35, %v4219_v20  ;;  %v5145_v28 = vadd.f32 0.00028619796, %v5144_v30 }
 0xd68   :  { %v5117_v62 = vmul.f32 %v5116_v34, %v11911_v23  ;;  %v5018_v43 = vsel %vm11950_vm7, %v5017_v17, %v5013_v53  ;;  %v4928_v0 = vmul.f32 %v11916_v22, %v4927_v14  ;;  %v5064_v10 = vmul.f32 2.1237322e-06, %v11883_v49 }
 0xd69   :  { %v5079_v36 = vmul.f32 %v5078_v37, %v11883_v49  ;;  %v11998_v39 = vmul.f32 %v4913_v31, %v11744_v29  ;;  %vm4930_vm11 = vweird.f32 %v11873_v2  ;;  %v5029_v38 = vadd.f32 0.05243302, %v5028_v24 }
 0xd6a   :  { %v5160_v45 = vadd.f32 0.112945676, %v5159_v6  ;;  %vm12001_vm12 = vcmp.eq.f32.partialorder %v4934_v42, 8.507059e+37  ;;  %v4937_v63 = vor.u32 1.1754944e-38, %v4936_v41  ;;  %v12006_v11 = vmul.f32 %v4953_v48, %v11753_v25 }
 0xd6b   :  { %v4967_v17 = vsub.f32 1.0, %v4966_v4  ;;  %v4293_v20 = vmul.f32 %v4223_v44, %v11659_v59  ;;  %v12009_v30 = vpop.eup %9080  ;;  %v8439_v34 = vclamps-f32 %v4899_v61, 1.0  ;;  %v5019_v29 = vmul.f32 %v5018_v43, %v11909_v8 }
 0xd6c   :  { %v5146_v47 = vmul.f32 %v5145_v28, %v11863_v18  ;;  %v5118_v15 = vadd.f32 0.014752088, %v5117_v62  ;;  %v4929_v31 = vadd.f32 %v11916_v22, %v4928_v0  ;;  %vm4931_vm13 = vweird.f32 %v11916_v22 }
 0xd6d   :  { %v5065_v14 = vadd.f32 0.00028619796, %v5064_v10  ;;  %v5080_v37 = vadd.f32 0.112945676, %v5079_v36  ;;  %vm4970_vm14 = vweird.f32 %v11902_v12  ;;  %v4974_v25 = vand.u32 2147483647, %v11902_v12  ;;  %vm12028_vm15 = vmor %vm4930_vm11, %vm4931_vm13  ;;  %v4081_v36 = vpop.xlane.xlu2 %4080 }
 0xd6e   :  { %v5030_v59 = vmul.f32 %v5029_v38, %v11785_v51  ;;  %v5161_v53 = vmul.f32 %v5160_v45, %v11863_v18  ;;  %v4968_v24 = vmul.f32 %v11955_v60, %v4967_v17  ;;  %v4976_v8 = vand.u32 2147483648, %v11902_v12 }
 0xd6f   :  { %v5046_v6 = vmul.f32 %v12009_v30, %v11948_v9  ;;  %v5104_v42 = vmul.f32 2.1237322e-06, %v11911_v23  ;;  %v12024_v41 = vadd.f32 1.0, %v8439_v34  ;;  %v8442_v48 = vclamps-f32 %v5019_v29, 1.0  ;;  %v12047_v34 = vpop.f32.mrf.mxu1 }
 0xd70   :  { %v5147_v13 = vadd.f32 0.0036580483, %v5146_v47  ;;  %v5119_v61 = vmul.f32 %v5118_v15, %v11911_v23  ;;  %v4933_v44 = vsel %vm12028_vm15, %v11916_v22, %v4929_v31  ;;  %v5066_v28 = vmul.f32 %v5065_v14, %v11883_v49 }
 0xd71   :  { %v5081_v62 = vmul.f32 %v5080_v37, %v11883_v49  ;;  %v4312_v43 = vmul.f32 %v11632_v54, %v4293_v20  ;;  %vm12039_vm0 = vcmp.eq.f32.partialorder %v4974_v25, 8.507059e+37  ;;  %v5031_v2 = vadd.f32 0.18741608, %v5030_v59 }
 0xd72   :  { %v5162_v10 = vadd.f32 0.4994258, %v5161_v53  ;;  %v4311_v38 = vmul.f32 %v11632_v54, %v11866_v27  ;;  %v4969_v45 = vadd.f32 %v11955_v60, %v4968_v24  ;;  %vm4971_vm1 = vweird.f32 %v11955_v60 }
 0xd73   :  { %v5047_v22 = vsub.f32 1.0, %v5046_v6  ;;  %v5105_v17 = vadd.f32 0.00028619796, %v5104_v42  ;;  %v4938_v20 = vsel %vm12001_vm12, %v4937_v63, %v4933_v44  ;;  %v4977_v29 = vor.u32 1.1754944e-38, %v4976_v8  ;;  %vm12058_vm2 = vmor %vm4970_vm14, %vm4971_vm1  ;;  %v4083_v6 = vpop.xlane.xlu0 %4082  ;;  %v12073_v42 = vpop.f32.mrf.mxu0 }
 0xd74   :  { %v5148_v47 = vmul.f32 %v5147_v13, %v11863_v18  ;;  %v5120_v15 = vadd.f32 0.112945676, %v5119_v61  ;;  %v5067_v31 = vadd.f32 0.0036580483, %v5066_v28  ;;  %v5082_v14 = vadd.f32 0.4994258, %v5081_v62 }
 0xd75   :  { %v4102_v37 = vmul.f32 %v4081_v36, %v15554_v1  ;;  %v4331_v54 = vadd.f32 %v11644_v19, %v4312_v43  ;;  %v12054_v27 = vadd.f32 1.0, %v8442_v48  ;;  %v5163_v35 = vmul.f32 %v5162_v10, %v11863_v18 }
 0xd76   :  { %v4330_v63 = vadd.f32 %v11644_v19, %v4311_v38  ;;  %v12065_v59 = vmul.f32 0.70710677, %v12047_v34  ;;  %v4973_v53 = vsel %vm12058_vm2, %v11955_v60, %v4969_v45  ;;  %v5032_v24 = vmul.f32 %v5031_v2, %v11785_v51 }
 0xd77   :  { %v5048_v8 = vmul.f32 %v12009_v30, %v5047_v22  ;;  %v5106_v12 = vmul.f32 %v5105_v17, %v11911_v23  ;;  %v4939_v48 = vmul.f32 %v4938_v20, %v11998_v39  ;;  %v5149_v4 = vadd.f32 0.05243302, %v5148_v47  ;;  %v12097_v22 = vpop.f32.mrf.mxu3  ;;  %v12236_v7 = vpop.f32.mrf.mxu1 }
 0xd78   :  { %v5121_v19 = vmul.f32 %v5120_v15, %v11911_v23  ;;  %v4342_v13 = vpack.c.bf16 %v4331_v54, %v4330_v63  ;;  %v5068_v61 = vmul.f32 %v5067_v31, %v11883_v49  ;;  %v5083_v44 = vmul.f32 %v5082_v14, %v11883_v49 }
 0xd79   :  { %v12079_v60 = vadd.f32 1e-05, %v4102_v37  ;;  %v5182_v51 = vmul.f32 %v12065_v59, %v12065_v59  ;;  %v4978_v28 = vsel %vm12039_vm0, %v4977_v29, %v4973_v53  ;;  %v12085_v62 = vadd.f32 1.0, %v5163_v35 }
 0xd7a   :  { %v4103_v39 = vmul.f32 %v4083_v6, %v15554_v1  ;;  %4566 = vmatmul.bf16.gmra.mxu1 %v4342_v13  ;;  %4615 = vmatmul.bf16.gmra.mxu3 %v4342_v13  ;;  %v12089_v43 = vmul.f32 0.70710677, %v12073_v42  ;;  %v5049_v2 = vadd.f32 %v12009_v30, %v5048_v8  ;;  %vm5050_vm3 = vweird.f32 %v11948_v9 }
 0xd7b   :  { %vm5051_vm4 = vweird.f32 %v12009_v30  ;;  %v5107_v10 = vadd.f32 0.0036580483, %v5106_v12  ;;  %4664 = vmatmul.bf16.gmra.mxu2 %v4342_v13  ;;  %4713 = vmatmul.bf16.gmra.mxu0 %v4342_v13  ;;  %v5054_v0 = vand.u32 2147483647, %v11948_v9  ;;  %v5056_v36 = vand.u32 2147483648, %v11948_v9 }
 0xd7c   :  { %v5150_v38 = vmul.f32 %v5149_v4, %v11863_v18  ;;  %v5122_v45 = vadd.f32 0.4994258, %v5121_v19  ;;  %v5069_v17 = vadd.f32 0.05243302, %v5068_v61  ;;  %v12099_v20 = vadd.f32 1.0, %v5083_v44  ;;  %vm12106_vm5 = vmor %vm5050_vm3, %vm5051_vm4 }
 0xd7d   :  { %9082 = vrsqrt.f32 %v12079_v60  ;;  %v12102_v29 = vmin.f32 %v5182_v51, 16.0  ;;  %v5033_v47 = vadd.f32 1.1283791, %v5032_v24  ;;  %v12111_v31 = vadd.f32 1e-05, %v4103_v39 }
 0xd7e   :  { %9084 = vrcp.f32 %v12085_v62  ;;  %v5302_v14 = vmul.f32 %v12089_v43, %v12089_v43  ;;  %v8440_v37 = vclamps-f32 %v4939_v48, 1.0  ;;  %v5053_v54 = vsel %vm12106_vm5, %v12009_v30, %v5049_v2 }
 0xd7f   :  { %v5108_v25 = vmul.f32 %v5107_v10, %v11911_v23  ;;  %v12120_v9 = vmul.f32 0.70710677, %v12097_v22  ;;  %v4979_v35 = vmul.f32 %v4978_v28, %v12006_v11  ;;  %v5057_v63 = vor.u32 1.1754944e-38, %v5056_v36 }
 0xd80   :  { %v5151_v53 = vadd.f32 0.18741608, %v5150_v38  ;;  %v5123_v24 = vmul.f32 %v5122_v45, %v11911_v23  ;;  %vm5055_vm6 = vcmp.eq.f32.partialorder %v5054_v0, 8.507059e+37  ;;  %v5070_v8 = vmul.f32 %v5069_v17, %v11883_v49 }
 0xd81   :  { %9086 = vrcp.f32 %v12099_v20  ;;  %v5195_v12 = vmul.f32 3.8918573e-05, %v12102_v29  ;;  %v5058_v6 = vsel %vm5055_vm6, %v5057_v63, %v5053_v54  ;;  %v12128_v30 = vmin.f32 %v5302_v14, 16.0 }
 0xd82   :  { %9088 = vrsqrt.f32 %v12111_v31  ;;  %v5222_v48 = vmul.f32 %v12120_v9, %v12120_v9  ;;  %v7423_v4 = vadd.f32 1.0, %v8440_v37  ;;  %v5034_v19 = vmul.f32 %v5033_v47, %v11771_v5 }
 0xd83   :  { %v12132_v11 = vpop.eup %9082  ;;  %v12136_v13 = vmul.f32 0.5, %v11806_v56  ;;  %v5109_v61 = vadd.f32 0.05243302, %v5108_v25  ;;  %v12142_v51 = vmul.f32 %v12024_v41, %v11849_v50  ;;  %v8441_v28 = vclamps-f32 %v4979_v35, 1.0  ;;  %v12150_v56 = vpop.f32.mrf.mxu2 }
 0xd84   :  { %v12138_v44 = vpop.eup %9084  ;;  %v5152_v39 = vmul.f32 %v5151_v53, %v11863_v18  ;;  %v12145_v2 = vadd.f32 1.0, %v5123_v24  ;;  %v5059_v10 = vmul.f32 %v5058_v6, %v5034_v19  ;;  %v12148_v0 = vmul.f32 0.5, %v11817_v40 }
 0xd85   :  { %v5071_v5 = vadd.f32 0.18741608, %v5070_v8  ;;  %v5196_v36 = vadd.f32 0.001143296, %v5195_v12  ;;  %v12154_v38 = vmul.f32 %v12054_v27, %v11854_v21  ;;  %v4225_v50 = vmul.f32 %v12132_v11, %v12079_v60  ;;  %v4085_v27 = vpop.xlane.xlu1 %4084 }
 0xd86   :  { %v5315_v41 = vmul.f32 3.8918573e-05, %v12128_v30  ;;  %v12159_v18 = vmin.f32 %v5222_v48, 16.0  ;;  %v12164_v40 = vmul.f32 %v7423_v4, %v11870_v52  ;;  %v5166_v17 = vmul.f32 %v12138_v44, %v12085_v62 }
 0xd87   :  { %15598 = vst [vmem:[#allocation35_spill] sm:$0xff] %v12154_v38  ;;  %v12161_v45 = vpop.eup %9086  ;;  %v12169_v47 = vmul.f32 0.5, %v11858_v16  ;;  %v5110_v21 = vmul.f32 %v5109_v61, %v11911_v23  ;;  %v7424_v14 = vadd.f32 1.0, %v8441_v28  ;;  %v5153_v37 = vadd.f32 1.1283791, %v5152_v39 }
 0xd88   :  { %v12172_v15 = vpop.eup %9088  ;;  %9090 = vrcp.f32 %v12145_v2  ;;  %v12176_v54 = vmul.f32 0.70710677, %v12150_v56  ;;  %v8443_v52 = vclamps-f32 %v5059_v10, 1.0  ;;  %v5176_v25 = vand.u32 2147483648, %v12085_v62 }
 0xd89   :  { %v5072_v35 = vmul.f32 %v5071_v5, %v11883_v49  ;;  %v5197_v16 = vmul.f32 %v5196_v36, %v12102_v29  ;;  %v4226_v63 = vmul.f32 %v12132_v11, %v4225_v50  ;;  %v4104_v53 = vmul.f32 %v4085_v27, %v15554_v1 }
 0xd8a   :  { %v5316_v24 = vadd.f32 0.001143296, %v5315_v41  ;;  %v5235_v8 = vmul.f32 3.8918573e-05, %v12159_v18  ;;  %v5167_v12 = vsub.f32 1.0, %v5166_v17  ;;  %v5086_v6 = vmul.f32 %v12161_v45, %v12099_v20 }
 0xd8b   :  { %v5111_v48 = vadd.f32 0.18741608, %v5110_v21  ;;  %v4235_v4 = vmul.f32 %v12172_v15, %v12111_v31  ;;  %v12189_v19 = vmul.f32 %v7424_v14, %v11889_v46  ;;  %v12192_v49 = vmul.f32 %v5153_v37, %v11815_v26 }
 0xd8c   :  { %v5174_v61 = vand.u32 2147483647, %v12085_v62  ;;  %v5262_v28 = vmul.f32 %v12176_v54, %v12176_v54  ;;  %v7426_v39 = vadd.f32 1.0, %v8443_v52  ;;  %vm5170_vm7 = vweird.f32 %v12085_v62 }
 0xd8d   :  { %15599 = vst [vmem:[#allocation24_spill] sm:$0xff] %v12189_v19  ;;  %v5177_v10 = vor.u32 1.1754944e-38, %v5176_v25  ;;  %v5073_v5 = vadd.f32 1.1283791, %v5072_v35  ;;  %v5198_v36 = vadd.f32 0.014752088, %v5197_v16  ;;  %vm4231_vm8 = vweird.f32 %v12132_v11 }
 0xd8e   :  { %v12198_v50 = vpop.eup %9090  ;;  %v4227_v41 = vmul.f32 0.5, %v4226_v63  ;;  %v12201_v46 = vadd.f32 1e-05, %v4104_v53  ;;  %v5317_v26 = vmul.f32 %v5316_v24, %v12128_v30  ;;  %v5236_v17 = vadd.f32 0.001143296, %v5235_v8 }
 0xd8f   :  { %v5168_v21 = vmul.f32 %v12138_v44, %v5167_v12  ;;  %v5087_v27 = vsub.f32 1.0, %v5086_v6  ;;  %v5112_v14 = vmul.f32 %v5111_v48, %v11911_v23  ;;  %v4236_v37 = vmul.f32 %v12172_v15, %v4235_v4 }
 0xd90   :  { %vm5171_vm9 = vweird.f32 %v12138_v44  ;;  %v5094_v52 = vand.u32 2147483647, %v12099_v20  ;;  %v5096_v25 = vand.u32 2147483648, %v12099_v20  ;;  %vm4230_vm10 = vweird.f32 %v12079_v60 }
 0xd91   :  { %v12211_v35 = vmin.f32 %v5262_v28, 16.0  ;;  %v12214_v16 = vmul.f32 %v7426_v39, %v11892_v33  ;;  %vm12216_vm11 = vcmp.eq.f32.partialorder %v5174_v61, 8.507059e+37  ;;  %v5126_v23 = vmul.f32 %v12198_v50, %v12145_v2  ;;  %vm12242_vm14 = vmor %vm5170_vm7, %vm5171_vm9 }
 0xd92   :  { %v5184_v53 = vmul.f32 2.1237322e-06, %v12102_v29  ;;  %v5199_v24 = vmul.f32 %v5198_v36, %v12102_v29  ;;  %v4228_v8 = vsub.f32 1.5, %v4227_v41  ;;  %9092 = vrsqrt.f32 %v12201_v46  ;;  %vm12273_vm2 = vmor %vm4230_vm10, %vm4231_vm8 }
 0xd93   :  { %v5318_v12 = vadd.f32 0.014752088, %v5317_v26  ;;  %v5237_v6 = vmul.f32 %v5236_v17, %v12159_v18  ;;  %v5169_v33 = vadd.f32 %v12138_v44, %v5168_v21  ;;  %v5088_v48 = vmul.f32 %v12161_v45, %v5087_v27 }
 0xd94   :  { %v5113_v4 = vadd.f32 1.1283791, %v5112_v14  ;;  %v4237_v61 = vmul.f32 0.5, %v4236_v37  ;;  %v12229_v28 = vmul.f32 %v5073_v5, %v11827_v55  ;;  %vm5090_vm12 = vweird.f32 %v12099_v20 }
 0xd95   :  { %v5097_v39 = vor.u32 1.1754944e-38, %v5096_v25  ;;  %v5275_v36 = vmul.f32 3.8918573e-05, %v12211_v35  ;;  %v5127_v26 = vsub.f32 1.0, %v5126_v23  ;;  %vm4240_vm13 = vweird.f32 %v12111_v31 }
 0xd96   :  { %v5185_v17 = vadd.f32 0.00028619796, %v5184_v53  ;;  %v5200_v21 = vadd.f32 0.112945676, %v5199_v24  ;;  %vm5091_vm15 = vweird.f32 %v12161_v45  ;;  %v4229_v5 = vmul.f32 %v12132_v11, %v4228_v8 }
 0xd97   :  { %v5319_v27 = vmul.f32 %v5318_v12, %v12128_v30  ;;  %v5238_v14 = vadd.f32 0.014752088, %v5237_v6  ;;  %v5173_v37 = vsel %vm12242_vm14, %v12138_v44, %v5169_v33  ;;  %v5089_v25 = vadd.f32 %v12161_v45, %v5088_v48  ;;  %vm12285_vm3 = vmor %vm5090_vm12, %vm5091_vm15 }
 0xd98   :  { %vm12253_vm0 = vcmp.eq.f32.partialorder %v5094_v52, 8.507059e+37  ;;  %v12258_v62 = vmul.f32 %v5113_v4, %v11878_v57  ;;  %v4238_v53 = vsub.f32 1.5, %v4237_v61  ;;  %v12260_v24 = vpop.eup %9092  ;;  %vm5130_vm1 = vweird.f32 %v12145_v2 }
 0xd99   :  { %v5304_v8 = vmul.f32 2.1237322e-06, %v12128_v30  ;;  %v5276_v12 = vadd.f32 0.001143296, %v5275_v36  ;;  %v12265_v6 = vmul.f32 0.70710677, %v12236_v7  ;;  %v5128_v44 = vmul.f32 %v12198_v50, %v5127_v26 }
 0xd9a   :  { %v5136_v52 = vand.u32 2147483648, %v12145_v2  ;;  %v5186_v33 = vmul.f32 %v5185_v17, %v12102_v29  ;;  %v5201_v48 = vmul.f32 %v5200_v21, %v12102_v29  ;;  %v5178_v4 = vsel %vm12216_vm11, %v5177_v10, %v5173_v37 }
 0xd9b   :  { %v4233_v60 = vsel %vm12273_vm2, %v12132_v11, %v4229_v5  ;;  %v5320_v36 = vadd.f32 0.112945676, %v5319_v27  ;;  %v5239_v26 = vmul.f32 %v5238_v14, %v12159_v18  ;;  %v5093_v63 = vsel %vm12285_vm3, %v12161_v45, %v5089_v25 }
 0xd9c   :  { %v4239_v10 = vmul.f32 %v12172_v15, %v4238_v53  ;;  %vm4241_vm4 = vweird.f32 %v12172_v15  ;;  %v4245_v20 = vmul.f32 %v12260_v24, %v12201_v46  ;;  %vm5131_vm5 = vweird.f32 %v12198_v50 }
 0xd9d   :  { %v5305_v17 = vadd.f32 0.00028619796, %v5304_v8  ;;  %v5277_v21 = vmul.f32 %v5276_v12, %v12211_v35  ;;  %v5342_v11 = vmul.f32 %v12265_v6, %v12265_v6  ;;  %v5129_v55 = vadd.f32 %v12198_v50, %v5128_v44  ;;  %vm12310_vm6 = vmor %vm4240_vm13, %vm4241_vm4 }
 0xd9e   :  { %v5187_v5 = vadd.f32 0.0036580483, %v5186_v33  ;;  %v5202_v27 = vadd.f32 0.4994258, %v5201_v48  ;;  %v5224_v45 = vmul.f32 2.1237322e-06, %v12159_v18  ;;  %v4294_v37 = vmul.f32 %v4233_v60, %v11666_v58  ;;  %v12320_v48 = vpop.f32.mrf.mxu0  ;;  %vm12328_vm7 = vmor %vm5130_vm1, %vm5131_vm5 }
 0xd9f   :  { %v5134_v14 = vand.u32 2147483647, %v12145_v2  ;;  %v5321_v53 = vmul.f32 %v5320_v36, %v12128_v30  ;;  %v5240_v8 = vadd.f32 0.112945676, %v5239_v26  ;;  %v5179_v12 = vmul.f32 %v5178_v4, %v12192_v49 }
 0xda0   :  { %v5137_v44 = vor.u32 1.1754944e-38, %v5136_v52  ;;  %v4243_v57 = vsel %vm12310_vm6, %v12172_v15, %v4239_v10  ;;  %v4246_v33 = vmul.f32 %v12260_v24, %v4245_v20  ;;  %v5098_v58 = vsel %vm12253_vm0, %v5097_v39, %v5093_v63 }
 0xda1   :  { %v5306_v49 = vmul.f32 %v5305_v17, %v12128_v30  ;;  %v5278_v52 = vadd.f32 0.014752088, %v5277_v21  ;;  %v12333_v4 = vmin.f32 %v5342_v11, 16.0  ;;  %v5133_v15 = vsel %vm12328_vm7, %v12198_v50, %v5129_v55 }
 0xda2   :  { %v5188_v23 = vmul.f32 %v5187_v5, %v12102_v29  ;;  %v5203_v39 = vmul.f32 %v5202_v27, %v12102_v29  ;;  %v5225_v61 = vadd.f32 0.00028619796, %v5224_v45  ;;  %v4295_v2 = vmul.f32 %v4243_v57, %v11674_v3 }
 0xda3   :  { %v5322_v60 = vadd.f32 0.4994258, %v5321_v53  ;;  %v5241_v36 = vmul.f32 %v5240_v8, %v12159_v18  ;;  %v12343_v26 = vmul.f32 0.70710677, %v12320_v48  ;;  %v8446_v63 = vclamps-f32 %v5179_v12, 1.0 }
 0xda4   :  { %v5099_v10 = vmul.f32 %v5098_v58, %v12229_v28  ;;  %vm5135_vm8 = vcmp.eq.f32.partialorder %v5134_v14, 8.507059e+37  ;;  %v4247_v20 = vmul.f32 0.5, %v4246_v33  ;;  %v5307_v50 = vadd.f32 0.0036580483, %v5306_v49  ;;  %v9228_v14 = vld [vmem:[%s15365_s5] ss:$0 sm:$0xff] }
 0xda5   :  { %v5138_v17 = vsel %vm5135_vm8, %v5137_v44, %v5133_v15  ;;  %v5279_v21 = vmul.f32 %v5278_v52, %v12211_v35  ;;  %v5355_v11 = vmul.f32 3.8918573e-05, %v12333_v4  ;;  %v12349_v55 = vmul.f32 0.5, %v12047_v34 }
 0xda6   :  { %v5189_v3 = vadd.f32 0.05243302, %v5188_v23  ;;  %v12351_v5 = vadd.f32 1.0, %v5203_v39  ;;  %v5226_v27 = vmul.f32 %v5225_v61, %v12159_v18  ;;  %v5323_v45 = vmul.f32 %v5322_v60, %v12128_v30  ;;  %v9229_v61 = vld [vmem:[%s15366_s6] ss:$0 sm:$0xff] }
 0xda7   :  { %v5242_v25 = vadd.f32 0.4994258, %v5241_v36  ;;  %v5462_v28 = vmul.f32 %v12343_v26, %v12343_v26  ;;  %v4314_v53 = vmul.f32 %v9228_v14, %v4295_v2  ;;  %v7429_v8 = vadd.f32 1.0, %v8446_v63 }
 0xda8   :  { %v8444_v12 = vclamps-f32 %v5099_v10, 1.0  ;;  %v5139_v34 = vmul.f32 %v5138_v17, %v12258_v62  ;;  %v4248_v44 = vsub.f32 1.5, %v4247_v20  ;;  %vm4250_vm9 = vweird.f32 %v12201_v46 }
 0xda9   :  { %v5308_v57 = vmul.f32 %v5307_v50, %v12128_v30  ;;  %v5280_v33 = vadd.f32 0.112945676, %v5279_v21  ;;  %v5356_v58 = vadd.f32 0.001143296, %v5355_v11  ;;  %v4313_v31 = vmul.f32 %v9228_v14, %v4294_v37 }
 0xdaa   :  { %v5190_v49 = vmul.f32 %v5189_v3, %v12102_v29  ;;  %9094 = vrcp.f32 %v12351_v5  ;;  %v5227_v52 = vadd.f32 0.0036580483, %v5226_v27  ;;  %v5264_v15 = vmul.f32 2.1237322e-06, %v12211_v35  ;;  %v12382_v27 = vpop.f32.mrf.mxu3 }
 0xdab   :  { %v12366_v23 = vadd.f32 1.0, %v5323_v45  ;;  %v5243_v39 = vmul.f32 %v5242_v25, %v12159_v18  ;;  %v12369_v62 = vmin.f32 %v5462_v28, 16.0  ;;  %v4333_v2 = vadd.f32 %v9229_v61, %v4314_v53 }
 0xdac   :  { %v12375_v37 = vmul.f32 %v7429_v8, %v12136_v13  ;;  %v7427_v60 = vadd.f32 1.0, %v8444_v12  ;;  %v8445_v36 = vclamps-f32 %v5139_v34, 1.0  ;;  %vm4251_vm10 = vweird.f32 %v12260_v24  ;;  %v12398_v34 = vpop.f32.mrf.mxu2 }
 0xdad   :  { %v5309_v63 = vadd.f32 0.05243302, %v5308_v57  ;;  %v5281_v10 = vmul.f32 %v5280_v33, %v12211_v35  ;;  %v5357_v20 = vmul.f32 %v5356_v58, %v12333_v4  ;;  %v4332_v17 = vadd.f32 %v9229_v61, %v4313_v31  ;;  %vm12404_vm11 = vmor %vm4250_vm9, %vm4251_vm10 }
 0xdae   :  { %15614 = vst [vmem:[#allocation31_spill] sm:$0xff] %v12375_v37  ;;  %v4249_v50 = vmul.f32 %v12260_v24, %v4248_v44  ;;  %v5191_v21 = vadd.f32 0.18741608, %v5190_v49  ;;  %v5228_v11 = vmul.f32 %v5227_v52, %v12159_v18  ;;  %v5265_v3 = vadd.f32 0.00028619796, %v5264_v15 }
 0xdaf   :  { %9096 = vrcp.f32 %v12366_v23  ;;  %v12385_v13 = vadd.f32 1.0, %v5243_v39  ;;  %v5475_v45 = vmul.f32 3.8918573e-05, %v12369_v62  ;;  %v4343_v25 = vpack.c.bf16 %v4333_v2, %v4332_v17 }
 0xdb0   :  { %v12388_v28 = vpop.eup %9094  ;;  %v12393_v53 = vmul.f32 %v7427_v60, %v12148_v0  ;;  %v7428_v8 = vadd.f32 1.0, %v8445_v36  ;;  %v12396_v12 = vmul.f32 0.5, %v12073_v42  ;;  %v5310_v57 = vmul.f32 %v5309_v63, %v12128_v30 }
 0xdb1   :  { %v5282_v33 = vadd.f32 0.4994258, %v5281_v10  ;;  %v5358_v58 = vadd.f32 0.014752088, %v5357_v20  ;;  %4571 = vmatmul.bf16.gmra.mxu1 %v4343_v25  ;;  %4620 = vmatmul.bf16.gmra.mxu3 %v4343_v25  ;;  %v12410_v0 = vmul.f32 0.70710677, %v12382_v27  ;;  %v4253_v42 = vsel %vm12404_vm11, %v12260_v24, %v4249_v50 }
 0xdb2   :  { %v5192_v31 = vmul.f32 %v5191_v21, %v12102_v29  ;;  %v5229_v46 = vadd.f32 0.05243302, %v5228_v11  ;;  %v5266_v49 = vmul.f32 %v5265_v3, %v12211_v35  ;;  %4669 = vmatmul.bf16.gmra.mxu2 %v4343_v25  ;;  %4718 = vmatmul.bf16.gmra.mxu0 %v4343_v25  ;;  %9098 = vrcp.f32 %v12385_v13 }
 0xdb3   :  { %v5476_v52 = vadd.f32 0.001143296, %v5475_v45  ;;  %v5382_v15 = vmul.f32 %v12410_v0, %v12410_v0  ;;  %v12421_v39 = vmul.f32 0.70710677, %v12398_v34  ;;  %v12426_v24 = vmul.f32 %v7428_v8, %v12169_v47 }
 0xdb4   :  { %v5206_v29 = vmul.f32 %v12388_v28, %v12351_v5  ;;  %v12431_v2 = vmul.f32 0.5, %v12097_v22  ;;  %v5311_v36 = vadd.f32 0.18741608, %v5310_v57  ;;  %v5283_v63 = vmul.f32 %v5282_v33, %v12211_v35 }
 0xdb5   :  { %15617 = vst [vmem:[#allocation37_spill] sm:$0xff] %v12426_v24  ;;  %v12433_v60 = vpop.eup %9096  ;;  %v5359_v10 = vmul.f32 %v5358_v58, %v12333_v4  ;;  %v12437_v20 = vmin.f32 %v5382_v15, 16.0  ;;  %v12440_v17 = vmul.f32 %v4253_v42, %v11683_v32  ;;  %v5193_v47 = vadd.f32 1.1283791, %v5192_v31 }
 0xdb6   :  { %v12443_v50 = vmul.f32 0.5, %v12150_v56  ;;  %v5422_v22 = vmul.f32 %v12421_v39, %v12421_v39  ;;  %v5216_v21 = vand.u32 2147483648, %v12351_v5  ;;  %v5230_v11 = vmul.f32 %v5229_v46, %v12159_v18 }
 0xdb7   :  { %v5267_v3 = vadd.f32 0.0036580483, %v5266_v49  ;;  %v5477_v45 = vmul.f32 %v5476_v52, %v12369_v62  ;;  %v5207_v8 = vsub.f32 1.0, %v5206_v29  ;;  %v5326_v32 = vmul.f32 %v12433_v60, %v12366_v23 }
 0xdb8   :  { %v5395_v56 = vmul.f32 3.8918573e-05, %v12437_v20  ;;  %v12455_v44 = vpop.eup %9098  ;;  %v5312_v57 = vmul.f32 %v5311_v36, %v12128_v30  ;;  %v12458_v33 = vadd.f32 1.0, %v5283_v63  ;;  %v5360_v58 = vadd.f32 0.112945676, %v5359_v10  ;;  %v12471_v36 = vpop.f32.mrf.mxu1 }
 0xdb9   :  { %v12460_v42 = vmin.f32 %v5422_v22, 16.0  ;;  %v12463_v31 = vmul.f32 %v5193_v47, %v12065_v59  ;;  %v5214_v46 = vand.u32 2147483647, %v12351_v5  ;;  %v12467_v49 = vmul.f32 0.5, %v12236_v7 }
 0xdba   :  { %v5344_v52 = vmul.f32 2.1237322e-06, %v12333_v4  ;;  %v5217_v15 = vor.u32 1.1754944e-38, %v5216_v21  ;;  %v5231_v29 = vadd.f32 0.18741608, %v5230_v11  ;;  %v5268_v14 = vmul.f32 %v5267_v3, %v12211_v35 }
 0xdbb   :  { %v5478_v30 = vadd.f32 0.014752088, %v5477_v45  ;;  %v5208_v63 = vmul.f32 %v12388_v28, %v5207_v8  ;;  %v5327_v10 = vsub.f32 1.0, %v5326_v32  ;;  %v5246_v59 = vmul.f32 %v12455_v44, %v12385_v13 }
 0xdbc   :  { %v5396_v47 = vadd.f32 0.001143296, %v5395_v56  ;;  %v5313_v22 = vadd.f32 1.1283791, %v5312_v57  ;;  %9100 = vrcp.f32 %v12458_v33  ;;  %v5361_v7 = vmul.f32 %v5360_v58, %v12333_v4 }
 0xdbd   :  { %v5435_v21 = vmul.f32 3.8918573e-05, %v12460_v42  ;;  %vm5210_vm12 = vweird.f32 %v12351_v5  ;;  %v5334_v11 = vand.u32 2147483647, %v12366_v23  ;;  %v5345_v3 = vadd.f32 0.00028619796, %v5344_v52 }
 0xdbe   :  { %v12482_v45 = vmul.f32 0.70710677, %v12471_v36  ;;  %vm5211_vm13 = vweird.f32 %v12388_v28  ;;  %vm12485_vm14 = vcmp.eq.f32.partialorder %v5214_v46, 8.507059e+37  ;;  %v5232_v32 = vmul.f32 %v5231_v29, %v12159_v18 }
 0xdbf   :  { %v5269_v56 = vadd.f32 0.05243302, %v5268_v14  ;;  %v5479_v57 = vmul.f32 %v5478_v30, %v12369_v62  ;;  %v5209_v58 = vadd.f32 %v12388_v28, %v5208_v63  ;;  %v5328_v25 = vmul.f32 %v12433_v60, %v5327_v10  ;;  %vm12509_vm0 = vmor %vm5210_vm12, %vm5211_vm13 }
 0xdc0   :  { %v5247_v61 = vsub.f32 1.0, %v5246_v59  ;;  %v5397_v52 = vmul.f32 %v5396_v47, %v12437_v20  ;;  %v12495_v41 = vmul.f32 %v5313_v22, %v12089_v43  ;;  %v5362_v38 = vadd.f32 0.4994258, %v5361_v7 }
 0xdc1   :  { %v5464_v46 = vmul.f32 2.1237322e-06, %v12369_v62  ;;  %v5436_v37 = vadd.f32 0.001143296, %v5435_v21  ;;  %vm5330_vm15 = vweird.f32 %v12366_v23  ;;  %v5336_v18 = vand.u32 2147483648, %v12366_v23 }
 0xdc2   :  { %v5346_v14 = vmul.f32 %v5345_v3, %v12333_v4  ;;  %v5502_v29 = vmul.f32 %v12482_v45, %v12482_v45  ;;  %v12503_v30 = vpop.eup %9100  ;;  %vm12513_vm1 = vcmp.eq.f32.partialorder %v5334_v11, 8.507059e+37  ;;  %v5233_v10 = vadd.f32 1.1283791, %v5232_v32 }
 0xdc3   :  { %v5270_v59 = vmul.f32 %v5269_v56, %v12211_v35  ;;  %v5480_v47 = vadd.f32 0.112945676, %v5479_v57  ;;  %v5213_v22 = vsel %vm12509_vm0, %v12388_v28, %v5209_v58  ;;  %v5329_v7 = vadd.f32 %v12433_v60, %v5328_v25 }
 0xdc4   :  { %vm5331_vm2 = vweird.f32 %v12433_v60  ;;  %v5398_v5 = vadd.f32 0.014752088, %v5397_v52  ;;  %v5248_v21 = vmul.f32 %v12455_v44, %v5247_v61  ;;  %v5363_v11 = vmul.f32 %v5362_v38, %v12333_v4  ;;  %v12546_v52 = vpop.f32.mrf.mxu0 }
 0xdc5   :  { %v5465_v3 = vadd.f32 0.00028619796, %v5464_v46  ;;  %v5437_v19 = vmul.f32 %v5436_v37, %v12460_v42  ;;  %v5337_v32 = vor.u32 1.1754944e-38, %v5336_v18  ;;  %v5286_v56 = vmul.f32 %v12503_v30, %v12458_v33  ;;  %vm12532_vm3 = vmor %vm5330_vm15, %vm5331_vm2 }
 0xdc6   :  { %v5347_v57 = vadd.f32 0.0036580483, %v5346_v14  ;;  %v12528_v24 = vmin.f32 %v5502_v29, 16.0  ;;  %v5234_v61 = vmul.f32 %v5233_v10, %v12120_v9  ;;  %vm5250_vm4 = vweird.f32 %v12385_v13 }
 0xdc7   :  { %v5271_v38 = vadd.f32 0.18741608, %v5270_v59  ;;  %v5481_v37 = vmul.f32 %v5480_v47, %v12369_v62  ;;  %v5218_v25 = vsel %vm12485_vm14, %v5217_v15, %v5213_v22  ;;  %v5333_v58 = vsel %vm12532_vm3, %v12433_v60, %v5329_v7 }
 0xdc8   :  { %vm5251_vm5 = vweird.f32 %v12455_v44  ;;  %v5399_v23 = vmul.f32 %v5398_v5, %v12437_v20  ;;  %v5249_v9 = vadd.f32 %v12455_v44, %v5248_v21  ;;  %v12549_v46 = vadd.f32 1.0, %v5363_v11 }
 0xdc9   :  { %v5466_v18 = vmul.f32 %v5465_v3, %v12369_v62  ;;  %v5438_v14 = vadd.f32 0.014752088, %v5437_v19  ;;  %v5256_v8 = vand.u32 2147483648, %v12385_v13  ;;  %v5287_v15 = vsub.f32 1.0, %v5286_v56  ;;  %vm12567_vm6 = vmor %vm5250_vm4, %vm5251_vm5 }
 0xdca   :  { %v5348_v29 = vmul.f32 %v5347_v57, %v12333_v4  ;;  %v5515_v60 = vmul.f32 3.8918573e-05, %v12528_v24  ;;  %v5254_v43 = vand.u32 2147483647, %v12385_v13  ;;  %v5272_v10 = vmul.f32 %v5271_v38, %v12211_v35 }
 0xdcb   :  { %v5482_v59 = vadd.f32 0.4994258, %v5481_v37  ;;  %v12558_v47 = vmul.f32 0.70710677, %v12546_v52  ;;  %v5219_v22 = vmul.f32 %v5218_v25, %v12463_v31  ;;  %v5338_v19 = vsel %vm12513_vm1, %v5337_v32, %v5333_v58 }
 0xdcc   :  { %v5384_v5 = vmul.f32 2.1237322e-06, %v12437_v20  ;;  %v5400_v35 = vadd.f32 0.112945676, %v5399_v23  ;;  %v5253_v21 = vsel %vm12567_vm6, %v12455_v44, %v5249_v9  ;;  %9102 = vrcp.f32 %v12549_v46 }
 0xdcd   :  { %v5467_v31 = vadd.f32 0.0036580483, %v5466_v18  ;;  %v5439_v63 = vmul.f32 %v5438_v14, %v12460_v42  ;;  %v5257_v11 = vor.u32 1.1754944e-38, %v5256_v8  ;;  %v5288_v3 = vmul.f32 %v12503_v30, %v5287_v15 }
 0xdce   :  { %v5349_v13 = vadd.f32 0.05243302, %v5348_v29  ;;  %v5516_v32 = vadd.f32 0.001143296, %v5515_v60  ;;  %vm5255_vm7 = vcmp.eq.f32.partialorder %v5254_v43, 8.507059e+37  ;;  %v5483_v57 = vmul.f32 %v5482_v59, %v12369_v62 }
 0xdcf   :  { %v5273_v56 = vadd.f32 1.1283791, %v5272_v10  ;;  %v5622_v28 = vmul.f32 %v12558_v47, %v12558_v47  ;;  %v5339_v38 = vmul.f32 %v5338_v19, %v12495_v41  ;;  %v5258_v44 = vsel %vm5255_vm7, %v5257_v11, %v5253_v21 }
 0xdd0   :  { %v5385_v37 = vadd.f32 0.00028619796, %v5384_v5  ;;  %v5401_v25 = vmul.f32 %v5400_v35, %v12437_v20  ;;  %v8447_v58 = vclamps-f32 %v5219_v22, 1.0  ;;  %v5296_v23 = vand.u32 2147483648, %v12458_v33 }
 0xdd1   :  { %v5468_v9 = vmul.f32 %v5467_v31, %v12369_v62  ;;  %v5440_v18 = vadd.f32 0.112945676, %v5439_v63  ;;  %v5289_v14 = vadd.f32 %v12503_v30, %v5288_v3  ;;  %vm5291_vm8 = vweird.f32 %v12503_v30 }
 0xdd2   :  { %v5350_v8 = vmul.f32 %v5349_v13, %v12333_v4  ;;  %v5517_v15 = vmul.f32 %v5516_v32, %v12528_v24  ;;  %v12589_v29 = vpop.eup %9102  ;;  %v5259_v41 = vmul.f32 %v5258_v44, %v5234_v61  ;;  %vm5290_vm9 = vweird.f32 %v12458_v33 }
 0xdd3   :  { %v12592_v60 = vadd.f32 1.0, %v5483_v57  ;;  %v12594_v43 = vmin.f32 %v5622_v28, 16.0  ;;  %v8450_v10 = vclamps-f32 %v5339_v38, 1.0  ;;  %v5294_v59 = vand.u32 2147483647, %v12458_v33  ;;  %vm12598_vm10 = vmor %vm5290_vm9, %vm5291_vm8 }
 0xdd4   :  { %v5386_v22 = vmul.f32 %v5385_v37, %v12437_v20  ;;  %v5402_v19 = vadd.f32 0.4994258, %v5401_v25  ;;  %v7430_v7 = vadd.f32 1.0, %v8447_v58  ;;  %v5297_v35 = vor.u32 1.1754944e-38, %v5296_v23 }
 0xdd5   :  { %v5469_v21 = vadd.f32 0.05243302, %v5468_v9  ;;  %v5441_v61 = vmul.f32 %v5440_v18, %v12460_v42  ;;  %v5293_v31 = vsel %vm12598_vm10, %v12503_v30, %v5289_v14  ;;  %v5351_v63 = vadd.f32 0.18741608, %v5350_v8 }
 0xdd6   :  { %v5366_v33 = vmul.f32 %v12589_v29, %v12549_v46  ;;  %v5518_v11 = vadd.f32 0.014752088, %v5517_v15  ;;  %v8448_v3 = vclamps-f32 %v5259_v41, 1.0  ;;  %9104 = vrcp.f32 %v12592_v60 }
 0xdd7   :  { %v5424_v13 = vmul.f32 2.1237322e-06, %v12460_v42  ;;  %v5635_v32 = vmul.f32 3.8918573e-05, %v12594_v43  ;;  %v7433_v57 = vadd.f32 1.0, %v8450_v10  ;;  %vm5295_vm11 = vcmp.eq.f32.partialorder %v5294_v59, 8.507059e+37  ;;  %v12622_v10 = vpop.f32.mrf.mxu3 }
 0xdd8   :  { %v5387_v28 = vadd.f32 0.0036580483, %v5386_v22  ;;  %v5403_v38 = vmul.f32 %v5402_v19, %v12437_v20  ;;  %v5298_v44 = vsel %vm5295_vm11, %v5297_v35, %v5293_v31  ;;  %v12613_v30 = vmul.f32 0.5, %v12320_v48 }
 0xdd9   :  { %v5470_v37 = vmul.f32 %v5469_v21, %v12369_v62  ;;  %v5442_v25 = vadd.f32 0.4994258, %v5441_v61  ;;  %v12617_v58 = vmul.f32 %v7430_v7, %v12349_v55  ;;  %v5274_v23 = vmul.f32 %v5273_v56, %v12176_v54 }
 0xdda   :  { %v5367_v9 = vsub.f32 1.0, %v5366_v33  ;;  %v5519_v18 = vmul.f32 %v5518_v11, %v12528_v24  ;;  %v7431_v14 = vadd.f32 1.0, %v8448_v3  ;;  %v5352_v8 = vmul.f32 %v5351_v63, %v12333_v4 }
 0xddb   :  { %15630 = vst [vmem:[#allocation16_spill] sm:$0xff] %v12617_v58  ;;  %v5425_v15 = vadd.f32 0.00028619796, %v5424_v13  ;;  %v5636_v41 = vadd.f32 0.001143296, %v5635_v32  ;;  %v12625_v48 = vmul.f32 %v7433_v57, %v12396_v12  ;;  %v5299_v59 = vmul.f32 %v5298_v44, %v5274_v23  ;;  %v8706_v58 = vld [vmem:[#allocation8 + $0x58] sm:$0xff] }
 0xddc   :  { %v5388_v22 = vmul.f32 %v5387_v28, %v12437_v20  ;;  %v12628_v55 = vadd.f32 1.0, %v5403_v38  ;;  %v12630_v19 = vpop.eup %9104  ;;  %v5471_v54 = vadd.f32 0.18741608, %v5470_v37  ;;  %v12633_v56 = vmul.f32 0.5, %v12382_v27 }
 0xddd   :  { %15631 = vst [vmem:[#allocation36_spill] sm:$0xff] %v12625_v48  ;;  %v5443_v4 = vmul.f32 %v5442_v25, %v12460_v42  ;;  %v5504_v7 = vmul.f32 2.1237322e-06, %v12528_v24  ;;  %v5368_v5 = vmul.f32 %v12589_v29, %v5367_v9  ;;  %v12639_v12 = vmul.f32 0.5, %v12398_v34  ;;  %v12652_v34 = vpop.f32.mrf.mxu2 }
 0xdde   :  { %v5520_v35 = vadd.f32 0.112945676, %v5519_v18  ;;  %v12642_v21 = vmul.f32 0.70710677, %v12622_v10  ;;  %v12645_v61 = vmul.f32 %v7431_v14, %v12431_v2  ;;  %v5353_v31 = vadd.f32 1.1283791, %v5352_v8 }
 0xddf   :  { %v5426_v27 = vmul.f32 %v5425_v15, %v12460_v42  ;;  %v5637_v63 = vmul.f32 %v5636_v41, %v12594_v43  ;;  %v8449_v33 = vclamps-f32 %v5299_v59, 1.0  ;;  %v5486_v11 = vmul.f32 %v12630_v19, %v12592_v60 }
 0xde0   :  { %15632 = vst [vmem:[#allocation40_spill] sm:$0xff] %v12645_v61  ;;  %v5389_v3 = vadd.f32 0.05243302, %v5388_v22  ;;  %9106 = vrcp.f32 %v12628_v55  ;;  %v5376_v13 = vand.u32 2147483648, %v12549_v46  ;;  %v5472_v32 = vmul.f32 %v5471_v54, %v12369_v62 }
 0xde1   :  { %v12656_v2 = vadd.f32 1.0, %v5443_v4  ;;  %v5505_v57 = vadd.f32 0.00028619796, %v5504_v7  ;;  %v5369_v28 = vadd.f32 %v12589_v29, %v5368_v5  ;;  %vm5371_vm12 = vweird.f32 %v12589_v29 }
 0xde2   :  { %v5521_v38 = vmul.f32 %v5520_v35, %v12528_v24  ;;  %v5542_v44 = vmul.f32 %v12642_v21, %v12642_v21  ;;  %v5354_v37 = vmul.f32 %v5353_v31, %v12265_v6  ;;  %v5427_v25 = vadd.f32 0.0036580483, %v5426_v27 }
 0xde3   :  { %v5638_v23 = vadd.f32 0.014752088, %v5637_v63  ;;  %v12665_v9 = vmul.f32 0.70710677, %v12652_v34  ;;  %vm5370_vm13 = vweird.f32 %v12549_v46  ;;  %v5374_v62 = vand.u32 2147483647, %v12549_v46 }
 0xde4   :  { %v5487_v18 = vsub.f32 1.0, %v5486_v11  ;;  %v5390_v14 = vmul.f32 %v5389_v3, %v12437_v20  ;;  %v7432_v8 = vadd.f32 1.0, %v8449_v33  ;;  %vm12670_vm14 = vmor %vm5370_vm13, %vm5371_vm12  ;;  %9108 = vrcp.f32 %v12656_v2 }
 0xde5   :  { %v12676_v6 = vmul.f32 0.5, %v12471_v36  ;;  %v5506_v41 = vmul.f32 %v5505_v57, %v12528_v24  ;;  %v5373_v46 = vsel %vm12670_vm14, %v12589_v29, %v5369_v28  ;;  %v5473_v22 = vadd.f32 1.1283791, %v5472_v32 }
 0xde6   :  { %v12679_v59 = vpop.eup %9106  ;;  %v5522_v54 = vadd.f32 0.4994258, %v5521_v38  ;;  %v12684_v4 = vmin.f32 %v5542_v44, 16.0  ;;  %v5377_v7 = vor.u32 1.1754944e-38, %v5376_v13  ;;  %v5428_v5 = vmul.f32 %v5427_v25, %v12460_v42 }
 0xde7   :  { %v5639_v35 = vmul.f32 %v5638_v23, %v12594_v43  ;;  %v5582_v36 = vmul.f32 %v12665_v9, %v12665_v9  ;;  %vm5375_vm15 = vcmp.eq.f32.partialorder %v5374_v62, 8.507059e+37  ;;  %v5488_v31 = vmul.f32 %v12630_v19, %v5487_v18 }
 0xde8   :  { %v5391_v27 = vadd.f32 0.18741608, %v5390_v14  ;;  %v12692_v63 = vmul.f32 0.5, %v12546_v52  ;;  %v5378_v29 = vsel %vm5375_vm15, %v5377_v7, %v5373_v46  ;;  %v5406_v33 = vmul.f32 %v12679_v59, %v12628_v55 }
 0xde9   :  { %v5507_v11 = vadd.f32 0.0036580483, %v5506_v41  ;;  %v5624_v3 = vmul.f32 2.1237322e-06, %v12594_v43  ;;  %v12698_v13 = vmul.f32 %v7432_v8, %v12443_v50  ;;  %v5494_v32 = vand.u32 2147483647, %v12592_v60 }
 0xdea   :  { %v5523_v57 = vmul.f32 %v5522_v54, %v12528_v24  ;;  %v5555_v28 = vmul.f32 3.8918573e-05, %v12684_v4  ;;  %v12703_v38 = vpop.eup %9108  ;;  %v5496_v52 = vand.u32 2147483648, %v12592_v60  ;;  %v5429_v44 = vadd.f32 0.05243302, %v5428_v5 }
 0xdeb   :  { %15635 = vst [vmem:[#allocation15_spill] sm:$0xff] %v12698_v13  ;;  %v5640_v25 = vadd.f32 0.112945676, %v5639_v35  ;;  %v12706_v23 = vmin.f32 %v5582_v36, 16.0  ;;  %v12708_v62 = vmul.f32 %v5378_v29, %v5354_v37  ;;  %v5489_v18 = vadd.f32 %v12630_v19, %v5488_v31  ;;  %v12733_v35 = vpop.f32.mrf.mxu1  ;;  %v8724_v13 = vld [vmem:[#allocation8 + $0xe8] sm:$0xff] }
 0xdec   :  { %vm5491_vm0 = vweird.f32 %v12630_v19  ;;  %v5392_v50 = vmul.f32 %v5391_v27, %v12437_v20  ;;  %v5407_v14 = vsub.f32 1.0, %v5406_v33  ;;  %v5508_v8 = vmul.f32 %v5507_v11, %v12528_v24 }
 0xded   :  { %v5625_v15 = vadd.f32 0.00028619796, %v5624_v3  ;;  %v12715_v41 = vmul.f32 0.5, %v12622_v10  ;;  %vm5490_vm1 = vweird.f32 %v12592_v60  ;;  %v5446_v46 = vmul.f32 %v12703_v38, %v12656_v2 }
 0xdee   :  { %v12720_v37 = vadd.f32 1.0, %v5523_v57  ;;  %v5556_v54 = vadd.f32 0.001143296, %v5555_v28  ;;  %vm12722_vm2 = vmor %vm5490_vm1, %vm5491_vm0  ;;  %vm12726_vm3 = vcmp.eq.f32.partialorder %v5494_v32, 8.507059e+37  ;;  %v5430_v5 = vmul.f32 %v5429_v44, %v12460_v42 }
 0xdef   :  { %v5641_v10 = vmul.f32 %v5640_v25, %v12594_v43  ;;  %v5595_v60 = vmul.f32 3.8918573e-05, %v12706_v23  ;;  %v8451_v36 = vclamps-f32 %v12708_v62, 1.0  ;;  %v5493_v31 = vsel %vm12722_vm2, %v12630_v19, %v5489_v18 }
 0xdf0   :  { %v5497_v27 = vor.u32 1.1754944e-38, %v5496_v52  ;;  %v5393_v29 = vadd.f32 1.1283791, %v5392_v50  ;;  %v5408_v33 = vmul.f32 %v12679_v59, %v5407_v14  ;;  %v5509_v11 = vadd.f32 0.05243302, %v5508_v8 }
 0xdf1   :  { %v5626_v3 = vmul.f32 %v5625_v15, %v12594_v43  ;;  %v5544_v32 = vmul.f32 2.1237322e-06, %v12684_v4  ;;  %v5447_v57 = vsub.f32 1.0, %v5446_v46  ;;  %9110 = vrcp.f32 %v12720_v37 }
 0xdf2   :  { %v5557_v28 = vmul.f32 %v5556_v54, %v12684_v4  ;;  %v12745_v44 = vmul.f32 0.70710677, %v12733_v35  ;;  %v5474_v25 = vmul.f32 %v5473_v22, %v12343_v26  ;;  %v5431_v19 = vadd.f32 0.18741608, %v5430_v5 }
 0xdf3   :  { %v5642_v52 = vadd.f32 0.4994258, %v5641_v10  ;;  %v5596_v18 = vadd.f32 0.001143296, %v5595_v60  ;;  %v5498_v50 = vsel %vm12726_vm3, %v5497_v27, %v5493_v31  ;;  %v5394_v14 = vmul.f32 %v5393_v29, %v12410_v0 }
 0xdf4   :  { %v5414_v8 = vand.u32 2147483647, %v12628_v55  ;;  %v5416_v15 = vand.u32 2147483648, %v12628_v55  ;;  %v5409_v46 = vadd.f32 %v12679_v59, %v5408_v33  ;;  %vm5411_vm4 = vweird.f32 %v12679_v59 }
 0xdf5   :  { %v5510_v54 = vmul.f32 %v5509_v11, %v12528_v24  ;;  %v5545_v7 = vadd.f32 0.00028619796, %v5544_v32  ;;  %v5448_v26 = vmul.f32 %v12703_v38, %v5447_v57  ;;  %v5627_v22 = vadd.f32 0.0036580483, %v5626_v3 }
 0xdf6   :  { %v5558_v5 = vadd.f32 0.014752088, %v5557_v28  ;;  %v5662_v20 = vmul.f32 %v12745_v44, %v12745_v44  ;;  %vm5410_vm5 = vweird.f32 %v12628_v55  ;;  %v5432_v0 = vmul.f32 %v5431_v19, %v12460_v42 }
 0xdf7   :  { %v5643_v10 = vmul.f32 %v5642_v52, %v12594_v43  ;;  %v5597_v60 = vmul.f32 %v5596_v18, %v12706_v23  ;;  %v12763_v31 = vpop.eup %9110  ;;  %v5499_v27 = vmul.f32 %v5498_v50, %v5474_v25  ;;  %vm12765_vm6 = vmor %vm5410_vm5, %vm5411_vm4  ;;  %vm12769_vm7 = vcmp.eq.f32.partialorder %v5414_v8, 8.507059e+37 }
 0xdf8   :  { %v5417_v11 = vor.u32 1.1754944e-38, %v5416_v15  ;;  %v5584_v55 = vmul.f32 2.1237322e-06, %v12706_v23  ;;  %v5413_v42 = vsel %vm12765_vm6, %v12679_v59, %v5409_v46  ;;  %vm5451_vm8 = vweird.f32 %v12703_v38 }
 0xdf9   :  { %v5511_v3 = vadd.f32 0.18741608, %v5510_v54  ;;  %v5546_v32 = vmul.f32 %v5545_v7, %v12684_v4  ;;  %v5449_v57 = vadd.f32 %v12703_v38, %v5448_v26  ;;  %v5628_v28 = vmul.f32 %v5627_v22, %v12594_v43  ;;  %v12790_v54 = vpop.f32.mrf.mxu0 }
 0xdfa   :  { %v5559_v25 = vmul.f32 %v5558_v5, %v12684_v4  ;;  %v12782_v19 = vmin.f32 %v5662_v20, 16.0  ;;  %v5433_v52 = vadd.f32 1.1283791, %v5432_v0  ;;  %v5526_v18 = vmul.f32 %v12763_v31, %v12720_v37 }
 0xdfb   :  { %v12786_v50 = vadd.f32 1.0, %v5643_v10  ;;  %v5598_v59 = vadd.f32 0.014752088, %v5597_v60  ;;  %v8454_v8 = vclamps-f32 %v5499_v27, 1.0  ;;  %vm5450_vm9 = vweird.f32 %v12656_v2 }
 0xdfc   :  { %v5456_v15 = vand.u32 2147483648, %v12656_v2  ;;  %v5585_v46 = vadd.f32 0.00028619796, %v5584_v55  ;;  %v5418_v7 = vsel %vm12769_vm7, %v5417_v11, %v5413_v42  ;;  %vm12796_vm10 = vmor %vm5450_vm9, %vm5451_vm8  ;;  %v5454_v22 = vand.u32 2147483647, %v12656_v2 }
 0xdfd   :  { %v5512_v5 = vmul.f32 %v5511_v3, %v12528_v24  ;;  %v5547_v20 = vadd.f32 0.0036580483, %v5546_v32  ;;  %v5453_v0 = vsel %vm12796_vm10, %v12703_v38, %v5449_v57  ;;  %v5629_v10 = vadd.f32 0.05243302, %v5628_v28 }
 0xdfe   :  { %v5560_v60 = vadd.f32 0.112945676, %v5559_v25  ;;  %v5675_v27 = vmul.f32 3.8918573e-05, %v12782_v19  ;;  %v5527_v29 = vsub.f32 1.0, %v5526_v18  ;;  %9112 = vrcp.f32 %v12786_v50 }
 0xdff   :  { %v5599_v33 = vmul.f32 %v5598_v59, %v12706_v23  ;;  %v12809_v11 = vmul.f32 0.70710677, %v12790_v54  ;;  %v7434_v24 = vadd.f32 1.0, %v8451_v36  ;;  %v7437_v2 = vadd.f32 1.0, %v8454_v8 }
 0xe00   :  { %v5457_v55 = vor.u32 1.1754944e-38, %v5456_v15  ;;  %v5586_v42 = vmul.f32 %v5585_v46, %v12706_v23  ;;  %v5419_v38 = vmul.f32 %v5418_v7, %v5394_v14  ;;  %vm5455_vm11 = vcmp.eq.f32.partialorder %v5454_v22, 8.507059e+37 }
 0xe01   :  { %v5513_v3 = vadd.f32 1.1283791, %v5512_v5  ;;  %v5548_v32 = vmul.f32 %v5547_v20, %v12684_v4  ;;  %v5630_v28 = vmul.f32 %v5629_v10, %v12594_v43  ;;  %v5561_v25 = vmul.f32 %v5560_v60, %v12684_v4  ;;  %v12836_v20 = vpop.f32.mrf.mxu3 }
 0xe02   :  { %v5458_v57 = vsel %vm5455_vm11, %v5457_v55, %v5453_v0  ;;  %v5676_v18 = vadd.f32 0.001143296, %v5675_v27  ;;  %v5434_v59 = vmul.f32 %v5433_v52, %v12421_v39  ;;  %v5528_v62 = vmul.f32 %v12763_v31, %v5527_v29 }
 0xe03   :  { %v5600_v36 = vadd.f32 0.112945676, %v5599_v33  ;;  %v5782_v8 = vmul.f32 %v12809_v11, %v12809_v11  ;;  %v12822_v14 = vmul.f32 %v7434_v24, %v12467_v49  ;;  %v12825_v15 = vmul.f32 %v7437_v2, %v12613_v30 }
 0xe04   :  { %v12828_v46 = vmul.f32 0.5, %v12652_v34  ;;  %v5587_v7 = vadd.f32 0.0036580483, %v5586_v42  ;;  %v12830_v26 = vpop.eup %9112  ;;  %v5459_v22 = vmul.f32 %v5458_v57, %v5434_v59  ;;  %v5514_v39 = vmul.f32 %v5513_v3, %v12482_v45 }
 0xe05   :  { %15646 = vst [vmem:[#allocation21_spill] sm:$0xff] %v12822_v14  ;;  %v5549_v52 = vadd.f32 0.05243302, %v5548_v32  ;;  %v12834_v5 = vmul.f32 0.5, %v12733_v35  ;;  %v8452_v49 = vclamps-f32 %v5419_v38, 1.0  ;;  %v5677_v30 = vmul.f32 %v5676_v18, %v12782_v19 }
 0xe06   :  { %15647 = vst [vmem:[#allocation25_spill] sm:$0xff] %v12825_v15  ;;  %v5631_v0 = vadd.f32 0.18741608, %v5630_v28  ;;  %v5562_v10 = vadd.f32 0.4994258, %v5561_v25  ;;  %v5529_v34 = vadd.f32 %v12763_v31, %v5528_v62  ;;  %vm5531_vm12 = vweird.f32 %v12763_v31  ;;  %v12860_v28 = vpop.f32.mrf.mxu2  ;;  %v4087_v62 = vpop.xlane.xlu2 %4086 }
 0xe07   :  { %v5601_v60 = vmul.f32 %v5600_v36, %v12706_v23  ;;  %v12842_v27 = vmin.f32 %v5782_v8, 16.0  ;;  %v5536_v45 = vand.u32 2147483648, %v12720_v37  ;;  %v5646_v35 = vmul.f32 %v12830_v26, %v12786_v50 }
 0xe08   :  { %v5588_v29 = vmul.f32 %v5587_v7, %v12706_v23  ;;  %v12849_v33 = vmul.f32 0.70710677, %v12836_v20  ;;  %v8453_v24 = vclamps-f32 %v5459_v22, 1.0  ;;  %vm5530_vm13 = vweird.f32 %v12720_v37 }
 0xe09   :  { %v5534_v2 = vand.u32 2147483647, %v12720_v37  ;;  %v5550_v55 = vmul.f32 %v5549_v52, %v12684_v4  ;;  %v7435_v42 = vadd.f32 1.0, %v8452_v49  ;;  %vm12854_vm14 = vmor %vm5530_vm13, %vm5531_vm12  ;;  %v5632_v3 = vmul.f32 %v5631_v0, %v12594_v43 }
 0xe0a   :  { %v5563_v32 = vmul.f32 %v5562_v10, %v12684_v4  ;;  %v5678_v57 = vadd.f32 0.014752088, %v5677_v30  ;;  %v5533_v25 = vsel %vm12854_vm14, %v12763_v31, %v5529_v34  ;;  %v5602_v18 = vadd.f32 0.4994258, %v5601_v60 }
 0xe0b   :  { %v5664_v37 = vmul.f32 2.1237322e-06, %v12782_v19  ;;  %v5795_v59 = vmul.f32 3.8918573e-05, %v12842_v27  ;;  %v5537_v36 = vor.u32 1.1754944e-38, %v5536_v45  ;;  %v5647_v8 = vsub.f32 1.0, %v5646_v35 }
 0xe0c   :  { %v5589_v7 = vadd.f32 0.05243302, %v5588_v29  ;;  %v5702_v43 = vmul.f32 %v12849_v33, %v12849_v33  ;;  %v7436_v22 = vadd.f32 1.0, %v8453_v24  ;;  %vm5535_vm15 = vcmp.eq.f32.partialorder %v5534_v2, 8.507059e+37 }
 0xe0d   :  { %v5551_v52 = vadd.f32 0.18741608, %v5550_v55  ;;  %v12870_v49 = vmul.f32 0.70710677, %v12860_v28  ;;  %v5538_v0 = vsel %vm5535_vm15, %v5537_v36, %v5533_v25  ;;  %v12872_v31 = vadd.f32 1.0, %v5563_v32 }
 0xe0e   :  { %v5679_v10 = vmul.f32 %v5678_v57, %v12782_v19  ;;  %v4105_v30 = vmul.f32 %v4087_v62, %v15554_v1  ;;  %v5633_v34 = vadd.f32 1.1283791, %v5632_v3  ;;  %v5603_v60 = vmul.f32 %v5602_v18, %v12706_v23 }
 0xe0f   :  { %v5665_v45 = vadd.f32 0.00028619796, %v5664_v37  ;;  %v5796_v35 = vadd.f32 0.001143296, %v5795_v59  ;;  %v5648_v29 = vmul.f32 %v12830_v26, %v5647_v8  ;;  %v5590_v24 = vmul.f32 %v5589_v7, %v12706_v23 }
 0xe10   :  { %v12879_v2 = vmin.f32 %v5702_v43, 16.0  ;;  %v5742_v55 = vmul.f32 %v12870_v49, %v12870_v49  ;;  %v5539_v38 = vmul.f32 %v5538_v0, %v5514_v39  ;;  %v5654_v32 = vand.u32 2147483647, %v12786_v50 }
 0xe11   :  { %v5656_v57 = vand.u32 2147483648, %v12786_v50  ;;  %v12885_v25 = vadd.f32 1e-05, %v4105_v30  ;;  %v5552_v3 = vmul.f32 %v5551_v52, %v12684_v4  ;;  %9114 = vrcp.f32 %v12872_v31 }
 0xe12   :  { %v5680_v18 = vadd.f32 0.112945676, %v5679_v10  ;;  %v12889_v37 = vmin.f32 %v5742_v55, 16.0  ;;  %v12891_v59 = vadd.f32 1.0, %v5603_v60  ;;  %v5666_v62 = vmul.f32 %v5665_v45, %v12782_v19 }
 0xe13   :  { %v5797_v36 = vmul.f32 %v5796_v35, %v12842_v27  ;;  %9116 = vrsqrt.f32 %v12885_v25  ;;  %v5649_v39 = vadd.f32 %v12830_v26, %v5648_v29  ;;  %vm5651_vm0 = vweird.f32 %v12830_v26 }
 0xe14   :  { %v5591_v8 = vadd.f32 0.18741608, %v5590_v24  ;;  %v5715_v4 = vmul.f32 3.8918573e-05, %v12879_v2  ;;  %v12900_v7 = vmul.f32 %v7435_v42, %v12633_v56  ;;  %v12903_v43 = vmul.f32 %v7436_v22, %v12639_v12 }
 0xe15   :  { %v8455_v52 = vclamps-f32 %v5539_v38, 1.0  ;;  %v5755_v0 = vmul.f32 3.8918573e-05, %v12889_v37  ;;  %v5634_v10 = vmul.f32 %v5633_v34, %v12558_v47  ;;  %vm5650_vm1 = vweird.f32 %v12786_v50 }
 0xe16   :  { %15650 = vst [vmem:[#allocation42_spill] sm:$0xff] %v12900_v7  ;;  %v5553_v30 = vadd.f32 1.1283791, %v5552_v3  ;;  %v5681_v60 = vmul.f32 %v5680_v18, %v12782_v19  ;;  %vm12909_vm2 = vmor %vm5650_vm1, %vm5651_vm0  ;;  %vm12913_vm3 = vcmp.eq.f32.partialorder %v5654_v32, 8.507059e+37  ;;  %9118 = vrcp.f32 %v12891_v59 }
 0xe17   :  { %15651 = vst [vmem:[#allocation41_spill] sm:$0xff] %v12903_v43  ;;  %v5667_v12 = vadd.f32 0.0036580483, %v5666_v62  ;;  %v5798_v42 = vadd.f32 0.014752088, %v5797_v36  ;;  %v12918_v22 = vpop.eup %9114  ;;  %v5653_v47 = vsel %vm12909_vm2, %v12830_v26, %v5649_v39  ;;  %v5657_v50 = vor.u32 1.1754944e-38, %v5656_v57 }
 0xe18   :  { %v5592_v34 = vmul.f32 %v5591_v8, %v12706_v23  ;;  %v5716_v35 = vadd.f32 0.001143296, %v5715_v4  ;;  %v7438_v24 = vadd.f32 1.0, %v8455_v52  ;;  %v5576_v55 = vand.u32 2147483648, %v12872_v31  ;;  %v4089_v23 = vpop.xlane.xlu0 %4088 }
 0xe19   :  { %v12924_v29 = vpop.eup %9116  ;;  %v12928_v38 = vmul.f32 0.5, %v12790_v54  ;;  %v5756_v32 = vadd.f32 0.001143296, %v5755_v0  ;;  %v12931_v3 = vmul.f32 %v5553_v30, %v12642_v21  ;;  %v5682_v18 = vadd.f32 0.4994258, %v5681_v60  ;;  %v4091_v0 = vpop.xlane.xlu1 %4090 }
 0xe1a   :  { %v5784_v62 = vmul.f32 2.1237322e-06, %v12842_v27  ;;  %v4255_v26 = vmul.f32 %v12924_v29, %v12885_v25  ;;  %v5658_v57 = vsel %vm12913_vm3, %v5657_v50, %v5653_v47  ;;  %v5668_v39 = vmul.f32 %v5667_v12, %v12782_v19 }
 0xe1b   :  { %v5799_v54 = vmul.f32 %v5798_v42, %v12842_v27  ;;  %v5566_v21 = vmul.f32 %v12918_v22, %v12872_v31  ;;  %v5593_v8 = vadd.f32 1.1283791, %v5592_v34  ;;  %v5717_v4 = vmul.f32 %v5716_v35, %v12879_v2 }
 0xe1c   :  { %v4256_v52 = vmul.f32 %v12924_v29, %v4255_v26  ;;  %v12945_v30 = vpop.eup %9118  ;;  %v12948_v60 = vmul.f32 %v7438_v24, %v12676_v6  ;;  %v12950_v45 = vor.u32 1.1754944e-38, %v5576_v55  ;;  %v5757_v56 = vmul.f32 %v5756_v32, %v12889_v37 }
 0xe1d   :  { %v4106_v12 = vmul.f32 %v4089_v23, %v15554_v1  ;;  %v5659_v42 = vmul.f32 %v5658_v57, %v5634_v10  ;;  %v5683_v47 = vmul.f32 %v5682_v18, %v12782_v19  ;;  %v5785_v50 = vadd.f32 0.00028619796, %v5784_v62 }
 0xe1e   :  { %15656 = vst [vmem:[#allocation38_spill] sm:$0xff] %v12948_v60  ;;  %v4257_v34 = vmul.f32 0.5, %v4256_v52  ;;  %v5669_v35 = vadd.f32 0.05243302, %v5668_v39  ;;  %v5800_v36 = vadd.f32 0.112945676, %v5799_v54  ;;  %v4107_v15 = vmul.f32 %v4091_v0, %v15554_v1 }
 0xe1f   :  { %v12956_v26 = vmul.f32 0.5, %v12836_v20  ;;  %v5567_v6 = vsub.f32 1.0, %v5566_v21  ;;  %v12960_v24 = vmul.f32 %v5593_v8, %v12665_v9  ;;  %v5606_v55 = vmul.f32 %v12945_v30, %v12891_v59  ;;  %v8710_v54 = vld [vmem:[#allocation8 + $0x78] sm:$0xff] }
 0xe20   :  { %v5718_v32 = vadd.f32 0.014752088, %v5717_v4  ;;  %v5758_v10 = vadd.f32 0.014752088, %v5757_v56  ;;  %v4258_v23 = vsub.f32 1.5, %v4257_v34  ;;  %vm4261_vm4 = vweird.f32 %v12924_v29  ;;  %v8718_v8 = vld [vmem:[#allocation8 + $0xb8] sm:$0xff]  ;;  %7887 = vmatpush.bf16.msra.mxu3 %v8710_v54 }
 0xe21   :  { %v12965_v18 = vadd.f32 1e-05, %v4106_v12  ;;  %v8458_v62 = vclamps-f32 %v5659_v42, 1.0  ;;  %v12967_v57 = vadd.f32 1.0, %v5683_v47  ;;  %v5786_v20 = vmul.f32 %v5785_v50, %v12842_v27  ;;  %v8702_v4 = vld [vmem:[#allocation8 + $0x38] sm:$0xff]  ;;  %7936 = vmatpush.bf16.msra.mxu2 %v8718_v8  ;;  %v8709_v42 = vld [vmem:[#allocation8 + $0x70] sm:$0xff]  ;;  %v12986_v50 = vpop.f32.mrf.mxu1 }
 0xe22   :  { %v12970_v1 = vadd.f32 1e-05, %v4107_v15  ;;  %vm5570_vm5 = vweird.f32 %v12872_v31  ;;  %v5670_v9 = vmul.f32 %v5669_v35, %v12782_v19  ;;  %v5801_v39 = vmul.f32 %v5800_v36, %v12842_v27  ;;  %v8726_v56 = vld [vmem:[#allocation8 + $0xf8] sm:$0xff]  ;;  %v8717_v47 = vld [vmem:[#allocation8 + $0xb0] sm:$0xff]  ;;  %7838 = vmatpush.bf16.msra.mxu1 %v8702_v4  ;;  %v13002_v4 = vld [vmem:[%s15365_s5] ss:$0 sm:$0xff] }
 0xe23   :  { %v4259_v21 = vmul.f32 %v12924_v29, %v4258_v23  ;;  %vm4260_vm6 = vweird.f32 %v12885_v25  ;;  %v5568_v52 = vmul.f32 %v12918_v22, %v5567_v6  ;;  %v5614_v0 = vand.u32 2147483647, %v12891_v59  ;;  %v15657_v6 = vld [vmem:[#allocation34_spill] sm:$0xff]  ;;  %7985 = vmatpush.bf16.msrb.mxu0 %v8726_v56 }
 0xe24   :  { %v5719_v15 = vmul.f32 %v5718_v32, %v12879_v2  ;;  %vm4262_vm7 = vmor %vm4260_vm6, %vm4261_vm4  ;;  %9120 = vrsqrt.f32 %v12970_v1  ;;  %v5607_v36 = vsub.f32 1.0, %v5606_v55  ;;  %v5759_v12 = vmul.f32 %v5758_v10, %v12889_v37  ;;  %v8701_v55 = vld [vmem:[#allocation8 + $0x30] sm:$0xff]  ;;  %7888 = vmatpush.bf16.msra.mxu3 %v8709_v42 }
 0xe25   :  { %v4263_v25 = vsel %vm4262_vm7, %v12924_v29, %v4259_v21  ;;  %9122 = vrsqrt.f32 %v12965_v18  ;;  %v5787_v34 = vadd.f32 0.0036580483, %v5786_v20  ;;  %v5704_v35 = vmul.f32 2.1237322e-06, %v12879_v2  ;;  %v8725_v10 = vld [vmem:[#allocation8 + $0xf0] sm:$0xff]  ;;  %7937 = vmatpush.bf16.msra.mxu2 %v8717_v47 }
 0xe26   :  { %9124 = vrcp.f32 %v12967_v57  ;;  %v4297_v32 = vmul.f32 %v4263_v25, %v15657_v6  ;;  %v7441_v23 = vadd.f32 1.0, %v8458_v62  ;;  %v15658_v29 = vand.u32 2147483647, %v12872_v31  ;;  %7839 = vmatpush.bf16.msra.mxu1 %v8701_v55 }
 0xe27   :  { %vm5610_vm9 = vweird.f32 %v12891_v59  ;;  %v5616_v21 = vand.u32 2147483648, %v12891_v59  ;;  %v5671_v20 = vadd.f32 0.18741608, %v5670_v9  ;;  %v5802_v8 = vadd.f32 0.4994258, %v5801_v39  ;;  %7986 = vmatpush.bf16.msrb.mxu0 %v8725_v10 }
 0xe28   :  { %vm12993_vm8 = vcmp.eq.f32.partialorder %v15658_v29, 8.507059e+37  ;;  %v5720_v60 = vadd.f32 0.112945676, %v5719_v15  ;;  %v4315_v62 = vmul.f32 %v13002_v4, %v12440_v17  ;;  %v4316_v56 = vmul.f32 %v13002_v4, %v4297_v32  ;;  %v8708_v15 = vld [vmem:[#allocation8 + $0x68] sm:$0xff] }
 0xe29   :  { %v13008_v25 = vmul.f32 0.70710677, %v12986_v50  ;;  %v5569_v6 = vadd.f32 %v12918_v22, %v5568_v52  ;;  %vm5571_vm10 = vweird.f32 %v12918_v22  ;;  %v5608_v9 = vmul.f32 %v12945_v30, %v5607_v36  ;;  %v13022_v52 = vld [vmem:[%s15366_s6] ss:$0 sm:$0xff]  ;;  %7889 = vmatpush.bf16.msra.mxu3 %v8708_v15  ;;  %s9374_s6 = smov [#allocation10]  }
 0xe2a   :  { %v5760_v39 = vadd.f32 0.112945676, %v5759_v12  ;;  %v13013_v29 = vpop.eup %9120  ;;  %v5788_v48 = vmul.f32 %v5787_v34, %v12842_v27  ;;  %v5705_v17 = vadd.f32 0.00028619796, %v5704_v35  ;;  %v13017_v32 = vmul.f32 0.5, %v12860_v28  ;;  %vm13040_vm11 = vmor %vm5570_vm5, %vm5571_vm10  ;;  %s8070_s27 = sshll.u32 %s9374_s6, 4  ;;  %s8071_s27 = int_to_ptr.vmem [resolvable:$true] %s8070_s27 }
 0xe2b   :  { %v4335_v36 = vadd.f32 %v13022_v52, %v4316_v56  ;;  %v13025_v12 = vpop.eup %9122  ;;  %v5617_v42 = vor.u32 1.1754944e-38, %v5616_v21  ;;  %v5672_v47 = vmul.f32 %v5671_v20, %v12782_v19  ;;  %v5803_v34 = vmul.f32 %v5802_v8, %v12842_v27  ;;  %7987 = vmatpush.bf16.msrb.mxu0 %v8724_v13 }
 0xe2c   :  { %v5822_v28 = vmul.f32 %v13008_v25, %v13008_v25  ;;  %v13031_v35 = vpop.eup %9124  ;;  %v13034_v55 = vmul.f32 %v7441_v23, %v12692_v63  ;;  %vm5611_vm12 = vweird.f32 %v12945_v30  ;;  %vm13045_vm13 = vcmp.eq.f32.partialorder %v5614_v0, 8.507059e+37 }
 0xe2d   :  { %v5721_v21 = vmul.f32 %v5720_v60, %v12879_v2  ;;  %v4334_v20 = vadd.f32 %v13022_v52, %v4315_v62  ;;  %v5573_v63 = vsel %vm13040_vm11, %v12918_v22, %v5569_v6  ;;  %v5609_v31 = vadd.f32 %v12945_v30, %v5608_v9  ;;  %v13061_v62 = vpop.f32.mrf.mxu0  ;;  %vm13076_vm14 = vmor %vm5610_vm9, %vm5611_vm12 }
 0xe2e   :  { %15661 = vst [vmem:[#allocation47_spill] sm:$0xff] %v13034_v55  ;;  %v5761_v23 = vmul.f32 %v5760_v39, %v12889_v37  ;;  %v4275_v8 = vmul.f32 %v13013_v29, %v12970_v1  ;;  %v5789_v0 = vadd.f32 0.05243302, %v5788_v48  ;;  %v5706_v56 = vmul.f32 %v5705_v17, %v12879_v2 }
 0xe2f   :  { %v4265_v60 = vmul.f32 %v13025_v12, %v12965_v18  ;;  %v4344_v55 = vpack.c.bf16 %v4335_v36, %v4334_v20  ;;  %v5673_v43 = vadd.f32 1.1283791, %v5672_v47  ;;  %v5686_v22 = vmul.f32 %v13031_v35, %v12967_v57  ;;  %v8716_v20 = vld [vmem:[#allocation8 + $0xa8] sm:$0xff] }
 0xe30   :  { %v13065_v6 = vadd.f32 1.0, %v5803_v34  ;;  %v13067_v9 = vmin.f32 %v5822_v28, 16.0  ;;  %v5578_v48 = vsel %vm12993_vm8, %v12950_v45, %v5573_v63  ;;  %v5722_v15 = vadd.f32 0.4994258, %v5721_v21  ;;  %v8700_v63 = vld [vmem:[#allocation8 + $0x28] sm:$0xff]  ;;  %7938 = vmatpush.bf16.msra.mxu2 %v8716_v20 }
 0xe31   :  { %v5744_v17 = vmul.f32 2.1237322e-06, %v12889_v37  ;;  %4576 = vmatmul.bf16.gmra.mxu1 %v4344_v55  ;;  %4625 = vmatmul.bf16.gmra.mxu3 %v4344_v55  ;;  %v13082_v36 = vmul.f32 0.70710677, %v13061_v62  ;;  %v5613_v45 = vsel %vm13076_vm14, %v12945_v30, %v5609_v31  ;;  %v5762_v54 = vadd.f32 0.4994258, %v5761_v23 }
 0xe32   :  { %v4276_v47 = vmul.f32 %v13013_v29, %v4275_v8  ;;  %4674 = vmatmul.bf16.gmra.mxu2 %v4344_v55  ;;  %4723 = vmatmul.bf16.gmra.mxu0 %v4344_v55  ;;  %v5835_v59 = vmul.f32 3.8918573e-05, %v13067_v9  ;;  %v5790_v34 = vmul.f32 %v5789_v0, %v12842_v27  ;;  %v5707_v28 = vadd.f32 0.0036580483, %v5706_v56 }
 0xe33   :  { %v4266_v10 = vmul.f32 %v13025_v12, %v4265_v60  ;;  %v5942_v21 = vmul.f32 %v13082_v36, %v13082_v36  ;;  %v5579_v30 = vmul.f32 %v5578_v48, %v12931_v3  ;;  %v5687_v31 = vsub.f32 1.0, %v5686_v22  ;;  %7840 = vmatpush.bf16.msra.mxu1 %v8700_v63  ;;  %v13099_v60 = vpop.f32.mrf.mxu3 }
 0xe34   :  { %v5696_v23 = vand.u32 2147483648, %v12967_v57  ;;  %9126 = vrcp.f32 %v13065_v6  ;;  %v5723_v55 = vmul.f32 %v5722_v15, %v12879_v2  ;;  %v5745_v8 = vadd.f32 0.00028619796, %v5744_v17 }
 0xe35   :  { %v5836_v0 = vadd.f32 0.001143296, %v5835_v59  ;;  %v13097_v56 = vmin.f32 %v5942_v21, 16.0  ;;  %v5618_v39 = vsel %vm13045_vm13, %v5617_v42, %v5613_v45  ;;  %v5694_v3 = vand.u32 2147483647, %v12967_v57 }
 0xe36   :  { %v5763_v22 = vmul.f32 %v5762_v54, %v12889_v37  ;;  %v4277_v48 = vmul.f32 0.5, %v4276_v47  ;;  %v5791_v7 = vadd.f32 0.18741608, %v5790_v34  ;;  %v5708_v15 = vmul.f32 %v5707_v28, %v12879_v2 }
 0xe37   :  { %v4267_v17 = vmul.f32 0.5, %v4266_v10  ;;  %v5837_v59 = vmul.f32 %v5836_v0, %v13067_v9  ;;  %v8456_v21 = vclamps-f32 %v5579_v30, 1.0  ;;  %v13108_v20 = vmul.f32 %v5673_v43, %v12745_v44  ;;  %v8699_v0 = vld [vmem:[#allocation8 + $0x20] sm:$0xff] }
 0xe38   :  { %v5955_v63 = vmul.f32 3.8918573e-05, %v13097_v56  ;;  %v13112_v42 = vmul.f32 0.70710677, %v13099_v60  ;;  %v5688_v19 = vmul.f32 %v13031_v35, %v5687_v31  ;;  %v5697_v45 = vor.u32 1.1754944e-38, %v5696_v23  ;;  %7841 = vmatpush.bf16.msra.mxu1 %v8699_v0 }
 0xe39   :  { %v13115_v54 = vadd.f32 1.0, %v5723_v55  ;;  %v5746_v13 = vmul.f32 %v5745_v8, %v12889_v37  ;;  %v13121_v34 = vmul.f32 %v5618_v39, %v12960_v24  ;;  %v13123_v28 = vadd.f32 1.0, %v5763_v22  ;;  %v8707_v39 = vld [vmem:[#allocation8 + $0x60] sm:$0xff] }
 0xe3a   :  { %v13118_v47 = vpop.eup %9126  ;;  %v4278_v44 = vsub.f32 1.5, %v4277_v48  ;;  %v5862_v43 = vmul.f32 %v13112_v42, %v13112_v42  ;;  %vm13127_vm15 = vcmp.eq.f32.partialorder %v5694_v3, 8.507059e+37  ;;  %v5792_v30 = vmul.f32 %v5791_v7, %v12842_v27  ;;  %v8715_v22 = vld [vmem:[#allocation8 + $0xa0] sm:$0xff]  ;;  %7890 = vmatpush.bf16.msra.mxu3 %v8707_v39 }
 0xe3b   :  { %v5709_v31 = vadd.f32 0.05243302, %v5708_v15  ;;  %v4268_v23 = vsub.f32 1.5, %v4267_v17  ;;  %v5838_v55 = vadd.f32 0.014752088, %v5837_v59  ;;  %vm5690_vm0 = vweird.f32 %v12967_v57  ;;  %7939 = vmatpush.bf16.msra.mxu2 %v8715_v22  ;;  %v15676_v57 = vld [vmem:[#allocation28_spill] sm:$0xff] }
 0xe3c   :  { %vm5691_vm1 = vweird.f32 %v13031_v35  ;;  %v5956_v24 = vadd.f32 0.001143296, %v5955_v63  ;;  %v13134_v8 = vmin.f32 %v5862_v43, 16.0  ;;  %v5689_v3 = vadd.f32 %v13031_v35, %v5688_v19  ;;  %v13148_v19 = vpop.f32.mrf.mxu2 }
 0xe3d   :  { %v5806_v48 = vmul.f32 %v13118_v47, %v13065_v6  ;;  %9128 = vrcp.f32 %v13115_v54  ;;  %v5747_v27 = vadd.f32 0.0036580483, %v5746_v13  ;;  %v4279_v7 = vmul.f32 %v13013_v29, %v4278_v44  ;;  %v8723_v13 = vld [vmem:[#allocation8 + $0xe0] sm:$0xff]  ;;  %vm13154_vm4 = vmor %vm5690_vm0, %vm5691_vm1 }
 0xe3e   :  { %9130 = vrcp.f32 %v13123_v28  ;;  %vm4281_vm2 = vweird.f32 %v13013_v29  ;;  %v5875_v15 = vmul.f32 3.8918573e-05, %v13134_v8  ;;  %v13144_v17 = vadd.f32 1.0, %v8456_v21  ;;  %7988 = vmatpush.bf16.msrb.mxu0 %v8723_v13  ;;  %7891 = vmatpush.bf16.msra.mxu3 %v8706_v58  ;;  %v8697_v58 = vld [vmem:[#allocation8 + $0x10] sm:$0xff] }
 0xe3f   :  { %v5793_v63 = vadd.f32 1.1283791, %v5792_v30  ;;  %vm4271_vm3 = vweird.f32 %v13025_v12  ;;  %v4269_v21 = vmul.f32 %v13025_v12, %v4268_v23  ;;  %vm4280_vm5 = vweird.f32 %v12970_v1 }
 0xe40   :  { %v5839_v43 = vmul.f32 %v5838_v55, %v13067_v9  ;;  %v5957_v30 = vmul.f32 %v5956_v24, %v13097_v56  ;;  %v5693_v0 = vsel %vm13154_vm4, %v13031_v35, %v5689_v3  ;;  %v5807_v39 = vsub.f32 1.0, %v5806_v48  ;;  %vm13168_vm6 = vmor %vm4280_vm5, %vm4281_vm2 }
 0xe41   :  { %v5748_v22 = vmul.f32 %v5747_v27, %v12889_v37  ;;  %v5876_v23 = vadd.f32 0.001143296, %v5875_v15  ;;  %v5710_v1 = vmul.f32 %v5709_v31, %v12879_v2  ;;  %vm4270_vm7 = vweird.f32 %v12965_v18 }
 0xe42   :  { %v4283_v55 = vsel %vm13168_vm6, %v13013_v29, %v4279_v7  ;;  %v13178_v35 = vmul.f32 0.70710677, %v13148_v19  ;;  %v13183_v3 = vmul.f32 %v5793_v63, %v12809_v11  ;;  %v5814_v48 = vand.u32 2147483647, %v13065_v6  ;;  %vm13189_vm8 = vmor %vm4270_vm7, %vm4271_vm3 }
 0xe43   :  { %v13180_v24 = vpop.eup %9128  ;;  %v5816_v27 = vand.u32 2147483648, %v13065_v6  ;;  %v5824_v29 = vmul.f32 2.1237322e-06, %v13067_v9  ;;  %v5698_v7 = vsel %vm13127_vm15, %v5697_v45, %v5693_v0  ;;  %v4273_v11 = vsel %vm13189_vm8, %v13025_v12, %v4269_v21  ;;  %v8722_v12 = vld [vmem:[#allocation8 + $0xd8] sm:$0xff] }
 0xe44   :  { %v13194_v31 = vpop.eup %9130  ;;  %v5840_v15 = vadd.f32 0.112945676, %v5839_v43  ;;  %v5958_v63 = vadd.f32 0.014752088, %v5957_v30  ;;  %v5808_v13 = vmul.f32 %v13118_v47, %v5807_v39  ;;  %v5749_v44 = vadd.f32 0.05243302, %v5748_v22  ;;  %7989 = vmatpush.bf16.msrb.mxu0 %v8722_v12 }
 0xe45   :  { %v4299_v59 = vmul.f32 %v4283_v55, %v15676_v57  ;;  %v5877_v61 = vmul.f32 %v5876_v23, %v13134_v8  ;;  %vm5810_vm9 = vweird.f32 %v13065_v6  ;;  %v5711_v14 = vadd.f32 0.18741608, %v5710_v1  ;;  %v15679_v30 = vld [vmem:[#allocation29_spill] sm:$0xff]  ;;  %v13222_v55 = vpop.f32.mrf.mxu1 }
 0xe46   :  { %v5726_v10 = vmul.f32 %v13180_v24, %v13115_v54  ;;  %v5902_v45 = vmul.f32 %v13178_v35, %v13178_v35  ;;  %vm13209_vm10 = vcmp.eq.f32.partialorder %v5814_v48, 8.507059e+37  ;;  %v5817_v21 = vor.u32 1.1754944e-38, %v5816_v27 }
 0xe47   :  { %v5766_v43 = vmul.f32 %v13194_v31, %v13123_v28  ;;  %v4298_v0 = vmul.f32 %v4273_v11, %v15679_v30  ;;  %v5825_v39 = vadd.f32 0.00028619796, %v5824_v29  ;;  %v13217_v22 = vmul.f32 %v5698_v7, %v13108_v20 }
 0xe48   :  { %vm5811_vm11 = vweird.f32 %v13118_v47  ;;  %v5841_v23 = vmul.f32 %v5840_v15, %v13067_v9  ;;  %v5959_v1 = vmul.f32 %v5958_v63, %v13097_v56  ;;  %v5809_v48 = vadd.f32 %v13118_v47, %v5808_v13 }
 0xe49   :  { %v5750_v27 = vmul.f32 %v5749_v44, %v12889_v37  ;;  %v5878_v18 = vadd.f32 0.014752088, %v5877_v61  ;;  %v4318_v57 = vmul.f32 %v13002_v4, %v4299_v59  ;;  %v5712_v29 = vmul.f32 %v5711_v14, %v12879_v2  ;;  %vm13241_vm12 = vmor %vm5810_vm9, %vm5811_vm11 }
 0xe4a   :  { %v5727_v11 = vsub.f32 1.0, %v5726_v10  ;;  %v5734_v20 = vand.u32 2147483647, %v13115_v54  ;;  %v13229_v7 = vmin.f32 %v5902_v45, 16.0  ;;  %v5767_v30 = vsub.f32 1.0, %v5766_v43 }
 0xe4b   :  { %v5826_v15 = vmul.f32 %v5825_v39, %v13067_v9  ;;  %v13233_v63 = vmul.f32 0.70710677, %v13222_v55  ;;  %v4317_v13 = vmul.f32 %v13002_v4, %v4298_v0  ;;  %v5736_v14 = vand.u32 2147483648, %v13115_v54 }
 0xe4c   :  { %v5842_v2 = vadd.f32 0.4994258, %v5841_v23  ;;  %v5960_v59 = vadd.f32 0.112945676, %v5959_v1  ;;  %v5813_v10 = vsel %vm13241_vm12, %v13118_v47, %v5809_v48  ;;  %v5751_v45 = vadd.f32 0.18741608, %v5750_v27 }
 0xe4d   :  { %v5879_v4 = vmul.f32 %v5878_v18, %v13134_v8  ;;  %v4337_v43 = vadd.f32 %v13022_v52, %v4318_v57  ;;  %v13251_v0 = vadd.f32 1.1283791, %v5712_v29  ;;  %v5728_v6 = vmul.f32 %v13180_v24, %v5727_v11  ;;  %v8698_v11 = vld [vmem:[#allocation8 + $0x18] sm:$0xff] }
 0xe4e   :  { %v5915_v39 = vmul.f32 3.8918573e-05, %v13229_v7  ;;  %v5982_v44 = vmul.f32 %v13233_v63, %v13233_v63  ;;  %v5768_v23 = vmul.f32 %v13194_v31, %v5767_v30  ;;  %v5827_v1 = vadd.f32 0.0036580483, %v5826_v15  ;;  %7842 = vmatpush.bf16.msra.mxu1 %v8698_v11 }
 0xe4f   :  { %v5944_v61 = vmul.f32 2.1237322e-06, %v13097_v56  ;;  %v4336_v47 = vadd.f32 %v13022_v52, %v4317_v13  ;;  %v5818_v48 = vsel %vm13209_vm10, %v5817_v21, %v5813_v10  ;;  %vm13262_vm13 = vcmp.eq.f32.partialorder %v5734_v20, 8.507059e+37  ;;  %v8714_v13 = vld [vmem:[#allocation8 + $0x98] sm:$0xff] }
 0xe50   :  { %v5737_v18 = vor.u32 1.1754944e-38, %v5736_v14  ;;  %v5843_v57 = vmul.f32 %v5842_v2, %v13067_v9  ;;  %v5961_v29 = vmul.f32 %v5960_v59, %v13097_v56  ;;  %vm5731_vm14 = vweird.f32 %v13180_v24  ;;  %7940 = vmatpush.bf16.msra.mxu2 %v8714_v13 }
 0xe51   :  { %v5752_v30 = vmul.f32 %v5751_v45, %v12889_v37  ;;  %v5880_v15 = vadd.f32 0.112945676, %v5879_v4  ;;  %v4345_v52 = vpack.c.bf16 %v4337_v43, %v4336_v47  ;;  %v5729_v21 = vadd.f32 %v13180_v24, %v5728_v6  ;;  %v13277_v45 = vpop.f32.mrf.mxu0  ;;  %v8705_v6 = vld [vmem:[#allocation8 + $0x50] sm:$0xff]  ;;  %v8695_v47 = vld [vmem:[#allocation8] sm:$0xff] }
 0xe52   :  { %vm5771_vm15 = vweird.f32 %v13194_v31  ;;  %v5916_v20 = vadd.f32 0.001143296, %v5915_v39  ;;  %v13272_v14 = vmin.f32 %v5982_v44, 16.0  ;;  %v5769_v2 = vadd.f32 %v13194_v31, %v5768_v23  ;;  %7843 = vmatpush.bf16.msra.mxu1 %v8697_v58  ;;  %7892 = vmatpush.bf16.msra.mxu3 %v8705_v6  ;;  %v8704_v23 = vld [vmem:[#allocation8 + $0x48] sm:$0xff] }
 0xe53   :  { %v5828_v59 = vmul.f32 %v5827_v1, %v13067_v9  ;;  %v5945_v10 = vadd.f32 0.00028619796, %v5944_v61  ;;  %v5864_v37 = vmul.f32 2.1237322e-06, %v13134_v8  ;;  %4581 = vmatmul.bf16.gmra.mxu1 %v4345_v52  ;;  %4630 = vmatmul.bf16.gmra.mxu3 %v4345_v52  ;;  %vm5730_vm0 = vweird.f32 %v13115_v54  ;;  %v8713_v61 = vld [vmem:[#allocation8 + $0x90] sm:$0xff] }
 0xe54   :  { %v5776_v4 = vand.u32 2147483648, %v13123_v28  ;;  %v13281_v43 = vadd.f32 1.0, %v5843_v57  ;;  %v5962_v44 = vadd.f32 0.4994258, %v5961_v29  ;;  %4679 = vmatmul.bf16.gmra.mxu2 %v4345_v52  ;;  %4728 = vmatmul.bf16.gmra.mxu0 %v4345_v52  ;;  %v13284_v39 = vmul.f32 %v5818_v48, %v13183_v3  ;;  %vm13288_vm1 = vmor %vm5730_vm0, %vm5731_vm14  ;;  %v8721_v29 = vld [vmem:[#allocation8 + $0xd0] sm:$0xff] }
 0xe55   :  { %vm5770_vm2 = vweird.f32 %v13123_v28  ;;  %v5774_v54 = vand.u32 2147483647, %v13123_v28  ;;  %v5881_v1 = vmul.f32 %v5880_v15, %v13134_v8  ;;  %v5733_v3 = vsel %vm13288_vm1, %v13180_v24, %v5729_v21  ;;  %7941 = vmatpush.bf16.msra.mxu2 %v8713_v61  ;;  %7990 = vmatpush.bf16.msrb.mxu0 %v8721_v29 }
 0xe56   :  { %vm13300_vm3 = vmor %vm5770_vm2, %vm5771_vm15  ;;  %v5917_v48 = vmul.f32 %v5916_v20, %v13229_v7  ;;  %v5995_v57 = vmul.f32 3.8918573e-05, %v13272_v14  ;;  %v13307_v28 = vmul.f32 0.70710677, %v13277_v45  ;;  %v5753_v11 = vadd.f32 1.1283791, %v5752_v30  ;;  %7893 = vmatpush.bf16.msra.mxu3 %v8704_v23 }
 0xe57   :  { %v5773_v24 = vsel %vm13300_vm3, %v13194_v31, %v5769_v2  ;;  %v5829_v15 = vadd.f32 0.05243302, %v5828_v59  ;;  %v5946_v52 = vmul.f32 %v5945_v10, %v13097_v56  ;;  %v5777_v13 = vor.u32 1.1754944e-38, %v5776_v4  ;;  %v8696_v20 = vld [vmem:[#allocation8 + $0x8] sm:$0xff] }
 0xe58   :  { %9132 = vrcp.f32 %v13281_v43  ;;  %v5963_v12 = vmul.f32 %v5962_v44, %v13097_v56  ;;  %v5865_v21 = vadd.f32 0.00028619796, %v5864_v37  ;;  %v5714_v58 = vmul.f32 %v13251_v0, %v12849_v33  ;;  %v8712_v31 = vld [vmem:[#allocation8 + $0x88] sm:$0xff]  ;;  %7844 = vmatpush.bf16.msra.mxu1 %v8696_v20 }
 0xe59   :  { %v5738_v30 = vsel %vm13262_vm13, %v5737_v18, %v5733_v3  ;;  %vm5775_vm4 = vcmp.eq.f32.partialorder %v5774_v54, 8.507059e+37  ;;  %v5882_v6 = vadd.f32 0.4994258, %v5881_v1  ;;  %v8720_v2 = vld [vmem:[#allocation8 + $0xc8] sm:$0xff]  ;;  %v5918_v10 = vadd.f32 0.014752088, %v5917_v48  ;;  %v13328_v3 = vpop.f32.mrf.mxu3  ;;  %7942 = vmatpush.bf16.msra.mxu2 %v8712_v31 }
 0xe5a   :  { %v5778_v59 = vsel %vm5775_vm4, %v5777_v13, %v5773_v24  ;;  %v5996_v4 = vadd.f32 0.001143296, %v5995_v57  ;;  %v6102_v37 = vmul.f32 %v13307_v28, %v13307_v28  ;;  %v8462_v44 = vclamps-f32 %v13284_v39, 1.0  ;;  %v8703_v48 = vld [vmem:[#allocation8 + $0x40] sm:$0xff]  ;;  %7991 = vmatpush.bf16.msrb.mxu0 %v8720_v2 }
 0xe5b   :  { %v5754_v33 = vmul.f32 %v5753_v11, %v12870_v49  ;;  %v5830_v0 = vmul.f32 %v5829_v15, %v13067_v9  ;;  %v5947_v27 = vadd.f32 0.0036580483, %v5946_v52  ;;  %v5739_v18 = vmul.f32 %v5738_v30, %v5714_v58  ;;  %v8711_v24 = vld [vmem:[#allocation8 + $0x80] sm:$0xff]  ;;  %7894 = vmatpush.bf16.msra.mxu3 %v8703_v48 }
 0xe5c   :  { %v13324_v54 = vadd.f32 1.0, %v5963_v12  ;;  %v5866_v1 = vmul.f32 %v5865_v21, %v13134_v8  ;;  %v5904_v61 = vmul.f32 2.1237322e-06, %v13229_v7  ;;  %v13332_v57 = vmul.f32 %v13144_v17, %v12715_v41  ;;  %v8719_v15 = vld [vmem:[#allocation8 + $0xc0] sm:$0xff]  ;;  %7845 = vmatpush.bf16.msra.mxu1 %v8695_v47 }
 0xe5d   :  { %v15688_v49 = vclamps-f32 %v13121_v34, 1.0  ;;  %v5779_v29 = vmul.f32 %v5778_v59, %v5754_v33  ;;  %v5883_v11 = vmul.f32 %v5882_v6, %v13134_v8  ;;  %v15689_v13 = vclamps-f32 %v13217_v22, 1.0  ;;  %7943 = vmatpush.bf16.msra.mxu2 %v8711_v24 }
 0xe5e   :  { %v13337_v52 = vpop.eup %9132  ;;  %v5919_v21 = vmul.f32 %v5918_v10, %v13229_v7  ;;  %v5997_v41 = vmul.f32 %v5996_v4, %v13272_v14  ;;  %v13343_v17 = vmin.f32 %v6102_v37, 16.0  ;;  %v7445_v34 = vadd.f32 1.0, %v8462_v44  ;;  %7992 = vmatpush.bf16.msrb.mxu0 %v8719_v15 }
 0xe5f   :  { %v7440_v39 = vadd.f32 1.0, %v15688_v49  ;;  %v7442_v12 = vadd.f32 1.0, %v15689_v13  ;;  %v5831_v20 = vadd.f32 0.18741608, %v5830_v0  ;;  %v5948_v23 = vmul.f32 %v5947_v27, %v13097_v56  ;;  %v15692_v49 = vld [vmem:[#allocation37_spill] sm:$0xff] }
 0xe60   :  { %v13347_v58 = vmul.f32 0.70710677, %v13328_v3  ;;  %v8460_v30 = vclamps-f32 %v5739_v18, 1.0  ;;  %9134 = vrcp.f32 %v13324_v54  ;;  %v5867_v22 = vadd.f32 0.0036580483, %v5866_v1 }
 0xe61   :  { %v5905_v6 = vadd.f32 0.00028619796, %v5904_v61  ;;  %v13351_v31 = vmul.f32 %v7440_v39, %v12828_v46  ;;  %v8461_v2 = vclamps-f32 %v5779_v29, 1.0  ;;  %v5846_v59 = vmul.f32 %v13337_v52, %v13281_v43  ;;  %v15693_v39 = vld [vmem:[#allocation24_spill] sm:$0xff]  ;;  %v15695_v29 = vld [vmem:[#allocation31_spill] sm:$0xff] }
 0xe62   :  { %v13355_v10 = vadd.f32 1.0, %v5883_v11  ;;  %v5920_v4 = vadd.f32 0.112945676, %v5919_v21  ;;  %v5998_v37 = vadd.f32 0.014752088, %v5997_v41  ;;  %v6022_v33 = vmul.f32 %v13347_v58, %v13347_v58  ;;  %v15696_v11 = vld [vmem:[#allocation35_spill] sm:$0xff] }
 0xe63   :  { %v6115_v44 = vmul.f32 3.8918573e-05, %v13343_v17  ;;  %v13361_v0 = vmul.f32 %v7442_v12, %v12834_v5  ;;  %v13364_v46 = vmul.f32 0.5, %v12986_v50  ;;  %v5832_v27 = vmul.f32 %v5831_v20, %v13067_v9 }
 0xe64   :  { %v5949_v18 = vadd.f32 0.05243302, %v5948_v23  ;;  %v15690_v1 = vpack.c.bf16 %v12214_v16, %v12142_v51  ;;  %v15691_v61 = vpack.c.bf16 %v12393_v53, %v12164_v40  ;;  %v13374_v47 = vmul.f32 %v7445_v34, %v12928_v38 }
 0xe65   :  { %v7443_v48 = vadd.f32 1.0, %v8460_v30  ;;  %v5868_v5 = vmul.f32 %v5867_v22, %v13134_v8  ;;  %v5906_v50 = vmul.f32 %v5905_v6, %v13229_v7  ;;  %v15694_v9 = vpack.c.bf16 %v15692_v49, %v15693_v39 }
 0xe66   :  { %7846 = vmatmul.bf16.vlgmr.msra.gmra.mxu1 %v15690_v1  ;;  %7895 = vmatmul.bf16.vlgmr.msra.gmra.mxu3 %v15691_v61  ;;  %v15697_v51 = vpack.c.bf16 %v15695_v29, %v15696_v11  ;;  %v7444_v16 = vadd.f32 1.0, %v8461_v2  ;;  %v5847_v24 = vsub.f32 1.0, %v5846_v59  ;;  %v13385_v40 = vmul.f32 0.5, %v13061_v62  ;;  %v13388_v53 = vpop.eup %9134 }
 0xe67   :  { %7944 = vmatmul.bf16.vlgmr.msra.gmra.mxu2 %v15694_v9  ;;  %9136 = vrcp.f32 %v13355_v10  ;;  %v5921_v38 = vmul.f32 %v5920_v4, %v13229_v7  ;;  %v5999_v15 = vmul.f32 %v5998_v37, %v13272_v14  ;;  %v6116_v13 = vadd.f32 0.001143296, %v6115_v44  ;;  %v13416_v44 = vpop.f32.mrf.mxu2 }
 0xe68   :  { %7993 = vmatmul.bf16.vlgmr.msrb.gmra.mxu0 %v15697_v51  ;;  %v13392_v12 = vmin.f32 %v6022_v33, 16.0  ;;  %v5833_v21 = vadd.f32 1.1283791, %v5832_v27  ;;  %v5950_v41 = vmul.f32 %v5949_v18, %v13097_v56  ;;  %v13396_v34 = vmul.f32 0.5, %v13099_v60 }
 0xe69   :  { %v13399_v62 = vmul.f32 0.5, %v13148_v19  ;;  %v13402_v20 = vmul.f32 %v7443_v48, %v12956_v26  ;;  %v5869_v23 = vadd.f32 0.05243302, %v5868_v5  ;;  %v5907_v30 = vadd.f32 0.0036580483, %v5906_v50 }
 0xe6a   :  { %v5984_v22 = vmul.f32 2.1237322e-06, %v13272_v14  ;;  %v13406_v6 = vmul.f32 %v7444_v16, %v13017_v32  ;;  %v5848_v2 = vmul.f32 %v13337_v52, %v5847_v24  ;;  %v5966_v59 = vmul.f32 %v13388_v53, %v13324_v54 }
 0xe6b   :  { %v13412_v60 = vmul.f32 0.5, %v13222_v55  ;;  %v5922_v19 = vadd.f32 0.4994258, %v5921_v38  ;;  %v6000_v4 = vadd.f32 0.112945676, %v5999_v15  ;;  %v6117_v26 = vmul.f32 %v6116_v13, %v13343_v17 }
 0xe6c   :  { %v6035_v37 = vmul.f32 3.8918573e-05, %v13392_v12  ;;  %v5834_v32 = vmul.f32 %v5833_v21, %v13008_v25  ;;  %v5854_v27 = vand.u32 2147483647, %v13281_v43  ;;  %v5951_v18 = vadd.f32 0.18741608, %v5950_v41 }
 0xe6d   :  { %v13418_v33 = vpop.eup %9136  ;;  %v13423_v1 = vmul.f32 0.5, %v13277_v45  ;;  %v5856_v55 = vand.u32 2147483648, %v13281_v43  ;;  %v5870_v61 = vmul.f32 %v5869_v23, %v13134_v8  ;;  %v5908_v48 = vmul.f32 %v5907_v30, %v13229_v7 }
 0xe6e   :  { %v5985_v5 = vadd.f32 0.00028619796, %v5984_v22  ;;  %v5849_v50 = vadd.f32 %v13337_v52, %v5848_v2  ;;  %vm5851_vm5 = vweird.f32 %v13337_v52  ;;  %v5967_v49 = vsub.f32 1.0, %v5966_v59 }
 0xe6f   :  { %v13431_v25 = vmul.f32 0.70710677, %v13416_v44  ;;  %v5923_v39 = vmul.f32 %v5922_v19, %v13229_v7  ;;  %v6001_v45 = vmul.f32 %v6000_v4, %v13272_v14  ;;  %v6118_v9 = vadd.f32 0.014752088, %v6117_v26 }
 0xe70   :  { %v6036_v29 = vadd.f32 0.001143296, %v6035_v37  ;;  %vm5850_vm6 = vweird.f32 %v13281_v43  ;;  %vm13436_vm7 = vcmp.eq.f32.partialorder %v5854_v27, 8.507059e+37  ;;  %v5952_v51 = vmul.f32 %v5951_v18, %v13097_v56 }
 0xe71   :  { %v5886_v16 = vmul.f32 %v13418_v33, %v13355_v10  ;;  %vm13443_vm8 = vmor %vm5850_vm6, %vm5851_vm5  ;;  %v5857_v38 = vor.u32 1.1754944e-38, %v5856_v55  ;;  %v5871_v15 = vadd.f32 0.18741608, %v5870_v61  ;;  %v5909_v13 = vadd.f32 0.05243302, %v5908_v48 }
 0xe72   :  { %v5986_v21 = vmul.f32 %v5985_v5, %v13272_v14  ;;  %v5853_v43 = vsel %vm13443_vm8, %v13337_v52, %v5849_v50  ;;  %v5968_v41 = vmul.f32 %v13388_v53, %v5967_v49  ;;  %v6104_v56 = vmul.f32 2.1237322e-06, %v13343_v17 }
 0xe73   :  { %v6062_v23 = vmul.f32 %v13431_v25, %v13431_v25  ;;  %v13455_v30 = vadd.f32 1.0, %v5923_v39  ;;  %v6002_v22 = vadd.f32 0.4994258, %v6001_v45  ;;  %v6119_v2 = vmul.f32 %v6118_v9, %v13343_v17  ;;  %v13471_v45 = vpop.f32.mrf.mxu1 }
 0xe74   :  { %v6037_v59 = vmul.f32 %v6036_v29, %v13392_v12  ;;  %v5953_v19 = vadd.f32 1.1283791, %v5952_v51  ;;  %v5974_v4 = vand.u32 2147483647, %v13324_v54  ;;  %v5976_v26 = vand.u32 2147483648, %v13324_v54 }
 0xe75   :  { %v5887_v52 = vsub.f32 1.0, %v5886_v16  ;;  %vm5971_vm9 = vweird.f32 %v13388_v53  ;;  %v5872_v37 = vmul.f32 %v5871_v15, %v13134_v8  ;;  %v5910_v27 = vmul.f32 %v5909_v13, %v13229_v7 }
 0xe76   :  { %v5987_v18 = vadd.f32 0.0036580483, %v5986_v21  ;;  %v5858_v55 = vsel %vm13436_vm7, %v5857_v38, %v5853_v43  ;;  %v5969_v61 = vadd.f32 %v13388_v53, %v5968_v41  ;;  %v6105_v48 = vadd.f32 0.00028619796, %v6104_v56 }
 0xe77   :  { %v13467_v5 = vmin.f32 %v6062_v23, 16.0  ;;  %9138 = vrcp.f32 %v13455_v30  ;;  %v6003_v50 = vmul.f32 %v6002_v22, %v13272_v14  ;;  %v6120_v49 = vadd.f32 0.112945676, %v6119_v2 }
 0xe78   :  { %v6038_v39 = vadd.f32 0.014752088, %v6037_v59  ;;  %v5954_v8 = vmul.f32 %v5953_v19, %v13082_v36  ;;  %vm5970_vm10 = vweird.f32 %v13324_v54  ;;  %vm13475_vm11 = vcmp.eq.f32.partialorder %v5974_v4, 8.507059e+37  ;;  %v13509_v4 = vpop.f32.mrf.mxu0 }
 0xe79   :  { %v5888_v29 = vmul.f32 %v13418_v33, %v5887_v52  ;;  %vm13482_vm12 = vmor %vm5970_vm10, %vm5971_vm9  ;;  %v5977_v51 = vor.u32 1.1754944e-38, %v5976_v26  ;;  %v5873_v16 = vadd.f32 1.1283791, %v5872_v37  ;;  %v5911_v24 = vadd.f32 0.18741608, %v5910_v27 }
 0xe7a   :  { %v5988_v38 = vmul.f32 %v5987_v18, %v13272_v14  ;;  %v5859_v36 = vmul.f32 %v5858_v55, %v5834_v32  ;;  %v5973_v54 = vsel %vm13482_vm12, %v13388_v53, %v5969_v61  ;;  %v6075_v15 = vmul.f32 3.8918573e-05, %v13467_v5 }
 0xe7b   :  { %v13492_v13 = vmul.f32 0.70710677, %v13471_v45  ;;  %v13494_v21 = vadd.f32 1.0, %v6003_v50  ;;  %v6106_v43 = vmul.f32 %v6105_v48, %v13343_v17  ;;  %v6121_v41 = vmul.f32 %v6120_v49, %v13343_v17 }
 0xe7c   :  { %v6039_v56 = vmul.f32 %v6038_v39, %v13392_v12  ;;  %v5889_v23 = vadd.f32 %v13418_v33, %v5888_v29  ;;  %vm5890_vm13 = vweird.f32 %v13355_v10  ;;  %vm5891_vm14 = vweird.f32 %v13418_v33 }
 0xe7d   :  { %v5896_v53 = vand.u32 2147483648, %v13355_v10  ;;  %v13503_v32 = vpop.eup %9138  ;;  %v5978_v22 = vsel %vm13475_vm11, %v5977_v51, %v5973_v54  ;;  %v5912_v2 = vmul.f32 %v5911_v24, %v13229_v7  ;;  %v5989_v59 = vadd.f32 0.05243302, %v5988_v38  ;;  %vm13514_vm15 = vmor %vm5890_vm13, %vm5891_vm14 }
 0xe7e   :  { %v6024_v19 = vmul.f32 2.1237322e-06, %v13392_v12  ;;  %v8463_v26 = vclamps-f32 %v5859_v36, 1.0  ;;  %v5894_v52 = vand.u32 2147483647, %v13355_v10  ;;  %v6142_v27 = vmul.f32 %v13492_v13, %v13492_v13 }
 0xe7f   :  { %v6076_v37 = vadd.f32 0.001143296, %v6075_v15  ;;  %9140 = vrcp.f32 %v13494_v21  ;;  %v6107_v55 = vadd.f32 0.0036580483, %v6106_v43  ;;  %v6122_v7 = vadd.f32 0.4994258, %v6121_v41 }
 0xe80   :  { %v6040_v61 = vadd.f32 0.112945676, %v6039_v56  ;;  %v5979_v48 = vmul.f32 %v5978_v22, %v5954_v8  ;;  %v5893_v50 = vsel %vm13514_vm15, %v13418_v33, %v5889_v23  ;;  %v5926_v10 = vmul.f32 %v13503_v32, %v13455_v30 }
 0xe81   :  { %v13525_v49 = vmul.f32 0.70710677, %v13509_v4  ;;  %v5897_v39 = vor.u32 1.1754944e-38, %v5896_v53  ;;  %v5913_v9 = vadd.f32 1.1283791, %v5912_v2  ;;  %v5990_v29 = vmul.f32 %v5989_v59, %v13272_v14 }
 0xe82   :  { %v6025_v11 = vadd.f32 0.00028619796, %v6024_v19  ;;  %v7446_v51 = vadd.f32 1.0, %v8463_v26  ;;  %vm5895_vm0 = vcmp.eq.f32.partialorder %v5894_v52, 8.507059e+37  ;;  %v6077_v24 = vmul.f32 %v6076_v37, %v13467_v5 }
 0xe83   :  { %v13529_v8 = vmin.f32 %v6142_v27, 16.0  ;;  %v5898_v38 = vsel %vm5895_vm0, %v5897_v39, %v5893_v50  ;;  %v6108_v33 = vmul.f32 %v6107_v55, %v13343_v17  ;;  %v6123_v36 = vmul.f32 %v6122_v7, %v13343_v17 }
 0xe84   :  { %v6041_v54 = vmul.f32 %v6040_v61, %v13392_v12  ;;  %v8466_v15 = vclamps-f32 %v5979_v48, 1.0  ;;  %v5874_v43 = vmul.f32 %v5873_v16, %v13112_v42  ;;  %v5927_v41 = vsub.f32 1.0, %v5926_v10 }
 0xe85   :  { %v6262_v56 = vmul.f32 %v13525_v49, %v13525_v49  ;;  %v13537_v23 = vpop.eup %9140  ;;  %v13540_v53 = vmul.f32 %v5913_v9, %v13178_v35  ;;  %v5991_v22 = vadd.f32 0.18741608, %v5990_v29  ;;  %v13543_v2 = vmul.f32 0.5, %v13328_v3  ;;  %v13554_v35 = vpop.f32.mrf.mxu3 }
 0xe86   :  { %v6026_v59 = vmul.f32 %v6025_v11, %v13392_v12  ;;  %v13547_v19 = vmul.f32 %v7446_v51, %v13364_v46  ;;  %v5899_v26 = vmul.f32 %v5898_v38, %v5874_v43  ;;  %v6078_v42 = vadd.f32 0.014752088, %v6077_v24 }
 0xe87   :  { %v6155_v16 = vmul.f32 3.8918573e-05, %v13529_v8  ;;  %v6109_v52 = vadd.f32 0.05243302, %v6108_v33  ;;  %v13550_v37 = vadd.f32 1.0, %v6123_v36  ;;  %v13552_v18 = vmin.f32 %v6262_v56, 16.0 }
 0xe88   :  { %v6042_v27 = vadd.f32 0.4994258, %v6041_v54  ;;  %v7449_v55 = vadd.f32 1.0, %v8466_v15  ;;  %v5928_v3 = vmul.f32 %v13503_v32, %v5927_v41  ;;  %v6006_v7 = vmul.f32 %v13537_v23, %v13494_v21 }
 0xe89   :  { %v6064_v46 = vmul.f32 2.1237322e-06, %v13467_v5  ;;  %v5934_v61 = vand.u32 2147483647, %v13455_v30  ;;  %v5936_v48 = vand.u32 2147483648, %v13455_v30  ;;  %v5992_v50 = vmul.f32 %v5991_v22, %v13272_v14 }
 0xe8a   :  { %v6027_v10 = vadd.f32 0.0036580483, %v6026_v59  ;;  %v8464_v39 = vclamps-f32 %v5899_v26, 1.0  ;;  %v6079_v9 = vmul.f32 %v6078_v42, %v13467_v5  ;;  %v6156_v29 = vadd.f32 0.001143296, %v6155_v16 }
 0xe8b   :  { %v13565_v11 = vmul.f32 0.70710677, %v13554_v35  ;;  %v6110_v51 = vmul.f32 %v6109_v52, %v13343_v17  ;;  %9142 = vrcp.f32 %v13550_v37  ;;  %v6043_v24 = vmul.f32 %v6042_v27, %v13392_v12 }
 0xe8c   :  { %v6275_v38 = vmul.f32 3.8918573e-05, %v13552_v18  ;;  %v5929_v33 = vadd.f32 %v13503_v32, %v5928_v3  ;;  %vm5931_vm1 = vweird.f32 %v13503_v32  ;;  %v6007_v14 = vsub.f32 1.0, %v6006_v7 }
 0xe8d   :  { %v6065_v36 = vadd.f32 0.00028619796, %v6064_v46  ;;  %v13574_v54 = vmul.f32 %v7449_v55, %v13385_v40  ;;  %vm5930_vm2 = vweird.f32 %v13455_v30  ;;  %v5993_v15 = vadd.f32 1.1283791, %v5992_v50 }
 0xe8e   :  { %v6028_v43 = vmul.f32 %v6027_v10, %v13392_v12  ;;  %vm13578_vm3 = vcmp.eq.f32.partialorder %v5934_v61, 8.507059e+37  ;;  %v6080_v56 = vadd.f32 0.112945676, %v6079_v9  ;;  %v6157_v22 = vmul.f32 %v6156_v29, %v13529_v8  ;;  %vm13585_vm4 = vmor %vm5930_vm2, %vm5931_vm1 }
 0xe8f   :  { %v6182_v59 = vmul.f32 %v13565_v11, %v13565_v11  ;;  %v5937_v40 = vor.u32 1.1754944e-38, %v5936_v48  ;;  %v6111_v42 = vadd.f32 0.18741608, %v6110_v51  ;;  %v13589_v30 = vadd.f32 1.0, %v6043_v24 }
 0xe90   :  { %v6276_v16 = vadd.f32 0.001143296, %v6275_v38  ;;  %v7447_v52 = vadd.f32 1.0, %v8464_v39  ;;  %v5933_v27 = vsel %vm13585_vm4, %v13503_v32, %v5929_v33  ;;  %v6008_v55 = vmul.f32 %v13537_v23, %v6007_v14 }
 0xe91   :  { %v6066_v3 = vmul.f32 %v6065_v36, %v13467_v5  ;;  %v13596_v7 = vpop.eup %9142  ;;  %v5994_v46 = vmul.f32 %v5993_v15, %v13233_v63  ;;  %v6014_v61 = vand.u32 2147483647, %v13494_v21  ;;  %v6016_v48 = vand.u32 2147483648, %v13494_v21 }
 0xe92   :  { %v6029_v50 = vadd.f32 0.05243302, %v6028_v43  ;;  %vm6011_vm5 = vweird.f32 %v13537_v23  ;;  %v6081_v10 = vmul.f32 %v6080_v56, %v13467_v5  ;;  %v6158_v39 = vadd.f32 0.014752088, %v6157_v22  ;;  %v13625_v22 = vpop.f32.mrf.mxu2 }
 0xe93   :  { %v13603_v9 = vmin.f32 %v6182_v59, 16.0  ;;  %v5938_v32 = vsel %vm13578_vm3, %v5937_v40, %v5933_v27  ;;  %v6112_v29 = vmul.f32 %v6111_v42, %v13343_v17  ;;  %9144 = vrcp.f32 %v13589_v30 }
 0xe94   :  { %v6277_v63 = vmul.f32 %v6276_v16, %v13552_v18  ;;  %v6009_v51 = vadd.f32 %v13537_v23, %v6008_v55  ;;  %v6126_v24 = vmul.f32 %v13596_v7, %v13550_v37  ;;  %v6067_v38 = vadd.f32 0.0036580483, %v6066_v3 }
 0xe95   :  { %v6144_v33 = vmul.f32 2.1237322e-06, %v13529_v8  ;;  %v13615_v14 = vmul.f32 %v7447_v52, %v13396_v34  ;;  %vm6010_vm6 = vweird.f32 %v13494_v21  ;;  %v6030_v36 = vmul.f32 %v6029_v50, %v13392_v12 }
 0xe96   :  { %v13620_v17 = vmul.f32 0.5, %v13416_v44  ;;  %v5939_v15 = vmul.f32 %v5938_v32, %v13540_v53  ;;  %v6082_v43 = vadd.f32 0.4994258, %v6081_v10  ;;  %v6159_v41 = vmul.f32 %v6158_v39, %v13529_v8  ;;  %vm13629_vm7 = vmor %vm6010_vm6, %vm6011_vm5  ;;  %v13653_v39 = vpop.f32.mrf.mxu1 }
 0xe97   :  { %v6195_v56 = vmul.f32 3.8918573e-05, %v13603_v9  ;;  %vm13633_vm8 = vcmp.eq.f32.partialorder %v6014_v61, 8.507059e+37  ;;  %v6017_v44 = vor.u32 1.1754944e-38, %v6016_v48  ;;  %v6113_v59 = vadd.f32 1.1283791, %v6112_v29 }
 0xe98   :  { %v6278_v53 = vadd.f32 0.014752088, %v6277_v63  ;;  %v6013_v26 = vsel %vm13629_vm7, %v13537_v23, %v6009_v51  ;;  %v6127_v40 = vsub.f32 1.0, %v6126_v24  ;;  %v6068_v42 = vmul.f32 %v6067_v38, %v13467_v5 }
 0xe99   :  { %v6145_v16 = vadd.f32 0.00028619796, %v6144_v33  ;;  %v13641_v52 = vpop.eup %9144  ;;  %v6031_v27 = vadd.f32 0.18741608, %v6030_v36  ;;  %v13644_v55 = vmul.f32 0.5, %v13471_v45  ;;  %v13647_v3 = vmul.f32 0.5, %v13509_v4 }
 0xe9a   :  { %v13650_v61 = vmul.f32 0.70710677, %v13625_v22  ;;  %v8465_v48 = vclamps-f32 %v5939_v15, 1.0  ;;  %v6083_v50 = vmul.f32 %v6082_v43, %v13467_v5  ;;  %v6160_v23 = vadd.f32 0.112945676, %v6159_v41 }
 0xe9b   :  { %v6196_v10 = vadd.f32 0.001143296, %v6195_v56  ;;  %v6018_v32 = vsel %vm13633_vm8, %v6017_v44, %v6013_v26  ;;  %v6114_v29 = vmul.f32 %v6113_v59, %v13307_v28  ;;  %vm6130_vm9 = vweird.f32 %v13550_v37 }
 0xe9c   :  { %v6279_v45 = vmul.f32 %v6278_v53, %v13552_v18  ;;  %v6128_v4 = vmul.f32 %v13596_v7, %v6127_v40  ;;  %v6046_v63 = vmul.f32 %v13641_v52, %v13589_v30  ;;  %v6069_v51 = vadd.f32 0.05243302, %v6068_v42 }
 0xe9d   :  { %v6146_v24 = vmul.f32 %v6145_v16, %v13529_v8  ;;  %v6134_v38 = vand.u32 2147483647, %v13550_v37  ;;  %v6032_v33 = vmul.f32 %v6031_v27, %v13392_v12  ;;  %v6222_v36 = vmul.f32 %v13650_v61, %v13650_v61 }
 0xe9e   :  { %v13669_v28 = vmul.f32 0.70710677, %v13653_v39  ;;  %v6019_v15 = vmul.f32 %v6018_v32, %v5994_v46  ;;  %v13671_v43 = vadd.f32 1.0, %v6083_v50  ;;  %v6161_v41 = vmul.f32 %v6160_v23, %v13529_v8 }
 0xe9f   :  { %v6197_v56 = vmul.f32 %v6196_v10, %v13603_v9  ;;  %v7448_v34 = vadd.f32 1.0, %v8465_v48  ;;  %vm6131_vm10 = vweird.f32 %v13596_v7  ;;  %v6136_v21 = vand.u32 2147483648, %v13550_v37 }
 0xea0   :  { %v6280_v44 = vadd.f32 0.112945676, %v6279_v45  ;;  %v6129_v12 = vadd.f32 %v13596_v7, %v6128_v4  ;;  %v6047_v59 = vsub.f32 1.0, %v6046_v63  ;;  %v6070_v53 = vmul.f32 %v6069_v51, %v13467_v5  ;;  %vm13695_vm12 = vmor %vm6130_vm9, %vm6131_vm10 }
 0xea1   :  { %v6147_v26 = vadd.f32 0.0036580483, %v6146_v24  ;;  %vm13679_vm11 = vcmp.eq.f32.partialorder %v6134_v38, 8.507059e+37  ;;  %v6033_v40 = vadd.f32 1.1283791, %v6032_v33  ;;  %v13683_v42 = vmin.f32 %v6222_v36, 16.0 }
 0xea2   :  { %v6302_v16 = vmul.f32 %v13669_v28, %v13669_v28  ;;  %v8467_v27 = vclamps-f32 %v6019_v15, 1.0  ;;  %9146 = vrcp.f32 %v13671_v43  ;;  %v6162_v48 = vadd.f32 0.4994258, %v6161_v41 }
 0xea3   :  { %v6198_v50 = vadd.f32 0.014752088, %v6197_v56  ;;  %v13689_v23 = vmul.f32 %v7448_v34, %v13399_v62  ;;  %v6137_v32 = vor.u32 1.1754944e-38, %v6136_v21  ;;  %v6054_v45 = vand.u32 2147483647, %v13589_v30 }
 0xea4   :  { %v6281_v4 = vmul.f32 %v6280_v44, %v13552_v18  ;;  %v6133_v63 = vsel %vm13695_vm12, %v13596_v7, %v6129_v12  ;;  %v6048_v62 = vmul.f32 %v13641_v52, %v6047_v59  ;;  %v6071_v51 = vadd.f32 0.18741608, %v6070_v53 }
 0xea5   :  { %v6148_v24 = vmul.f32 %v6147_v26, %v13529_v8  ;;  %v6034_v37 = vmul.f32 %v6033_v40, %v13347_v58  ;;  %v6264_v38 = vmul.f32 2.1237322e-06, %v13552_v18  ;;  %v6235_v33 = vmul.f32 3.8918573e-05, %v13683_v42  ;;  %v13725_v26 = vpop.f32.mrf.mxu0  ;;  %v15722_v40 = vld [vmem:[#allocation16_spill] sm:$0xff] }
 0xea6   :  { %v13709_v36 = vmin.f32 %v6302_v16, 16.0  ;;  %v7450_v15 = vadd.f32 1.0, %v8467_v27  ;;  %v6056_v41 = vand.u32 2147483648, %v13589_v30  ;;  %v6163_v56 = vmul.f32 %v6162_v48, %v13529_v8  ;;  %v15723_v16 = vld [vmem:[#allocation21_spill] sm:$0xff] }
 0xea7   :  { %v6199_v7 = vmul.f32 %v6198_v50, %v13603_v9  ;;  %v6138_v34 = vsel %vm13679_vm11, %v6137_v32, %v6133_v63  ;;  %vm6051_vm13 = vweird.f32 %v13641_v52  ;;  %vm13717_vm14 = vcmp.eq.f32.partialorder %v6054_v45, 8.507059e+37 }
 0xea8   :  { %v6282_v21 = vadd.f32 0.4994258, %v6281_v4  ;;  %v13721_v44 = vpop.eup %9146  ;;  %v6049_v12 = vadd.f32 %v13641_v52, %v6048_v62  ;;  %v6072_v59 = vmul.f32 %v6071_v51, %v13467_v5  ;;  %v6149_v53 = vadd.f32 0.05243302, %v6148_v24 }
 0xea9   :  { %v7554_v46 = vpack.c.bf16 %v15723_v16, %v15722_v40  ;;  %vm6050_vm15 = vweird.f32 %v13589_v30  ;;  %v6265_v27 = vadd.f32 0.00028619796, %v6264_v38  ;;  %v6236_v48 = vadd.f32 0.001143296, %v6235_v33  ;;  %v15726_v40 = vld [vmem:[#allocation40_spill] sm:$0xff]  ;;  %v15727_v16 = vld [vmem:[#allocation42_spill] sm:$0xff] }
 0xeaa   :  { %v6315_v50 = vmul.f32 3.8918573e-05, %v13709_v36  ;;  %v6139_v10 = vmul.f32 %v6138_v34, %v6114_v29  ;;  %v6057_v32 = vor.u32 1.1754944e-38, %v6056_v41  ;;  %v13731_v45 = vadd.f32 1.0, %v6163_v56  ;;  %vm13738_vm0 = vmor %vm6050_vm15, %vm6051_vm13 }
 0xeab   :  { %v6200_v4 = vadd.f32 0.112945676, %v6199_v7  ;;  %7851 = vmatmul.bf16.gmra.mxu1 %v7554_v46  ;;  %v13734_v5 = vmul.f32 %v7450_v15, %v13412_v60  ;;  %v6086_v30 = vmul.f32 %v13721_v44, %v13671_v43  ;;  %v6283_v62 = vmul.f32 %v6282_v21, %v13552_v18 }
 0xeac   :  { %v13746_v29 = vmul.f32 0.70710677, %v13725_v26  ;;  %v6053_v51 = vsel %vm13738_vm0, %v13641_v52, %v6049_v12  ;;  %v6073_v60 = vadd.f32 1.1283791, %v6072_v59  ;;  %v6150_v24 = vmul.f32 %v6149_v53, %v13529_v8 }
 0xead   :  { %v13753_v38 = vmul.f32 0.5, %v13554_v35  ;;  %v6266_v33 = vmul.f32 %v6265_v27, %v13552_v18  ;;  %v13757_v15 = vmul.f32 0.5, %v13625_v22  ;;  %v6237_v41 = vmul.f32 %v6236_v48, %v13683_v42  ;;  %v15728_v27 = vld [vmem:[#allocation15_spill] sm:$0xff]  ;;  %v15729_v48 = vld [vmem:[#allocation41_spill] sm:$0xff] }
 0xeae   :  { %v6316_v56 = vadd.f32 0.001143296, %v6315_v50  ;;  %v8470_v7 = vclamps-f32 %v6139_v10, 1.0  ;;  %9148 = vrcp.f32 %v13731_v45  ;;  %v6184_v34 = vmul.f32 2.1237322e-06, %v13603_v9 }
 0xeaf   :  { %v6201_v52 = vmul.f32 %v6200_v4, %v13603_v9  ;;  %v6058_v21 = vsel %vm13717_vm14, %v6057_v32, %v6053_v51  ;;  %v6087_v35 = vsub.f32 1.0, %v6086_v30  ;;  %v13765_v12 = vadd.f32 1.0, %v6283_v62  ;;  %v15731_v51 = vld [vmem:[#allocation25_spill] sm:$0xff] }
 0xeb0   :  { %v6422_v22 = vmul.f32 %v13746_v29, %v13746_v29  ;;  %v13770_v59 = vmul.f32 %v6073_v60, %v13431_v25  ;;  %v6151_v53 = vadd.f32 0.18741608, %v6150_v24  ;;  %v7555_v46 = vpack.c.bf16 %v15727_v16, %v15726_v40  ;;  %v15730_v25 = vld [vmem:[#allocation36_spill] sm:$0xff] }
 0xeb1   :  { %v7556_v50 = vpack.c.bf16 %v15729_v48, %v15728_v27  ;;  %v6267_v10 = vadd.f32 0.0036580483, %v6266_v33  ;;  %v6238_v4 = vadd.f32 0.014752088, %v6237_v41  ;;  %v6317_v58 = vmul.f32 %v6316_v56, %v13709_v36 }
 0xeb2   :  { %v13777_v32 = vmin.f32 %v6422_v22, 16.0  ;;  %v6059_v63 = vmul.f32 %v6058_v21, %v6034_v37  ;;  %v6185_v30 = vadd.f32 0.00028619796, %v6184_v34  ;;  %v6202_v62 = vadd.f32 0.4994258, %v6201_v52  ;;  %7900 = vmatmul.bf16.gmra.mxu3 %v7555_v46 }
 0xeb3   :  { %7949 = vmatmul.bf16.gmra.mxu2 %v7556_v50  ;;  %v7557_v60 = vpack.c.bf16 %v15731_v51, %v15730_v25  ;;  %v7453_v24 = vadd.f32 1.0, %v8470_v7  ;;  %v6088_v40 = vmul.f32 %v13721_v44, %v6087_v35  ;;  %9150 = vrcp.f32 %v13765_v12 }
 0xeb4   :  { %v6224_v33 = vmul.f32 2.1237322e-06, %v13683_v42  ;;  %v13784_v41 = vpop.eup %9148  ;;  %vm6090_vm1 = vweird.f32 %v13671_v43  ;;  %v6094_v37 = vand.u32 2147483647, %v13671_v43  ;;  %v6096_v56 = vand.u32 2147483648, %v13671_v43 }
 0xeb5   :  { %v6152_v34 = vmul.f32 %v6151_v53, %v13529_v8  ;;  %7998 = vmatmul.bf16.gmra.mxu0 %v7557_v60  ;;  %v6268_v52 = vmul.f32 %v6267_v10, %v13552_v18  ;;  %v6239_v7 = vmul.f32 %v6238_v4, %v13683_v42  ;;  %v6318_v21 = vadd.f32 0.014752088, %v6317_v58  ;;  %v15732_v58 = vld [vmem:[#allocation38_spill] sm:$0xff] }
 0xeb6   :  { %v6435_v35 = vmul.f32 3.8918573e-05, %v13777_v32  ;;  %v8468_v22 = vclamps-f32 %v6059_v63, 1.0  ;;  %vm6091_vm2 = vweird.f32 %v13721_v44  ;;  %v6186_v16 = vmul.f32 %v6185_v30, %v13603_v9 }
 0xeb7   :  { %v6203_v46 = vmul.f32 %v6202_v62, %v13603_v9  ;;  %v6089_v27 = vadd.f32 %v13721_v44, %v6088_v40  ;;  %v6166_v8 = vmul.f32 %v13784_v41, %v13731_v45  ;;  %v6225_v53 = vadd.f32 0.00028619796, %v6224_v33  ;;  %vm13816_vm4 = vmor %vm6090_vm1, %vm6091_vm2 }
 0xeb8   :  { %v6436_v48 = vadd.f32 0.001143296, %v6435_v35  ;;  %v13800_v50 = vmul.f32 %v7453_v24, %v13423_v1  ;;  %v6153_v10 = vadd.f32 1.1283791, %v6152_v34  ;;  %v6304_v4 = vmul.f32 2.1237322e-06, %v13709_v36 }
 0xeb9   :  { %v7558_v63 = vpack.c.bf16 %v13361_v0, %v15732_v58  ;;  %v13805_v25 = vpop.eup %9150  ;;  %vm13807_vm3 = vcmp.eq.f32.partialorder %v6094_v37, 8.507059e+37  ;;  %v6269_v62 = vadd.f32 0.05243302, %v6268_v52  ;;  %v6240_v51 = vadd.f32 0.112945676, %v6239_v7 }
 0xeba   :  { %v6319_v60 = vmul.f32 %v6318_v21, %v13709_v36  ;;  %v6097_v24 = vor.u32 1.1754944e-38, %v6096_v56  ;;  %v6187_v0 = vadd.f32 0.0036580483, %v6186_v16  ;;  %v13820_v40 = vadd.f32 1.0, %v6203_v46 }
 0xebb   :  { %v6437_v33 = vmul.f32 %v6436_v48, %v13777_v32  ;;  %7856 = vmatmul.bf16.gmra.mxu1 %v7558_v63  ;;  %v13823_v37 = vadd.f32 1.0, %v8468_v22  ;;  %v6093_v34 = vsel %vm13816_vm4, %v13721_v44, %v6089_v27  ;;  %v6167_v52 = vsub.f32 1.0, %v6166_v8 }
 0xebc   :  { %v6226_v43 = vmul.f32 %v6225_v53, %v13683_v42  ;;  %v13830_v7 = vmul.f32 %v6153_v10, %v13492_v13  ;;  %v6286_v56 = vmul.f32 %v13805_v25, %v13765_v12  ;;  %v6305_v21 = vadd.f32 0.00028619796, %v6304_v4 }
 0xebd   :  { %v6438_v35 = vadd.f32 0.014752088, %v6437_v33  ;;  %v6174_v16 = vand.u32 2147483647, %v13731_v45  ;;  %v6270_v22 = vmul.f32 %v6269_v62, %v13552_v18  ;;  %v6241_v46 = vmul.f32 %v6240_v51, %v13683_v42 }
 0xebe   :  { %v6320_v48 = vadd.f32 0.112945676, %v6319_v60  ;;  %v6098_v44 = vsel %vm13807_vm3, %v6097_v24, %v6093_v34  ;;  %v6188_v27 = vmul.f32 %v6187_v0, %v13603_v9  ;;  %9152 = vrcp.f32 %v13820_v40  ;;  %v13856_v34 = vpop.f32.mrf.mxu3 }
 0xebf   :  { %v6439_v13 = vmul.f32 %v6438_v35, %v13777_v32  ;;  %v6168_v8 = vmul.f32 %v13784_v41, %v6167_v52  ;;  %vm6170_vm5 = vweird.f32 %v13731_v45  ;;  %v6176_v53 = vand.u32 2147483648, %v13731_v45 }
 0xec0   :  { %v6227_v10 = vadd.f32 0.0036580483, %v6226_v43  ;;  %v6287_v4 = vsub.f32 1.0, %v6286_v56  ;;  %v6306_v58 = vmul.f32 %v6305_v21, %v13709_v36  ;;  %v7559_v63 = vpack.c.bf16 %v13402_v20, %v13332_v57  ;;  %v15739_v57 = vld [vmem:[#allocation47_spill] sm:$0xff] }
 0xec1   :  { %v7560_v30 = vpack.c.bf16 %v13406_v6, %v13351_v31  ;;  %v6099_v62 = vmul.f32 %v6098_v44, %v13770_v59  ;;  %v6271_v51 = vadd.f32 0.18741608, %v6270_v22  ;;  %v6242_v60 = vadd.f32 0.4994258, %v6241_v46 }
 0xec2   :  { %v6321_v1 = vmul.f32 %v6320_v48, %v13709_v36  ;;  %vm13852_vm6 = vcmp.eq.f32.partialorder %v6174_v16, 8.507059e+37  ;;  %v6189_v0 = vadd.f32 0.05243302, %v6188_v27  ;;  %v6440_v33 = vadd.f32 0.112945676, %v6439_v13  ;;  %7905 = vmatmul.bf16.gmra.mxu3 %v7559_v63 }
 0xec3   :  { %7954 = vmatmul.bf16.gmra.mxu2 %v7560_v30  ;;  %v7561_v20 = vpack.c.bf16 %v13374_v47, %v15739_v57  ;;  %v6169_v31 = vadd.f32 %v13784_v41, %v6168_v8  ;;  %vm6171_vm7 = vweird.f32 %v13784_v41  ;;  %v6177_v6 = vor.u32 1.1754944e-38, %v6176_v53 }
 0xec4   :  { %v6228_v59 = vmul.f32 %v6227_v10, %v13683_v42  ;;  %v13863_v52 = vpop.eup %9152  ;;  %v6288_v43 = vmul.f32 %v13805_v25, %v6287_v4  ;;  %v6307_v56 = vadd.f32 0.0036580483, %v6306_v58  ;;  %v6424_v21 = vmul.f32 2.1237322e-06, %v13777_v32  ;;  %vm13874_vm8 = vmor %vm6170_vm5, %vm6171_vm7 }
 0xec5   :  { %v13868_v35 = vmul.f32 0.70710677, %v13856_v34  ;;  %8003 = vmatmul.bf16.gmra.mxu0 %v7561_v20  ;;  %v8469_v16 = vclamps-f32 %v6099_v62, 1.0  ;;  %v6272_v47 = vmul.f32 %v6271_v51, %v13552_v18  ;;  %v6243_v22 = vmul.f32 %v6242_v60, %v13683_v42 }
 0xec6   :  { %v6322_v46 = vadd.f32 0.4994258, %v6321_v1  ;;  %vm6290_vm9 = vweird.f32 %v13765_v12  ;;  %v6190_v44 = vmul.f32 %v6189_v0, %v13603_v9  ;;  %v6441_v27 = vmul.f32 %v6440_v33, %v13777_v32 }
 0xec7   :  { %v6342_v13 = vmul.f32 %v13868_v35, %v13868_v35  ;;  %v6173_v18 = vsel %vm13874_vm8, %v13784_v41, %v6169_v31  ;;  %vm6291_vm10 = vweird.f32 %v13805_v25  ;;  %v6206_v45 = vmul.f32 %v13863_v52, %v13820_v40 }
 0xec8   :  { %v6229_v8 = vadd.f32 0.05243302, %v6228_v59  ;;  %v6289_v53 = vadd.f32 %v13805_v25, %v6288_v43  ;;  %v6308_v10 = vmul.f32 %v6307_v56, %v13709_v36  ;;  %v6425_v4 = vadd.f32 0.00028619796, %v6424_v21  ;;  %vm13905_vm11 = vmor %vm6290_vm9, %vm6291_vm10 }
 0xec9   :  { %v13891_v58 = vmin.f32 %v6342_v13, 16.0  ;;  %v6294_v63 = vand.u32 2147483647, %v13765_v12  ;;  %v6296_v30 = vand.u32 2147483648, %v13765_v12  ;;  %v13895_v62 = vadd.f32 1.0, %v6243_v22 }
 0xeca   :  { %v6323_v41 = vmul.f32 %v6322_v46, %v13709_v36  ;;  %v6178_v51 = vsel %vm13852_vm6, %v6177_v6, %v6173_v18  ;;  %v6191_v60 = vadd.f32 0.18741608, %v6190_v44  ;;  %v6442_v1 = vadd.f32 0.4994258, %v6441_v27 }
 0xecb   :  { %v6355_v0 = vmul.f32 3.8918573e-05, %v13891_v58  ;;  %v7452_v33 = vadd.f32 1.0, %v8469_v16  ;;  %v6273_v57 = vadd.f32 1.1283791, %v6272_v47  ;;  %v6207_v31 = vsub.f32 1.0, %v6206_v45 }
 0xecc   :  { %v6230_v59 = vmul.f32 %v6229_v8, %v13683_v42  ;;  %v6293_v24 = vsel %vm13905_vm11, %v13805_v25, %v6289_v53  ;;  %v6309_v6 = vadd.f32 0.05243302, %v6308_v10  ;;  %v6426_v43 = vmul.f32 %v6425_v4, %v13777_v32 }
 0xecd   :  { %v6356_v56 = vadd.f32 0.001143296, %v6355_v0  ;;  %v6179_v21 = vmul.f32 %v6178_v51, %v13830_v7  ;;  %v6297_v16 = vor.u32 1.1754944e-38, %v6296_v30  ;;  %9154 = vrcp.f32 %v13895_v62 }
 0xece   :  { %v13916_v12 = vadd.f32 1.0, %v6323_v41  ;;  %vm6295_vm12 = vcmp.eq.f32.partialorder %v6294_v63, 8.507059e+37  ;;  %v6192_v47 = vmul.f32 %v6191_v60, %v13603_v9  ;;  %v6443_v22 = vmul.f32 %v6442_v1, %v13777_v32 }
 0xecf   :  { %v6357_v46 = vmul.f32 %v6356_v56, %v13891_v58  ;;  %v6274_v25 = vmul.f32 %v6273_v57, %v13525_v49  ;;  %v6298_v48 = vsel %vm6295_vm12, %v6297_v16, %v6293_v24  ;;  %v6208_v44 = vmul.f32 %v13863_v52, %v6207_v31 }
 0xed0   :  { %v13924_v27 = vmul.f32 0.5, %v13653_v39  ;;  %v6231_v7 = vadd.f32 0.18741608, %v6230_v59  ;;  %v6310_v13 = vmul.f32 %v6309_v6, %v13709_v36  ;;  %v6427_v18 = vadd.f32 0.0036580483, %v6426_v43 }
 0xed1   :  { %v6358_v45 = vadd.f32 0.014752088, %v6357_v46  ;;  %v13929_v9 = vmul.f32 %v13823_v37, %v13543_v2  ;;  %v8471_v8 = vclamps-f32 %v6179_v21, 1.0  ;;  %9156 = vrcp.f32 %v13916_v12 }
 0xed2   :  { %v13933_v49 = vmul.f32 0.5, %v13725_v26  ;;  %v13936_v53 = vmul.f32 %v7452_v33, %v13620_v17  ;;  %v6299_v39 = vmul.f32 %v6298_v48, %v6274_v25  ;;  %v6193_v10 = vadd.f32 1.1283791, %v6192_v47 }
 0xed3   :  { %v13938_v4 = vadd.f32 1.0, %v6443_v22  ;;  %v13940_v63 = vpop.eup %9154  ;;  %v6209_v30 = vadd.f32 %v13863_v52, %v6208_v44  ;;  %vm6211_vm13 = vweird.f32 %v13863_v52  ;;  %v6344_v2 = vmul.f32 2.1237322e-06, %v13891_v58 }
 0xed4   :  { %v6359_v37 = vmul.f32 %v6358_v45, %v13891_v58  ;;  %v6216_v26 = vand.u32 2147483648, %v13820_v40  ;;  %v6232_v41 = vmul.f32 %v6231_v7, %v13683_v42  ;;  %v6311_v17 = vadd.f32 0.18741608, %v6310_v13  ;;  %v13959_v42 = vpop.f32.mrf.mxu2 }
 0xed5   :  { %v6428_v51 = vmul.f32 %v6427_v18, %v13777_v32  ;;  %v7454_v60 = vadd.f32 1.0, %v8471_v8  ;;  %vm6210_vm14 = vweird.f32 %v13820_v40  ;;  %v6214_v1 = vand.u32 2147483647, %v13820_v40 }
 0xed6   :  { %v6360_v0 = vadd.f32 0.112945676, %v6359_v37  ;;  %v8474_v33 = vclamps-f32 %v6299_v39, 1.0  ;;  %v6194_v57 = vmul.f32 %v6193_v10, %v13565_v11  ;;  %vm13952_vm15 = vmor %vm6210_vm14, %vm6211_vm13  ;;  %v6246_v31 = vmul.f32 %v13940_v63, %v13895_v62 }
 0xed7   :  { %9158 = vrcp.f32 %v13938_v4  ;;  %v13961_v59 = vpop.eup %9156  ;;  %v6213_v40 = vsel %vm13952_vm15, %v13863_v52, %v6209_v30  ;;  %v6345_v24 = vadd.f32 0.00028619796, %v6344_v2  ;;  %v13968_v6 = vmul.f32 0.70710677, %v13959_v42 }
 0xed8   :  { %v6361_v11 = vmul.f32 %v6360_v0, %v13891_v58  ;;  %v6217_v43 = vor.u32 1.1754944e-38, %v6216_v26  ;;  %v6233_v56 = vadd.f32 1.1283791, %v6232_v41  ;;  %v6312_v21 = vmul.f32 %v6311_v17, %v13709_v36 }
 0xed9   :  { %v6429_v16 = vadd.f32 0.05243302, %v6428_v51  ;;  %v13972_v47 = vmul.f32 %v7454_v60, %v13644_v55  ;;  %vm6215_vm0 = vcmp.eq.f32.partialorder %v6214_v1, 8.507059e+37  ;;  %v6382_v46 = vmul.f32 %v13968_v6, %v13968_v6 }
 0xeda   :  { %v6362_v22 = vadd.f32 0.4994258, %v6361_v11  ;;  %v6218_v52 = vsel %vm6215_vm0, %v6217_v43, %v6213_v40  ;;  %v6247_v25 = vsub.f32 1.0, %v6246_v31  ;;  %v6256_v48 = vand.u32 2147483648, %v13895_v62  ;;  %v14009_v40 = vpop.f32.mrf.mxu1 }
 0xedb   :  { %v6326_v44 = vmul.f32 %v13961_v59, %v13916_v12  ;;  %v7457_v7 = vadd.f32 1.0, %v8474_v33  ;;  %v6346_v13 = vmul.f32 %v6345_v24, %v13891_v58  ;;  %v13981_v18 = vmin.f32 %v6382_v46, 16.0 }
 0xedc   :  { %v6363_v36 = vmul.f32 %v6362_v22, %v13891_v58  ;;  %v13986_v45 = vmul.f32 %v6233_v56, %v13650_v61  ;;  %v6254_v8 = vand.u32 2147483647, %v13895_v62  ;;  %v6313_v39 = vadd.f32 1.1283791, %v6312_v21 }
 0xedd   :  { %v13983_v55 = vpop.eup %9158  ;;  %v6430_v10 = vmul.f32 %v6429_v16, %v13777_v32  ;;  %v6219_v30 = vmul.f32 %v6218_v52, %v6194_v57  ;;  %v6384_v37 = vmul.f32 2.1237322e-06, %v13981_v18  ;;  %v6395_v26 = vmul.f32 3.8918573e-05, %v13981_v18 }
 0xede   :  { %v13990_v2 = vadd.f32 1.0, %v6363_v36  ;;  %v6248_v41 = vmul.f32 %v13940_v63, %v6247_v25  ;;  %vm6250_vm1 = vweird.f32 %v13895_v62  ;;  %v6257_v17 = vor.u32 1.1754944e-38, %v6256_v48 }
 0xedf   :  { %v6327_v51 = vsub.f32 1.0, %v6326_v44  ;;  %v13997_v61 = vmul.f32 %v7457_v7, %v13647_v3  ;;  %v6446_v60 = vmul.f32 %v13983_v55, %v13938_v4  ;;  %v6347_v1 = vadd.f32 0.0036580483, %v6346_v13  ;;  %v14011_v3 = vpop.f32.mrf.mxu0 }
 0xee0   :  { %9160 = vrcp.f32 %v13990_v2  ;;  %vm14002_vm2 = vcmp.eq.f32.partialorder %v6254_v8, 8.507059e+37  ;;  %v14007_v33 = vmul.f32 %v6313_v39, %v13669_v28  ;;  %v6431_v57 = vadd.f32 0.18741608, %v6430_v10 }
 0xee1   :  { %v6385_v20 = vadd.f32 0.00028619796, %v6384_v37  ;;  %v6396_v31 = vadd.f32 0.001143296, %v6395_v26  ;;  %v8472_v24 = vclamps-f32 %v6219_v30, 1.0  ;;  %vm6251_vm3 = vweird.f32 %v13940_v63 }
 0xee2   :  { %v6336_v11 = vand.u32 2147483648, %v13916_v12  ;;  %v14016_v43 = vmul.f32 0.70710677, %v14009_v40  ;;  %v6249_v56 = vadd.f32 %v13940_v63, %v6248_v41  ;;  %v6328_v28 = vmul.f32 %v13961_v59, %v6327_v51  ;;  %vm14039_vm5 = vmor %vm6250_vm1, %vm6251_vm3 }
 0xee3   :  { %v6334_v21 = vand.u32 2147483647, %v13916_v12  ;;  %v6397_v16 = vmul.f32 %v6396_v31, %v13981_v18  ;;  %v6447_v22 = vsub.f32 1.0, %v6446_v60  ;;  %v6348_v46 = vmul.f32 %v6347_v1, %v13891_v58 }
 0xee4   :  { %v6462_v52 = vmul.f32 %v14016_v43, %v14016_v43  ;;  %v14026_v25 = vmul.f32 0.70710677, %v14011_v3  ;;  %vm6330_vm4 = vweird.f32 %v13916_v12  ;;  %v6432_v48 = vmul.f32 %v6431_v57, %v13777_v32 }
 0xee5   :  { %v6386_v44 = vmul.f32 %v6385_v20, %v13981_v18  ;;  %v6398_v7 = vadd.f32 0.014752088, %v6397_v16  ;;  %v14033_v36 = vadd.f32 1.0, %v8472_v24  ;;  %v6337_v39 = vor.u32 1.1754944e-38, %v6336_v11  ;;  %v14063_v24 = vpop.f32.mrf.mxu3 }
 0xee6   :  { %v14031_v13 = vpop.eup %9160  ;;  %v14043_v10 = vmin.f32 %v6462_v52, 16.0  ;;  %v6582_v32 = vmul.f32 %v14026_v25, %v14026_v25  ;;  %v6253_v30 = vsel %vm14039_vm5, %v13940_v63, %v6249_v56  ;;  %v6329_v37 = vadd.f32 %v13961_v59, %v6328_v28 }
 0xee7   :  { %vm6331_vm6 = vweird.f32 %v13961_v59  ;;  %vm14052_vm7 = vcmp.eq.f32.partialorder %v6334_v21, 8.507059e+37  ;;  %v6399_v26 = vmul.f32 %v6398_v7, %v13981_v18  ;;  %v6448_v41 = vmul.f32 %v13983_v55, %v6447_v22 }
 0xee8   :  { %v6349_v51 = vadd.f32 0.05243302, %v6348_v46  ;;  %v6475_v60 = vmul.f32 3.8918573e-05, %v14043_v10  ;;  %v14059_v1 = vmin.f32 %v6582_v32, 16.0  ;;  %v6366_v63 = vmul.f32 %v14031_v13, %v13990_v2  ;;  %vm14069_vm8 = vmor %vm6330_vm4, %vm6331_vm6 }
 0xee9   :  { %v6433_v57 = vadd.f32 1.1283791, %v6432_v48  ;;  %v6387_v20 = vadd.f32 0.0036580483, %v6386_v44  ;;  %v6400_v31 = vadd.f32 0.112945676, %v6399_v26  ;;  %v6258_v11 = vsel %vm14002_vm2, %v6257_v17, %v6253_v30 }
 0xeea   :  { %v6456_v28 = vand.u32 2147483648, %v13938_v4  ;;  %v6464_v21 = vmul.f32 2.1237322e-06, %v14043_v10  ;;  %v6476_v16 = vadd.f32 0.001143296, %v6475_v60  ;;  %v6333_v22 = vsel %vm14069_vm8, %v13961_v59, %v6329_v37 }
 0xeeb   :  { %vm6451_vm9 = vweird.f32 %v13983_v55  ;;  %v6401_v0 = vmul.f32 %v6400_v31, %v13981_v18  ;;  %v6595_v17 = vmul.f32 3.8918573e-05, %v14059_v1  ;;  %v6449_v12 = vadd.f32 %v13983_v55, %v6448_v41 }
 0xeec   :  { %v6350_v46 = vmul.f32 %v6349_v51, %v13891_v58  ;;  %v6477_v52 = vmul.f32 %v6476_v16, %v14043_v10  ;;  %v14085_v48 = vmul.f32 0.70710677, %v14063_v24  ;;  %v6367_v44 = vsub.f32 1.0, %v6366_v63 }
 0xeed   :  { %v6388_v7 = vmul.f32 %v6387_v20, %v13981_v18  ;;  %v6402_v8 = vadd.f32 0.4994258, %v6401_v0  ;;  %v6596_v59 = vadd.f32 0.001143296, %v6595_v17  ;;  %vm6450_vm10 = vweird.f32 %v13938_v4 }
 0xeee   :  { %v6465_v32 = vadd.f32 0.00028619796, %v6464_v21  ;;  %v6478_v30 = vadd.f32 0.014752088, %v6477_v52  ;;  %v6584_v37 = vmul.f32 2.1237322e-06, %v14059_v1  ;;  %v6338_v63 = vsel %vm14052_vm7, %v6337_v39, %v6333_v22  ;;  %vm14097_vm11 = vmor %vm6450_vm10, %vm6451_vm9 }
 0xeef   :  { %v6454_v26 = vand.u32 2147483647, %v13938_v4  ;;  %v6457_v41 = vor.u32 1.1754944e-38, %v6456_v28  ;;  %v6403_v51 = vmul.f32 %v6402_v8, %v13981_v18  ;;  %v6597_v60 = vmul.f32 %v6596_v59, %v14059_v1 }
 0xef0   :  { %v6351_v31 = vadd.f32 0.18741608, %v6350_v46  ;;  %v6479_v56 = vmul.f32 %v6478_v30, %v14043_v10  ;;  %v6502_v4 = vmul.f32 %v14085_v48, %v14085_v48  ;;  %v6453_v28 = vsel %vm14097_vm11, %v13983_v55, %v6449_v12 }
 0xef1   :  { %v6389_v21 = vadd.f32 0.05243302, %v6388_v7  ;;  %v14107_v16 = vadd.f32 1.0, %v6403_v51  ;;  %v6598_v39 = vadd.f32 0.014752088, %v6597_v60  ;;  %v6368_v62 = vmul.f32 %v14031_v13, %v6367_v44 }
 0xef2   :  { %v6466_v22 = vmul.f32 %v6465_v32, %v14043_v10  ;;  %v6480_v0 = vadd.f32 0.112945676, %v6479_v56  ;;  %v6585_v17 = vadd.f32 0.00028619796, %v6584_v37  ;;  %v6259_v46 = vmul.f32 %v6258_v11, %v13986_v45 }
 0xef3   :  { %v6434_v52 = vmul.f32 %v6433_v57, %v13746_v29  ;;  %vm6455_vm12 = vcmp.eq.f32.partialorder %v6454_v26, 8.507059e+37  ;;  %9162 = vrcp.f32 %v14107_v16  ;;  %v6339_v8 = vmul.f32 %v6338_v63, %v14007_v33  ;;  %v14129_v26 = vpop.f32.mrf.mxu2 }
 0xef4   :  { %v6458_v55 = vsel %vm6455_vm12, %v6457_v41, %v6453_v28  ;;  %v6481_v12 = vmul.f32 %v6480_v0, %v14043_v10  ;;  %v14116_v7 = vmin.f32 %v6502_v4, 16.0  ;;  %v6352_v44 = vmul.f32 %v6351_v31, %v13891_v58 }
 0xef5   :  { %vm6371_vm13 = vweird.f32 %v14031_v13  ;;  %v6390_v59 = vmul.f32 %v6389_v21, %v13981_v18  ;;  %v6599_v45 = vmul.f32 %v6598_v39, %v14059_v1  ;;  %v6369_v29 = vadd.f32 %v14031_v13, %v6368_v62 }
 0xef6   :  { %v6467_v57 = vadd.f32 0.0036580483, %v6466_v22  ;;  %v6482_v11 = vadd.f32 0.4994258, %v6481_v12  ;;  %v6586_v32 = vmul.f32 %v6585_v17, %v14059_v1  ;;  %v14126_v33 = vmul.f32 %v14033_v36, %v13753_v38 }
 0xef7   :  { %v6459_v30 = vmul.f32 %v6458_v55, %v6434_v52  ;;  %v6376_v37 = vand.u32 2147483648, %v13990_v2  ;;  %v6600_v58 = vadd.f32 0.112945676, %v6599_v45  ;;  %vm6370_vm14 = vweird.f32 %v13990_v2 }
 0xef8   :  { %v6374_v41 = vand.u32 2147483647, %v13990_v2  ;;  %v6483_v51 = vmul.f32 %v6482_v11, %v14043_v10  ;;  %v6515_v60 = vmul.f32 3.8918573e-05, %v14116_v7  ;;  %v8473_v20 = vclamps-f32 %v6259_v46, 1.0  ;;  %vm14139_vm15 = vmor %vm6370_vm14, %vm6371_vm13 }
 0xef9   :  { %v14135_v63 = vpop.eup %9162  ;;  %v8475_v31 = vclamps-f32 %v6339_v8, 1.0  ;;  %v6353_v38 = vadd.f32 1.1283791, %v6352_v44  ;;  %v6391_v56 = vadd.f32 0.18741608, %v6390_v59  ;;  %v6373_v2 = vsel %vm14139_vm15, %v14031_v13, %v6369_v29 }
 0xefa   :  { %v6468_v4 = vmul.f32 %v6467_v57, %v14043_v10  ;;  %v6587_v28 = vadd.f32 0.0036580483, %v6586_v32  ;;  %v14148_v21 = vmul.f32 0.70710677, %v14129_v26  ;;  %v6377_v39 = vor.u32 1.1754944e-38, %v6376_v37 }
 0xefb   :  { %v6601_v62 = vmul.f32 %v6600_v58, %v14059_v1  ;;  %v6504_v22 = vmul.f32 2.1237322e-06, %v14116_v7  ;;  %v6516_v0 = vadd.f32 0.001143296, %v6515_v60  ;;  %v8478_v17 = vclamps-f32 %v6459_v30, 1.0 }
 0xefc   :  { %vm6375_vm0 = vcmp.eq.f32.partialorder %v6374_v41, 8.507059e+37  ;;  %v6406_v46 = vmul.f32 %v14135_v63, %v14107_v16  ;;  %v14154_v52 = vadd.f32 1.0, %v6483_v51  ;;  %v7456_v13 = vadd.f32 1.0, %v8473_v20 }
 0xefd   :  { %v7458_v8 = vadd.f32 1.0, %v8475_v31  ;;  %v6378_v55 = vsel %vm6375_vm0, %v6377_v39, %v6373_v2  ;;  %v6392_v12 = vmul.f32 %v6391_v56, %v13981_v18  ;;  %v6469_v44 = vadd.f32 0.05243302, %v6468_v4  ;;  %v4574_v4 = vpop.f32.mrf.mxu1 }
 0xefe   :  { %v6588_v59 = vmul.f32 %v6587_v28, %v14059_v1  ;;  %v6517_v45 = vmul.f32 %v6516_v0, %v14116_v7  ;;  %v6542_v29 = vmul.f32 %v14148_v21, %v14148_v21  ;;  %v14162_v57 = vmul.f32 0.5, %v13856_v34 }
 0xeff   :  { %v6354_v11 = vmul.f32 %v6353_v38, %v13868_v35  ;;  %v6602_v32 = vadd.f32 0.4994258, %v6601_v62  ;;  %v6505_v30 = vadd.f32 0.00028619796, %v6504_v22  ;;  %v7461_v37 = vadd.f32 1.0, %v8478_v17  ;;  %v14198_v17 = vpop.f32.mrf.mxu0 }
 0xf00   :  { %v6407_v58 = vsub.f32 1.0, %v6406_v46  ;;  %9164 = vrcp.f32 %v14154_v52  ;;  %v6518_v18 = vadd.f32 0.014752088, %v6517_v45  ;;  %v14167_v41 = vmul.f32 %v7456_v13, %v13757_v15 }
 0xf01   :  { %v6379_v51 = vmul.f32 %v6378_v55, %v6354_v11  ;;  %v6393_v60 = vadd.f32 1.1283791, %v6392_v12  ;;  %v14169_v20 = vmin.f32 %v6542_v29, 16.0  ;;  %v14172_v31 = vmul.f32 %v7458_v8, %v13924_v27 }
 0xf02   :  { %v6470_v34 = vmul.f32 %v6469_v44, %v14043_v10  ;;  %v6589_v35 = vadd.f32 0.05243302, %v6588_v59  ;;  %v6519_v38 = vmul.f32 %v6518_v18, %v14116_v7  ;;  %v14177_v36 = vmul.f32 0.5, %v13959_v42 }
 0xf03   :  { %v14180_v56 = vmul.f32 0.5, %v14009_v40  ;;  %v6603_v15 = vmul.f32 %v6602_v32, %v14059_v1  ;;  %v6506_v2 = vmul.f32 %v6505_v30, %v14116_v7  ;;  %v14185_v28 = vmul.f32 %v7461_v37, %v13933_v49 }
 0xf04   :  { %v6408_v27 = vmul.f32 %v14135_v63, %v6407_v58  ;;  %v14189_v39 = vmul.f32 0.5, %v14011_v3  ;;  %v6520_v62 = vadd.f32 0.112945676, %v6519_v38  ;;  %v8476_v22 = vclamps-f32 %v6379_v51, 1.0 }
 0xf05   :  { %v14192_v42 = vmul.f32 %v6393_v60, %v13968_v6  ;;  %v14195_v40 = vmul.f32 0.5, %v14063_v24  ;;  %v6555_v0 = vmul.f32 3.8918573e-05, %v14169_v20  ;;  %v6471_v49 = vadd.f32 0.18741608, %v6470_v34 }
 0xf06   :  { %v14200_v46 = vpop.eup %9164  ;;  %v6590_v13 = vmul.f32 %v6589_v35, %v14059_v1  ;;  %v6521_v3 = vmul.f32 %v6520_v62, %v14116_v7  ;;  %v14204_v8 = vmul.f32 0.70710677, %v4574_v4  ;;  %vm6410_vm1 = vweird.f32 %v14107_v16 }
 0xf07   :  { %v14207_v6 = vadd.f32 1.0, %v6603_v15  ;;  %v6507_v55 = vadd.f32 0.0036580483, %v6506_v2  ;;  %v6556_v24 = vadd.f32 0.001143296, %v6555_v0  ;;  %v6409_v12 = vadd.f32 %v14135_v63, %v6408_v27 }
 0xf08   :  { %vm6411_vm2 = vweird.f32 %v14135_v63  ;;  %v6414_v44 = vand.u32 2147483647, %v14107_v16  ;;  %v14213_v59 = vmul.f32 0.70710677, %v14198_v17  ;;  %v6486_v45 = vmul.f32 %v14200_v46, %v14154_v52 }
 0xf09   :  { %v6522_v29 = vadd.f32 0.4994258, %v6521_v3  ;;  %v6544_v11 = vmul.f32 2.1237322e-06, %v14169_v20  ;;  %v6557_v32 = vmul.f32 %v6556_v24, %v14169_v20  ;;  %v6416_v30 = vand.u32 2147483648, %v14107_v16  ;;  %vm14225_vm3 = vmor %vm6410_vm1, %vm6411_vm2 }
 0xf0a   :  { %v6472_v37 = vmul.f32 %v6471_v49, %v14043_v10  ;;  %v6591_v58 = vadd.f32 0.18741608, %v6590_v13  ;;  %v6622_v18 = vmul.f32 %v14204_v8, %v14204_v8  ;;  %9166 = vrcp.f32 %v14207_v6 }
 0xf0b   :  { %v6508_v60 = vmul.f32 %v6507_v55, %v14116_v7  ;;  %v6523_v34 = vmul.f32 %v6522_v29, %v14116_v7  ;;  %v6558_v35 = vadd.f32 0.014752088, %v6557_v32  ;;  %v7459_v38 = vadd.f32 1.0, %v8476_v22 }
 0xf0c   :  { %v6413_v10 = vsel %vm14225_vm3, %v14135_v63, %v6409_v12  ;;  %v14235_v15 = vmin.f32 %v6622_v18, 16.0  ;;  %v6742_v16 = vmul.f32 %v14213_v59, %v14213_v59  ;;  %v6487_v2 = vsub.f32 1.0, %v6486_v45 }
 0xf0d   :  { %v14239_v27 = vadd.f32 1.0, %v6523_v34  ;;  %v6545_v62 = vadd.f32 0.00028619796, %v6544_v11  ;;  %v6559_v0 = vmul.f32 %v6558_v35, %v14169_v20  ;;  %vm6415_vm4 = vcmp.eq.f32.partialorder %v6414_v44, 8.507059e+37 }
 0xf0e   :  { %v6417_v49 = vor.u32 1.1754944e-38, %v6416_v30  ;;  %v6473_v13 = vadd.f32 1.1283791, %v6472_v37  ;;  %v6624_v22 = vmul.f32 2.1237322e-06, %v14235_v15  ;;  %v6592_v3 = vmul.f32 %v6591_v58, %v14059_v1 }
 0xf0f   :  { %v6509_v55 = vadd.f32 0.05243302, %v6508_v60  ;;  %v6635_v63 = vmul.f32 3.8918573e-05, %v14235_v15  ;;  %v14245_v24 = vmin.f32 %v6742_v16, 16.0  ;;  %v14248_v12 = vmul.f32 %v7459_v38, %v14162_v57 }
 0xf10   :  { %v6418_v45 = vsel %vm6415_vm4, %v6417_v49, %v6413_v10  ;;  %v6560_v29 = vadd.f32 0.112945676, %v6559_v0  ;;  %v14250_v11 = vmul.f32 0.5, %v4574_v4  ;;  %v14252_v32 = vpop.eup %9166  ;;  %v6488_v44 = vmul.f32 %v14200_v46, %v6487_v2 }
 0xf11   :  { %9168 = vrcp.f32 %v14239_v27  ;;  %v6546_v1 = vmul.f32 %v6545_v62, %v14169_v20  ;;  %v6625_v30 = vadd.f32 0.00028619796, %v6624_v22  ;;  %v6474_v37 = vmul.f32 %v6473_v13, %v14016_v43 }
 0xf12   :  { %v6494_v58 = vand.u32 2147483647, %v14154_v52  ;;  %v6496_v57 = vand.u32 2147483648, %v14154_v52  ;;  %v6561_v18 = vmul.f32 %v6560_v29, %v14169_v20  ;;  %v6593_v51 = vadd.f32 1.1283791, %v6592_v3 }
 0xf13   :  { %v6510_v4 = vmul.f32 %v6509_v55, %v14116_v7  ;;  %v6636_v60 = vadd.f32 0.001143296, %v6635_v63  ;;  %v6744_v34 = vmul.f32 2.1237322e-06, %v14245_v24  ;;  %v6419_v35 = vmul.f32 %v6418_v45, %v14192_v42  ;;  %v14279_v45 = vpop.f32.mrf.mxu3 }
 0xf14   :  { %vm6491_vm5 = vweird.f32 %v14200_v46  ;;  %v6606_v38 = vmul.f32 %v14252_v32, %v14207_v6  ;;  %v6755_v43 = vmul.f32 3.8918573e-05, %v14245_v24  ;;  %v6489_v10 = vadd.f32 %v14200_v46, %v6488_v44 }
 0xf15   :  { %v6547_v16 = vadd.f32 0.0036580483, %v6546_v1  ;;  %v6626_v2 = vmul.f32 %v6625_v30, %v14235_v15  ;;  %v6637_v62 = vmul.f32 %v6636_v60, %v14235_v15  ;;  %vm14271_vm6 = vcmp.eq.f32.partialorder %v6494_v58, 8.507059e+37 }
 0xf16   :  { %v6497_v49 = vor.u32 1.1754944e-38, %v6496_v57  ;;  %v6616_v42 = vand.u32 2147483648, %v14207_v6  ;;  %v6562_v13 = vadd.f32 0.4994258, %v6561_v18  ;;  %vm6490_vm7 = vweird.f32 %v14154_v52 }
 0xf17   :  { %v14276_v22 = vpop.eup %9168  ;;  %v6511_v3 = vadd.f32 0.18741608, %v6510_v4  ;;  %v6638_v55 = vadd.f32 0.014752088, %v6637_v62  ;;  %v6745_v63 = vadd.f32 0.00028619796, %v6744_v34  ;;  %vm14283_vm8 = vmor %vm6490_vm7, %vm6491_vm5  ;;  %v14288_v1 = vmul.f32 %v6593_v51, %v14026_v25  ;;  %v14308_v62 = vpop.f32.mrf.mxu2 }
 0xf18   :  { %v8477_v29 = vclamps-f32 %v6419_v35, 1.0  ;;  %v6607_v30 = vsub.f32 1.0, %v6606_v38  ;;  %v6756_v58 = vadd.f32 0.001143296, %v6755_v43  ;;  %v6493_v52 = vsel %vm14283_vm8, %v14200_v46, %v6489_v10  ;;  %15764 = vst [vmem:[#allocation48_spill] sm:$0xff] %v14308_v62 }
 0xf19   :  { %v6548_v57 = vmul.f32 %v6547_v16, %v14169_v20  ;;  %v6627_v18 = vadd.f32 0.0036580483, %v6626_v2  ;;  %v6639_v4 = vmul.f32 %v6638_v55, %v14235_v15  ;;  %vm6610_vm9 = vweird.f32 %v14207_v6 }
 0xf1a   :  { %v6526_v60 = vmul.f32 %v14276_v22, %v14239_v27  ;;  %v6563_v34 = vmul.f32 %v6562_v13, %v14169_v20  ;;  %v6757_v25 = vmul.f32 %v6756_v58, %v14245_v24  ;;  %v14301_v51 = vmul.f32 0.70710677, %v14279_v45 }
 0xf1b   :  { %v6614_v35 = vand.u32 2147483647, %v14207_v6  ;;  %v6617_v46 = vor.u32 1.1754944e-38, %v6616_v42  ;;  %v6512_v38 = vmul.f32 %v6511_v3, %v14116_v7  ;;  %v6746_v43 = vmul.f32 %v6745_v63, %v14245_v24 }
 0xf1c   :  { %v7460_v10 = vadd.f32 1.0, %v8477_v29  ;;  %v6608_v16 = vmul.f32 %v14252_v32, %v6607_v30  ;;  %vm6611_vm10 = vweird.f32 %v14252_v32  ;;  %v6640_v2 = vadd.f32 0.112945676, %v6639_v4 }
 0xf1d   :  { %v6498_v13 = vsel %vm14271_vm6, %v6497_v49, %v6493_v52  ;;  %v6549_v55 = vadd.f32 0.05243302, %v6548_v57  ;;  %v6758_v44 = vadd.f32 0.014752088, %v6757_v25  ;;  %v6662_v42 = vmul.f32 %v14301_v51, %v14301_v51  ;;  %vm14340_vm12 = vmor %vm6610_vm9, %vm6611_vm10 }
 0xf1e   :  { %v6527_v58 = vsub.f32 1.0, %v6526_v60  ;;  %v14314_v7 = vadd.f32 1.0, %v6563_v34  ;;  %v6628_v3 = vmul.f32 %v6627_v18, %v14235_v15  ;;  %v6641_v63 = vmul.f32 %v6640_v2, %v14235_v15 }
 0xf1f   :  { %v6747_v29 = vadd.f32 0.0036580483, %v6746_v43  ;;  %v6759_v30 = vmul.f32 %v6758_v44, %v14245_v24  ;;  %v14319_v4 = vmin.f32 %v6662_v42, 16.0  ;;  %v14322_v0 = vmul.f32 0.70710677, %v14308_v62 }
 0xf20   :  { %v6499_v49 = vmul.f32 %v6498_v13, %v6474_v37  ;;  %v6609_v52 = vadd.f32 %v14252_v32, %v6608_v16  ;;  %vm14325_vm11 = vcmp.eq.f32.partialorder %v6614_v35, 8.507059e+37  ;;  %v6513_v60 = vadd.f32 1.1283791, %v6512_v38 }
 0xf21   :  { %v6642_v34 = vadd.f32 0.4994258, %v6641_v63  ;;  %v6550_v18 = vmul.f32 %v6549_v55, %v14169_v20  ;;  %v6760_v25 = vadd.f32 0.112945676, %v6759_v30  ;;  %v6664_v43 = vmul.f32 2.1237322e-06, %v14319_v4 }
 0xf22   :  { %v6675_v2 = vmul.f32 3.8918573e-05, %v14319_v4  ;;  %v6528_v44 = vmul.f32 %v14276_v22, %v6527_v58  ;;  %9170 = vrcp.f32 %v14314_v7  ;;  %v6629_v37 = vadd.f32 0.05243302, %v6628_v3 }
 0xf23   :  { %v6702_v35 = vmul.f32 %v14322_v0, %v14322_v0  ;;  %v6643_v16 = vmul.f32 %v6642_v34, %v14235_v15  ;;  %v6748_v13 = vmul.f32 %v6747_v29, %v14245_v24  ;;  %v6761_v55 = vmul.f32 %v6760_v25, %v14245_v24 }
 0xf24   :  { %v6665_v42 = vadd.f32 0.00028619796, %v6664_v43  ;;  %v14348_v58 = vmul.f32 %v7460_v10, %v14177_v36  ;;  %v6613_v3 = vsel %vm14340_vm12, %v14252_v32, %v6609_v52  ;;  %v14354_v6 = vmul.f32 %v6513_v60, %v14085_v48 }
 0xf25   :  { %v6676_v63 = vadd.f32 0.001143296, %v6675_v2  ;;  %v6551_v30 = vadd.f32 0.18741608, %v6550_v18  ;;  %v14356_v62 = vadd.f32 1.0, %v6643_v16  ;;  %v6529_v25 = vadd.f32 %v14276_v22, %v6528_v44 }
 0xf26   :  { %v6762_v34 = vadd.f32 0.4994258, %v6761_v55  ;;  %v6666_v29 = vmul.f32 %v6665_v42, %v14319_v4  ;;  %vm6531_vm13 = vweird.f32 %v14276_v22  ;;  %v14362_v10 = vmin.f32 %v6702_v35, 16.0 }
 0xf27   :  { %v6677_v36 = vmul.f32 %v6676_v63, %v14319_v4  ;;  %v8479_v43 = vclamps-f32 %v6499_v49, 1.0  ;;  %v6630_v32 = vmul.f32 %v6629_v37, %v14235_v15  ;;  %9172 = vrcp.f32 %v14356_v62 }
 0xf28   :  { %v6749_v48 = vadd.f32 0.05243302, %v6748_v13  ;;  %v14366_v52 = vpop.eup %9170  ;;  %vm6530_vm14 = vweird.f32 %v14239_v27  ;;  %v6536_v60 = vand.u32 2147483648, %v14239_v27  ;;  %v6763_v18 = vmul.f32 %v6762_v34, %v14245_v24 }
 0xf29   :  { %v6667_v2 = vadd.f32 0.0036580483, %v6666_v29  ;;  %v6618_v44 = vsel %vm14325_vm11, %v6617_v46, %v6613_v3  ;;  %vm14373_vm15 = vmor %vm6530_vm14, %vm6531_vm13  ;;  %v6534_v49 = vand.u32 2147483647, %v14239_v27  ;;  %v6678_v37 = vadd.f32 0.014752088, %v6677_v36 }
 0xf2a   :  { %v6704_v38 = vmul.f32 2.1237322e-06, %v14362_v10  ;;  %v6533_v16 = vsel %vm14373_vm15, %v14276_v22, %v6529_v25  ;;  %v6552_v13 = vmul.f32 %v6551_v30, %v14169_v20  ;;  %v14383_v55 = vadd.f32 1.0, %v6763_v18 }
 0xf2b   :  { %v6668_v57 = vmul.f32 %v6667_v2, %v14319_v4  ;;  %v6631_v46 = vadd.f32 0.18741608, %v6630_v32  ;;  %v6750_v42 = vmul.f32 %v6749_v48, %v14245_v24  ;;  %v6679_v3 = vmul.f32 %v6678_v37, %v14319_v4 }
 0xf2c   :  { %v6705_v63 = vadd.f32 0.00028619796, %v6704_v38  ;;  %v6537_v27 = vor.u32 1.1754944e-38, %v6536_v60  ;;  %v6566_v34 = vmul.f32 %v14366_v52, %v14314_v7  ;;  %9174 = vrcp.f32 %v14383_v55 }
 0xf2d   :  { %v6715_v22 = vmul.f32 3.8918573e-05, %v14362_v10  ;;  %v9173_v29 = vpop.eup %9172  ;;  %v14392_v20 = vadd.f32 1.0, %v8479_v43  ;;  %v14395_v30 = vmul.f32 %v6618_v44, %v14288_v1  ;;  %vm6535_vm0 = vcmp.eq.f32.partialorder %v6534_v49, 8.507059e+37 }
 0xf2e   :  { %v6680_v25 = vadd.f32 0.112945676, %v6679_v3  ;;  %v14397_v36 = vsel %vm6535_vm0, %v6537_v27, %v6533_v16  ;;  %v14399_v32 = vadd.f32 1.1283791, %v6552_v13  ;;  %v6646_v48 = vmul.f32 %v9173_v29, %v14356_v62 }
 0xf2f   :  { %v6669_v60 = vadd.f32 0.05243302, %v6668_v57  ;;  %v6632_v18 = vmul.f32 %v6631_v46, %v14235_v15  ;;  %v6751_v2 = vadd.f32 0.18741608, %v6750_v42  ;;  %v6706_v43 = vmul.f32 %v6705_v63, %v14362_v10 }
 0xf30   :  { %v6681_v35 = vmul.f32 %v6680_v25, %v14319_v4  ;;  %v6567_v37 = vsub.f32 1.0, %v6566_v34  ;;  %v6647_v38 = vsub.f32 1.0, %v6646_v48  ;;  %v6716_v1 = vadd.f32 0.001143296, %v6715_v22 }
 0xf31   :  { %v7562_v44 = vpack.c.bf16 %v13734_v5, %v13547_v19  ;;  %vm6651_vm1 = vweird.f32 %v9173_v29  ;;  %v6656_v49 = vand.u32 2147483648, %v14356_v62  ;;  %v7563_v13 = vpack.c.bf16 %v13929_v9, %v13615_v14 }
 0xf32   :  { %v6682_v16 = vadd.f32 0.4994258, %v6681_v35  ;;  %v9175_v57 = vpop.eup %9174  ;;  %v6648_v15 = vmul.f32 %v9173_v29, %v6647_v38  ;;  %v6670_v46 = vmul.f32 %v6669_v60, %v14319_v4  ;;  %v6717_v42 = vmul.f32 %v6716_v1, %v14362_v10 }
 0xf33   :  { %7861 = vmatmul.bf16.gmra.mxu1 %v7562_v44  ;;  %v7564_v3 = vpack.c.bf16 %v13936_v53, %v13689_v23  ;;  %vm6650_vm2 = vweird.f32 %v14356_v62  ;;  %v6766_v19 = vmul.f32 %v9175_v57, %v14383_v55  ;;  %v6707_v63 = vadd.f32 0.0036580483, %v6706_v43  ;;  %7910 = vmatmul.bf16.gmra.mxu3 %v7563_v13 }
 0xf34   :  { %v6683_v5 = vmul.f32 %v6682_v16, %v14319_v4  ;;  %v6649_v27 = vadd.f32 %v9173_v29, %v6648_v15  ;;  %v6654_v14 = vand.u32 2147483647, %v14356_v62  ;;  %v6718_v9 = vadd.f32 0.014752088, %v6717_v42  ;;  %vm14421_vm3 = vmor %vm6650_vm2, %vm6651_vm1 }
 0xf35   :  { %7959 = vmatmul.bf16.gmra.mxu2 %v7564_v3  ;;  %v7565_v34 = vpack.c.bf16 %v13800_v50, %v13574_v54  ;;  %v6633_v22 = vadd.f32 1.1283791, %v6632_v18  ;;  %v6752_v53 = vmul.f32 %v6751_v2, %v14245_v24  ;;  %v6767_v25 = vsub.f32 1.0, %v6766_v19 }
 0xf36   :  { %v14426_v48 = vadd.f32 1.0, %v6683_v5  ;;  %v6653_v60 = vsel %vm14421_vm3, %v9173_v29, %v6649_v27  ;;  %v6657_v62 = vor.u32 1.1754944e-38, %v6656_v49  ;;  %v6671_v35 = vadd.f32 0.18741608, %v6670_v46 }
 0xf37   :  { %v6719_v43 = vmul.f32 %v6718_v9, %v14362_v10  ;;  %8008 = vmatmul.bf16.gmra.mxu0 %v7565_v34  ;;  %v6768_v54 = vmul.f32 %v9175_v57, %v6767_v25  ;;  %vm6771_vm4 = vweird.f32 %v9175_v57  ;;  %v6708_v50 = vmul.f32 %v6707_v63, %v14362_v10 }
 0xf38   :  { %9176 = vrcp.f32 %v14426_v48  ;;  %v6568_v18 = vmul.f32 %v14366_v52, %v6567_v37  ;;  %vm6655_vm5 = vcmp.eq.f32.partialorder %v6654_v14, 8.507059e+37  ;;  %vm6770_vm6 = vweird.f32 %v14383_v55 }
 0xf39   :  { %v6776_v24 = vand.u32 2147483648, %v14383_v55  ;;  %v6658_v2 = vsel %vm6655_vm5, %v6657_v62, %v6653_v60  ;;  %v6769_v29 = vadd.f32 %v9175_v57, %v6768_v54  ;;  %v6774_v38 = vand.u32 2147483647, %v14383_v55  ;;  %vm14441_vm8 = vmor %vm6770_vm6, %vm6771_vm4 }
 0xf3a   :  { %v6720_v1 = vadd.f32 0.112945676, %v6719_v43  ;;  %vm6570_vm7 = vweird.f32 %v14314_v7  ;;  %v6574_v44 = vand.u32 2147483647, %v14314_v7  ;;  %v6634_v49 = vmul.f32 %v6633_v22, %v14204_v8 }
 0xf3b   :  { %v6753_v16 = vadd.f32 1.1283791, %v6752_v53  ;;  %v6773_v13 = vsel %vm14441_vm8, %v9175_v57, %v6769_v29  ;;  %v6672_v15 = vmul.f32 %v6671_v35, %v14319_v4  ;;  %v6709_v46 = vadd.f32 0.05243302, %v6708_v50 }
 0xf3c   :  { %v6721_v55 = vmul.f32 %v6720_v1, %v14362_v10  ;;  %v6539_v42 = vmul.f32 %v14397_v36, %v14354_v6  ;;  %v6576_v3 = vand.u32 2147483648, %v14314_v7  ;;  %v6659_v8 = vmul.f32 %v6658_v2, %v6634_v49  ;;  %v14458_v6 = vpop.f32.mrf.mxu1 }
 0xf3d   :  { %v6777_v19 = vor.u32 1.1754944e-38, %v6776_v24  ;;  %v6569_v63 = vadd.f32 %v14366_v52, %v6568_v18  ;;  %vm6571_vm9 = vweird.f32 %v14366_v52  ;;  %vm6775_vm10 = vcmp.eq.f32.partialorder %v6774_v38, 8.507059e+37 }
 0xf3e   :  { %v9177_v5 = vpop.eup %9176  ;;  %v6722_v27 = vadd.f32 0.4994258, %v6721_v55  ;;  %v6754_v57 = vmul.f32 %v6753_v16, %v14213_v59  ;;  %v7566_v9 = vpack.c.bf16 %v14172_v31, %v13972_v47  ;;  %v6673_v36 = vadd.f32 1.1283791, %v6672_v15  ;;  %vm14478_vm11 = vmor %vm6570_vm7, %vm6571_vm9 }
 0xf3f   :  { %v6778_v4 = vsel %vm6775_vm10, %v6777_v19, %v6773_v13  ;;  %v6686_v14 = vmul.f32 %v9177_v5, %v14426_v48  ;;  %v6710_v34 = vmul.f32 %v6709_v46, %v14362_v10  ;;  %v7567_v23 = vpack.c.bf16 %v14248_v12, %v14126_v33 }
 0xf40   :  { %v6723_v22 = vmul.f32 %v6722_v27, %v14362_v10  ;;  %v8483_v53 = vclamps-f32 %v6659_v8, 1.0  ;;  %v7568_v59 = vpack.c.bf16 %v14348_v58, %v14167_v41  ;;  %v14467_v60 = vmul.f32 0.70710677, %v14458_v6 }
 0xf41   :  { %v6687_v25 = vsub.f32 1.0, %v6686_v14  ;;  %v6779_v62 = vmul.f32 %v6778_v4, %v6754_v57  ;;  %v6696_v47 = vand.u32 2147483648, %v14426_v48  ;;  %v7569_v35 = vpack.c.bf16 %v14185_v28, %v13997_v61 }
 0xf42   :  { %v14470_v31 = vadd.f32 1.0, %v6723_v22  ;;  %vm6691_vm12 = vweird.f32 %v9177_v5  ;;  %v6694_v12 = vand.u32 2147483647, %v14426_v48  ;;  %v6782_v58 = vmul.f32 %v14467_v60, %v14467_v60 }
 0xf43   :  { %v6688_v41 = vmul.f32 %v9177_v5, %v6687_v25  ;;  %7866 = vmatmul.bf16.gmra.mxu1 %v7566_v9  ;;  %v8480_v43 = vclamps-f32 %v6539_v42, 1.0  ;;  %v6573_v61 = vsel %vm14478_vm11, %v14366_v52, %v6569_v63  ;;  %vm6690_vm13 = vweird.f32 %v14426_v48  ;;  %7915 = vmatmul.bf16.gmra.mxu3 %v7567_v23 }
 0xf44   :  { %9178 = vrcp.f32 %v14470_v31  ;;  %v7466_v28 = vadd.f32 1.0, %v8483_v53  ;;  %v6711_v54 = vadd.f32 0.18741608, %v6710_v34  ;;  %v14490_v50 = vmin.f32 %v6782_v58, 16.0  ;;  %vm6692_vm15 = vmor %vm6690_vm13, %vm6691_vm12 }
 0xf45   :  { %v6689_v7 = vadd.f32 %v9177_v5, %v6688_v41  ;;  %7964 = vmatmul.bf16.gmra.mxu2 %v7568_v59  ;;  %vm6575_vm14 = vcmp.eq.f32.partialorder %v6574_v44, 8.507059e+37  ;;  %v6577_v18 = vor.u32 1.1754944e-38, %v6576_v3  ;;  %v8486_v24 = vclamps-f32 %v6779_v62, 1.0  ;;  %v14515_v41 = vpop.f32.mrf.mxu0 }
 0xf46   :  { %v6697_v2 = vor.u32 1.1754944e-38, %v6696_v47  ;;  %v6674_v29 = vmul.f32 %v6673_v36, %v14301_v51  ;;  %vm6695_vm0 = vcmp.eq.f32.partialorder %v6694_v12, 8.507059e+37  ;;  %v6795_v48 = vmul.f32 3.8918573e-05, %v14490_v50 }
 0xf47   :  { %v6693_v52 = vsel %vm6692_vm15, %v9177_v5, %v6689_v7  ;;  %8013 = vmatmul.bf16.gmra.mxu0 %v7569_v35  ;;  %v8482_v38 = vclamps-f32 %v14395_v30, 1.0  ;;  %v7463_v1 = vadd.f32 1.0, %v8480_v43  ;;  %v6578_v49 = vsel %vm6575_vm14, %v6577_v18, %v6573_v61 }
 0xf48   :  { %v6698_v16 = vsel %vm6695_vm0, %v6697_v2, %v6693_v52  ;;  %v7530_v37 = vmul.f32 %v7466_v28, %v14250_v11  ;;  %v6712_v13 = vmul.f32 %v6711_v54, %v14362_v10  ;;  %v6796_v15 = vadd.f32 0.001143296, %v6795_v48  ;;  %v15777_v2 = vld [vmem:[#allocation48_spill] sm:$0xff]  ;;  %v14528_v48 = vpop.f32.mrf.mxu3 }
 0xf49   :  { %v6699_v44 = vmul.f32 %v6698_v16, %v6674_v29  ;;  %v6554_v51 = vmul.f32 %v14399_v32, %v14148_v21  ;;  %v4781_v55 = vmul.f32 0.5, %v14198_v17  ;;  %v7469_v42 = vadd.f32 1.0, %v8486_v24 }
 0xf4a   :  { %v9179_v46 = vpop.eup %9178  ;;  %v6784_v3 = vmul.f32 2.1237322e-06, %v14490_v50  ;;  %v7526_v30 = vmul.f32 %v14392_v20, %v14180_v56  ;;  %v4779_v8 = vmul.f32 0.5, %v14279_v45  ;;  %v7465_v5 = vadd.f32 1.0, %v8482_v38 }
 0xf4b   :  { %v8484_v19 = vclamps-f32 %v6699_v44, 1.0  ;;  %v6726_v11 = vmul.f32 %v9179_v46, %v14470_v31  ;;  %v7527_v10 = vmul.f32 %v7463_v1, %v14195_v40  ;;  %v6579_v63 = vmul.f32 %v6578_v49, %v6554_v51 }
 0xf4c   :  { %v6797_v27 = vmul.f32 %v6796_v15, %v14490_v50  ;;  %v6713_v32 = vadd.f32 1.1283791, %v6712_v13  ;;  %v7570_v57 = vpack.c.bf16 %v7530_v37, %v7526_v30  ;;  %v7533_v4 = vmul.f32 %v7469_v42, %v4781_v55  ;;  %v14538_v15 = vpop.f32.mrf.mxu2 }
 0xf4d   :  { %v7467_v21 = vadd.f32 1.0, %v8484_v19  ;;  %v6727_v17 = vsub.f32 1.0, %v6726_v11  ;;  %v6736_v14 = vand.u32 2147483648, %v14470_v31  ;;  %v6785_v9 = vadd.f32 0.00028619796, %v6784_v3 }
 0xf4e   :  { %v6798_v56 = vadd.f32 0.014752088, %v6797_v27  ;;  %vm6731_vm1 = vweird.f32 %v9179_v46  ;;  %v6734_v36 = vand.u32 2147483647, %v14470_v31  ;;  %v7529_v40 = vmul.f32 %v7465_v5, %v14189_v39 }
 0xf4f   :  { %v7531_v20 = vmul.f32 %v7467_v21, %v4779_v8  ;;  %v6728_v45 = vmul.f32 %v9179_v46, %v6727_v17  ;;  %vm6730_vm2 = vweird.f32 %v14470_v31  ;;  %v8481_v53 = vclamps-f32 %v6579_v63, 1.0 }
 0xf50   :  { %v6799_v34 = vmul.f32 %v6798_v56, %v14490_v50  ;;  %vm6732_vm3 = vmor %vm6730_vm2, %vm6731_vm1  ;;  %v6737_v25 = vor.u32 1.1754944e-38, %v6736_v14  ;;  %v6786_v59 = vmul.f32 %v6785_v9, %v14490_v50  ;;  %v6714_v47 = vmul.f32 %v6713_v32, %v14322_v0 }
 0xf51   :  { %v6729_v22 = vadd.f32 %v9179_v46, %v6728_v45  ;;  %v7571_v23 = vpack.c.bf16 %v7531_v20, %v7527_v10  ;;  %vm6735_vm4 = vcmp.eq.f32.partialorder %v6734_v36, 8.507059e+37  ;;  %v7573_v33 = vpack.c.bf16 %v7533_v4, %v7529_v40 }
 0xf52   :  { %v6800_v62 = vadd.f32 0.112945676, %v6799_v34  ;;  %v14519_v31 = vmul.f32 0.70710677, %v14515_v41  ;;  %v6787_v43 = vadd.f32 0.0036580483, %v6786_v59 }
 0xf53   :  { %v6733_v35 = vsel %vm6732_vm3, %v9179_v46, %v6729_v22  ;;  %7871 = vmatmul.bf16.gmra.mxu1 %v7570_v57  ;;  %7920 = vmatmul.bf16.gmra.mxu3 %v7571_v23  ;;  %v7464_v0 = vadd.f32 1.0, %v8481_v53  ;;  %v4776_v24 = vmul.f32 0.5, %v14129_v26  ;;  %v4780_v29 = vmul.f32 0.5, %v15777_v2  ;;  %v14541_v26 = vpop.f32.mrf.mxu1 }
 0xf54   :  { %v6738_v12 = vsel %vm6735_vm4, %v6737_v25, %v6733_v35  ;;  %v6801_v39 = vmul.f32 %v6800_v62, %v14490_v50  ;;  %v6902_v28 = vmul.f32 %v14519_v31, %v14519_v31  ;;  %v6788_v38 = vmul.f32 %v6787_v43, %v14490_v50  ;;  %v14578_v43 = vpop.f32.mrf.mxu0 }
 0xf55   :  { %v6739_v58 = vmul.f32 %v6738_v12, %v6714_v47  ;;  %v7528_v37 = vmul.f32 %v7464_v0, %v4776_v24  ;;  %v14536_v13 = vmul.f32 0.70710677, %v14528_v48  ;;  %v14546_v30 = vmul.f32 0.70710677, %v14538_v15 }
 0xf56   :  { %v6802_v61 = vadd.f32 0.4994258, %v6801_v39  ;;  %v14524_v18 = vmin.f32 %v6902_v28, 16.0  ;;  %v6789_v3 = vadd.f32 0.05243302, %v6788_v38 }
 0xf57   :  { %v8485_v7 = vclamps-f32 %v6739_v58, 1.0  ;;  %8018 = vmatmul.bf16.gmra.mxu0 %v7573_v33  ;;  %v6822_v42 = vmul.f32 %v14536_v13, %v14536_v13  ;;  %v14553_v5 = vmul.f32 0.70710677, %v14541_v26  ;;  %v6862_v10 = vmul.f32 %v14546_v30, %v14546_v30 }
 0xf58   :  { %v6803_v54 = vmul.f32 %v6802_v61, %v14490_v50  ;;  %v6904_v49 = vmul.f32 2.1237322e-06, %v14524_v18  ;;  %v6915_v16 = vmul.f32 3.8918573e-05, %v14524_v18  ;;  %v6790_v14 = vmul.f32 %v6789_v3, %v14490_v50 }
 0xf59   :  { %v7468_v52 = vadd.f32 1.0, %v8485_v7  ;;  %v14550_v11 = vmin.f32 %v6822_v42, 16.0  ;;  %v14561_v57 = vmin.f32 %v6862_v10, 16.0  ;;  %v6942_v4 = vmul.f32 %v14553_v5, %v14553_v5 }
 0xf5a   :  { %v14531_v1 = vadd.f32 1.0, %v6803_v54  ;;  %v6905_v51 = vadd.f32 0.00028619796, %v6904_v49  ;;  %v6916_v55 = vadd.f32 0.001143296, %v6915_v16 }
 0xf5b   :  { %v7532_v44 = vmul.f32 %v7468_v52, %v4780_v29  ;;  %v6824_v27 = vmul.f32 2.1237322e-06, %v14550_v11  ;;  %v6835_v17 = vmul.f32 3.8918573e-05, %v14550_v11  ;;  %v6864_v36 = vmul.f32 2.1237322e-06, %v14561_v57 }
 0xf5c   :  { %9180 = vrcp.f32 %v14531_v1  ;;  %v6906_v8 = vmul.f32 %v6905_v51, %v14524_v18  ;;  %v6917_v19 = vmul.f32 %v6916_v55, %v14524_v18  ;;  %v6875_v53 = vmul.f32 3.8918573e-05, %v14561_v57 }
 0xf5d   :  { %v7572_v46 = vpack.c.bf16 %v7532_v44, %v7528_v37  ;;  %v6825_v20 = vadd.f32 0.00028619796, %v6824_v27  ;;  %v6836_v45 = vadd.f32 0.001143296, %v6835_v17  ;;  %v14573_v25 = vmin.f32 %v6942_v4, 16.0 }
 0xf5e   :  { %v6918_v63 = vadd.f32 0.014752088, %v6917_v19  ;;  %v6907_v32 = vadd.f32 0.0036580483, %v6906_v8  ;;  %v6791_v59 = vadd.f32 0.18741608, %v6790_v14  ;;  %vm6810_vm6 = vweird.f32 %v14531_v1 }
 0xf5f   :  { %7969 = vmatmul.bf16.gmra.mxu2 %v7572_v46  ;;  %v6837_v23 = vmul.f32 %v6836_v45, %v14550_v11  ;;  %v6826_v47 = vmul.f32 %v6825_v20, %v14550_v11  ;;  %v6865_v33 = vadd.f32 0.00028619796, %v6864_v36  ;;  %v6876_v12 = vadd.f32 0.001143296, %v6875_v53  ;;  %v14624_v53 = vpop.f32.mrf.mxu3 }
 0xf60   :  { %v6919_v56 = vmul.f32 %v6918_v63, %v14524_v18  ;;  %v6908_v22 = vmul.f32 %v6907_v32, %v14524_v18  ;;  %v6944_v7 = vmul.f32 2.1237322e-06, %v14573_v25  ;;  %v6792_v54 = vmul.f32 %v6791_v59, %v14490_v50 }
 0xf61   :  { %v6838_v35 = vadd.f32 0.014752088, %v6837_v23  ;;  %v6877_v0 = vmul.f32 %v6876_v12, %v14561_v57  ;;  %v6827_v2 = vadd.f32 0.0036580483, %v6826_v47  ;;  %v6866_v52 = vmul.f32 %v6865_v33, %v14561_v57 }
 0xf62   :  { %v14558_v21 = vpop.eup %9180  ;;  %v6920_v40 = vadd.f32 0.112945676, %v6919_v56  ;;  %v6909_v61 = vadd.f32 0.05243302, %v6908_v22  ;;  %v14587_v38 = vmul.f32 0.70710677, %v14578_v43 }
 0xf63   :  { %v6806_v9 = vmul.f32 %v14558_v21, %v14531_v1  ;;  %v6839_v28 = vmul.f32 %v6838_v35, %v14550_v11  ;;  %vm6811_vm5 = vweird.f32 %v14558_v21  ;;  %v6878_v37 = vadd.f32 0.014752088, %v6877_v0 }
 0xf64   :  { %v6921_v62 = vmul.f32 %v6920_v40, %v14524_v18  ;;  %v6816_v44 = vand.u32 2147483648, %v14531_v1  ;;  %v6910_v50 = vmul.f32 %v6909_v61, %v14524_v18  ;;  %v6945_v51 = vadd.f32 0.00028619796, %v6944_v7  ;;  %vm14599_vm7 = vmor %vm6810_vm6, %vm6811_vm5 }
 0xf65   :  { %v6807_v34 = vsub.f32 1.0, %v6806_v9  ;;  %v6840_v29 = vadd.f32 0.112945676, %v6839_v28  ;;  %v6814_v55 = vand.u32 2147483647, %v14531_v1  ;;  %v6828_v3 = vmul.f32 %v6827_v2, %v14550_v11 }
 0xf66   :  { %v6922_v58 = vadd.f32 0.4994258, %v6921_v62  ;;  %v6867_v8 = vadd.f32 0.0036580483, %v6866_v52  ;;  %v6879_v63 = vmul.f32 %v6878_v37, %v14561_v57  ;;  %v7062_v27 = vmul.f32 %v14587_v38, %v14587_v38 }
 0xf67   :  { %v6808_v39 = vmul.f32 %v14558_v21, %v6807_v34  ;;  %v6841_v46 = vmul.f32 %v6840_v29, %v14550_v11  ;;  %v6793_v1 = vadd.f32 1.1283791, %v6792_v54  ;;  %v6817_v32 = vor.u32 1.1754944e-38, %v6816_v44 }
 0xf68   :  { %v6923_v24 = vmul.f32 %v6922_v58, %v14524_v18  ;;  %v6911_v17 = vadd.f32 0.18741608, %v6910_v50  ;;  %v6946_v4 = vmul.f32 %v6945_v51, %v14573_v25  ;;  %vm6815_vm8 = vcmp.eq.f32.partialorder %v6814_v55, 8.507059e+37 }
 0xf69   :  { %v6809_v49 = vadd.f32 %v14558_v21, %v6808_v39  ;;  %v6842_v10 = vadd.f32 0.4994258, %v6841_v46  ;;  %v6880_v9 = vadd.f32 0.112945676, %v6879_v63  ;;  %v14613_v56 = vmul.f32 0.5, %v14458_v6 }
 0xf6a   :  { %v14591_v16 = vadd.f32 1.0, %v6923_v24  ;;  %v6868_v45 = vmul.f32 %v6867_v8, %v14561_v57  ;;  %v6955_v22 = vmul.f32 3.8918573e-05, %v14573_v25  ;;  %v14622_v23 = vmin.f32 %v7062_v27, 16.0  ;;  %v14671_v27 = vpop.f32.mrf.mxu2 }
 0xf6b   :  { %v6813_v19 = vsel %vm14599_vm7, %v14558_v21, %v6809_v49  ;;  %v6843_v14 = vmul.f32 %v6842_v10, %v14550_v11  ;;  %v6829_v21 = vadd.f32 0.05243302, %v6828_v3  ;;  %v6881_v40 = vmul.f32 %v6880_v9, %v14561_v57 }
 0xf6c   :  { %9182 = vrcp.f32 %v14591_v16  ;;  %v6818_v20 = vsel %vm6815_vm8, %v6817_v32, %v6813_v19  ;;  %v6794_v59 = vmul.f32 %v6793_v1, %v14467_v60  ;;  %v6912_v6 = vmul.f32 %v6911_v17, %v14524_v18 }
 0xf6d   :  { %v14618_v34 = vadd.f32 1.0, %v6843_v14  ;;  %v6947_v47 = vadd.f32 0.0036580483, %v6946_v4  ;;  %v14631_v35 = vmul.f32 0.5, %v14515_v41  ;;  %v14634_v33 = vmul.f32 0.5, %v14528_v48 }
 0xf6e   :  { %v14638_v12 = vmul.f32 0.5, %v14538_v15  ;;  %v6819_v39 = vmul.f32 %v6818_v20, %v6794_v59  ;;  %v6882_v60 = vadd.f32 0.4994258, %v6881_v40  ;;  %v14641_v18 = vmul.f32 0.70710677, %v14624_v53 }
 0xf6f   :  { %9184 = vrcp.f32 %v14618_v34  ;;  %v6830_v61 = vmul.f32 %v6829_v21, %v14550_v11  ;;  %v6869_v28 = vadd.f32 0.05243302, %v6868_v45  ;;  %v6956_v0 = vadd.f32 0.001143296, %v6955_v22 }
 0xf70   :  { %v7064_v41 = vmul.f32 2.1237322e-06, %v14622_v23  ;;  %v6913_v7 = vadd.f32 1.1283791, %v6912_v6  ;;  %v6883_v48 = vmul.f32 %v6882_v60, %v14561_v57  ;;  %v6948_v54 = vmul.f32 %v6947_v47, %v14573_v25 }
 0xf71   :  { %v7075_v15 = vmul.f32 3.8918573e-05, %v14622_v23  ;;  %v14650_v2 = vmul.f32 0.5, %v14541_v26  ;;  %v6957_v29 = vmul.f32 %v6956_v0, %v14573_v25  ;;  %v14654_v52 = vmul.f32 0.5, %v14578_v43 }
 0xf72   :  { %v14616_v36 = vpop.eup %9182  ;;  %v8487_v49 = vclamps-f32 %v6819_v39, 1.0  ;;  %v14656_v37 = vadd.f32 1.0, %v6883_v48  ;;  %v7065_v44 = vadd.f32 0.00028619796, %v7064_v41  ;;  %v6982_v50 = vmul.f32 %v14641_v18, %v14641_v18 }
 0xf73   :  { %v6926_v62 = vmul.f32 %v14616_v36, %v14591_v16  ;;  %v6831_v51 = vadd.f32 0.18741608, %v6830_v61  ;;  %v6870_v55 = vmul.f32 %v6869_v28, %v14561_v57  ;;  %v6958_v42 = vadd.f32 0.014752088, %v6957_v29 }
 0xf74   :  { %v7076_v26 = vadd.f32 0.001143296, %v7075_v15  ;;  %v6914_v3 = vmul.f32 %v6913_v7, %v14519_v31  ;;  %9186 = vrcp.f32 %v14656_v37  ;;  %v6949_v8 = vadd.f32 0.05243302, %v6948_v54 }
 0xf75   :  { %v6927_v58 = vsub.f32 1.0, %v6926_v62  ;;  %v14660_v46 = vpop.eup %9184  ;;  %vm6931_vm9 = vweird.f32 %v14616_v36  ;;  %v6934_v10 = vand.u32 2147483647, %v14591_v16  ;;  %v6936_v63 = vand.u32 2147483648, %v14591_v16 }
 0xf76   :  { %v6846_v43 = vmul.f32 %v14660_v46, %v14618_v34  ;;  %v6959_v32 = vmul.f32 %v6958_v42, %v14573_v25  ;;  %v7066_v31 = vmul.f32 %v7065_v44, %v14622_v23  ;;  %v14675_v17 = vmin.f32 %v6982_v50, 16.0 }
 0xf77   :  { %v6928_v24 = vmul.f32 %v14616_v36, %v6927_v58  ;;  %vm6930_vm10 = vweird.f32 %v14591_v16  ;;  %v6832_v4 = vmul.f32 %v6831_v51, %v14550_v11  ;;  %v6871_v14 = vadd.f32 0.18741608, %v6870_v55 }
 0xf78   :  { %v6847_v1 = vsub.f32 1.0, %v6846_v43  ;;  %v7077_v9 = vmul.f32 %v7076_v26, %v14622_v23  ;;  %v7470_v20 = vadd.f32 1.0, %v8487_v49  ;;  %v6950_v21 = vmul.f32 %v6949_v8, %v14573_v25  ;;  %vm14686_vm11 = vmor %vm6930_vm10, %vm6931_vm9 }
 0xf79   :  { %v6929_v19 = vadd.f32 %v14616_v36, %v6928_v24  ;;  %v6960_v45 = vadd.f32 0.112945676, %v6959_v32  ;;  %v14682_v40 = vmul.f32 0.70710677, %v14671_v27  ;;  %vm14690_vm12 = vcmp.eq.f32.partialorder %v6934_v10, 8.507059e+37 }
 0xf7a   :  { %v6937_v11 = vor.u32 1.1754944e-38, %v6936_v63  ;;  %v6848_v59 = vmul.f32 %v14660_v46, %v6847_v1  ;;  %v7078_v6 = vadd.f32 0.014752088, %v7077_v9  ;;  %v14695_v62 = vpop.eup %9186  ;;  %v7067_v58 = vadd.f32 0.0036580483, %v7066_v31 }
 0xf7b   :  { %v6933_v47 = vsel %vm14686_vm11, %v14616_v36, %v6929_v19  ;;  %v6961_v39 = vmul.f32 %v6960_v45, %v14573_v25  ;;  %v6995_v60 = vmul.f32 3.8918573e-05, %v14675_v17  ;;  %v6833_v61 = vadd.f32 1.1283791, %v6832_v4 }
 0xf7c   :  { %v6856_v28 = vand.u32 2147483648, %v14618_v34  ;;  %v6872_v0 = vmul.f32 %v6871_v14, %v14561_v57  ;;  %v7079_v41 = vmul.f32 %v7078_v6, %v14622_v23  ;;  %vm6851_vm13 = vweird.f32 %v14660_v46 }
 0xf7d   :  { %v6951_v7 = vadd.f32 0.18741608, %v6950_v21  ;;  %v6962_v48 = vadd.f32 0.4994258, %v6961_v39  ;;  %v7022_v54 = vmul.f32 %v14682_v40, %v14682_v40  ;;  %v6938_v36 = vsel %vm14690_vm12, %v6937_v11, %v6933_v47 }
 0xf7e   :  { %v6849_v15 = vadd.f32 %v14660_v46, %v6848_v59  ;;  %v6886_v24 = vmul.f32 %v14695_v62, %v14656_v37  ;;  %v7080_v29 = vadd.f32 0.112945676, %v7079_v41  ;;  %v7068_v49 = vmul.f32 %v7067_v58, %v14622_v23 }
 0xf7f   :  { %v6963_v57 = vmul.f32 %v6962_v48, %v14573_v25  ;;  %v6984_v44 = vmul.f32 2.1237322e-06, %v14675_v17  ;;  %v6996_v50 = vadd.f32 0.001143296, %v6995_v60  ;;  %vm6850_vm14 = vweird.f32 %v14618_v34  ;;  %v14765_v48 = vpop.f32.mrf.mxu1 }
 0xf80   :  { %v6854_v51 = vand.u32 2147483647, %v14618_v34  ;;  %v6873_v55 = vadd.f32 1.1283791, %v6872_v0  ;;  %v7081_v42 = vmul.f32 %v7080_v29, %v14622_v23  ;;  %v6939_v26 = vmul.f32 %v6938_v36, %v6914_v3  ;;  %vm14721_vm15 = vmor %vm6850_vm14, %vm6851_vm13 }
 0xf81   :  { %v6857_v8 = vor.u32 1.1754944e-38, %v6856_v28  ;;  %v14725_v19 = vadd.f32 1.0, %v6963_v57  ;;  %v14727_v10 = vmin.f32 %v7022_v54, 16.0  ;;  %v6853_v63 = vsel %vm14721_vm15, %v14660_v46, %v6849_v15 }
 0xf82   :  { %v6887_v34 = vsub.f32 1.0, %v6886_v24  ;;  %v6952_v1 = vmul.f32 %v6951_v7, %v14573_v25  ;;  %v7082_v32 = vadd.f32 0.4994258, %v7081_v42  ;;  %v7069_v3 = vadd.f32 0.05243302, %v7068_v49 }
 0xf83   :  { %9188 = vrcp.f32 %v14725_v19  ;;  %v6985_v31 = vadd.f32 0.00028619796, %v6984_v44  ;;  %v6997_v4 = vmul.f32 %v6996_v50, %v14675_v17  ;;  %v14736_v14 = vmul.f32 %v7470_v20, %v14613_v56 }
 0xf84   :  { %vm6855_vm0 = vcmp.eq.f32.partialorder %v6854_v51, 8.507059e+37  ;;  %v7083_v9 = vmul.f32 %v7082_v32, %v14622_v23  ;;  %v14740_v21 = vmul.f32 0.5, %v14624_v53  ;;  %v8490_v46 = vclamps-f32 %v6939_v26, 1.0 }
 0xf85   :  { %v6834_v45 = vmul.f32 %v6833_v61, %v14536_v13  ;;  %v6858_v25 = vsel %vm6855_vm0, %v6857_v8, %v6853_v63  ;;  %v7024_v22 = vmul.f32 2.1237322e-06, %v14727_v10  ;;  %v6874_v16 = vmul.f32 %v6873_v55, %v14546_v30 }
 0xf86   :  { %v6888_v11 = vmul.f32 %v14695_v62, %v6887_v34  ;;  %v6953_v59 = vadd.f32 1.1283791, %v6952_v1  ;;  %v14746_v6 = vadd.f32 1.0, %v7083_v9  ;;  %v6894_v56 = vand.u32 2147483647, %v14656_v37 }
 0xf87   :  { %v7070_v20 = vmul.f32 %v7069_v3, %v14622_v23  ;;  %v6986_v53 = vmul.f32 %v6985_v31, %v14675_v17  ;;  %v6998_v47 = vadd.f32 0.014752088, %v6997_v4  ;;  %v6859_v39 = vmul.f32 %v6858_v25, %v6834_v45 }
 0xf88   :  { %v6896_v13 = vand.u32 2147483648, %v14656_v37  ;;  %9190 = vrcp.f32 %v14746_v6  ;;  %v7035_v58 = vmul.f32 3.8918573e-05, %v14727_v10  ;;  %v7473_v60 = vadd.f32 1.0, %v8490_v46 }
 0xf89   :  { %v14754_v30 = vpop.eup %9188  ;;  %v6999_v61 = vmul.f32 %v6998_v47, %v14675_v17  ;;  %v14758_v28 = vmul.f32 0.5, %v14671_v27  ;;  %v7025_v0 = vadd.f32 0.00028619796, %v7024_v22  ;;  %v6889_v41 = vadd.f32 %v14695_v62, %v6888_v11  ;;  %v14770_v27 = vpop.f32.mrf.mxu0 }
 0xf8a   :  { %vm6890_vm1 = vweird.f32 %v14656_v37  ;;  %vm6891_vm2 = vweird.f32 %v14695_v62  ;;  %v6966_v7 = vmul.f32 %v14754_v30, %v14725_v19  ;;  %v14768_v54 = vmul.f32 %v6953_v59, %v14553_v5 }
 0xf8b   :  { %v7071_v36 = vadd.f32 0.18741608, %v7070_v20  ;;  %v6987_v15 = vadd.f32 0.0036580483, %v6986_v53  ;;  %v7000_v24 = vadd.f32 0.112945676, %v6999_v61  ;;  %v14777_v44 = vmul.f32 %v7473_v60, %v14631_v35  ;;  %vm14779_vm4 = vmor %vm6890_vm1, %vm6891_vm2 }
 0xf8c   :  { %v8488_v29 = vclamps-f32 %v6859_v39, 1.0  ;;  %vm14772_vm3 = vcmp.eq.f32.partialorder %v6894_v56, 8.507059e+37  ;;  %v6897_v37 = vor.u32 1.1754944e-38, %v6896_v13  ;;  %v7036_v49 = vadd.f32 0.001143296, %v7035_v58 }
 0xf8d   :  { %v7001_v5 = vmul.f32 %v7000_v24, %v14675_v17  ;;  %v7026_v51 = vmul.f32 %v7025_v0, %v14727_v10  ;;  %v14786_v55 = vmul.f32 0.70710677, %v14765_v48  ;;  %v6893_v26 = vsel %vm14779_vm4, %v14695_v62, %v6889_v41 }
 0xf8e   :  { %v14788_v42 = vpop.eup %9190  ;;  %v6967_v43 = vsub.f32 1.0, %v6966_v7  ;;  %v7037_v35 = vmul.f32 %v7036_v49, %v14727_v10  ;;  %v14795_v8 = vmul.f32 0.70710677, %v14770_v27  ;;  %v7072_v63 = vmul.f32 %v7071_v36, %v14622_v23 }
 0xf8f   :  { %v7086_v34 = vmul.f32 %v14788_v42, %v14746_v6  ;;  %v6988_v1 = vmul.f32 %v6987_v15, %v14675_v17  ;;  %v7002_v32 = vadd.f32 0.4994258, %v7001_v5  ;;  %v7471_v3 = vadd.f32 1.0, %v8488_v29 }
 0xf90   :  { %vm6970_vm5 = vweird.f32 %v14725_v19  ;;  %v7038_v31 = vadd.f32 0.014752088, %v7037_v35  ;;  %v7102_v62 = vmul.f32 %v14786_v55, %v14786_v55  ;;  %v6898_v4 = vsel %vm14772_vm3, %v6897_v37, %v6893_v26 }
 0xf91   :  { %v6974_v9 = vand.u32 2147483647, %v14725_v19  ;;  %v7003_v23 = vmul.f32 %v7002_v32, %v14675_v17  ;;  %v7027_v46 = vadd.f32 0.0036580483, %v7026_v51  ;;  %v6968_v45 = vmul.f32 %v14754_v30, %v6967_v43 }
 0xf92   :  { %v7039_v25 = vmul.f32 %v7038_v31, %v14727_v10  ;;  %v14810_v22 = vmin.f32 %v7102_v62, 16.0  ;;  %v7222_v11 = vmul.f32 %v14795_v8, %v14795_v8  ;;  %v6976_v59 = vand.u32 2147483648, %v14725_v19  ;;  %v14858_v31 = vpop.f32.mrf.mxu3 }
 0xf93   :  { %v7073_v56 = vadd.f32 1.1283791, %v7072_v63  ;;  %v7087_v20 = vsub.f32 1.0, %v7086_v34  ;;  %v14815_v53 = vadd.f32 1.0, %v7003_v23  ;;  %v14817_v47 = vmul.f32 %v6898_v4, %v6874_v16  ;;  %15794 = vst [vmem:[#allocation39_spill] sm:$0xff] %v14858_v31 }
 0xf94   :  { %v6989_v39 = vadd.f32 0.05243302, %v6988_v1  ;;  %v7040_v13 = vadd.f32 0.112945676, %v7039_v25  ;;  %v7104_v58 = vmul.f32 2.1237322e-06, %v14810_v22  ;;  %v14821_v60 = vmul.f32 %v7471_v3, %v14634_v33 }
 0xf95   :  { %vm14823_vm6 = vcmp.eq.f32.partialorder %v6974_v9, 8.507059e+37  ;;  %9192 = vrcp.f32 %v14815_v53  ;;  %v7028_v0 = vmul.f32 %v7027_v46, %v14727_v10  ;;  %v6969_v41 = vadd.f32 %v14754_v30, %v6968_v45 }
 0xf96   :  { %vm6971_vm7 = vweird.f32 %v14754_v30  ;;  %v7041_v16 = vmul.f32 %v7040_v13, %v14727_v10  ;;  %v14832_v7 = vmin.f32 %v7222_v11, 16.0  ;;  %v6977_v36 = vor.u32 1.1754944e-38, %v6976_v59 }
 0xf97   :  { %v7088_v33 = vmul.f32 %v14788_v42, %v7087_v20  ;;  %v7105_v15 = vadd.f32 0.00028619796, %v7104_v58  ;;  %v7115_v24 = vmul.f32 3.8918573e-05, %v14810_v22  ;;  %v8489_v29 = vclamps-f32 %v14817_v47, 1.0  ;;  %vm14842_vm9 = vmor %vm6970_vm5, %vm6971_vm7 }
 0xf98   :  { %vm7090_vm8 = vweird.f32 %v14746_v6  ;;  %v7094_v57 = vand.u32 2147483647, %v14746_v6  ;;  %v6990_v37 = vmul.f32 %v6989_v39, %v14675_v17  ;;  %v7029_v50 = vadd.f32 0.05243302, %v7028_v0 }
 0xf99   :  { %v7042_v5 = vadd.f32 0.4994258, %v7041_v16  ;;  %v7106_v51 = vmul.f32 %v7105_v15, %v14810_v22  ;;  %v7116_v26 = vadd.f32 0.001143296, %v7115_v24  ;;  %v6973_v43 = vsel %vm14842_vm9, %v14754_v30, %v6969_v41 }
 0xf9a   :  { %vm7091_vm10 = vweird.f32 %v14788_v42  ;;  %v7224_v35 = vmul.f32 2.1237322e-06, %v14832_v7  ;;  %v7235_v63 = vmul.f32 3.8918573e-05, %v14832_v7  ;;  %v7089_v34 = vadd.f32 %v14788_v42, %v7088_v33 }
 0xf9b   :  { %v14853_v19 = vpop.eup %9192  ;;  %v7043_v1 = vmul.f32 %v7042_v5, %v14727_v10  ;;  %v7107_v32 = vadd.f32 0.0036580483, %v7106_v51  ;;  %v7117_v3 = vmul.f32 %v7116_v26, %v14810_v22  ;;  %v7096_v62 = vand.u32 2147483648, %v14746_v6  ;;  %vm14872_vm11 = vmor %vm7090_vm8, %vm7091_vm10 }
 0xf9c   :  { %v7006_v30 = vmul.f32 %v14853_v19, %v14815_v53  ;;  %v7225_v4 = vadd.f32 0.00028619796, %v7224_v35  ;;  %v7236_v9 = vadd.f32 0.001143296, %v7235_v63  ;;  %v6991_v23 = vadd.f32 0.18741608, %v6990_v37 }
 0xf9d   :  { %v7030_v46 = vmul.f32 %v7029_v50, %v14727_v10  ;;  %v14864_v45 = vadd.f32 1.0, %v7043_v1  ;;  %v7118_v25 = vadd.f32 0.014752088, %v7117_v3  ;;  %v6978_v11 = vsel %vm14823_vm6, %v6977_v36, %v6973_v43 }
 0xf9e   :  { %v7007_v20 = vsub.f32 1.0, %v7006_v30  ;;  %v7237_v47 = vmul.f32 %v7236_v9, %v14832_v7  ;;  %v14878_v39 = vmul.f32 0.70710677, %v14858_v31  ;;  %v7093_v13 = vsel %vm14872_vm11, %v14788_v42, %v7089_v34  ;;  %v14912_v9 = vpop.f32.mrf.mxu2 }
 0xf9f   :  { %9194 = vrcp.f32 %v14864_v45  ;;  %v7108_v58 = vmul.f32 %v7107_v32, %v14810_v22  ;;  %v7226_v6 = vmul.f32 %v7225_v4, %v14832_v7  ;;  %v7074_v61 = vmul.f32 %v7073_v56, %v14587_v38  ;;  %15799 = vst [vmem:[#allocation43_spill] sm:$0xff] %v14912_v9 }
 0xfa0   :  { %v7097_v0 = vor.u32 1.1754944e-38, %v7096_v62  ;;  %v7008_v41 = vmul.f32 %v14853_v19, %v7007_v20  ;;  %v7119_v16 = vmul.f32 %v7118_v25, %v14810_v22  ;;  %vm7095_vm12 = vcmp.eq.f32.partialorder %v7094_v57, 8.507059e+37 }
 0xfa1   :  { %v6992_v36 = vmul.f32 %v6991_v23, %v14675_v17  ;;  %v7238_v33 = vadd.f32 0.014752088, %v7237_v47  ;;  %v7142_v42 = vmul.f32 %v14878_v39, %v14878_v39  ;;  %v6979_v15 = vmul.f32 %v6978_v11, %v14768_v54 }
 0xfa2   :  { %v7098_v24 = vsel %vm7095_vm12, %v7097_v0, %v7093_v13  ;;  %v7031_v37 = vadd.f32 0.18741608, %v7030_v46  ;;  %v7120_v49 = vadd.f32 0.112945676, %v7119_v16  ;;  %v7472_v50 = vadd.f32 1.0, %v8489_v29 }
 0xfa3   :  { %v7109_v5 = vadd.f32 0.05243302, %v7108_v58  ;;  %v7227_v38 = vadd.f32 0.0036580483, %v7226_v6  ;;  %v7239_v56 = vmul.f32 %v7238_v33, %v14832_v7  ;;  %v7009_v51 = vadd.f32 %v14853_v19, %v7008_v41 }
 0xfa4   :  { %vm7011_vm13 = vweird.f32 %v14853_v19  ;;  %v7121_v17 = vmul.f32 %v7120_v49, %v14810_v22  ;;  %v14897_v57 = vmin.f32 %v7142_v42, 16.0  ;;  %v7099_v43 = vmul.f32 %v7098_v24, %v7074_v61 }
 0xfa5   :  { %v14899_v26 = vpop.eup %9194  ;;  %v6993_v54 = vadd.f32 1.1283791, %v6992_v36  ;;  %v7016_v35 = vand.u32 2147483648, %v14815_v53  ;;  %v7240_v63 = vadd.f32 0.112945676, %v7239_v56  ;;  %v8491_v29 = vclamps-f32 %v6979_v15, 1.0 }
 0xfa6   :  { %vm7010_vm14 = vweird.f32 %v14815_v53  ;;  %v7014_v34 = vand.u32 2147483647, %v14815_v53  ;;  %v7032_v1 = vmul.f32 %v7031_v37, %v14727_v10  ;;  %v7110_v3 = vmul.f32 %v7109_v5, %v14810_v22 }
 0xfa7   :  { %vm14905_vm15 = vmor %vm7010_vm14, %vm7011_vm13  ;;  %v7122_v62 = vadd.f32 0.4994258, %v7121_v17  ;;  %v7228_v30 = vmul.f32 %v7227_v38, %v14832_v7  ;;  %v7241_v4 = vmul.f32 %v7240_v63, %v14832_v7  ;;  %v7046_v10 = vmul.f32 %v14899_v26, %v14864_v45  ;;  %v14959_v63 = vpop.f32.mrf.mxu0 }
 0xfa8   :  { %v7013_v23 = vsel %vm14905_vm15, %v14853_v19, %v7009_v51  ;;  %v7144_v53 = vmul.f32 2.1237322e-06, %v14897_v57  ;;  %v7155_v46 = vmul.f32 3.8918573e-05, %v14897_v57  ;;  %v8494_v25 = vclamps-f32 %v7099_v43, 1.0  ;;  %v14945_v43 = vpop.f32.mrf.mxu1 }
 0xfa9   :  { %v7017_v11 = vor.u32 1.1754944e-38, %v7016_v35  ;;  %v7123_v59 = vmul.f32 %v7122_v62, %v14810_v22  ;;  %v7242_v20 = vadd.f32 0.4994258, %v7241_v4  ;;  %v6994_v47 = vmul.f32 %v6993_v54, %v14641_v18 }
 0xfaa   :  { %vm7015_vm0 = vcmp.eq.f32.partialorder %v7014_v34, 8.507059e+37  ;;  %v7156_v13 = vadd.f32 0.001143296, %v7155_v46  ;;  %v14924_v58 = vmul.f32 0.70710677, %v14912_v9  ;;  %v7047_v41 = vsub.f32 1.0, %v7046_v10 }
 0xfab   :  { %v7018_v19 = vsel %vm7015_vm0, %v7017_v11, %v7013_v23  ;;  %v7111_v6 = vadd.f32 0.18741608, %v7110_v3  ;;  %v14926_v61 = vadd.f32 1.0, %v7123_v59  ;;  %v7243_v0 = vmul.f32 %v7242_v20, %v14832_v7 }
 0xfac   :  { %15800 = vst [vmem:[#allocation34_spill] sm:$0xff] %v14924_v58  ;;  %v7229_v16 = vadd.f32 0.05243302, %v7228_v30  ;;  %v7145_v36 = vadd.f32 0.00028619796, %v7144_v53  ;;  %v7157_v33 = vmul.f32 %v7156_v13, %v14897_v57  ;;  %v7474_v42 = vadd.f32 1.0, %v8491_v29 }
 0xfad   :  { %v7477_v15 = vadd.f32 1.0, %v8494_v25  ;;  %v7033_v24 = vadd.f32 1.1283791, %v7032_v1  ;;  %9196 = vrcp.f32 %v14926_v61  ;;  %v14932_v18 = vmul.f32 %v7472_v50, %v14638_v12 }
 0xfae   :  { %v7019_v37 = vmul.f32 %v7018_v19, %v6994_v47  ;;  %v14934_v49 = vadd.f32 1.0, %v7243_v0  ;;  %v7182_v5 = vmul.f32 %v14924_v58, %v14924_v58  ;;  %v14939_v38 = vmul.f32 0.5, %v14765_v48 }
 0xfaf   :  { %v7112_v56 = vmul.f32 %v7111_v6, %v14810_v22  ;;  %v14943_v51 = vmul.f32 0.5, %v14770_v27  ;;  %v7158_v17 = vadd.f32 0.014752088, %v7157_v33  ;;  %v7048_v12 = vmul.f32 %v14899_v26, %v7047_v41  ;;  %v14991_v41 = vpop.f32.mrf.mxu3 }
 0xfb0   :  { %v7230_v50 = vmul.f32 %v7229_v16, %v14832_v7  ;;  %9198 = vrcp.f32 %v14934_v49  ;;  %v7146_v54 = vmul.f32 %v7145_v36, %v14897_v57  ;;  %v14952_v35 = vmul.f32 %v7474_v42, %v14650_v2  ;;  %15803 = vst [vmem:[#allocation28_spill] sm:$0xff] %v14991_v41  ;;  %v14993_v16 = vpop.f32.mrf.mxu2 }
 0xfb1   :  { %v14955_v48 = vmul.f32 %v7477_v15, %v14654_v52  ;;  %v7034_v27 = vmul.f32 %v7033_v24, %v14682_v40  ;;  %v7159_v22 = vmul.f32 %v7158_v17, %v14897_v57  ;;  %v8492_v29 = vclamps-f32 %v7019_v37, 1.0  ;;  %15804 = vst [vmem:[#allocation29_spill] sm:$0xff] %v14993_v16 }
 0xfb2   :  { %v7054_v34 = vand.u32 2147483647, %v14864_v45  ;;  %v14962_v1 = vmin.f32 %v7182_v5, 16.0  ;;  %v14965_v32 = vmul.f32 0.70710677, %v14945_v43  ;;  %vm7051_vm1 = vweird.f32 %v14899_v26 }
 0xfb3   :  { %v14967_v3 = vpop.eup %9196  ;;  %v7056_v2 = vand.u32 2147483648, %v14864_v45  ;;  %v7113_v52 = vadd.f32 1.1283791, %v7112_v56  ;;  %v7160_v40 = vadd.f32 0.112945676, %v7159_v22  ;;  %v7049_v62 = vadd.f32 %v14899_v26, %v7048_v12  ;;  %v15020_v22 = vpop.f32.mrf.mxu1 }
 0xfb4   :  { %v7126_v30 = vmul.f32 %v14967_v3, %v14926_v61  ;;  %v7231_v4 = vadd.f32 0.18741608, %v7230_v50  ;;  %v7147_v23 = vadd.f32 0.0036580483, %v7146_v54  ;;  %v7184_v53 = vmul.f32 2.1237322e-06, %v14962_v1 }
 0xfb5   :  { %v7161_v10 = vmul.f32 %v7160_v40, %v14897_v57  ;;  %v7195_v46 = vmul.f32 3.8918573e-05, %v14962_v1  ;;  %v7262_v25 = vmul.f32 %v14965_v32, %v14965_v32  ;;  %v7475_v59 = vadd.f32 1.0, %v8492_v29  ;;  %v15022_v29 = vpop.f32.mrf.mxu0 }
 0xfb6   :  { %v14979_v11 = vpop.eup %9198  ;;  %vm7050_vm2 = vweird.f32 %v14864_v45  ;;  %vm14982_vm3 = vcmp.eq.f32.partialorder %v7054_v34, 8.507059e+37  ;;  %v7127_v47 = vsub.f32 1.0, %v7126_v30  ;;  %v7057_v13 = vor.u32 1.1754944e-38, %v7056_v2 }
 0xfb7   :  { %v14987_v19 = vmul.f32 %v7113_v52, %v14786_v55  ;;  %v7246_v6 = vmul.f32 %v14979_v11, %v14934_v49  ;;  %v7162_v0 = vadd.f32 0.4994258, %v7161_v10  ;;  %vm14997_vm4 = vmor %vm7050_vm2, %vm7051_vm1  ;;  %v7232_v36 = vmul.f32 %v7231_v4, %v14832_v7 }
 0xfb8   :  { %v7148_v33 = vmul.f32 %v7147_v23, %v14897_v57  ;;  %v7196_v55 = vadd.f32 0.001143296, %v7195_v46  ;;  %v15003_v42 = vmin.f32 %v7262_v25, 16.0  ;;  %v7053_v15 = vsel %vm14997_vm4, %v14899_v26, %v7049_v62 }
 0xfb9   :  { %v7128_v24 = vmul.f32 %v14967_v3, %v7127_v47  ;;  %v7163_v37 = vmul.f32 %v7162_v0, %v14897_v57  ;;  %v7185_v5 = vadd.f32 0.00028619796, %v7184_v53  ;;  %v15011_v56 = vmul.f32 %v7475_v59, %v14740_v21 }
 0xfba   :  { %v7247_v17 = vsub.f32 1.0, %v7246_v6  ;;  %v7197_v7 = vmul.f32 %v7196_v55, %v14962_v1  ;;  %v7264_v12 = vmul.f32 2.1237322e-06, %v15003_v42  ;;  %vm7130_vm5 = vweird.f32 %v14926_v61 }
 0xfbb   :  { %v7134_v50 = vand.u32 2147483647, %v14926_v61  ;;  %v15017_v54 = vadd.f32 1.0, %v7163_v37  ;;  %v7275_v26 = vmul.f32 3.8918573e-05, %v15003_v42  ;;  %v7058_v21 = vsel %vm14982_vm3, %v7057_v13, %v7053_v15 }
 0xfbc   :  { %v7149_v34 = vadd.f32 0.05243302, %v7148_v33  ;;  %v7198_v2 = vadd.f32 0.014752088, %v7197_v7  ;;  %v7265_v52 = vadd.f32 0.00028619796, %v7264_v12  ;;  %v7129_v40 = vadd.f32 %v14967_v3, %v7128_v24  ;;  %v15056_v33 = vpop.f32.mrf.mxu2 }
 0xfbd   :  { %vm7131_vm6 = vweird.f32 %v14967_v3  ;;  %9200 = vrcp.f32 %v15017_v54  ;;  %v7186_v62 = vmul.f32 %v7185_v5, %v14962_v1  ;;  %v7136_v30 = vand.u32 2147483648, %v14926_v61 }
 0xfbe   :  { %v7233_v4 = vadd.f32 1.1283791, %v7232_v36  ;;  %v7248_v23 = vmul.f32 %v14979_v11, %v7247_v17  ;;  %v15033_v10 = vmul.f32 0.70710677, %v14959_v63  ;;  %v7059_v53 = vmul.f32 %v7058_v21, %v7034_v27  ;;  %vm15039_vm7 = vmor %vm7130_vm5, %vm7131_vm6  ;;  %v15054_v36 = vpop.f32.mrf.mxu3 }
 0xfbf   :  { %v7199_v46 = vmul.f32 %v7198_v2, %v14962_v1  ;;  %v7266_v25 = vmul.f32 %v7265_v52, %v15003_v42  ;;  %v7276_v59 = vadd.f32 0.001143296, %v7275_v26  ;;  %vm15043_vm8 = vcmp.eq.f32.partialorder %v7134_v50, 8.507059e+37 }
 0xfc0   :  { %v7254_v13 = vand.u32 2147483647, %v14934_v49  ;;  %v7256_v6 = vand.u32 2147483648, %v14934_v49  ;;  %v7150_v27 = vmul.f32 %v7149_v34, %v14897_v57  ;;  %v7133_v0 = vsel %vm15039_vm7, %v14967_v3, %v7129_v40  ;;  %v15082_v40 = vpop.f32.mrf.mxu1 }
 0xfc1   :  { %vm7251_vm9 = vweird.f32 %v14979_v11  ;;  %v7187_v61 = vadd.f32 0.0036580483, %v7186_v62  ;;  %v7200_v45 = vadd.f32 0.112945676, %v7199_v46  ;;  %v7249_v55 = vadd.f32 %v14979_v11, %v7248_v23  ;;  %v15084_v62 = vpop.f32.mrf.mxu0 }
 0xfc2   :  { %v7267_v15 = vadd.f32 0.0036580483, %v7266_v25  ;;  %v7277_v24 = vmul.f32 %v7276_v59, %v15003_v42  ;;  %v7382_v37 = vmul.f32 %v15033_v10, %v15033_v10  ;;  %v8493_v17 = vclamps-f32 %v7059_v53, 1.0 }
 0xfc3   :  { %v15062_v5 = vpop.eup %9200  ;;  %v7137_v3 = vor.u32 1.1754944e-38, %v7136_v30  ;;  %v7234_v7 = vmul.f32 %v7233_v4, %v14795_v8  ;;  %v7201_v12 = vmul.f32 %v7200_v45, %v14962_v1  ;;  %vm7250_vm10 = vweird.f32 %v14934_v49 }
 0xfc4   :  { %v7151_v50 = vadd.f32 0.18741608, %v7150_v27  ;;  %v7166_v26 = vmul.f32 %v15062_v5, %v15017_v54  ;;  %v7278_v21 = vadd.f32 0.014752088, %v7277_v24  ;;  %vm15073_vm11 = vmor %vm7250_vm10, %vm7251_vm9  ;;  %vm15077_vm12 = vcmp.eq.f32.partialorder %v7254_v13, 8.507059e+37 }
 0xfc5   :  { %v7138_v34 = vsel %vm15043_vm8, %v7137_v3, %v7133_v0  ;;  %v7257_v52 = vor.u32 1.1754944e-38, %v7256_v6  ;;  %v7188_v49 = vmul.f32 %v7187_v61, %v14962_v1  ;;  %v7253_v30 = vsel %vm15073_vm11, %v14979_v11, %v7249_v55 }
 0xfc6   :  { %v7268_v4 = vmul.f32 %v7267_v15, %v15003_v42  ;;  %v7279_v23 = vmul.f32 %v7278_v21, %v15003_v42  ;;  %v15091_v53 = vmin.f32 %v7382_v37, 16.0  ;;  %v7476_v46 = vadd.f32 1.0, %v8493_v17 }
 0xfc7   :  { %v7167_v25 = vsub.f32 1.0, %v7166_v26  ;;  %v7202_v59 = vadd.f32 0.4994258, %v7201_v12  ;;  %v15094_v20 = vmul.f32 0.70710677, %v14991_v41  ;;  %v7152_v47 = vmul.f32 %v7151_v50, %v14897_v57  ;;  %v15115_v12 = vpop.f32.mrf.mxu3 }
 0xfc8   :  { %v7280_v13 = vadd.f32 0.112945676, %v7279_v23  ;;  %v7384_v6 = vmul.f32 2.1237322e-06, %v15091_v53  ;;  %v7395_v27 = vmul.f32 3.8918573e-05, %v15091_v53  ;;  %v7139_v11 = vmul.f32 %v7138_v34, %v14987_v19 }
 0xfc9   :  { %v7258_v0 = vsel %vm15077_vm12, %v7257_v52, %v7253_v30  ;;  %v7189_v61 = vadd.f32 0.05243302, %v7188_v49  ;;  %v15103_v45 = vmul.f32 0.5, %v14945_v43  ;;  %v7269_v55 = vadd.f32 0.05243302, %v7268_v4  ;;  %v15117_v43 = vpop.f32.mrf.mxu2  ;;  %v15123_v52 = vpop.f32.mrf.mxu1 }
 0xfca   :  { %v7281_v15 = vmul.f32 %v7280_v13, %v15003_v42  ;;  %v7385_v24 = vadd.f32 0.00028619796, %v7384_v6  ;;  %v7396_v37 = vadd.f32 0.001143296, %v7395_v27  ;;  %v15107_v57 = vmul.f32 %v7476_v46, %v14758_v28  ;;  %v15125_v49 = vpop.f32.mrf.mxu0 }
 0xfcb   :  { %v7203_v17 = vmul.f32 %v7202_v59, %v14962_v1  ;;  %v15111_v3 = vmul.f32 0.5, %v14959_v63  ;;  %v7302_v19 = vmul.f32 %v15094_v20, %v15094_v20  ;;  %v7153_v50 = vadd.f32 1.1283791, %v7152_v47 }
 0xfcc   :  { %v7168_v26 = vmul.f32 %v15062_v5, %v7167_v25  ;;  %v7282_v21 = vadd.f32 0.4994258, %v7281_v15  ;;  %v7386_v34 = vmul.f32 %v7385_v24, %v15091_v53  ;;  %v8495_v28 = vclamps-f32 %v7139_v11, 1.0 }
 0xfcd   :  { %v7259_v2 = vmul.f32 %v7258_v0, %v7234_v7  ;;  %v7176_v8 = vand.u32 2147483648, %v15017_v54  ;;  %v7397_v63 = vmul.f32 %v7396_v37, %v15091_v53  ;;  %v7190_v30 = vmul.f32 %v7189_v61, %v14962_v1 }
 0xfce   :  { %v7270_v4 = vmul.f32 %v7269_v55, %v15003_v42  ;;  %v7283_v23 = vmul.f32 %v7282_v21, %v15003_v42  ;;  %v7387_v46 = vadd.f32 0.0036580483, %v7386_v34  ;;  %v15130_v25 = vadd.f32 1.0, %v7203_v17 }
 0xfcf   :  { %v7398_v59 = vadd.f32 0.014752088, %v7397_v63  ;;  %v15132_v47 = vmin.f32 %v7302_v19, 16.0  ;;  %v15135_v7 = vmul.f32 0.70710677, %v14993_v16  ;;  %v7169_v13 = vadd.f32 %v15062_v5, %v7168_v26  ;;  %v15156_v21 = vpop.f32.mrf.mxu3 }
 0xfd0   :  { %vm7171_vm13 = vweird.f32 %v15062_v5  ;;  %v15139_v6 = vadd.f32 1.0, %v7283_v23  ;;  %v7388_v27 = vmul.f32 %v7387_v46, %v15091_v53  ;;  %v8498_v11 = vclamps-f32 %v7259_v2, 1.0 }
 0xfd1   :  { %15815 = vst [vmem:[#allocation37_spill] sm:$0xff] %v15135_v7  ;;  %v7399_v0 = vmul.f32 %v7398_v59, %v15091_v53  ;;  %v7304_v61 = vmul.f32 2.1237322e-06, %v15132_v47  ;;  %v7315_v55 = vmul.f32 3.8918573e-05, %v15132_v47  ;;  %vm7170_vm14 = vweird.f32 %v15017_v54  ;;  %v15158_v34 = vpop.f32.mrf.mxu2  ;;  %v15163_v59 = vpop.f32.mrf.mxu1 }
 0xfd2   :  { %v7174_v15 = vand.u32 2147483647, %v15017_v54  ;;  %9202 = vrcp.f32 %v15139_v6  ;;  %v7342_v24 = vmul.f32 %v15135_v7, %v15135_v7  ;;  %v7478_v37 = vadd.f32 1.0, %v8495_v28  ;;  %vm15151_vm15 = vmor %vm7170_vm14, %vm7171_vm13  ;;  %v15165_v16 = vpop.f32.mrf.mxu0 }
 0xfd3   :  { %v7154_v17 = vmul.f32 %v7153_v50, %v14878_v39  ;;  %9204 = vrcp.f32 %v15130_v25  ;;  %v7271_v26 = vadd.f32 0.18741608, %v7270_v4  ;;  %v7173_v54 = vsel %vm15151_vm15, %v15062_v5, %v7169_v13 }
 0xfd4   :  { %v7389_v2 = vadd.f32 0.05243302, %v7388_v27  ;;  %v7400_v63 = vadd.f32 0.112945676, %v7399_v0  ;;  %v7305_v28 = vadd.f32 0.00028619796, %v7304_v61  ;;  %v15172_v5 = vmul.f32 %v7478_v37, %v14939_v38 }
 0xfd5   :  { %v7481_v23 = vadd.f32 1.0, %v8498_v11  ;;  %v7177_v39 = vor.u32 1.1754944e-38, %v7176_v8  ;;  %v7191_v50 = vadd.f32 0.18741608, %v7190_v30  ;;  %v7316_v46 = vadd.f32 0.001143296, %v7315_v55 }
 0xfd6   :  { %vm7175_vm0 = vcmp.eq.f32.partialorder %v7174_v15, 8.507059e+37  ;;  %v7401_v4 = vmul.f32 %v7400_v63, %v15091_v53  ;;  %v7306_v9 = vmul.f32 %v7305_v28, %v15132_v47  ;;  %v15169_v7 = vmin.f32 %v7342_v24, 16.0 }
 0xfd7   :  { %v7178_v13 = vsel %vm7175_vm0, %v7177_v39, %v7173_v54  ;;  %v7272_v27 = vmul.f32 %v7271_v26, %v15003_v42  ;;  %v7317_v8 = vmul.f32 %v7316_v46, %v15132_v47  ;;  %v7390_v11 = vmul.f32 %v7389_v2, %v15091_v53 }
 0xfd8   :  { %v9203_v30 = vpop.eup %9202  ;;  %v7402_v0 = vadd.f32 0.4994258, %v7401_v4  ;;  %v7307_v61 = vadd.f32 0.0036580483, %v7306_v9  ;;  %v7344_v55 = vmul.f32 2.1237322e-06, %v15169_v7  ;;  %v15181_v24 = vmul.f32 %v7481_v23, %v14943_v51  ;;  %v15193_v23 = vpop.f32.mrf.mxu3 }
 0xfd9   :  { %v15178_v15 = vpop.eup %9204  ;;  %v15184_v38 = vmul.f32 %v7191_v50, %v14962_v1  ;;  %v7286_v37 = vmul.f32 %v9203_v30, %v15139_v6  ;;  %v7318_v42 = vadd.f32 0.014752088, %v7317_v8  ;;  %v15190_v2 = vmul.f32 %v7178_v13, %v7154_v17  ;;  %v15195_v1 = vpop.f32.mrf.mxu2 }
 0xfda   :  { %v7403_v26 = vmul.f32 %v7402_v0, %v15091_v53  ;;  %v7308_v54 = vmul.f32 %v7307_v61, %v15132_v47  ;;  %v7345_v9 = vadd.f32 0.00028619796, %v7344_v55  ;;  %v7273_v63 = vadd.f32 1.1283791, %v7272_v27  ;;  %v15202_v13 = vpop.f32.mrf.mxu1  ;;  %v15204_v27 = vpop.f32.mrf.mxu0 }
 0xfdb   :  { %v7287_v28 = vsub.f32 1.0, %v7286_v37  ;;  %v7319_v51 = vmul.f32 %v7318_v42, %v15132_v47  ;;  %v7206_v39 = vmul.f32 %v15178_v15, %v15130_v25  ;;  %vm7291_vm1 = vweird.f32 %v9203_v30 }
 0xfdc   :  { %v7391_v50 = vadd.f32 0.18741608, %v7390_v11  ;;  %v15199_v46 = vadd.f32 1.0, %v7403_v26  ;;  %v7309_v8 = vadd.f32 0.05243302, %v7308_v54  ;;  %vm7290_vm2 = vweird.f32 %v15139_v6 }
 0xfdd   :  { %v7288_v4 = vmul.f32 %v9203_v30, %v7287_v28  ;;  %v7320_v0 = vadd.f32 0.112945676, %v7319_v51  ;;  %v7355_v17 = vmul.f32 3.8918573e-05, %v15169_v7  ;;  %v7296_v61 = vand.u32 2147483648, %v15139_v6  ;;  %vm15216_vm3 = vmor %vm7290_vm2, %vm7291_vm1 }
 0xfde   :  { %9206 = vrcp.f32 %v15199_v46  ;;  %v7346_v55 = vmul.f32 %v7345_v9, %v15169_v7  ;;  %v7294_v37 = vand.u32 2147483647, %v15139_v6  ;;  %v7897_v26 = vadd.f32 %v15054_v36, %v15020_v22 }
 0xfdf   :  { %v7289_v11 = vadd.f32 %v9203_v30, %v7288_v4  ;;  %v7321_v42 = vmul.f32 %v7320_v0, %v15132_v47  ;;  %v7392_v51 = vmul.f32 %v7391_v50, %v15091_v53  ;;  %v7356_v19 = vadd.f32 0.001143296, %v7355_v17 }
 0xfe0   :  { %v7899_v9 = vadd.f32 %v15115_v12, %v15082_v40  ;;  %v7207_v4 = vsub.f32 1.0, %v7206_v39  ;;  %v7310_v0 = vmul.f32 %v7309_v8, %v15132_v47  ;;  %v8496_v36 = vclamps-f32 %v15190_v2, 1.0  ;;  %v15231_v12 = vpop.f32.mrf.mxu3  ;;  %v15832_v2 = vld [vmem:[#allocation39_spill] sm:$0xff] }
 0xfe1   :  { %v7293_v6 = vsel %vm15216_vm3, %v9203_v30, %v7289_v11  ;;  %v7322_v22 = vadd.f32 0.4994258, %v7321_v42  ;;  %v7297_v54 = vor.u32 1.1754944e-38, %v7296_v61  ;;  %v7347_v41 = vadd.f32 0.0036580483, %v7346_v55  ;;  %v15233_v39 = vpop.f32.mrf.mxu2 }
 0xfe2   :  { %v7357_v58 = vmul.f32 %v7356_v19, %v15169_v7  ;;  %v7274_v31 = vmul.f32 %v7273_v63, %v14965_v32  ;;  %vm7295_vm4 = vcmp.eq.f32.partialorder %v7294_v37, 8.507059e+37  ;;  %v7946_v40 = vadd.f32 %v15056_v33, %v7897_v26  ;;  %v15241_v11 = vpop.f32.mrf.mxu1  ;;  %v15243_v33 = vpop.f32.mrf.mxu0 }
 0xfe3   :  { %v7323_v53 = vmul.f32 %v7322_v22, %v15132_v47  ;;  %v7298_v50 = vsel %vm7295_vm4, %v7297_v54, %v7293_v6  ;;  %v7393_v8 = vadd.f32 1.1283791, %v7392_v51  ;;  %v7948_v61 = vadd.f32 %v15117_v43, %v7899_v9  ;;  %v15820_v22 = vld [vmem:[#allocation44_spill] sm:$0xff] }
 0xfe4   :  { %v9207_v30 = vpop.eup %9206  ;;  %v7358_v17 = vadd.f32 0.014752088, %v7357_v58  ;;  %v15237_v55 = vmul.f32 %v15178_v15, %v7207_v4  ;;  %v7416_v19 = vand.u32 2147483648, %v15199_v46  ;;  %v7311_v63 = vadd.f32 0.18741608, %v7310_v0 }
 0xfe5   :  { %v7406_v32 = vmul.f32 %v9207_v30, %v15199_v46  ;;  %v15245_v37 = vadd.f32 1.0, %v7323_v53  ;;  %v7348_v42 = vmul.f32 %v7347_v41, %v15169_v7  ;;  %v7995_v43 = vadd.f32 %v15022_v29, %v7946_v40  ;;  %v15821_v53 = vld [vmem:[#allocation17_spill] sm:$0xff] }
 0xfe6   :  { %v7359_v58 = vmul.f32 %v7358_v17, %v15169_v7  ;;  %v7299_v26 = vmul.f32 %v7298_v50, %v7274_v31  ;;  %v7997_v28 = vadd.f32 %v15084_v62, %v7948_v61  ;;  %v7902_v51 = vadd.f32 %v15156_v21, %v15123_v52 }
 0xfe7   :  { %v7407_v54 = vsub.f32 1.0, %v7406_v32  ;;  %v7394_v9 = vmul.f32 %v7393_v8, %v15033_v10  ;;  %vm7410_vm5 = vweird.f32 %v15199_v46  ;;  %v7414_v4 = vand.u32 2147483647, %v15199_v46 }
 0xfe8   :  { %9208 = vrcp.f32 %v15245_v37  ;;  %vm7411_vm6 = vweird.f32 %v9207_v30  ;;  %v7417_v6 = vor.u32 1.1754944e-38, %v7416_v19  ;;  %v7360_v0 = vadd.f32 0.112945676, %v7359_v58  ;;  %v7908_v8 = vpop.f32.mrf.mxu3 }
 0xfe9   :  { %v7408_v41 = vmul.f32 %v9207_v30, %v7407_v54  ;;  %v7312_v31 = vmul.f32 %v7311_v63, %v15132_v47  ;;  %v7349_v29 = vadd.f32 0.05243302, %v7348_v42  ;;  %v8034_v62 = vadd.f32 %v7995_v43, %v15820_v22  ;;  %v7957_v17 = vpop.f32.mrf.mxu2  ;;  %vm15265_vm8 = vmor %vm7410_vm5, %vm7411_vm6 }
 0xfea   :  { %v8035_v40 = vadd.f32 %v7997_v28, %v15821_v53  ;;  %v8499_v52 = vclamps-f32 %v7299_v26, 1.0  ;;  %v7361_v10 = vmul.f32 %v7360_v0, %v15169_v7  ;;  %v7951_v50 = vadd.f32 %v15158_v34, %v7902_v51  ;;  %v7862_v58 = vpop.f32.mrf.mxu1  ;;  %v15280_v43 = vpop.f32.mrf.mxu0  ;;  %v15824_v26 = vld [vmem:[#allocation20_spill] sm:$0xff] }
 0xfeb   :  { %v7409_v21 = vadd.f32 %v9207_v30, %v7408_v41  ;;  %vm7211_vm7 = vweird.f32 %v15178_v15  ;;  %8050 = vst [vmem:[#allocation10] sm:$0xff] %v8034_v62  ;;  %v7574_v47 = vpack.c.bf16 %v14952_v35, %v14736_v14  ;;  %v7904_v32 = vadd.f32 %v15193_v23, %v15163_v59 }
 0xfec   :  { %v7577_v34 = vpack.c.bf16 %v14955_v48, %v14777_v44  ;;  %v7575_v19 = vpack.c.bf16 %v15011_v56, %v14821_v60  ;;  %vm7415_vm9 = vcmp.eq.f32.partialorder %v7414_v4, 8.507059e+37  ;;  %v7362_v63 = vadd.f32 0.4994258, %v7361_v10  ;;  %8051 = vst [vmem:[#allocation10 + $0x8] sm:$0xff] %v8035_v40 }
 0xfed   :  { %v7413_v46 = vsel %vm15265_vm8, %v9207_v30, %v7409_v21  ;;  %v8000_v42 = vadd.f32 %v15125_v49, %v7951_v50  ;;  %vm7210_vm10 = vweird.f32 %v15130_v25  ;;  %v7313_v59 = vadd.f32 1.1283791, %v7312_v31  ;;  %7876 = vmatmul.bf16.gmra.mxu1 %v7574_v47 }
 0xfee   :  { %v9209_v14 = vpop.eup %9208  ;;  %v7418_v35 = vsel %vm7415_vm9, %v7417_v6, %v7413_v46  ;;  %v7953_v44 = vadd.f32 %v15195_v1, %v7904_v32  ;;  %8023 = vmatmul.bf16.gmra.mxu0 %v7577_v34  ;;  %v7576_v60 = vpack.c.bf16 %v15107_v57, %v14932_v18  ;;  %v7482_v48 = vadd.f32 1.0, %v8499_v52  ;;  %7925 = vmatmul.bf16.gmra.mxu3 %v7575_v19  ;;  %v15825_v6 = vld [vmem:[#allocation45_spill] sm:$0xff]  ;;  %vm15314_vm14 = vmor %vm7210_vm10, %vm7211_vm7 }
 0xfef   :  { %v7419_v56 = vmul.f32 %v7418_v35, %v7394_v9  ;;  %v7326_v23 = vmul.f32 %v9209_v14, %v15245_v37  ;;  %v7350_v49 = vmul.f32 %v7349_v29, %v15169_v7  ;;  %v7363_v30 = vmul.f32 %v7362_v63, %v15169_v7 }
 0xff0   :  { %v8036_v54 = vadd.f32 %v8000_v42, %v15824_v26  ;;  %v8002_v28 = vadd.f32 %v15165_v16, %v7953_v44  ;;  %7974 = vmatmul.bf16.gmra.mxu2 %v7576_v60  ;;  %v7907_v1 = vadd.f32 %v15231_v12, %v15202_v13  ;;  %v7334_v18 = vand.u32 2147483647, %v15245_v37  ;;  %v7911_v13 = vpop.f32.mrf.mxu3 }
 0xff1   :  { %v8502_v51 = vclamps-f32 %v7419_v56, 1.0  ;;  %v7327_v4 = vsub.f32 1.0, %v7326_v23  ;;  %v7909_v57 = vadd.f32 %v7908_v8, %v15241_v11  ;;  %v7336_v9 = vand.u32 2147483648, %v15245_v37  ;;  %v7960_v12 = vpop.f32.mrf.mxu2  ;;  %v15833_v23 = vld [vmem:[#allocation34_spill] sm:$0xff] }
 0xff2   :  { %v15296_v41 = vadd.f32 1.0, %v7363_v30  ;;  %8052 = vst [vmem:[#allocation10 + $0x10] sm:$0xff] %v8036_v54  ;;  %v8037_v0 = vadd.f32 %v8002_v28, %v15825_v6  ;;  %v7956_v31 = vadd.f32 %v15233_v39, %v7907_v1  ;;  %vm7331_vm11 = vweird.f32 %v9209_v14  ;;  %v7864_v21 = vpop.f32.mrf.mxu1  ;;  %v8011_v8 = vpop.f32.mrf.mxu0  ;;  %v15834_v30 = vld [vmem:[#allocation18_spill] sm:$0xff] }
 0xff3   :  { %v7485_v16 = vadd.f32 1.0, %v8502_v51  ;;  %v7328_v29 = vmul.f32 %v9209_v14, %v7327_v4  ;;  %v7958_v22 = vadd.f32 %v7957_v17, %v7909_v57  ;;  %v7209_v62 = vadd.f32 %v15178_v15, %v15237_v55  ;;  %v15829_v17 = vld [vmem:[#allocation49_spill] sm:$0xff] }
 0xff4   :  { %v7314_v11 = vmul.f32 %v7313_v59, %v15094_v20  ;;  %vm7330_vm12 = vweird.f32 %v15245_v37  ;;  %9210 = vrcp.f32 %v15296_v41  ;;  %8053 = vst [vmem:[#allocation10 + $0x18] sm:$0xff] %v8037_v0  ;;  %v7546_v53 = vmul.f32 %v7482_v48, %v15103_v45 }
 0xff5   :  { %v7329_v40 = vadd.f32 %v9209_v14, %v7328_v29  ;;  %v8005_v39 = vadd.f32 %v15204_v27, %v7956_v31  ;;  %v8007_v52 = vadd.f32 %v15243_v33, %v7958_v22  ;;  %v7549_v10 = vmul.f32 %v7485_v16, %v15111_v3  ;;  %vm7332_vm13 = vmor %vm7330_vm12, %vm7331_vm11  ;;  %v15828_v33 = vld [vmem:[#allocation46_spill] sm:$0xff] }
 0xff6   :  { %v7337_v55 = vor.u32 1.1754944e-38, %v7336_v9  ;;  %v7351_v50 = vadd.f32 0.18741608, %v7350_v49  ;;  %v7912_v20 = vadd.f32 %v7911_v13, %v7862_v58  ;;  %vm7335_vm15 = vcmp.eq.f32.partialorder %v7334_v18, 8.507059e+37 }
 0xff7   :  { %v7333_v27 = vsel %vm7332_vm13, %v9209_v14, %v7329_v40  ;;  %v8038_v37 = vadd.f32 %v8005_v39, %v15828_v33  ;;  %v8039_v3 = vadd.f32 %v8007_v52, %v15829_v17  ;;  %v7193_v61 = vadd.f32 1.1283791, %v15184_v38  ;;  %v15838_v33 = vld [vmem:[#allocation43_spill] sm:$0xff]  ;;  %v15839_v17 = vld [vmem:[#allocation29_spill] sm:$0xff] }
 0xff8   :  { %v7213_v47 = vsel %vm15314_vm14, %v15178_v15, %v7209_v62  ;;  %v7338_v32 = vsel %vm7335_vm15, %v7337_v55, %v7333_v27  ;;  %v7961_v34 = vadd.f32 %v7960_v12, %v7912_v20  ;;  %v7479_v19 = vadd.f32 1.0, %v8496_v36  ;;  %v15836_v12 = vld [vmem:[#allocation22_spill] sm:$0xff] }
 0xff9   :  { %v15830_v46 = vand.u32 2147483647, %v15130_v25  ;;  %v15831_v63 = vand.u32 2147483648, %v15130_v25  ;;  %v7339_v58 = vmul.f32 %v7338_v32, %v7314_v11  ;;  %8054 = vst [vmem:[#allocation10 + $0x20] sm:$0xff] %v8038_v37  ;;  %v7352_v38 = vmul.f32 %v7351_v50, %v15169_v7  ;;  %v7913_v25 = vpop.f32.mrf.mxu3  ;;  %v7962_v56 = vpop.f32.mrf.mxu2  ;;  %v15840_v32 = vld [vmem:[#allocation50_spill] sm:$0xff] }
 0xffa   :  { %v9211_v14 = vpop.eup %9210  ;;  %v7578_v35 = vpack.c.bf16 %v7546_v53, %v15172_v5  ;;  %8055 = vst [vmem:[#allocation10 + $0x28] sm:$0xff] %v8039_v3  ;;  %v7581_v15 = vpack.c.bf16 %v7549_v10, %v15181_v24  ;;  %v8010_v59 = vadd.f32 %v15280_v43, %v7961_v34  ;;  %v4791_v36 = vmul.f32 0.5, %v15832_v2  ;;  %v15835_v5 = vld [vmem:[#allocation28_spill] sm:$0xff]  ;;  %v7867_v51 = vpop.f32.mrf.mxu1  ;;  %v15837_v53 = vld [vmem:[#allocation37_spill] sm:$0xff] }
 0xffb   :  { %vm7215_vm0 = vcmp.eq.f32.partialorder %v15830_v46, 8.507059e+37  ;;  %v7217_v42 = vor.u32 1.1754944e-38, %v15831_v63  ;;  %v8500_v60 = vclamps-f32 %v7339_v58, 1.0  ;;  %v7366_v48 = vmul.f32 %v9211_v14, %v15296_v41  ;;  %v8014_v16 = vpop.f32.mrf.mxu0 }
 0xffc   :  { %v7194_v49 = vmul.f32 %v7193_v61, %v15833_v23  ;;  %v8040_v26 = vadd.f32 %v8010_v59, %v15834_v30  ;;  %v7914_v7 = vadd.f32 %v7913_v25, %v7864_v21  ;;  %v7543_v54 = vmul.f32 %v7479_v19, %v4791_v36  ;;  %v15841_v59 = vld [vmem:[#allocation19_spill] sm:$0xff] }
 0xffd   :  { %v7218_v44 = vsel %vm7215_vm0, %v7217_v42, %v7213_v47  ;;  %v4795_v28 = vmul.f32 0.5, %v15835_v5  ;;  %v7483_v1 = vadd.f32 1.0, %v8500_v60  ;;  %v7367_v24 = vsub.f32 1.0, %v7366_v48  ;;  %7881 = vmatmul.bf16.gmra.mxu1 %v7578_v35  ;;  %v15842_v23 = vld [vmem:[#allocation27_spill] sm:$0xff] }
 0xffe   :  { %v7219_v43 = vmul.f32 %v7218_v44, %v7194_v49  ;;  %v7353_v4 = vadd.f32 1.1283791, %v7352_v38  ;;  %v7376_v18 = vand.u32 2147483648, %v15296_v41  ;;  %8028 = vmatmul.bf16.gmra.mxu0 %v7581_v15  ;;  %8056 = vst [vmem:[#allocation10 + $0x30] sm:$0xff] %v8040_v26  ;;  %v7963_v57 = vadd.f32 %v7962_v56, %v7914_v7 }
 0xfff   :  { %v7547_v9 = vmul.f32 %v7483_v1, %v4795_v28  ;;  %v7368_v6 = vmul.f32 %v9211_v14, %v7367_v24  ;;  %vm7371_vm1 = vweird.f32 %v9211_v14  ;;  %v7374_v0 = vand.u32 2147483647, %v15296_v41  ;;  %v15843_v24 = vld [vmem:[#allocation23_spill] sm:$0xff] }
0x1000   :  { %v8012_v31 = vadd.f32 %v8011_v8, %v7963_v57  ;;  %vm7370_vm2 = vweird.f32 %v15296_v41  ;;  %v7377_v13 = vor.u32 1.1754944e-38, %v7376_v18  ;;  %v8497_v11 = vclamps-f32 %v7219_v43, 1.0 }
0x1001   :  { %v7369_v29 = vadd.f32 %v9211_v14, %v7368_v6  ;;  %v7579_v22 = vpack.c.bf16 %v7547_v9, %v7543_v54  ;;  %vm7372_vm3 = vmor %vm7370_vm2, %vm7371_vm1  ;;  %v7354_v40 = vmul.f32 %v7353_v4, %v15837_v53  ;;  %vm7375_vm4 = vcmp.eq.f32.partialorder %v7374_v0, 8.507059e+37  ;;  %v7916_v52 = vpop.f32.mrf.mxu3  ;;  %v7965_v21 = vpop.f32.mrf.mxu2 }
0x1002   :  { %v8041_v62 = vadd.f32 %v8012_v31, %v15836_v12  ;;  %v7917_v55 = vadd.f32 %v7916_v52, %v7867_v51  ;;  %v7480_v8 = vadd.f32 1.0, %v8497_v11  ;;  %v7869_v45 = vpop.f32.mrf.mxu1  ;;  %v4792_v37 = vmul.f32 0.5, %v15838_v33  ;;  %v15844_v31 = vld [vmem:[#allocation26_spill] sm:$0xff] }
0x1003   :  { %v7373_v39 = vsel %vm7372_vm3, %v9211_v14, %v7369_v29  ;;  %7930 = vmatmul.bf16.gmra.mxu3 %v7579_v22  ;;  %v4796_v3 = vmul.f32 0.5, %v15839_v17  ;;  %v8016_v47 = vpop.f32.mrf.mxu0 }
0x1004   :  { %v7378_v10 = vsel %vm7375_vm4, %v7377_v13, %v7373_v39  ;;  %8057 = vst [vmem:[#allocation10 + $0x38] sm:$0xff] %v8041_v62  ;;  %v7966_v20 = vadd.f32 %v7965_v21, %v7917_v55  ;;  %v7544_v19 = vmul.f32 %v7480_v8, %v4792_v37 }
0x1005   :  { %v7379_v50 = vmul.f32 %v7378_v10, %v7354_v40  ;;  %v15845_v40 = vld [vmem:[#allocation32_spill] sm:$0xff] }
0x1006   :  { %v8015_v27 = vadd.f32 %v8014_v16, %v7966_v20 }
0x1007   :  { %v8501_v41 = vclamps-f32 %v7379_v50, 1.0 }
0x1008   :  { %v8042_v34 = vadd.f32 %v8015_v27, %v15840_v32  ;;  %v15846_v27 = vld [vmem:[#allocation30_spill] sm:$0xff]  ;;  %v15847_v32 = vld [vmem:[#allocation33_spill] sm:$0xff] }
0x1009   :  { %v7484_v61 = vadd.f32 1.0, %v8501_v41  ;;  %v7918_v63 = vpop.f32.mrf.mxu3  ;;  %v7967_v42 = vpop.f32.mrf.mxu2 }
0x100a   :  { %8058 = vst [vmem:[#allocation10 + $0x40] sm:$0xff] %v8042_v34  ;;  %v7919_v58 = vadd.f32 %v7918_v63, %v7869_v45  ;;  %v7872_v15 = vpop.f32.mrf.mxu1 }
0x100b   :  { %v7548_v46 = vmul.f32 %v7484_v61, %v4796_v3  ;;  %v8019_v48 = vpop.f32.mrf.mxu0 }
0x100c   :  { %v7968_v38 = vadd.f32 %v7967_v42, %v7919_v58 }
0x100d   :  { %v7580_v14 = vpack.c.bf16 %v7548_v46, %v7544_v19 }
0x100e   :  { %v8017_v35 = vadd.f32 %v8016_v47, %v7968_v38 }
0x100f   :  { %7979 = vmatmul.bf16.gmra.mxu2 %v7580_v14 }
0x1010   :  { %v8043_v2 = vadd.f32 %v8017_v35, %v15841_v59 }
0x1011   :  { %v7921_v36 = vpop.f32.mrf.mxu3  ;;  %v7970_v44 = vpop.f32.mrf.mxu2 }
0x1012   :  { %8059 = vst [vmem:[#allocation10 + $0x48] sm:$0xff] %v8043_v2  ;;  %v7922_v60 = vadd.f32 %v7921_v36, %v7872_v15  ;;  %v7874_v30 = vpop.f32.mrf.mxu1 }
0x1013   :  { %v8021_v28 = vpop.f32.mrf.mxu0 }
0x1014   :  { %v7971_v25 = vadd.f32 %v7970_v44, %v7922_v60 }
0x1016   :  { %v8020_v56 = vadd.f32 %v8019_v48, %v7971_v25 }
0x1018   :  { %v8044_v49 = vadd.f32 %v8020_v56, %v15842_v23 }
0x1019   :  { %v7923_v26 = vpop.f32.mrf.mxu3  ;;  %v7972_v54 = vpop.f32.mrf.mxu2 }
0x101a   :  { %8060 = vst [vmem:[#allocation10 + $0x50] sm:$0xff] %v8044_v49  ;;  %v7924_v7 = vadd.f32 %v7923_v26, %v7874_v30 }
0x101c   :  { %v7973_v5 = vadd.f32 %v7972_v54, %v7924_v7 }
0x101e   :  { %v8022_v1 = vadd.f32 %v8021_v28, %v7973_v5 }
0x1020   :  { %v8045_v51 = vadd.f32 %v8022_v1, %v15843_v24 }
0x1022   :  { %8061 = vst [vmem:[#allocation10 + $0x58] sm:$0xff] %v8045_v51 }
0x106a   :  { %v7877_v43 = vpop.f32.mrf.mxu1 }
0x106b   :  { %v8024_v57 = vpop.f32.mrf.mxu0 }
0x1071   :  { %v7926_v4 = vpop.f32.mrf.mxu3 }
0x1072   :  { %v7927_v18 = vadd.f32 %v7926_v4, %v7877_v43  ;;  %v7879_v29 = vpop.f32.mrf.mxu1 }
0x1073   :  { %v7975_v9 = vpop.f32.mrf.mxu2  ;;  %v8026_v11 = vpop.f32.mrf.mxu0 }
0x1074   :  { %v7976_v6 = vadd.f32 %v7975_v9, %v7927_v18 }
0x1076   :  { %v8025_v0 = vadd.f32 %v8024_v57, %v7976_v6 }
0x1078   :  { %v8046_v16 = vadd.f32 %v8025_v0, %v15844_v31 }
0x1079   :  { %v7928_v22 = vpop.f32.mrf.mxu3 }
0x107a   :  { %8062 = vst [vmem:[#allocation10 + $0x60] sm:$0xff] %v8046_v16  ;;  %v7929_v13 = vadd.f32 %v7928_v22, %v7879_v29  ;;  %v7882_v21 = vpop.f32.mrf.mxu1 }
0x107b   :  { %v7977_v12 = vpop.f32.mrf.mxu2  ;;  %v8029_v55 = vpop.f32.mrf.mxu0 }
0x107c   :  { %v7978_v62 = vadd.f32 %v7977_v12, %v7929_v13 }
0x107e   :  { %v8027_v53 = vadd.f32 %v8026_v11, %v7978_v62 }
0x1080   :  { %v8047_v39 = vadd.f32 %v8027_v53, %v15845_v40 }
0x1082   :  { %8063 = vst [vmem:[#allocation10 + $0x68] sm:$0xff] %v8047_v39  ;;  %v7884_v45 = vpop.f32.mrf.mxu1 }
0x1083   :  { %v8031_v61 = vpop.f32.mrf.mxu0 }
0x1086   :  { %v7931_v52 = vpop.f32.mrf.mxu3 }
0x1087   :  { %v7932_v10 = vadd.f32 %v7931_v52, %v7882_v21 }
0x108e   :  { %v7933_v8 = vpop.f32.mrf.mxu3 }
0x108f   :  { %v7934_v37 = vadd.f32 %v7933_v8, %v7884_v45 }
0x1092   :  { %v7980_v50 = vpop.f32.mrf.mxu2 }
0x1093   :  { %v7981_v20 = vadd.f32 %v7980_v50, %v7932_v10 }
0x1095   :  { %v8030_v41 = vadd.f32 %v8029_v55, %v7981_v20 }
0x1097   :  { %v8048_v33 = vadd.f32 %v8030_v41, %v15846_v27 }
0x1099   :  { %8064 = vst [vmem:[#allocation10 + $0x70] sm:$0xff] %v8048_v33 }
0x109a   :  { %v7982_v17 = vpop.f32.mrf.mxu2 }
0x109b   :  { %v7983_v3 = vadd.f32 %v7982_v17, %v7934_v37 }
0x109d   :  { %v8032_v47 = vadd.f32 %v8031_v61, %v7983_v3 }
0x109f   :  { %v8049_v34 = vadd.f32 %v8032_v47, %v15847_v32 }
0x10a1   :  { %8065 = vst [vmem:[#allocation10 + $0x78] sm:$0xff] %v8049_v34 }
0x10a2   :  { %8078 = dma.vmem_to_hbm [thread:$0]  %s8071_s27, 2048, %s8073_s30, [#allocation4], %s9364_s21, %s9364_s21, %s9365_s22  }
0x10a3   :  { %9358 = dma.done.wait [#allocation4], 2048  }
0x10a4   :  { %9359 = vsyncadd [#allocation4], 4294965248 }
0x10a5   :  { %8083 = vsyncpa [#allocation3], 1 }
0x10a6   :  { %8084 = vsyncpa [#allocation6], 1 }
0x10a7   :  { %8085 = vsyncpa [#allocation9], 1 }
0x10a8   :  { %8086 = vsyncpa [#allocation4], 1 }

</bundles_post_ra>
